<compile_context>
chip_gen: v6e
topology: v6e:2x2x1
jax: 0.10.0
libtpu: 0.0.40
codegen_flags: <defaults>
</compile_context>

<pallas_src>
import jax
import jax.numpy as jnp
from jax.experimental import pallas as pl
from jax.experimental.pallas import tpu as pltpu


def _brm_kernel(x_ref, w1_ref, b1_ref, w2_ref, b2_ref, o_ref, pad_a, pad_b):
    """Fused conv3x3 -> ReLU -> conv3x3 -> +residual on strip-packed slabs.

    x_ref : (NB, C, H, W) VMEM block (NB images handled by this grid step).
    w*_ref: (9*C*C,) f32 SMEM, flat index ((ky*3+kx)*C + ci)*C + co.
    b*_ref: (C,)     f32 SMEM.
    o_ref : (1, C, H, LANES) VMEM block; image n / column w lives at lane
            n*(W+2) + 1 + w, all other lanes are don't-care.
    pad_a : (C, H+2, LANES) VMEM scratch = zero-padded strip-packed input.
    pad_b : (C, H+2, LANES) VMEM scratch = zero-padded strip-packed
            relu(conv1(x)).
    """
    nb, C, H, W = x_ref.shape
    _, _, LANES = pad_a.shape
    S = W + 2                                            # lane stride per strip

    # Interior-lane mask: lane g is a real pixel column of some image strip.
    lane = jax.lax.broadcasted_iota(jnp.int32, (1, LANES), 1)
    interior = (lane >= 1) & (lane < 1 + W)
    for n in range(1, nb):
        lo = n * S + 1
        interior = interior | ((lane >= lo) & (lane < lo + W))

    # ---- build the zero-padded, strip-packed input (conv1 operand) --------
    pad_a[...] = jnp.zeros(pad_a.shape, jnp.float32)
    for n in range(nb):
        pad_a[:, 1:H + 1, n * S + 1:n * S + 1 + W] = (
            x_ref[n].astype(jnp.float32))
    # pad_b rows 1..H are fully rewritten below (interior-masked store also
    # re-zeroes its column halo); only the top/bottom halo rows need clearing.
    pad_b[:, 0, :] = jnp.zeros((C, LANES), jnp.float32)
    pad_b[:, H + 1, :] = jnp.zeros((C, LANES), jnp.float32)

    def conv3x3(src, w_ref, b_ref):
        """3x3 conv over a padded strip-packed scratch; returns C (H, LANES)
        f32 slabs with bias included.

        One lane-aligned row-slab load per (ci, ky) = 3*C loads per conv; the
        kx shifts come from pltpu.roll (XLU).  Channel mixing is VPU
        scalar-broadcast MACs -- C is tiny, the MXU would be latency-bound.
        """
        accs = [jnp.full((H, LANES), b_ref[co], jnp.float32)
                for co in range(C)]
        for ky in range(3):
            for ci in range(C):
                slab = src[ci, ky:ky + H, :]                  # (H, LANES)
                taps = (
                    pltpu.roll(slab, 1, axis=1),              # kx=0: w-1 tap
                    slab,                                     # kx=1: center
                    pltpu.roll(slab, LANES - 1, axis=1),      # kx=2: w+1 tap
                )
                for co in range(C):
                    a = accs[co]
                    for kx in range(3):
                        w_s = w_ref[((ky * 3 + kx) * C + ci) * C + co]
                        a = a + w_s * taps[kx]
                    accs[co] = a
        return accs

    # ---- conv1 -> ReLU -> strip-packed operand of conv2 -------------------
    acc1 = conv3x3(pad_a, w1_ref, b1_ref)
    for co in range(C):
        r = jnp.maximum(acc1[co], 0.0)
        # Interior lanes get relu(conv1); halo columns, inter-strip gaps and
        # lane padding are re-zeroed, so pad_b is exactly the zero padding of
        # nn.Conv2d(padding=1) applied to relu(conv1(x)).
        pad_b[co, 1:H + 1, :] = jnp.where(interior, r, 0.0)

    # ---- conv2 -> + residual -> output slab (full-width unmasked store) ---
    acc2 = conv3x3(pad_b, w2_ref, b2_ref)
    for co in range(C):
        o_ref[0, co] = (acc2[co] + pad_a[co, 1:H + 1, :]).astype(o_ref.dtype)


def boundary_refine_nchw(x, w1_oihw, b1, w2_oihw, b2, *, images_per_block=None):
    """Matches the PyTorch _BoundaryRefineModule: NCHW input, OIHW weights."""
    n, c, h, w = x.shape
    nb = n if images_per_block is None else images_per_block
    assert n % nb == 0, "images_per_block must divide the batch"
    g = n // nb
    s = w + 2
    lanes = max(128, ((nb * s + 127) // 128) * 128)

    # OIHW -> (ky, kx, cin, cout), flattened for cheap scalar SMEM reads.
    w1f = jnp.transpose(w1_oihw, (2, 3, 1, 0)).reshape(-1)
    w2f = jnp.transpose(w2_oihw, (2, 3, 1, 0)).reshape(-1)

    def smem_spec():
        return pl.BlockSpec(memory_space=pltpu.MemorySpace.SMEM)

    packed = pl.pallas_call(
        _brm_kernel,
        out_shape=jax.ShapeDtypeStruct((g, c, h, lanes), x.dtype),
        grid_spec=pltpu.PrefetchScalarGridSpec(
            num_scalar_prefetch=0,
            grid=(g,),
            in_specs=[
                pl.BlockSpec((nb, c, h, w), lambda i: (i, 0, 0, 0)),
                smem_spec(), smem_spec(), smem_spec(), smem_spec(),
            ],
            out_specs=pl.BlockSpec((1, c, h, lanes), lambda i: (i, 0, 0, 0)),
            scratch_shapes=[
                pltpu.VMEM((c, h + 2, lanes), jnp.float32),   # padded x
                pltpu.VMEM((c, h + 2, lanes), jnp.float32),   # padded relu(conv1)
            ],
        ),
        compiler_params=pltpu.CompilerParams(
            dimension_semantics=("parallel",)),
    )(x, w1f, b1, w2f, b2)

    # Un-pack the lane strips: (g, c, h, lanes) -> (n, c, h, w).
    strips = packed[..., :nb * s].reshape(g, c, h, nb, s)[..., 1:w + 1]
    return jnp.transpose(strips, (0, 3, 1, 2, 4)).reshape(n, c, h, w)


def _reference_nchw(x, w1, b1, w2, b2):
    """Pure-JAX reference mirroring the PyTorch forward (NCHW, OIHW)."""
    dn = jax.lax.conv_dimension_numbers(x.shape, w1.shape,
                                        ("NCHW", "OIHW", "NCHW"))
    r = jax.lax.conv_general_dilated(x, w1, (1, 1), ((1, 1), (1, 1)),
                                     dimension_numbers=dn)
    r = r + b1[None, :, None, None]
    r = jnp.maximum(r, 0.0)
    r = jax.lax.conv_general_dilated(r, w2, (1, 1), ((1, 1), (1, 1)),
                                     dimension_numbers=dn)
    r = r + b2[None, :, None, None]
    return x + r


if __name__ == "__main__":
    N, C, H, W = 2, 4, 16, 16

    key = jax.random.PRNGKey(0)
    kx, kw1, kb1, kw2, kb2 = jax.random.split(key, 5)

    x = jax.random.normal(kx, (N, C, H, W), dtype=jnp.float32)
    # PyTorch Conv2d(dim, dim, 3) weight/bias shapes (OIHW / (C,)).
    w1 = 0.1 * jax.random.normal(kw1, (C, C, 3, 3), dtype=jnp.float32)
    b1 = 0.1 * jax.random.normal(kb1, (C,), dtype=jnp.float32)
    w2 = 0.1 * jax.random.normal(kw2, (C, C, 3, 3), dtype=jnp.float32)
    b2 = 0.1 * jax.random.normal(kb2, (C,), dtype=jnp.float32)

    out = jax.block_until_ready(boundary_refine_nchw(x, w1, b1, w2, b2))
    ref = _reference_nchw(x, w1, b1, w2, b2)

    assert out.shape == (N, C, H, W)
    err = jnp.max(jnp.abs(out - ref))
    assert jnp.allclose(out, ref, atol=1e-4, rtol=1e-4), (
        "max abs err = %s" % err)

    print("KERNEL_OK")
</pallas_src>

<mosaic_0001>
module attributes {stable_mosaic.version = 11 : i64} {
  func.func @_brm_kernel(%arg0: i32, %arg1: memref<2x4x16x16xf32, #tpu.memory_space<vmem>>, %arg2: memref<144xf32, #tpu.memory_space<smem>>, %arg3: memref<4xf32, #tpu.memory_space<smem>>, %arg4: memref<144xf32, #tpu.memory_space<smem>>, %arg5: memref<4xf32, #tpu.memory_space<smem>>, %arg6: memref<1x4x16x128xf32, #tpu.memory_space<vmem>>, %arg7: memref<4x18x128xf32, #tpu.memory_space<vmem>>, %arg8: memref<4x18x128xf32, #tpu.memory_space<vmem>>) attributes {dimension_semantics = [#tpu.dimension_semantics<parallel>], iteration_bounds = array<i64: 1>, scalar_prefetch = 0 : i64, scratch_operands = 2 : i64, tpu.core_type = #tpu.core_type<tc>, window_params = [{transform_indices = @transform_0, window_bounds = array<i64: 2, 4, 16, 16>}, {transform_indices = @transform_1, window_bounds = array<i64: 144>}, {transform_indices = @transform_2, window_bounds = array<i64: 4>}, {transform_indices = @transform_3, window_bounds = array<i64: 144>}, {transform_indices = @transform_4, window_bounds = array<i64: 4>}, {transform_indices = @transform_5, window_bounds = array<i64: 1, 4, 16, 128>}]} {
    %0 = tpu.iota {dimensions = array<i32: 1>} : vector<1x128xi32>
    %c1_i32 = arith.constant 1 : i32
    %1 = vector.broadcast %c1_i32 : i32 to vector<1x128xi32>
    %2 = arith.cmpi sge, %0, %1 : vector<1x128xi32>
    %c17_i32 = arith.constant 17 : i32
    %3 = vector.broadcast %c17_i32 : i32 to vector<1x128xi32>
    %4 = arith.cmpi slt, %0, %3 : vector<1x128xi32>
    %5 = arith.andi %2, %4 : vector<1x128xi1>
    %c19_i32 = arith.constant 19 : i32
    %6 = vector.broadcast %c19_i32 : i32 to vector<1x128xi32>
    %7 = arith.cmpi sge, %0, %6 : vector<1x128xi32>
    %c35_i32 = arith.constant 35 : i32
    %8 = vector.broadcast %c35_i32 : i32 to vector<1x128xi32>
    %9 = arith.cmpi slt, %0, %8 : vector<1x128xi32>
    %10 = arith.andi %7, %9 : vector<1x128xi1>
    %11 = arith.ori %5, %10 : vector<1x128xi1>
    %cst = arith.constant 0.000000e+00 : f32
    %12 = vector.broadcast %cst : f32 to vector<4x18x128xf32>
    %c0 = arith.constant 0 : index
    %c0_0 = arith.constant 0 : index
    %c0_1 = arith.constant 0 : index
    %13 = vector.load %arg7[%c0, %c0_0, %c0_1] : memref<4x18x128xf32, #tpu.memory_space<vmem>>, vector<4x18x128xf32>
    tpu.vector_store %arg7[%c0, %c0_0, %c0_1], %12 {strides = array<i32>} : memref<4x18x128xf32, #tpu.memory_space<vmem>>, vector<4x18x128xf32>,
    %c0_2 = arith.constant 0 : index
    %c0_3 = arith.constant 0 : index
    %c0_4 = arith.constant 0 : index
    %c0_5 = arith.constant 0 : index
    %14 = vector.load %arg1[%c0_2, %c0_3, %c0_4, %c0_5] : memref<2x4x16x16xf32, #tpu.memory_space<vmem>>, vector<1x4x16x16xf32>
    %15 = vector.shape_cast %14 : vector<1x4x16x16xf32> to vector<4x16x16xf32>
    %c0_6 = arith.constant 0 : index
    %c1 = arith.constant 1 : index
    %c1_7 = arith.constant 1 : index
    %16 = vector.load %arg7[%c0_6, %c1, %c1_7] : memref<4x18x128xf32, #tpu.memory_space<vmem>>, vector<4x16x16xf32>
    tpu.vector_store %arg7[%c0_6, %c1, %c1_7], %15 {strides = array<i32>} : memref<4x18x128xf32, #tpu.memory_space<vmem>>, vector<4x16x16xf32>,
    %c1_8 = arith.constant 1 : index
    %c0_9 = arith.constant 0 : index
    %c0_10 = arith.constant 0 : index
    %c0_11 = arith.constant 0 : index
    %17 = vector.load %arg1[%c1_8, %c0_9, %c0_10, %c0_11] : memref<2x4x16x16xf32, #tpu.memory_space<vmem>>, vector<1x4x16x16xf32>
    %18 = vector.shape_cast %17 : vector<1x4x16x16xf32> to vector<4x16x16xf32>
    %c0_12 = arith.constant 0 : index
    %c1_13 = arith.constant 1 : index
    %c19 = arith.constant 19 : index
    %19 = vector.load %arg7[%c0_12, %c1_13, %c19] : memref<4x18x128xf32, #tpu.memory_space<vmem>>, vector<4x16x16xf32>
    tpu.vector_store %arg7[%c0_12, %c1_13, %c19], %18 {strides = array<i32>} : memref<4x18x128xf32, #tpu.memory_space<vmem>>, vector<4x16x16xf32>,
    %cst_14 = arith.constant 0.000000e+00 : f32
    %20 = vector.broadcast %cst_14 : f32 to vector<4x128xf32>
    %c0_15 = arith.constant 0 : index
    %c0_16 = arith.constant 0 : index
    %c0_17 = arith.constant 0 : index
    %21 = vector.load %arg8[%c0_15, %c0_16, %c0_17] : memref<4x18x128xf32, #tpu.memory_space<vmem>>, vector<4x1x128xf32>
    %22 = vector.shape_cast %21 : vector<4x1x128xf32> to vector<4x128xf32>
    %23 = vector.shape_cast %20 : vector<4x128xf32> to vector<4x1x128xf32>
    tpu.vector_store %arg8[%c0_15, %c0_16, %c0_17], %23 {strides = array<i32>} : memref<4x18x128xf32, #tpu.memory_space<vmem>>, vector<4x1x128xf32>,
    %cst_18 = arith.constant 0.000000e+00 : f32
    %24 = vector.broadcast %cst_18 : f32 to vector<4x128xf32>
    %c0_19 = arith.constant 0 : index
    %c17 = arith.constant 17 : index
    %c0_20 = arith.constant 0 : index
    %25 = vector.load %arg8[%c0_19, %c17, %c0_20] : memref<4x18x128xf32, #tpu.memory_space<vmem>>, vector<4x1x128xf32>
    %26 = vector.shape_cast %25 : vector<4x1x128xf32> to vector<4x128xf32>
    %27 = vector.shape_cast %24 : vector<4x128xf32> to vector<4x1x128xf32>
    tpu.vector_store %arg8[%c0_19, %c17, %c0_20], %27 {strides = array<i32>} : memref<4x18x128xf32, #tpu.memory_space<vmem>>, vector<4x1x128xf32>,
    %c0_21 = arith.constant 0 : index
    %28 = memref.load %arg3[%c0_21] : memref<4xf32, #tpu.memory_space<smem>>
    %29 = vector.broadcast %28 : f32 to vector<16x128xf32>
    %c1_22 = arith.constant 1 : index
    %30 = memref.load %arg3[%c1_22] : memref<4xf32, #tpu.memory_space<smem>>
    %31 = vector.broadcast %30 : f32 to vector<16x128xf32>
    %c2 = arith.constant 2 : index
    %32 = memref.load %arg3[%c2] : memref<4xf32, #tpu.memory_space<smem>>
    %33 = vector.broadcast %32 : f32 to vector<16x128xf32>
    %c3 = arith.constant 3 : index
    %34 = memref.load %arg3[%c3] : memref<4xf32, #tpu.memory_space<smem>>
    %35 = vector.broadcast %34 : f32 to vector<16x128xf32>
    %c0_23 = arith.constant 0 : index
    %c0_24 = arith.constant 0 : index
    %c0_25 = arith.constant 0 : index
    %36 = vector.load %arg7[%c0_23, %c0_24, %c0_25] : memref<4x18x128xf32, #tpu.memory_space<vmem>>, vector<1x16x128xf32>
    %37 = vector.shape_cast %36 : vector<1x16x128xf32> to vector<16x128xf32>
    %c1_i32_26 = arith.constant 1 : i32
    %38 = tpu.dynamic_rotate %37 by %c1_i32_26 dim 1 : vector<16x128xf32>, i32 -> vector<16x128xf32>
    %c127_i32 = arith.constant 127 : i32
    %39 = tpu.dynamic_rotate %37 by %c127_i32 dim 1 : vector<16x128xf32>, i32 -> vector<16x128xf32>
    %c0_27 = arith.constant 0 : index
    %40 = memref.load %arg2[%c0_27] : memref<144xf32, #tpu.memory_space<smem>>
    %41 = vector.broadcast %40 : f32 to vector<16x128xf32>
    %42 = arith.mulf %41, %38 : vector<16x128xf32>
    %43 = arith.addf %29, %42 : vector<16x128xf32>
    %c16 = arith.constant 16 : index
    %44 = memref.load %arg2[%c16] : memref<144xf32, #tpu.memory_space<smem>>
    %45 = vector.broadcast %44 : f32 to vector<16x128xf32>
    %46 = arith.mulf %45, %37 : vector<16x128xf32>
    %47 = arith.addf %43, %46 : vector<16x128xf32>
    %c32 = arith.constant 32 : index
    %48 = memref.load %arg2[%c32] : memref<144xf32, #tpu.memory_space<smem>>
    %49 = vector.broadcast %48 : f32 to vector<16x128xf32>
    %50 = arith.mulf %49, %39 : vector<16x128xf32>
    %51 = arith.addf %47, %50 : vector<16x128xf32>
    %c1_28 = arith.constant 1 : index
    %52 = memref.load %arg2[%c1_28] : memref<144xf32, #tpu.memory_space<smem>>
    %53 = vector.broadcast %52 : f32 to vector<16x128xf32>
    %54 = arith.mulf %53, %38 : vector<16x128xf32>
    %55 = arith.addf %31, %54 : vector<16x128xf32>
    %c17_29 = arith.constant 17 : index
    %56 = memref.load %arg2[%c17_29] : memref<144xf32, #tpu.memory_space<smem>>
    %57 = vector.broadcast %56 : f32 to vector<16x128xf32>
    %58 = arith.mulf %57, %37 : vector<16x128xf32>
    %59 = arith.addf %55, %58 : vector<16x128xf32>
    %c33 = arith.constant 33 : index
    %60 = memref.load %arg2[%c33] : memref<144xf32, #tpu.memory_space<smem>>
    %61 = vector.broadcast %60 : f32 to vector<16x128xf32>
    %62 = arith.mulf %61, %39 : vector<16x128xf32>
    %63 = arith.addf %59, %62 : vector<16x128xf32>
    %c2_30 = arith.constant 2 : index
    %64 = memref.load %arg2[%c2_30] : memref<144xf32, #tpu.memory_space<smem>>
    %65 = vector.broadcast %64 : f32 to vector<16x128xf32>
    %66 = arith.mulf %65, %38 : vector<16x128xf32>
    %67 = arith.addf %33, %66 : vector<16x128xf32>
    %c18 = arith.constant 18 : index
    %68 = memref.load %arg2[%c18] : memref<144xf32, #tpu.memory_space<smem>>
    %69 = vector.broadcast %68 : f32 to vector<16x128xf32>
    %70 = arith.mulf %69, %37 : vector<16x128xf32>
    %71 = arith.addf %67, %70 : vector<16x128xf32>
    %c34 = arith.constant 34 : index
    %72 = memref.load %arg2[%c34] : memref<144xf32, #tpu.memory_space<smem>>
    %73 = vector.broadcast %72 : f32 to vector<16x128xf32>
    %74 = arith.mulf %73, %39 : vector<16x128xf32>
    %75 = arith.addf %71, %74 : vector<16x128xf32>
    %c3_31 = arith.constant 3 : index
    %76 = memref.load %arg2[%c3_31] : memref<144xf32, #tpu.memory_space<smem>>
    %77 = vector.broadcast %76 : f32 to vector<16x128xf32>
    %78 = arith.mulf %77, %38 : vector<16x128xf32>
    %79 = arith.addf %35, %78 : vector<16x128xf32>
    %c19_32 = arith.constant 19 : index
    %80 = memref.load %arg2[%c19_32] : memref<144xf32, #tpu.memory_space<smem>>
    %81 = vector.broadcast %80 : f32 to vector<16x128xf32>
    %82 = arith.mulf %81, %37 : vector<16x128xf32>
    %83 = arith.addf %79, %82 : vector<16x128xf32>
    %c35 = arith.constant 35 : index
    %84 = memref.load %arg2[%c35] : memref<144xf32, #tpu.memory_space<smem>>
    %85 = vector.broadcast %84 : f32 to vector<16x128xf32>
    %86 = arith.mulf %85, %39 : vector<16x128xf32>
    %87 = arith.addf %83, %86 : vector<16x128xf32>
    %c1_33 = arith.constant 1 : index
    %c0_34 = arith.constant 0 : index
    %c0_35 = arith.constant 0 : index
    %88 = vector.load %arg7[%c1_33, %c0_34, %c0_35] : memref<4x18x128xf32, #tpu.memory_space<vmem>>, vector<1x16x128xf32>
    %89 = vector.shape_cast %88 : vector<1x16x128xf32> to vector<16x128xf32>
    %c1_i32_36 = arith.constant 1 : i32
    %90 = tpu.dynamic_rotate %89 by %c1_i32_36 dim 1 : vector<16x128xf32>, i32 -> vector<16x128xf32>
    %c127_i32_37 = arith.constant 127 : i32
    %91 = tpu.dynamic_rotate %89 by %c127_i32_37 dim 1 : vector<16x128xf32>, i32 -> vector<16x128xf32>
    %c4 = arith.constant 4 : index
    %92 = memref.load %arg2[%c4] : memref<144xf32, #tpu.memory_space<smem>>
    %93 = vector.broadcast %92 : f32 to vector<16x128xf32>
    %94 = arith.mulf %93, %90 : vector<16x128xf32>
    %95 = arith.addf %51, %94 : vector<16x128xf32>
    %c20 = arith.constant 20 : index
    %96 = memref.load %arg2[%c20] : memref<144xf32, #tpu.memory_space<smem>>
    %97 = vector.broadcast %96 : f32 to vector<16x128xf32>
    %98 = arith.mulf %97, %89 : vector<16x128xf32>
    %99 = arith.addf %95, %98 : vector<16x128xf32>
    %c36 = arith.constant 36 : index
    %100 = memref.load %arg2[%c36] : memref<144xf32, #tpu.memory_space<smem>>
    %101 = vector.broadcast %100 : f32 to vector<16x128xf32>
    %102 = arith.mulf %101, %91 : vector<16x128xf32>
    %103 = arith.addf %99, %102 : vector<16x128xf32>
    %c5 = arith.constant 5 : index
    %104 = memref.load %arg2[%c5] : memref<144xf32, #tpu.memory_space<smem>>
    %105 = vector.broadcast %104 : f32 to vector<16x128xf32>
    %106 = arith.mulf %105, %90 : vector<16x128xf32>
    %107 = arith.addf %63, %106 : vector<16x128xf32>
    %c21 = arith.constant 21 : index
    %108 = memref.load %arg2[%c21] : memref<144xf32, #tpu.memory_space<smem>>
    %109 = vector.broadcast %108 : f32 to vector<16x128xf32>
    %110 = arith.mulf %109, %89 : vector<16x128xf32>
    %111 = arith.addf %107, %110 : vector<16x128xf32>
    %c37 = arith.constant 37 : index
    %112 = memref.load %arg2[%c37] : memref<144xf32, #tpu.memory_space<smem>>
    %113 = vector.broadcast %112 : f32 to vector<16x128xf32>
    %114 = arith.mulf %113, %91 : vector<16x128xf32>
    %115 = arith.addf %111, %114 : vector<16x128xf32>
    %c6 = arith.constant 6 : index
    %116 = memref.load %arg2[%c6] : memref<144xf32, #tpu.memory_space<smem>>
    %117 = vector.broadcast %116 : f32 to vector<16x128xf32>
    %118 = arith.mulf %117, %90 : vector<16x128xf32>
    %119 = arith.addf %75, %118 : vector<16x128xf32>
    %c22 = arith.constant 22 : index
    %120 = memref.load %arg2[%c22] : memref<144xf32, #tpu.memory_space<smem>>
    %121 = vector.broadcast %120 : f32 to vector<16x128xf32>
    %122 = arith.mulf %121, %89 : vector<16x128xf32>
    %123 = arith.addf %119, %122 : vector<16x128xf32>
    %c38 = arith.constant 38 : index
    %124 = memref.load %arg2[%c38] : memref<144xf32, #tpu.memory_space<smem>>
    %125 = vector.broadcast %124 : f32 to vector<16x128xf32>
    %126 = arith.mulf %125, %91 : vector<16x128xf32>
    %127 = arith.addf %123, %126 : vector<16x128xf32>
    %c7 = arith.constant 7 : index
    %128 = memref.load %arg2[%c7] : memref<144xf32, #tpu.memory_space<smem>>
    %129 = vector.broadcast %128 : f32 to vector<16x128xf32>
    %130 = arith.mulf %129, %90 : vector<16x128xf32>
    %131 = arith.addf %87, %130 : vector<16x128xf32>
    %c23 = arith.constant 23 : index
    %132 = memref.load %arg2[%c23] : memref<144xf32, #tpu.memory_space<smem>>
    %133 = vector.broadcast %132 : f32 to vector<16x128xf32>
    %134 = arith.mulf %133, %89 : vector<16x128xf32>
    %135 = arith.addf %131, %134 : vector<16x128xf32>
    %c39 = arith.constant 39 : index
    %136 = memref.load %arg2[%c39] : memref<144xf32, #tpu.memory_space<smem>>
    %137 = vector.broadcast %136 : f32 to vector<16x128xf32>
    %138 = arith.mulf %137, %91 : vector<16x128xf32>
    %139 = arith.addf %135, %138 : vector<16x128xf32>
    %c2_38 = arith.constant 2 : index
    %c0_39 = arith.constant 0 : index
    %c0_40 = arith.constant 0 : index
    %140 = vector.load %arg7[%c2_38, %c0_39, %c0_40] : memref<4x18x128xf32, #tpu.memory_space<vmem>>, vector<1x16x128xf32>
    %141 = vector.shape_cast %140 : vector<1x16x128xf32> to vector<16x128xf32>
    %c1_i32_41 = arith.constant 1 : i32
    %142 = tpu.dynamic_rotate %141 by %c1_i32_41 dim 1 : vector<16x128xf32>, i32 -> vector<16x128xf32>
    %c127_i32_42 = arith.constant 127 : i32
    %143 = tpu.dynamic_rotate %141 by %c127_i32_42 dim 1 : vector<16x128xf32>, i32 -> vector<16x128xf32>
    %c8 = arith.constant 8 : index
    %144 = memref.load %arg2[%c8] : memref<144xf32, #tpu.memory_space<smem>>
    %145 = vector.broadcast %144 : f32 to vector<16x128xf32>
    %146 = arith.mulf %145, %142 : vector<16x128xf32>
    %147 = arith.addf %103, %146 : vector<16x128xf32>
    %c24 = arith.constant 24 : index
    %148 = memref.load %arg2[%c24] : memref<144xf32, #tpu.memory_space<smem>>
    %149 = vector.broadcast %148 : f32 to vector<16x128xf32>
    %150 = arith.mulf %149, %141 : vector<16x128xf32>
    %151 = arith.addf %147, %150 : vector<16x128xf32>
    %c40 = arith.constant 40 : index
    %152 = memref.load %arg2[%c40] : memref<144xf32, #tpu.memory_space<smem>>
    %153 = vector.broadcast %152 : f32 to vector<16x128xf32>
    %154 = arith.mulf %153, %143 : vector<16x128xf32>
    %155 = arith.addf %151, %154 : vector<16x128xf32>
    %c9 = arith.constant 9 : index
    %156 = memref.load %arg2[%c9] : memref<144xf32, #tpu.memory_space<smem>>
    %157 = vector.broadcast %156 : f32 to vector<16x128xf32>
    %158 = arith.mulf %157, %142 : vector<16x128xf32>
    %159 = arith.addf %115, %158 : vector<16x128xf32>
    %c25 = arith.constant 25 : index
    %160 = memref.load %arg2[%c25] : memref<144xf32, #tpu.memory_space<smem>>
    %161 = vector.broadcast %160 : f32 to vector<16x128xf32>
    %162 = arith.mulf %161, %141 : vector<16x128xf32>
    %163 = arith.addf %159, %162 : vector<16x128xf32>
    %c41 = arith.constant 41 : index
    %164 = memref.load %arg2[%c41] : memref<144xf32, #tpu.memory_space<smem>>
    %165 = vector.broadcast %164 : f32 to vector<16x128xf32>
    %166 = arith.mulf %165, %143 : vector<16x128xf32>
    %167 = arith.addf %163, %166 : vector<16x128xf32>
    %c10 = arith.constant 10 : index
    %168 = memref.load %arg2[%c10] : memref<144xf32, #tpu.memory_space<smem>>
    %169 = vector.broadcast %168 : f32 to vector<16x128xf32>
    %170 = arith.mulf %169, %142 : vector<16x128xf32>
    %171 = arith.addf %127, %170 : vector<16x128xf32>
    %c26 = arith.constant 26 : index
    %172 = memref.load %arg2[%c26] : memref<144xf32, #tpu.memory_space<smem>>
    %173 = vector.broadcast %172 : f32 to vector<16x128xf32>
    %174 = arith.mulf %173, %141 : vector<16x128xf32>
    %175 = arith.addf %171, %174 : vector<16x128xf32>
    %c42 = arith.constant 42 : index
    %176 = memref.load %arg2[%c42] : memref<144xf32, #tpu.memory_space<smem>>
    %177 = vector.broadcast %176 : f32 to vector<16x128xf32>
    %178 = arith.mulf %177, %143 : vector<16x128xf32>
    %179 = arith.addf %175, %178 : vector<16x128xf32>
    %c11 = arith.constant 11 : index
    %180 = memref.load %arg2[%c11] : memref<144xf32, #tpu.memory_space<smem>>
    %181 = vector.broadcast %180 : f32 to vector<16x128xf32>
    %182 = arith.mulf %181, %142 : vector<16x128xf32>
    %183 = arith.addf %139, %182 : vector<16x128xf32>
    %c27 = arith.constant 27 : index
    %184 = memref.load %arg2[%c27] : memref<144xf32, #tpu.memory_space<smem>>
    %185 = vector.broadcast %184 : f32 to vector<16x128xf32>
    %186 = arith.mulf %185, %141 : vector<16x128xf32>
    %187 = arith.addf %183, %186 : vector<16x128xf32>
    %c43 = arith.constant 43 : index
    %188 = memref.load %arg2[%c43] : memref<144xf32, #tpu.memory_space<smem>>
    %189 = vector.broadcast %188 : f32 to vector<16x128xf32>
    %190 = arith.mulf %189, %143 : vector<16x128xf32>
    %191 = arith.addf %187, %190 : vector<16x128xf32>
    %c3_43 = arith.constant 3 : index
    %c0_44 = arith.constant 0 : index
    %c0_45 = arith.constant 0 : index
    %192 = vector.load %arg7[%c3_43, %c0_44, %c0_45] : memref<4x18x128xf32, #tpu.memory_space<vmem>>, vector<1x16x128xf32>
    %193 = vector.shape_cast %192 : vector<1x16x128xf32> to vector<16x128xf32>
    %c1_i32_46 = arith.constant 1 : i32
    %194 = tpu.dynamic_rotate %193 by %c1_i32_46 dim 1 : vector<16x128xf32>, i32 -> vector<16x128xf32>
    %c127_i32_47 = arith.constant 127 : i32
    %195 = tpu.dynamic_rotate %193 by %c127_i32_47 dim 1 : vector<16x128xf32>, i32 -> vector<16x128xf32>
    %c12 = arith.constant 12 : index
    %196 = memref.load %arg2[%c12] : memref<144xf32, #tpu.memory_space<smem>>
    %197 = vector.broadcast %196 : f32 to vector<16x128xf32>
    %198 = arith.mulf %197, %194 : vector<16x128xf32>
    %199 = arith.addf %155, %198 : vector<16x128xf32>
    %c28 = arith.constant 28 : index
    %200 = memref.load %arg2[%c28] : memref<144xf32, #tpu.memory_space<smem>>
    %201 = vector.broadcast %200 : f32 to vector<16x128xf32>
    %202 = arith.mulf %201, %193 : vector<16x128xf32>
    %203 = arith.addf %199, %202 : vector<16x128xf32>
    %c44 = arith.constant 44 : index
    %204 = memref.load %arg2[%c44] : memref<144xf32, #tpu.memory_space<smem>>
    %205 = vector.broadcast %204 : f32 to vector<16x128xf32>
    %206 = arith.mulf %205, %195 : vector<16x128xf32>
    %207 = arith.addf %203, %206 : vector<16x128xf32>
    %c13 = arith.constant 13 : index
    %208 = memref.load %arg2[%c13] : memref<144xf32, #tpu.memory_space<smem>>
    %209 = vector.broadcast %208 : f32 to vector<16x128xf32>
    %210 = arith.mulf %209, %194 : vector<16x128xf32>
    %211 = arith.addf %167, %210 : vector<16x128xf32>
    %c29 = arith.constant 29 : index
    %212 = memref.load %arg2[%c29] : memref<144xf32, #tpu.memory_space<smem>>
    %213 = vector.broadcast %212 : f32 to vector<16x128xf32>
    %214 = arith.mulf %213, %193 : vector<16x128xf32>
    %215 = arith.addf %211, %214 : vector<16x128xf32>
    %c45 = arith.constant 45 : index
    %216 = memref.load %arg2[%c45] : memref<144xf32, #tpu.memory_space<smem>>
    %217 = vector.broadcast %216 : f32 to vector<16x128xf32>
    %218 = arith.mulf %217, %195 : vector<16x128xf32>
    %219 = arith.addf %215, %218 : vector<16x128xf32>
    %c14 = arith.constant 14 : index
    %220 = memref.load %arg2[%c14] : memref<144xf32, #tpu.memory_space<smem>>
    %221 = vector.broadcast %220 : f32 to vector<16x128xf32>
    %222 = arith.mulf %221, %194 : vector<16x128xf32>
    %223 = arith.addf %179, %222 : vector<16x128xf32>
    %c30 = arith.constant 30 : index
    %224 = memref.load %arg2[%c30] : memref<144xf32, #tpu.memory_space<smem>>
    %225 = vector.broadcast %224 : f32 to vector<16x128xf32>
    %226 = arith.mulf %225, %193 : vector<16x128xf32>
    %227 = arith.addf %223, %226 : vector<16x128xf32>
    %c46 = arith.constant 46 : index
    %228 = memref.load %arg2[%c46] : memref<144xf32, #tpu.memory_space<smem>>
    %229 = vector.broadcast %228 : f32 to vector<16x128xf32>
    %230 = arith.mulf %229, %195 : vector<16x128xf32>
    %231 = arith.addf %227, %230 : vector<16x128xf32>
    %c15 = arith.constant 15 : index
    %232 = memref.load %arg2[%c15] : memref<144xf32, #tpu.memory_space<smem>>
    %233 = vector.broadcast %232 : f32 to vector<16x128xf32>
    %234 = arith.mulf %233, %194 : vector<16x128xf32>
    %235 = arith.addf %191, %234 : vector<16x128xf32>
    %c31 = arith.constant 31 : index
    %236 = memref.load %arg2[%c31] : memref<144xf32, #tpu.memory_space<smem>>
    %237 = vector.broadcast %236 : f32 to vector<16x128xf32>
    %238 = arith.mulf %237, %193 : vector<16x128xf32>
    %239 = arith.addf %235, %238 : vector<16x128xf32>
    %c47 = arith.constant 47 : index
    %240 = memref.load %arg2[%c47] : memref<144xf32, #tpu.memory_space<smem>>
    %241 = vector.broadcast %240 : f32 to vector<16x128xf32>
    %242 = arith.mulf %241, %195 : vector<16x128xf32>
    %243 = arith.addf %239, %242 : vector<16x128xf32>
    %c0_48 = arith.constant 0 : index
    %c1_49 = arith.constant 1 : index
    %c0_50 = arith.constant 0 : index
    %244 = vector.load %arg7[%c0_48, %c1_49, %c0_50] : memref<4x18x128xf32, #tpu.memory_space<vmem>>, vector<1x16x128xf32>
    %245 = vector.shape_cast %244 : vector<1x16x128xf32> to vector<16x128xf32>
    %c1_i32_51 = arith.constant 1 : i32
    %246 = tpu.dynamic_rotate %245 by %c1_i32_51 dim 1 : vector<16x128xf32>, i32 -> vector<16x128xf32>
    %c127_i32_52 = arith.constant 127 : i32
    %247 = tpu.dynamic_rotate %245 by %c127_i32_52 dim 1 : vector<16x128xf32>, i32 -> vector<16x128xf32>
    %c48 = arith.constant 48 : index
    %248 = memref.load %arg2[%c48] : memref<144xf32, #tpu.memory_space<smem>>
    %249 = vector.broadcast %248 : f32 to vector<16x128xf32>
    %250 = arith.mulf %249, %246 : vector<16x128xf32>
    %251 = arith.addf %207, %250 : vector<16x128xf32>
    %c64 = arith.constant 64 : index
    %252 = memref.load %arg2[%c64] : memref<144xf32, #tpu.memory_space<smem>>
    %253 = vector.broadcast %252 : f32 to vector<16x128xf32>
    %254 = arith.mulf %253, %245 : vector<16x128xf32>
    %255 = arith.addf %251, %254 : vector<16x128xf32>
    %c80 = arith.constant 80 : index
    %256 = memref.load %arg2[%c80] : memref<144xf32, #tpu.memory_space<smem>>
    %257 = vector.broadcast %256 : f32 to vector<16x128xf32>
    %258 = arith.mulf %257, %247 : vector<16x128xf32>
    %259 = arith.addf %255, %258 : vector<16x128xf32>
    %c49 = arith.constant 49 : index
    %260 = memref.load %arg2[%c49] : memref<144xf32, #tpu.memory_space<smem>>
    %261 = vector.broadcast %260 : f32 to vector<16x128xf32>
    %262 = arith.mulf %261, %246 : vector<16x128xf32>
    %263 = arith.addf %219, %262 : vector<16x128xf32>
    %c65 = arith.constant 65 : index
    %264 = memref.load %arg2[%c65] : memref<144xf32, #tpu.memory_space<smem>>
    %265 = vector.broadcast %264 : f32 to vector<16x128xf32>
    %266 = arith.mulf %265, %245 : vector<16x128xf32>
    %267 = arith.addf %263, %266 : vector<16x128xf32>
    %c81 = arith.constant 81 : index
    %268 = memref.load %arg2[%c81] : memref<144xf32, #tpu.memory_space<smem>>
    %269 = vector.broadcast %268 : f32 to vector<16x128xf32>
    %270 = arith.mulf %269, %247 : vector<16x128xf32>
    %271 = arith.addf %267, %270 : vector<16x128xf32>
    %c50 = arith.constant 50 : index
    %272 = memref.load %arg2[%c50] : memref<144xf32, #tpu.memory_space<smem>>
    %273 = vector.broadcast %272 : f32 to vector<16x128xf32>
    %274 = arith.mulf %273, %246 : vector<16x128xf32>
    %275 = arith.addf %231, %274 : vector<16x128xf32>
    %c66 = arith.constant 66 : index
    %276 = memref.load %arg2[%c66] : memref<144xf32, #tpu.memory_space<smem>>
    %277 = vector.broadcast %276 : f32 to vector<16x128xf32>
    %278 = arith.mulf %277, %245 : vector<16x128xf32>
    %279 = arith.addf %275, %278 : vector<16x128xf32>
    %c82 = arith.constant 82 : index
    %280 = memref.load %arg2[%c82] : memref<144xf32, #tpu.memory_space<smem>>
    %281 = vector.broadcast %280 : f32 to vector<16x128xf32>
    %282 = arith.mulf %281, %247 : vector<16x128xf32>
    %283 = arith.addf %279, %282 : vector<16x128xf32>
    %c51 = arith.constant 51 : index
    %284 = memref.load %arg2[%c51] : memref<144xf32, #tpu.memory_space<smem>>
    %285 = vector.broadcast %284 : f32 to vector<16x128xf32>
    %286 = arith.mulf %285, %246 : vector<16x128xf32>
    %287 = arith.addf %243, %286 : vector<16x128xf32>
    %c67 = arith.constant 67 : index
    %288 = memref.load %arg2[%c67] : memref<144xf32, #tpu.memory_space<smem>>
    %289 = vector.broadcast %288 : f32 to vector<16x128xf32>
    %290 = arith.mulf %289, %245 : vector<16x128xf32>
    %291 = arith.addf %287, %290 : vector<16x128xf32>
    %c83 = arith.constant 83 : index
    %292 = memref.load %arg2[%c83] : memref<144xf32, #tpu.memory_space<smem>>
    %293 = vector.broadcast %292 : f32 to vector<16x128xf32>
    %294 = arith.mulf %293, %247 : vector<16x128xf32>
    %295 = arith.addf %291, %294 : vector<16x128xf32>
    %c1_53 = arith.constant 1 : index
    %c1_54 = arith.constant 1 : index
    %c0_55 = arith.constant 0 : index
    %296 = vector.load %arg7[%c1_53, %c1_54, %c0_55] : memref<4x18x128xf32, #tpu.memory_space<vmem>>, vector<1x16x128xf32>
    %297 = vector.shape_cast %296 : vector<1x16x128xf32> to vector<16x128xf32>
    %c1_i32_56 = arith.constant 1 : i32
    %298 = tpu.dynamic_rotate %297 by %c1_i32_56 dim 1 : vector<16x128xf32>, i32 -> vector<16x128xf32>
    %c127_i32_57 = arith.constant 127 : i32
    %299 = tpu.dynamic_rotate %297 by %c127_i32_57 dim 1 : vector<16x128xf32>, i32 -> vector<16x128xf32>
    %c52 = arith.constant 52 : index
    %300 = memref.load %arg2[%c52] : memref<144xf32, #tpu.memory_space<smem>>
    %301 = vector.broadcast %300 : f32 to vector<16x128xf32>
    %302 = arith.mulf %301, %298 : vector<16x128xf32>
    %303 = arith.addf %259, %302 : vector<16x128xf32>
    %c68 = arith.constant 68 : index
    %304 = memref.load %arg2[%c68] : memref<144xf32, #tpu.memory_space<smem>>
    %305 = vector.broadcast %304 : f32 to vector<16x128xf32>
    %306 = arith.mulf %305, %297 : vector<16x128xf32>
    %307 = arith.addf %303, %306 : vector<16x128xf32>
    %c84 = arith.constant 84 : index
    %308 = memref.load %arg2[%c84] : memref<144xf32, #tpu.memory_space<smem>>
    %309 = vector.broadcast %308 : f32 to vector<16x128xf32>
    %310 = arith.mulf %309, %299 : vector<16x128xf32>
    %311 = arith.addf %307, %310 : vector<16x128xf32>
    %c53 = arith.constant 53 : index
    %312 = memref.load %arg2[%c53] : memref<144xf32, #tpu.memory_space<smem>>
    %313 = vector.broadcast %312 : f32 to vector<16x128xf32>
    %314 = arith.mulf %313, %298 : vector<16x128xf32>
    %315 = arith.addf %271, %314 : vector<16x128xf32>
    %c69 = arith.constant 69 : index
    %316 = memref.load %arg2[%c69] : memref<144xf32, #tpu.memory_space<smem>>
    %317 = vector.broadcast %316 : f32 to vector<16x128xf32>
    %318 = arith.mulf %317, %297 : vector<16x128xf32>
    %319 = arith.addf %315, %318 : vector<16x128xf32>
    %c85 = arith.constant 85 : index
    %320 = memref.load %arg2[%c85] : memref<144xf32, #tpu.memory_space<smem>>
    %321 = vector.broadcast %320 : f32 to vector<16x128xf32>
    %322 = arith.mulf %321, %299 : vector<16x128xf32>
    %323 = arith.addf %319, %322 : vector<16x128xf32>
    %c54 = arith.constant 54 : index
    %324 = memref.load %arg2[%c54] : memref<144xf32, #tpu.memory_space<smem>>
    %325 = vector.broadcast %324 : f32 to vector<16x128xf32>
    %326 = arith.mulf %325, %298 : vector<16x128xf32>
    %327 = arith.addf %283, %326 : vector<16x128xf32>
    %c70 = arith.constant 70 : index
    %328 = memref.load %arg2[%c70] : memref<144xf32, #tpu.memory_space<smem>>
    %329 = vector.broadcast %328 : f32 to vector<16x128xf32>
    %330 = arith.mulf %329, %297 : vector<16x128xf32>
    %331 = arith.addf %327, %330 : vector<16x128xf32>
    %c86 = arith.constant 86 : index
    %332 = memref.load %arg2[%c86] : memref<144xf32, #tpu.memory_space<smem>>
    %333 = vector.broadcast %332 : f32 to vector<16x128xf32>
    %334 = arith.mulf %333, %299 : vector<16x128xf32>
    %335 = arith.addf %331, %334 : vector<16x128xf32>
    %c55 = arith.constant 55 : index
    %336 = memref.load %arg2[%c55] : memref<144xf32, #tpu.memory_space<smem>>
    %337 = vector.broadcast %336 : f32 to vector<16x128xf32>
    %338 = arith.mulf %337, %298 : vector<16x128xf32>
    %339 = arith.addf %295, %338 : vector<16x128xf32>
    %c71 = arith.constant 71 : index
    %340 = memref.load %arg2[%c71] : memref<144xf32, #tpu.memory_space<smem>>
    %341 = vector.broadcast %340 : f32 to vector<16x128xf32>
    %342 = arith.mulf %341, %297 : vector<16x128xf32>
    %343 = arith.addf %339, %342 : vector<16x128xf32>
    %c87 = arith.constant 87 : index
    %344 = memref.load %arg2[%c87] : memref<144xf32, #tpu.memory_space<smem>>
    %345 = vector.broadcast %344 : f32 to vector<16x128xf32>
    %346 = arith.mulf %345, %299 : vector<16x128xf32>
    %347 = arith.addf %343, %346 : vector<16x128xf32>
    %c2_58 = arith.constant 2 : index
    %c1_59 = arith.constant 1 : index
    %c0_60 = arith.constant 0 : index
    %348 = vector.load %arg7[%c2_58, %c1_59, %c0_60] : memref<4x18x128xf32, #tpu.memory_space<vmem>>, vector<1x16x128xf32>
    %349 = vector.shape_cast %348 : vector<1x16x128xf32> to vector<16x128xf32>
    %c1_i32_61 = arith.constant 1 : i32
    %350 = tpu.dynamic_rotate %349 by %c1_i32_61 dim 1 : vector<16x128xf32>, i32 -> vector<16x128xf32>
    %c127_i32_62 = arith.constant 127 : i32
    %351 = tpu.dynamic_rotate %349 by %c127_i32_62 dim 1 : vector<16x128xf32>, i32 -> vector<16x128xf32>
    %c56 = arith.constant 56 : index
    %352 = memref.load %arg2[%c56] : memref<144xf32, #tpu.memory_space<smem>>
    %353 = vector.broadcast %352 : f32 to vector<16x128xf32>
    %354 = arith.mulf %353, %350 : vector<16x128xf32>
    %355 = arith.addf %311, %354 : vector<16x128xf32>
    %c72 = arith.constant 72 : index
    %356 = memref.load %arg2[%c72] : memref<144xf32, #tpu.memory_space<smem>>
    %357 = vector.broadcast %356 : f32 to vector<16x128xf32>
    %358 = arith.mulf %357, %349 : vector<16x128xf32>
    %359 = arith.addf %355, %358 : vector<16x128xf32>
    %c88 = arith.constant 88 : index
    %360 = memref.load %arg2[%c88] : memref<144xf32, #tpu.memory_space<smem>>
    %361 = vector.broadcast %360 : f32 to vector<16x128xf32>
    %362 = arith.mulf %361, %351 : vector<16x128xf32>
    %363 = arith.addf %359, %362 : vector<16x128xf32>
    %c57 = arith.constant 57 : index
    %364 = memref.load %arg2[%c57] : memref<144xf32, #tpu.memory_space<smem>>
    %365 = vector.broadcast %364 : f32 to vector<16x128xf32>
    %366 = arith.mulf %365, %350 : vector<16x128xf32>
    %367 = arith.addf %323, %366 : vector<16x128xf32>
    %c73 = arith.constant 73 : index
    %368 = memref.load %arg2[%c73] : memref<144xf32, #tpu.memory_space<smem>>
    %369 = vector.broadcast %368 : f32 to vector<16x128xf32>
    %370 = arith.mulf %369, %349 : vector<16x128xf32>
    %371 = arith.addf %367, %370 : vector<16x128xf32>
    %c89 = arith.constant 89 : index
    %372 = memref.load %arg2[%c89] : memref<144xf32, #tpu.memory_space<smem>>
    %373 = vector.broadcast %372 : f32 to vector<16x128xf32>
    %374 = arith.mulf %373, %351 : vector<16x128xf32>
    %375 = arith.addf %371, %374 : vector<16x128xf32>
    %c58 = arith.constant 58 : index
    %376 = memref.load %arg2[%c58] : memref<144xf32, #tpu.memory_space<smem>>
    %377 = vector.broadcast %376 : f32 to vector<16x128xf32>
    %378 = arith.mulf %377, %350 : vector<16x128xf32>
    %379 = arith.addf %335, %378 : vector<16x128xf32>
    %c74 = arith.constant 74 : index
    %380 = memref.load %arg2[%c74] : memref<144xf32, #tpu.memory_space<smem>>
    %381 = vector.broadcast %380 : f32 to vector<16x128xf32>
    %382 = arith.mulf %381, %349 : vector<16x128xf32>
    %383 = arith.addf %379, %382 : vector<16x128xf32>
    %c90 = arith.constant 90 : index
    %384 = memref.load %arg2[%c90] : memref<144xf32, #tpu.memory_space<smem>>
    %385 = vector.broadcast %384 : f32 to vector<16x128xf32>
    %386 = arith.mulf %385, %351 : vector<16x128xf32>
    %387 = arith.addf %383, %386 : vector<16x128xf32>
    %c59 = arith.constant 59 : index
    %388 = memref.load %arg2[%c59] : memref<144xf32, #tpu.memory_space<smem>>
    %389 = vector.broadcast %388 : f32 to vector<16x128xf32>
    %390 = arith.mulf %389, %350 : vector<16x128xf32>
    %391 = arith.addf %347, %390 : vector<16x128xf32>
    %c75 = arith.constant 75 : index
    %392 = memref.load %arg2[%c75] : memref<144xf32, #tpu.memory_space<smem>>
    %393 = vector.broadcast %392 : f32 to vector<16x128xf32>
    %394 = arith.mulf %393, %349 : vector<16x128xf32>
    %395 = arith.addf %391, %394 : vector<16x128xf32>
    %c91 = arith.constant 91 : index
    %396 = memref.load %arg2[%c91] : memref<144xf32, #tpu.memory_space<smem>>
    %397 = vector.broadcast %396 : f32 to vector<16x128xf32>
    %398 = arith.mulf %397, %351 : vector<16x128xf32>
    %399 = arith.addf %395, %398 : vector<16x128xf32>
    %c3_63 = arith.constant 3 : index
    %c1_64 = arith.constant 1 : index
    %c0_65 = arith.constant 0 : index
    %400 = vector.load %arg7[%c3_63, %c1_64, %c0_65] : memref<4x18x128xf32, #tpu.memory_space<vmem>>, vector<1x16x128xf32>
    %401 = vector.shape_cast %400 : vector<1x16x128xf32> to vector<16x128xf32>
    %c1_i32_66 = arith.constant 1 : i32
    %402 = tpu.dynamic_rotate %401 by %c1_i32_66 dim 1 : vector<16x128xf32>, i32 -> vector<16x128xf32>
    %c127_i32_67 = arith.constant 127 : i32
    %403 = tpu.dynamic_rotate %401 by %c127_i32_67 dim 1 : vector<16x128xf32>, i32 -> vector<16x128xf32>
    %c60 = arith.constant 60 : index
    %404 = memref.load %arg2[%c60] : memref<144xf32, #tpu.memory_space<smem>>
    %405 = vector.broadcast %404 : f32 to vector<16x128xf32>
    %406 = arith.mulf %405, %402 : vector<16x128xf32>
    %407 = arith.addf %363, %406 : vector<16x128xf32>
    %c76 = arith.constant 76 : index
    %408 = memref.load %arg2[%c76] : memref<144xf32, #tpu.memory_space<smem>>
    %409 = vector.broadcast %408 : f32 to vector<16x128xf32>
    %410 = arith.mulf %409, %401 : vector<16x128xf32>
    %411 = arith.addf %407, %410 : vector<16x128xf32>
    %c92 = arith.constant 92 : index
    %412 = memref.load %arg2[%c92] : memref<144xf32, #tpu.memory_space<smem>>
    %413 = vector.broadcast %412 : f32 to vector<16x128xf32>
    %414 = arith.mulf %413, %403 : vector<16x128xf32>
    %415 = arith.addf %411, %414 : vector<16x128xf32>
    %c61 = arith.constant 61 : index
    %416 = memref.load %arg2[%c61] : memref<144xf32, #tpu.memory_space<smem>>
    %417 = vector.broadcast %416 : f32 to vector<16x128xf32>
    %418 = arith.mulf %417, %402 : vector<16x128xf32>
    %419 = arith.addf %375, %418 : vector<16x128xf32>
    %c77 = arith.constant 77 : index
    %420 = memref.load %arg2[%c77] : memref<144xf32, #tpu.memory_space<smem>>
    %421 = vector.broadcast %420 : f32 to vector<16x128xf32>
    %422 = arith.mulf %421, %401 : vector<16x128xf32>
    %423 = arith.addf %419, %422 : vector<16x128xf32>
    %c93 = arith.constant 93 : index
    %424 = memref.load %arg2[%c93] : memref<144xf32, #tpu.memory_space<smem>>
    %425 = vector.broadcast %424 : f32 to vector<16x128xf32>
    %426 = arith.mulf %425, %403 : vector<16x128xf32>
    %427 = arith.addf %423, %426 : vector<16x128xf32>
    %c62 = arith.constant 62 : index
    %428 = memref.load %arg2[%c62] : memref<144xf32, #tpu.memory_space<smem>>
    %429 = vector.broadcast %428 : f32 to vector<16x128xf32>
    %430 = arith.mulf %429, %402 : vector<16x128xf32>
    %431 = arith.addf %387, %430 : vector<16x128xf32>
    %c78 = arith.constant 78 : index
    %432 = memref.load %arg2[%c78] : memref<144xf32, #tpu.memory_space<smem>>
    %433 = vector.broadcast %432 : f32 to vector<16x128xf32>
    %434 = arith.mulf %433, %401 : vector<16x128xf32>
    %435 = arith.addf %431, %434 : vector<16x128xf32>
    %c94 = arith.constant 94 : index
    %436 = memref.load %arg2[%c94] : memref<144xf32, #tpu.memory_space<smem>>
    %437 = vector.broadcast %436 : f32 to vector<16x128xf32>
    %438 = arith.mulf %437, %403 : vector<16x128xf32>
    %439 = arith.addf %435, %438 : vector<16x128xf32>
    %c63 = arith.constant 63 : index
    %440 = memref.load %arg2[%c63] : memref<144xf32, #tpu.memory_space<smem>>
    %441 = vector.broadcast %440 : f32 to vector<16x128xf32>
    %442 = arith.mulf %441, %402 : vector<16x128xf32>
    %443 = arith.addf %399, %442 : vector<16x128xf32>
    %c79 = arith.constant 79 : index
    %444 = memref.load %arg2[%c79] : memref<144xf32, #tpu.memory_space<smem>>
    %445 = vector.broadcast %444 : f32 to vector<16x128xf32>
    %446 = arith.mulf %445, %401 : vector<16x128xf32>
    %447 = arith.addf %443, %446 : vector<16x128xf32>
    %c95 = arith.constant 95 : index
    %448 = memref.load %arg2[%c95] : memref<144xf32, #tpu.memory_space<smem>>
    %449 = vector.broadcast %448 : f32 to vector<16x128xf32>
    %450 = arith.mulf %449, %403 : vector<16x128xf32>
    %451 = arith.addf %447, %450 : vector<16x128xf32>
    %c0_68 = arith.constant 0 : index
    %c2_69 = arith.constant 2 : index
    %c0_70 = arith.constant 0 : index
    %452 = vector.load %arg7[%c0_68, %c2_69, %c0_70] : memref<4x18x128xf32, #tpu.memory_space<vmem>>, vector<1x16x128xf32>
    %453 = vector.shape_cast %452 : vector<1x16x128xf32> to vector<16x128xf32>
    %c1_i32_71 = arith.constant 1 : i32
    %454 = tpu.dynamic_rotate %453 by %c1_i32_71 dim 1 : vector<16x128xf32>, i32 -> vector<16x128xf32>
    %c127_i32_72 = arith.constant 127 : i32
    %455 = tpu.dynamic_rotate %453 by %c127_i32_72 dim 1 : vector<16x128xf32>, i32 -> vector<16x128xf32>
    %c96 = arith.constant 96 : index
    %456 = memref.load %arg2[%c96] : memref<144xf32, #tpu.memory_space<smem>>
    %457 = vector.broadcast %456 : f32 to vector<16x128xf32>
    %458 = arith.mulf %457, %454 : vector<16x128xf32>
    %459 = arith.addf %415, %458 : vector<16x128xf32>
    %c112 = arith.constant 112 : index
    %460 = memref.load %arg2[%c112] : memref<144xf32, #tpu.memory_space<smem>>
    %461 = vector.broadcast %460 : f32 to vector<16x128xf32>
    %462 = arith.mulf %461, %453 : vector<16x128xf32>
    %463 = arith.addf %459, %462 : vector<16x128xf32>
    %c128 = arith.constant 128 : index
    %464 = memref.load %arg2[%c128] : memref<144xf32, #tpu.memory_space<smem>>
    %465 = vector.broadcast %464 : f32 to vector<16x128xf32>
    %466 = arith.mulf %465, %455 : vector<16x128xf32>
    %467 = arith.addf %463, %466 : vector<16x128xf32>
    %c97 = arith.constant 97 : index
    %468 = memref.load %arg2[%c97] : memref<144xf32, #tpu.memory_space<smem>>
    %469 = vector.broadcast %468 : f32 to vector<16x128xf32>
    %470 = arith.mulf %469, %454 : vector<16x128xf32>
    %471 = arith.addf %427, %470 : vector<16x128xf32>
    %c113 = arith.constant 113 : index
    %472 = memref.load %arg2[%c113] : memref<144xf32, #tpu.memory_space<smem>>
    %473 = vector.broadcast %472 : f32 to vector<16x128xf32>
    %474 = arith.mulf %473, %453 : vector<16x128xf32>
    %475 = arith.addf %471, %474 : vector<16x128xf32>
    %c129 = arith.constant 129 : index
    %476 = memref.load %arg2[%c129] : memref<144xf32, #tpu.memory_space<smem>>
    %477 = vector.broadcast %476 : f32 to vector<16x128xf32>
    %478 = arith.mulf %477, %455 : vector<16x128xf32>
    %479 = arith.addf %475, %478 : vector<16x128xf32>
    %c98 = arith.constant 98 : index
    %480 = memref.load %arg2[%c98] : memref<144xf32, #tpu.memory_space<smem>>
    %481 = vector.broadcast %480 : f32 to vector<16x128xf32>
    %482 = arith.mulf %481, %454 : vector<16x128xf32>
    %483 = arith.addf %439, %482 : vector<16x128xf32>
    %c114 = arith.constant 114 : index
    %484 = memref.load %arg2[%c114] : memref<144xf32, #tpu.memory_space<smem>>
    %485 = vector.broadcast %484 : f32 to vector<16x128xf32>
    %486 = arith.mulf %485, %453 : vector<16x128xf32>
    %487 = arith.addf %483, %486 : vector<16x128xf32>
    %c130 = arith.constant 130 : index
    %488 = memref.load %arg2[%c130] : memref<144xf32, #tpu.memory_space<smem>>
    %489 = vector.broadcast %488 : f32 to vector<16x128xf32>
    %490 = arith.mulf %489, %455 : vector<16x128xf32>
    %491 = arith.addf %487, %490 : vector<16x128xf32>
    %c99 = arith.constant 99 : index
    %492 = memref.load %arg2[%c99] : memref<144xf32, #tpu.memory_space<smem>>
    %493 = vector.broadcast %492 : f32 to vector<16x128xf32>
    %494 = arith.mulf %493, %454 : vector<16x128xf32>
    %495 = arith.addf %451, %494 : vector<16x128xf32>
    %c115 = arith.constant 115 : index
    %496 = memref.load %arg2[%c115] : memref<144xf32, #tpu.memory_space<smem>>
    %497 = vector.broadcast %496 : f32 to vector<16x128xf32>
    %498 = arith.mulf %497, %453 : vector<16x128xf32>
    %499 = arith.addf %495, %498 : vector<16x128xf32>
    %c131 = arith.constant 131 : index
    %500 = memref.load %arg2[%c131] : memref<144xf32, #tpu.memory_space<smem>>
    %501 = vector.broadcast %500 : f32 to vector<16x128xf32>
    %502 = arith.mulf %501, %455 : vector<16x128xf32>
    %503 = arith.addf %499, %502 : vector<16x128xf32>
    %c1_73 = arith.constant 1 : index
    %c2_74 = arith.constant 2 : index
    %c0_75 = arith.constant 0 : index
    %504 = vector.load %arg7[%c1_73, %c2_74, %c0_75] : memref<4x18x128xf32, #tpu.memory_space<vmem>>, vector<1x16x128xf32>
    %505 = vector.shape_cast %504 : vector<1x16x128xf32> to vector<16x128xf32>
    %c1_i32_76 = arith.constant 1 : i32
    %506 = tpu.dynamic_rotate %505 by %c1_i32_76 dim 1 : vector<16x128xf32>, i32 -> vector<16x128xf32>
    %c127_i32_77 = arith.constant 127 : i32
    %507 = tpu.dynamic_rotate %505 by %c127_i32_77 dim 1 : vector<16x128xf32>, i32 -> vector<16x128xf32>
    %c100 = arith.constant 100 : index
    %508 = memref.load %arg2[%c100] : memref<144xf32, #tpu.memory_space<smem>>
    %509 = vector.broadcast %508 : f32 to vector<16x128xf32>
    %510 = arith.mulf %509, %506 : vector<16x128xf32>
    %511 = arith.addf %467, %510 : vector<16x128xf32>
    %c116 = arith.constant 116 : index
    %512 = memref.load %arg2[%c116] : memref<144xf32, #tpu.memory_space<smem>>
    %513 = vector.broadcast %512 : f32 to vector<16x128xf32>
    %514 = arith.mulf %513, %505 : vector<16x128xf32>
    %515 = arith.addf %511, %514 : vector<16x128xf32>
    %c132 = arith.constant 132 : index
    %516 = memref.load %arg2[%c132] : memref<144xf32, #tpu.memory_space<smem>>
    %517 = vector.broadcast %516 : f32 to vector<16x128xf32>
    %518 = arith.mulf %517, %507 : vector<16x128xf32>
    %519 = arith.addf %515, %518 : vector<16x128xf32>
    %c101 = arith.constant 101 : index
    %520 = memref.load %arg2[%c101] : memref<144xf32, #tpu.memory_space<smem>>
    %521 = vector.broadcast %520 : f32 to vector<16x128xf32>
    %522 = arith.mulf %521, %506 : vector<16x128xf32>
    %523 = arith.addf %479, %522 : vector<16x128xf32>
    %c117 = arith.constant 117 : index
    %524 = memref.load %arg2[%c117] : memref<144xf32, #tpu.memory_space<smem>>
    %525 = vector.broadcast %524 : f32 to vector<16x128xf32>
    %526 = arith.mulf %525, %505 : vector<16x128xf32>
    %527 = arith.addf %523, %526 : vector<16x128xf32>
    %c133 = arith.constant 133 : index
    %528 = memref.load %arg2[%c133] : memref<144xf32, #tpu.memory_space<smem>>
    %529 = vector.broadcast %528 : f32 to vector<16x128xf32>
    %530 = arith.mulf %529, %507 : vector<16x128xf32>
    %531 = arith.addf %527, %530 : vector<16x128xf32>
    %c102 = arith.constant 102 : index
    %532 = memref.load %arg2[%c102] : memref<144xf32, #tpu.memory_space<smem>>
    %533 = vector.broadcast %532 : f32 to vector<16x128xf32>
    %534 = arith.mulf %533, %506 : vector<16x128xf32>
    %535 = arith.addf %491, %534 : vector<16x128xf32>
    %c118 = arith.constant 118 : index
    %536 = memref.load %arg2[%c118] : memref<144xf32, #tpu.memory_space<smem>>
    %537 = vector.broadcast %536 : f32 to vector<16x128xf32>
    %538 = arith.mulf %537, %505 : vector<16x128xf32>
    %539 = arith.addf %535, %538 : vector<16x128xf32>
    %c134 = arith.constant 134 : index
    %540 = memref.load %arg2[%c134] : memref<144xf32, #tpu.memory_space<smem>>
    %541 = vector.broadcast %540 : f32 to vector<16x128xf32>
    %542 = arith.mulf %541, %507 : vector<16x128xf32>
    %543 = arith.addf %539, %542 : vector<16x128xf32>
    %c103 = arith.constant 103 : index
    %544 = memref.load %arg2[%c103] : memref<144xf32, #tpu.memory_space<smem>>
    %545 = vector.broadcast %544 : f32 to vector<16x128xf32>
    %546 = arith.mulf %545, %506 : vector<16x128xf32>
    %547 = arith.addf %503, %546 : vector<16x128xf32>
    %c119 = arith.constant 119 : index
    %548 = memref.load %arg2[%c119] : memref<144xf32, #tpu.memory_space<smem>>
    %549 = vector.broadcast %548 : f32 to vector<16x128xf32>
    %550 = arith.mulf %549, %505 : vector<16x128xf32>
    %551 = arith.addf %547, %550 : vector<16x128xf32>
    %c135 = arith.constant 135 : index
    %552 = memref.load %arg2[%c135] : memref<144xf32, #tpu.memory_space<smem>>
    %553 = vector.broadcast %552 : f32 to vector<16x128xf32>
    %554 = arith.mulf %553, %507 : vector<16x128xf32>
    %555 = arith.addf %551, %554 : vector<16x128xf32>
    %c2_78 = arith.constant 2 : index
    %c2_79 = arith.constant 2 : index
    %c0_80 = arith.constant 0 : index
    %556 = vector.load %arg7[%c2_78, %c2_79, %c0_80] : memref<4x18x128xf32, #tpu.memory_space<vmem>>, vector<1x16x128xf32>
    %557 = vector.shape_cast %556 : vector<1x16x128xf32> to vector<16x128xf32>
    %c1_i32_81 = arith.constant 1 : i32
    %558 = tpu.dynamic_rotate %557 by %c1_i32_81 dim 1 : vector<16x128xf32>, i32 -> vector<16x128xf32>
    %c127_i32_82 = arith.constant 127 : i32
    %559 = tpu.dynamic_rotate %557 by %c127_i32_82 dim 1 : vector<16x128xf32>, i32 -> vector<16x128xf32>
    %c104 = arith.constant 104 : index
    %560 = memref.load %arg2[%c104] : memref<144xf32, #tpu.memory_space<smem>>
    %561 = vector.broadcast %560 : f32 to vector<16x128xf32>
    %562 = arith.mulf %561, %558 : vector<16x128xf32>
    %563 = arith.addf %519, %562 : vector<16x128xf32>
    %c120 = arith.constant 120 : index
    %564 = memref.load %arg2[%c120] : memref<144xf32, #tpu.memory_space<smem>>
    %565 = vector.broadcast %564 : f32 to vector<16x128xf32>
    %566 = arith.mulf %565, %557 : vector<16x128xf32>
    %567 = arith.addf %563, %566 : vector<16x128xf32>
    %c136 = arith.constant 136 : index
    %568 = memref.load %arg2[%c136] : memref<144xf32, #tpu.memory_space<smem>>
    %569 = vector.broadcast %568 : f32 to vector<16x128xf32>
    %570 = arith.mulf %569, %559 : vector<16x128xf32>
    %571 = arith.addf %567, %570 : vector<16x128xf32>
    %c105 = arith.constant 105 : index
    %572 = memref.load %arg2[%c105] : memref<144xf32, #tpu.memory_space<smem>>
    %573 = vector.broadcast %572 : f32 to vector<16x128xf32>
    %574 = arith.mulf %573, %558 : vector<16x128xf32>
    %575 = arith.addf %531, %574 : vector<16x128xf32>
    %c121 = arith.constant 121 : index
    %576 = memref.load %arg2[%c121] : memref<144xf32, #tpu.memory_space<smem>>
    %577 = vector.broadcast %576 : f32 to vector<16x128xf32>
    %578 = arith.mulf %577, %557 : vector<16x128xf32>
    %579 = arith.addf %575, %578 : vector<16x128xf32>
    %c137 = arith.constant 137 : index
    %580 = memref.load %arg2[%c137] : memref<144xf32, #tpu.memory_space<smem>>
    %581 = vector.broadcast %580 : f32 to vector<16x128xf32>
    %582 = arith.mulf %581, %559 : vector<16x128xf32>
    %583 = arith.addf %579, %582 : vector<16x128xf32>
    %c106 = arith.constant 106 : index
    %584 = memref.load %arg2[%c106] : memref<144xf32, #tpu.memory_space<smem>>
    %585 = vector.broadcast %584 : f32 to vector<16x128xf32>
    %586 = arith.mulf %585, %558 : vector<16x128xf32>
    %587 = arith.addf %543, %586 : vector<16x128xf32>
    %c122 = arith.constant 122 : index
    %588 = memref.load %arg2[%c122] : memref<144xf32, #tpu.memory_space<smem>>
    %589 = vector.broadcast %588 : f32 to vector<16x128xf32>
    %590 = arith.mulf %589, %557 : vector<16x128xf32>
    %591 = arith.addf %587, %590 : vector<16x128xf32>
    %c138 = arith.constant 138 : index
    %592 = memref.load %arg2[%c138] : memref<144xf32, #tpu.memory_space<smem>>
    %593 = vector.broadcast %592 : f32 to vector<16x128xf32>
    %594 = arith.mulf %593, %559 : vector<16x128xf32>
    %595 = arith.addf %591, %594 : vector<16x128xf32>
    %c107 = arith.constant 107 : index
    %596 = memref.load %arg2[%c107] : memref<144xf32, #tpu.memory_space<smem>>
    %597 = vector.broadcast %596 : f32 to vector<16x128xf32>
    %598 = arith.mulf %597, %558 : vector<16x128xf32>
    %599 = arith.addf %555, %598 : vector<16x128xf32>
    %c123 = arith.constant 123 : index
    %600 = memref.load %arg2[%c123] : memref<144xf32, #tpu.memory_space<smem>>
    %601 = vector.broadcast %600 : f32 to vector<16x128xf32>
    %602 = arith.mulf %601, %557 : vector<16x128xf32>
    %603 = arith.addf %599, %602 : vector<16x128xf32>
    %c139 = arith.constant 139 : index
    %604 = memref.load %arg2[%c139] : memref<144xf32, #tpu.memory_space<smem>>
    %605 = vector.broadcast %604 : f32 to vector<16x128xf32>
    %606 = arith.mulf %605, %559 : vector<16x128xf32>
    %607 = arith.addf %603, %606 : vector<16x128xf32>
    %c3_83 = arith.constant 3 : index
    %c2_84 = arith.constant 2 : index
    %c0_85 = arith.constant 0 : index
    %608 = vector.load %arg7[%c3_83, %c2_84, %c0_85] : memref<4x18x128xf32, #tpu.memory_space<vmem>>, vector<1x16x128xf32>
    %609 = vector.shape_cast %608 : vector<1x16x128xf32> to vector<16x128xf32>
    %c1_i32_86 = arith.constant 1 : i32
    %610 = tpu.dynamic_rotate %609 by %c1_i32_86 dim 1 : vector<16x128xf32>, i32 -> vector<16x128xf32>
    %c127_i32_87 = arith.constant 127 : i32
    %611 = tpu.dynamic_rotate %609 by %c127_i32_87 dim 1 : vector<16x128xf32>, i32 -> vector<16x128xf32>
    %c108 = arith.constant 108 : index
    %612 = memref.load %arg2[%c108] : memref<144xf32, #tpu.memory_space<smem>>
    %613 = vector.broadcast %612 : f32 to vector<16x128xf32>
    %614 = arith.mulf %613, %610 : vector<16x128xf32>
    %615 = arith.addf %571, %614 : vector<16x128xf32>
    %c124 = arith.constant 124 : index
    %616 = memref.load %arg2[%c124] : memref<144xf32, #tpu.memory_space<smem>>
    %617 = vector.broadcast %616 : f32 to vector<16x128xf32>
    %618 = arith.mulf %617, %609 : vector<16x128xf32>
    %619 = arith.addf %615, %618 : vector<16x128xf32>
    %c140 = arith.constant 140 : index
    %620 = memref.load %arg2[%c140] : memref<144xf32, #tpu.memory_space<smem>>
    %621 = vector.broadcast %620 : f32 to vector<16x128xf32>
    %622 = arith.mulf %621, %611 : vector<16x128xf32>
    %623 = arith.addf %619, %622 : vector<16x128xf32>
    %c109 = arith.constant 109 : index
    %624 = memref.load %arg2[%c109] : memref<144xf32, #tpu.memory_space<smem>>
    %625 = vector.broadcast %624 : f32 to vector<16x128xf32>
    %626 = arith.mulf %625, %610 : vector<16x128xf32>
    %627 = arith.addf %583, %626 : vector<16x128xf32>
    %c125 = arith.constant 125 : index
    %628 = memref.load %arg2[%c125] : memref<144xf32, #tpu.memory_space<smem>>
    %629 = vector.broadcast %628 : f32 to vector<16x128xf32>
    %630 = arith.mulf %629, %609 : vector<16x128xf32>
    %631 = arith.addf %627, %630 : vector<16x128xf32>
    %c141 = arith.constant 141 : index
    %632 = memref.load %arg2[%c141] : memref<144xf32, #tpu.memory_space<smem>>
    %633 = vector.broadcast %632 : f32 to vector<16x128xf32>
    %634 = arith.mulf %633, %611 : vector<16x128xf32>
    %635 = arith.addf %631, %634 : vector<16x128xf32>
    %c110 = arith.constant 110 : index
    %636 = memref.load %arg2[%c110] : memref<144xf32, #tpu.memory_space<smem>>
    %637 = vector.broadcast %636 : f32 to vector<16x128xf32>
    %638 = arith.mulf %637, %610 : vector<16x128xf32>
    %639 = arith.addf %595, %638 : vector<16x128xf32>
    %c126 = arith.constant 126 : index
    %640 = memref.load %arg2[%c126] : memref<144xf32, #tpu.memory_space<smem>>
    %641 = vector.broadcast %640 : f32 to vector<16x128xf32>
    %642 = arith.mulf %641, %609 : vector<16x128xf32>
    %643 = arith.addf %639, %642 : vector<16x128xf32>
    %c142 = arith.constant 142 : index
    %644 = memref.load %arg2[%c142] : memref<144xf32, #tpu.memory_space<smem>>
    %645 = vector.broadcast %644 : f32 to vector<16x128xf32>
    %646 = arith.mulf %645, %611 : vector<16x128xf32>
    %647 = arith.addf %643, %646 : vector<16x128xf32>
    %c111 = arith.constant 111 : index
    %648 = memref.load %arg2[%c111] : memref<144xf32, #tpu.memory_space<smem>>
    %649 = vector.broadcast %648 : f32 to vector<16x128xf32>
    %650 = arith.mulf %649, %610 : vector<16x128xf32>
    %651 = arith.addf %607, %650 : vector<16x128xf32>
    %c127 = arith.constant 127 : index
    %652 = memref.load %arg2[%c127] : memref<144xf32, #tpu.memory_space<smem>>
    %653 = vector.broadcast %652 : f32 to vector<16x128xf32>
    %654 = arith.mulf %653, %609 : vector<16x128xf32>
    %655 = arith.addf %651, %654 : vector<16x128xf32>
    %c143 = arith.constant 143 : index
    %656 = memref.load %arg2[%c143] : memref<144xf32, #tpu.memory_space<smem>>
    %657 = vector.broadcast %656 : f32 to vector<16x128xf32>
    %658 = arith.mulf %657, %611 : vector<16x128xf32>
    %659 = arith.addf %655, %658 : vector<16x128xf32>
    %cst_88 = arith.constant 0.000000e+00 : f32
    %660 = vector.broadcast %cst_88 : f32 to vector<16x128xf32>
    %661 = arith.maximumf %623, %660 : vector<16x128xf32>
    %cst_89 = arith.constant 0.000000e+00 : f32
    %662 = vector.shape_cast %11 : vector<1x128xi1> to vector<1x128xi1>
    %663 = vector.broadcast %662 : vector<1x128xi1> to vector<16x128xi1>
    %664 = vector.broadcast %cst_89 : f32 to vector<16x128xf32>
    %665 = arith.select %663, %661, %664 : vector<16x128xi1>, vector<16x128xf32>
    %c0_90 = arith.constant 0 : index
    %c1_91 = arith.constant 1 : index
    %c0_92 = arith.constant 0 : index
    %666 = vector.load %arg8[%c0_90, %c1_91, %c0_92] : memref<4x18x128xf32, #tpu.memory_space<vmem>>, vector<1x16x128xf32>
    %667 = vector.shape_cast %666 : vector<1x16x128xf32> to vector<16x128xf32>
    %668 = vector.shape_cast %665 : vector<16x128xf32> to vector<1x16x128xf32>
    tpu.vector_store %arg8[%c0_90, %c1_91, %c0_92], %668 {strides = array<i32>} : memref<4x18x128xf32, #tpu.memory_space<vmem>>, vector<1x16x128xf32>,
    %cst_93 = arith.constant 0.000000e+00 : f32
    %669 = vector.broadcast %cst_93 : f32 to vector<16x128xf32>
    %670 = arith.maximumf %635, %669 : vector<16x128xf32>
    %cst_94 = arith.constant 0.000000e+00 : f32
    %671 = vector.shape_cast %11 : vector<1x128xi1> to vector<1x128xi1>
    %672 = vector.broadcast %671 : vector<1x128xi1> to vector<16x128xi1>
    %673 = vector.broadcast %cst_94 : f32 to vector<16x128xf32>
    %674 = arith.select %672, %670, %673 : vector<16x128xi1>, vector<16x128xf32>
    %c1_95 = arith.constant 1 : index
    %c1_96 = arith.constant 1 : index
    %c0_97 = arith.constant 0 : index
    %675 = vector.load %arg8[%c1_95, %c1_96, %c0_97] : memref<4x18x128xf32, #tpu.memory_space<vmem>>, vector<1x16x128xf32>
    %676 = vector.shape_cast %675 : vector<1x16x128xf32> to vector<16x128xf32>
    %677 = vector.shape_cast %674 : vector<16x128xf32> to vector<1x16x128xf32>
    tpu.vector_store %arg8[%c1_95, %c1_96, %c0_97], %677 {strides = array<i32>} : memref<4x18x128xf32, #tpu.memory_space<vmem>>, vector<1x16x128xf32>,
    %cst_98 = arith.constant 0.000000e+00 : f32
    %678 = vector.broadcast %cst_98 : f32 to vector<16x128xf32>
    %679 = arith.maximumf %647, %678 : vector<16x128xf32>
    %cst_99 = arith.constant 0.000000e+00 : f32
    %680 = vector.shape_cast %11 : vector<1x128xi1> to vector<1x128xi1>
    %681 = vector.broadcast %680 : vector<1x128xi1> to vector<16x128xi1>
    %682 = vector.broadcast %cst_99 : f32 to vector<16x128xf32>
    %683 = arith.select %681, %679, %682 : vector<16x128xi1>, vector<16x128xf32>
    %c2_100 = arith.constant 2 : index
    %c1_101 = arith.constant 1 : index
    %c0_102 = arith.constant 0 : index
    %684 = vector.load %arg8[%c2_100, %c1_101, %c0_102] : memref<4x18x128xf32, #tpu.memory_space<vmem>>, vector<1x16x128xf32>
    %685 = vector.shape_cast %684 : vector<1x16x128xf32> to vector<16x128xf32>
    %686 = vector.shape_cast %683 : vector<16x128xf32> to vector<1x16x128xf32>
    tpu.vector_store %arg8[%c2_100, %c1_101, %c0_102], %686 {strides = array<i32>} : memref<4x18x128xf32, #tpu.memory_space<vmem>>, vector<1x16x128xf32>,
    %cst_103 = arith.constant 0.000000e+00 : f32
    %687 = vector.broadcast %cst_103 : f32 to vector<16x128xf32>
    %688 = arith.maximumf %659, %687 : vector<16x128xf32>
    %cst_104 = arith.constant 0.000000e+00 : f32
    %689 = vector.shape_cast %11 : vector<1x128xi1> to vector<1x128xi1>
    %690 = vector.broadcast %689 : vector<1x128xi1> to vector<16x128xi1>
    %691 = vector.broadcast %cst_104 : f32 to vector<16x128xf32>
    %692 = arith.select %690, %688, %691 : vector<16x128xi1>, vector<16x128xf32>
    %c3_105 = arith.constant 3 : index
    %c1_106 = arith.constant 1 : index
    %c0_107 = arith.constant 0 : index
    %693 = vector.load %arg8[%c3_105, %c1_106, %c0_107] : memref<4x18x128xf32, #tpu.memory_space<vmem>>, vector<1x16x128xf32>
    %694 = vector.shape_cast %693 : vector<1x16x128xf32> to vector<16x128xf32>
    %695 = vector.shape_cast %692 : vector<16x128xf32> to vector<1x16x128xf32>
    tpu.vector_store %arg8[%c3_105, %c1_106, %c0_107], %695 {strides = array<i32>} : memref<4x18x128xf32, #tpu.memory_space<vmem>>, vector<1x16x128xf32>,
    %c0_108 = arith.constant 0 : index
    %696 = memref.load %arg5[%c0_108] : memref<4xf32, #tpu.memory_space<smem>>
    %697 = vector.broadcast %696 : f32 to vector<16x128xf32>
    %c1_109 = arith.constant 1 : index
    %698 = memref.load %arg5[%c1_109] : memref<4xf32, #tpu.memory_space<smem>>
    %699 = vector.broadcast %698 : f32 to vector<16x128xf32>
    %c2_110 = arith.constant 2 : index
    %700 = memref.load %arg5[%c2_110] : memref<4xf32, #tpu.memory_space<smem>>
    %701 = vector.broadcast %700 : f32 to vector<16x128xf32>
    %c3_111 = arith.constant 3 : index
    %702 = memref.load %arg5[%c3_111] : memref<4xf32, #tpu.memory_space<smem>>
    %703 = vector.broadcast %702 : f32 to vector<16x128xf32>
    %c0_112 = arith.constant 0 : index
    %c0_113 = arith.constant 0 : index
    %c0_114 = arith.constant 0 : index
    %704 = vector.load %arg8[%c0_112, %c0_113, %c0_114] : memref<4x18x128xf32, #tpu.memory_space<vmem>>, vector<1x16x128xf32>
    %705 = vector.shape_cast %704 : vector<1x16x128xf32> to vector<16x128xf32>
    %c1_i32_115 = arith.constant 1 : i32
    %706 = tpu.dynamic_rotate %705 by %c1_i32_115 dim 1 : vector<16x128xf32>, i32 -> vector<16x128xf32>
    %c127_i32_116 = arith.constant 127 : i32
    %707 = tpu.dynamic_rotate %705 by %c127_i32_116 dim 1 : vector<16x128xf32>, i32 -> vector<16x128xf32>
    %c0_117 = arith.constant 0 : index
    %708 = memref.load %arg4[%c0_117] : memref<144xf32, #tpu.memory_space<smem>>
    %709 = vector.broadcast %708 : f32 to vector<16x128xf32>
    %710 = arith.mulf %709, %706 : vector<16x128xf32>
    %711 = arith.addf %697, %710 : vector<16x128xf32>
    %c16_118 = arith.constant 16 : index
    %712 = memref.load %arg4[%c16_118] : memref<144xf32, #tpu.memory_space<smem>>
    %713 = vector.broadcast %712 : f32 to vector<16x128xf32>
    %714 = arith.mulf %713, %705 : vector<16x128xf32>
    %715 = arith.addf %711, %714 : vector<16x128xf32>
    %c32_119 = arith.constant 32 : index
    %716 = memref.load %arg4[%c32_119] : memref<144xf32, #tpu.memory_space<smem>>
    %717 = vector.broadcast %716 : f32 to vector<16x128xf32>
    %718 = arith.mulf %717, %707 : vector<16x128xf32>
    %719 = arith.addf %715, %718 : vector<16x128xf32>
    %c1_120 = arith.constant 1 : index
    %720 = memref.load %arg4[%c1_120] : memref<144xf32, #tpu.memory_space<smem>>
    %721 = vector.broadcast %720 : f32 to vector<16x128xf32>
    %722 = arith.mulf %721, %706 : vector<16x128xf32>
    %723 = arith.addf %699, %722 : vector<16x128xf32>
    %c17_121 = arith.constant 17 : index
    %724 = memref.load %arg4[%c17_121] : memref<144xf32, #tpu.memory_space<smem>>
    %725 = vector.broadcast %724 : f32 to vector<16x128xf32>
    %726 = arith.mulf %725, %705 : vector<16x128xf32>
    %727 = arith.addf %723, %726 : vector<16x128xf32>
    %c33_122 = arith.constant 33 : index
    %728 = memref.load %arg4[%c33_122] : memref<144xf32, #tpu.memory_space<smem>>
    %729 = vector.broadcast %728 : f32 to vector<16x128xf32>
    %730 = arith.mulf %729, %707 : vector<16x128xf32>
    %731 = arith.addf %727, %730 : vector<16x128xf32>
    %c2_123 = arith.constant 2 : index
    %732 = memref.load %arg4[%c2_123] : memref<144xf32, #tpu.memory_space<smem>>
    %733 = vector.broadcast %732 : f32 to vector<16x128xf32>
    %734 = arith.mulf %733, %706 : vector<16x128xf32>
    %735 = arith.addf %701, %734 : vector<16x128xf32>
    %c18_124 = arith.constant 18 : index
    %736 = memref.load %arg4[%c18_124] : memref<144xf32, #tpu.memory_space<smem>>
    %737 = vector.broadcast %736 : f32 to vector<16x128xf32>
    %738 = arith.mulf %737, %705 : vector<16x128xf32>
    %739 = arith.addf %735, %738 : vector<16x128xf32>
    %c34_125 = arith.constant 34 : index
    %740 = memref.load %arg4[%c34_125] : memref<144xf32, #tpu.memory_space<smem>>
    %741 = vector.broadcast %740 : f32 to vector<16x128xf32>
    %742 = arith.mulf %741, %707 : vector<16x128xf32>
    %743 = arith.addf %739, %742 : vector<16x128xf32>
    %c3_126 = arith.constant 3 : index
    %744 = memref.load %arg4[%c3_126] : memref<144xf32, #tpu.memory_space<smem>>
    %745 = vector.broadcast %744 : f32 to vector<16x128xf32>
    %746 = arith.mulf %745, %706 : vector<16x128xf32>
    %747 = arith.addf %703, %746 : vector<16x128xf32>
    %c19_127 = arith.constant 19 : index
    %748 = memref.load %arg4[%c19_127] : memref<144xf32, #tpu.memory_space<smem>>
    %749 = vector.broadcast %748 : f32 to vector<16x128xf32>
    %750 = arith.mulf %749, %705 : vector<16x128xf32>
    %751 = arith.addf %747, %750 : vector<16x128xf32>
    %c35_128 = arith.constant 35 : index
    %752 = memref.load %arg4[%c35_128] : memref<144xf32, #tpu.memory_space<smem>>
    %753 = vector.broadcast %752 : f32 to vector<16x128xf32>
    %754 = arith.mulf %753, %707 : vector<16x128xf32>
    %755 = arith.addf %751, %754 : vector<16x128xf32>
    %c1_129 = arith.constant 1 : index
    %c0_130 = arith.constant 0 : index
    %c0_131 = arith.constant 0 : index
    %756 = vector.load %arg8[%c1_129, %c0_130, %c0_131] : memref<4x18x128xf32, #tpu.memory_space<vmem>>, vector<1x16x128xf32>
    %757 = vector.shape_cast %756 : vector<1x16x128xf32> to vector<16x128xf32>
    %c1_i32_132 = arith.constant 1 : i32
    %758 = tpu.dynamic_rotate %757 by %c1_i32_132 dim 1 : vector<16x128xf32>, i32 -> vector<16x128xf32>
    %c127_i32_133 = arith.constant 127 : i32
    %759 = tpu.dynamic_rotate %757 by %c127_i32_133 dim 1 : vector<16x128xf32>, i32 -> vector<16x128xf32>
    %c4_134 = arith.constant 4 : index
    %760 = memref.load %arg4[%c4_134] : memref<144xf32, #tpu.memory_space<smem>>
    %761 = vector.broadcast %760 : f32 to vector<16x128xf32>
    %762 = arith.mulf %761, %758 : vector<16x128xf32>
    %763 = arith.addf %719, %762 : vector<16x128xf32>
    %c20_135 = arith.constant 20 : index
    %764 = memref.load %arg4[%c20_135] : memref<144xf32, #tpu.memory_space<smem>>
    %765 = vector.broadcast %764 : f32 to vector<16x128xf32>
    %766 = arith.mulf %765, %757 : vector<16x128xf32>
    %767 = arith.addf %763, %766 : vector<16x128xf32>
    %c36_136 = arith.constant 36 : index
    %768 = memref.load %arg4[%c36_136] : memref<144xf32, #tpu.memory_space<smem>>
    %769 = vector.broadcast %768 : f32 to vector<16x128xf32>
    %770 = arith.mulf %769, %759 : vector<16x128xf32>
    %771 = arith.addf %767, %770 : vector<16x128xf32>
    %c5_137 = arith.constant 5 : index
    %772 = memref.load %arg4[%c5_137] : memref<144xf32, #tpu.memory_space<smem>>
    %773 = vector.broadcast %772 : f32 to vector<16x128xf32>
    %774 = arith.mulf %773, %758 : vector<16x128xf32>
    %775 = arith.addf %731, %774 : vector<16x128xf32>
    %c21_138 = arith.constant 21 : index
    %776 = memref.load %arg4[%c21_138] : memref<144xf32, #tpu.memory_space<smem>>
    %777 = vector.broadcast %776 : f32 to vector<16x128xf32>
    %778 = arith.mulf %777, %757 : vector<16x128xf32>
    %779 = arith.addf %775, %778 : vector<16x128xf32>
    %c37_139 = arith.constant 37 : index
    %780 = memref.load %arg4[%c37_139] : memref<144xf32, #tpu.memory_space<smem>>
    %781 = vector.broadcast %780 : f32 to vector<16x128xf32>
    %782 = arith.mulf %781, %759 : vector<16x128xf32>
    %783 = arith.addf %779, %782 : vector<16x128xf32>
    %c6_140 = arith.constant 6 : index
    %784 = memref.load %arg4[%c6_140] : memref<144xf32, #tpu.memory_space<smem>>
    %785 = vector.broadcast %784 : f32 to vector<16x128xf32>
    %786 = arith.mulf %785, %758 : vector<16x128xf32>
    %787 = arith.addf %743, %786 : vector<16x128xf32>
    %c22_141 = arith.constant 22 : index
    %788 = memref.load %arg4[%c22_141] : memref<144xf32, #tpu.memory_space<smem>>
    %789 = vector.broadcast %788 : f32 to vector<16x128xf32>
    %790 = arith.mulf %789, %757 : vector<16x128xf32>
    %791 = arith.addf %787, %790 : vector<16x128xf32>
    %c38_142 = arith.constant 38 : index
    %792 = memref.load %arg4[%c38_142] : memref<144xf32, #tpu.memory_space<smem>>
    %793 = vector.broadcast %792 : f32 to vector<16x128xf32>
    %794 = arith.mulf %793, %759 : vector<16x128xf32>
    %795 = arith.addf %791, %794 : vector<16x128xf32>
    %c7_143 = arith.constant 7 : index
    %796 = memref.load %arg4[%c7_143] : memref<144xf32, #tpu.memory_space<smem>>
    %797 = vector.broadcast %796 : f32 to vector<16x128xf32>
    %798 = arith.mulf %797, %758 : vector<16x128xf32>
    %799 = arith.addf %755, %798 : vector<16x128xf32>
    %c23_144 = arith.constant 23 : index
    %800 = memref.load %arg4[%c23_144] : memref<144xf32, #tpu.memory_space<smem>>
    %801 = vector.broadcast %800 : f32 to vector<16x128xf32>
    %802 = arith.mulf %801, %757 : vector<16x128xf32>
    %803 = arith.addf %799, %802 : vector<16x128xf32>
    %c39_145 = arith.constant 39 : index
    %804 = memref.load %arg4[%c39_145] : memref<144xf32, #tpu.memory_space<smem>>
    %805 = vector.broadcast %804 : f32 to vector<16x128xf32>
    %806 = arith.mulf %805, %759 : vector<16x128xf32>
    %807 = arith.addf %803, %806 : vector<16x128xf32>
    %c2_146 = arith.constant 2 : index
    %c0_147 = arith.constant 0 : index
    %c0_148 = arith.constant 0 : index
    %808 = vector.load %arg8[%c2_146, %c0_147, %c0_148] : memref<4x18x128xf32, #tpu.memory_space<vmem>>, vector<1x16x128xf32>
    %809 = vector.shape_cast %808 : vector<1x16x128xf32> to vector<16x128xf32>
    %c1_i32_149 = arith.constant 1 : i32
    %810 = tpu.dynamic_rotate %809 by %c1_i32_149 dim 1 : vector<16x128xf32>, i32 -> vector<16x128xf32>
    %c127_i32_150 = arith.constant 127 : i32
    %811 = tpu.dynamic_rotate %809 by %c127_i32_150 dim 1 : vector<16x128xf32>, i32 -> vector<16x128xf32>
    %c8_151 = arith.constant 8 : index
    %812 = memref.load %arg4[%c8_151] : memref<144xf32, #tpu.memory_space<smem>>
    %813 = vector.broadcast %812 : f32 to vector<16x128xf32>
    %814 = arith.mulf %813, %810 : vector<16x128xf32>
    %815 = arith.addf %771, %814 : vector<16x128xf32>
    %c24_152 = arith.constant 24 : index
    %816 = memref.load %arg4[%c24_152] : memref<144xf32, #tpu.memory_space<smem>>
    %817 = vector.broadcast %816 : f32 to vector<16x128xf32>
    %818 = arith.mulf %817, %809 : vector<16x128xf32>
    %819 = arith.addf %815, %818 : vector<16x128xf32>
    %c40_153 = arith.constant 40 : index
    %820 = memref.load %arg4[%c40_153] : memref<144xf32, #tpu.memory_space<smem>>
    %821 = vector.broadcast %820 : f32 to vector<16x128xf32>
    %822 = arith.mulf %821, %811 : vector<16x128xf32>
    %823 = arith.addf %819, %822 : vector<16x128xf32>
    %c9_154 = arith.constant 9 : index
    %824 = memref.load %arg4[%c9_154] : memref<144xf32, #tpu.memory_space<smem>>
    %825 = vector.broadcast %824 : f32 to vector<16x128xf32>
    %826 = arith.mulf %825, %810 : vector<16x128xf32>
    %827 = arith.addf %783, %826 : vector<16x128xf32>
    %c25_155 = arith.constant 25 : index
    %828 = memref.load %arg4[%c25_155] : memref<144xf32, #tpu.memory_space<smem>>
    %829 = vector.broadcast %828 : f32 to vector<16x128xf32>
    %830 = arith.mulf %829, %809 : vector<16x128xf32>
    %831 = arith.addf %827, %830 : vector<16x128xf32>
    %c41_156 = arith.constant 41 : index
    %832 = memref.load %arg4[%c41_156] : memref<144xf32, #tpu.memory_space<smem>>
    %833 = vector.broadcast %832 : f32 to vector<16x128xf32>
    %834 = arith.mulf %833, %811 : vector<16x128xf32>
    %835 = arith.addf %831, %834 : vector<16x128xf32>
    %c10_157 = arith.constant 10 : index
    %836 = memref.load %arg4[%c10_157] : memref<144xf32, #tpu.memory_space<smem>>
    %837 = vector.broadcast %836 : f32 to vector<16x128xf32>
    %838 = arith.mulf %837, %810 : vector<16x128xf32>
    %839 = arith.addf %795, %838 : vector<16x128xf32>
    %c26_158 = arith.constant 26 : index
    %840 = memref.load %arg4[%c26_158] : memref<144xf32, #tpu.memory_space<smem>>
    %841 = vector.broadcast %840 : f32 to vector<16x128xf32>
    %842 = arith.mulf %841, %809 : vector<16x128xf32>
    %843 = arith.addf %839, %842 : vector<16x128xf32>
    %c42_159 = arith.constant 42 : index
    %844 = memref.load %arg4[%c42_159] : memref<144xf32, #tpu.memory_space<smem>>
    %845 = vector.broadcast %844 : f32 to vector<16x128xf32>
    %846 = arith.mulf %845, %811 : vector<16x128xf32>
    %847 = arith.addf %843, %846 : vector<16x128xf32>
    %c11_160 = arith.constant 11 : index
    %848 = memref.load %arg4[%c11_160] : memref<144xf32, #tpu.memory_space<smem>>
    %849 = vector.broadcast %848 : f32 to vector<16x128xf32>
    %850 = arith.mulf %849, %810 : vector<16x128xf32>
    %851 = arith.addf %807, %850 : vector<16x128xf32>
    %c27_161 = arith.constant 27 : index
    %852 = memref.load %arg4[%c27_161] : memref<144xf32, #tpu.memory_space<smem>>
    %853 = vector.broadcast %852 : f32 to vector<16x128xf32>
    %854 = arith.mulf %853, %809 : vector<16x128xf32>
    %855 = arith.addf %851, %854 : vector<16x128xf32>
    %c43_162 = arith.constant 43 : index
    %856 = memref.load %arg4[%c43_162] : memref<144xf32, #tpu.memory_space<smem>>
    %857 = vector.broadcast %856 : f32 to vector<16x128xf32>
    %858 = arith.mulf %857, %811 : vector<16x128xf32>
    %859 = arith.addf %855, %858 : vector<16x128xf32>
    %c3_163 = arith.constant 3 : index
    %c0_164 = arith.constant 0 : index
    %c0_165 = arith.constant 0 : index
    %860 = vector.load %arg8[%c3_163, %c0_164, %c0_165] : memref<4x18x128xf32, #tpu.memory_space<vmem>>, vector<1x16x128xf32>
    %861 = vector.shape_cast %860 : vector<1x16x128xf32> to vector<16x128xf32>
    %c1_i32_166 = arith.constant 1 : i32
    %862 = tpu.dynamic_rotate %861 by %c1_i32_166 dim 1 : vector<16x128xf32>, i32 -> vector<16x128xf32>
    %c127_i32_167 = arith.constant 127 : i32
    %863 = tpu.dynamic_rotate %861 by %c127_i32_167 dim 1 : vector<16x128xf32>, i32 -> vector<16x128xf32>
    %c12_168 = arith.constant 12 : index
    %864 = memref.load %arg4[%c12_168] : memref<144xf32, #tpu.memory_space<smem>>
    %865 = vector.broadcast %864 : f32 to vector<16x128xf32>
    %866 = arith.mulf %865, %862 : vector<16x128xf32>
    %867 = arith.addf %823, %866 : vector<16x128xf32>
    %c28_169 = arith.constant 28 : index
    %868 = memref.load %arg4[%c28_169] : memref<144xf32, #tpu.memory_space<smem>>
    %869 = vector.broadcast %868 : f32 to vector<16x128xf32>
    %870 = arith.mulf %869, %861 : vector<16x128xf32>
    %871 = arith.addf %867, %870 : vector<16x128xf32>
    %c44_170 = arith.constant 44 : index
    %872 = memref.load %arg4[%c44_170] : memref<144xf32, #tpu.memory_space<smem>>
    %873 = vector.broadcast %872 : f32 to vector<16x128xf32>
    %874 = arith.mulf %873, %863 : vector<16x128xf32>
    %875 = arith.addf %871, %874 : vector<16x128xf32>
    %c13_171 = arith.constant 13 : index
    %876 = memref.load %arg4[%c13_171] : memref<144xf32, #tpu.memory_space<smem>>
    %877 = vector.broadcast %876 : f32 to vector<16x128xf32>
    %878 = arith.mulf %877, %862 : vector<16x128xf32>
    %879 = arith.addf %835, %878 : vector<16x128xf32>
    %c29_172 = arith.constant 29 : index
    %880 = memref.load %arg4[%c29_172] : memref<144xf32, #tpu.memory_space<smem>>
    %881 = vector.broadcast %880 : f32 to vector<16x128xf32>
    %882 = arith.mulf %881, %861 : vector<16x128xf32>
    %883 = arith.addf %879, %882 : vector<16x128xf32>
    %c45_173 = arith.constant 45 : index
    %884 = memref.load %arg4[%c45_173] : memref<144xf32, #tpu.memory_space<smem>>
    %885 = vector.broadcast %884 : f32 to vector<16x128xf32>
    %886 = arith.mulf %885, %863 : vector<16x128xf32>
    %887 = arith.addf %883, %886 : vector<16x128xf32>
    %c14_174 = arith.constant 14 : index
    %888 = memref.load %arg4[%c14_174] : memref<144xf32, #tpu.memory_space<smem>>
    %889 = vector.broadcast %888 : f32 to vector<16x128xf32>
    %890 = arith.mulf %889, %862 : vector<16x128xf32>
    %891 = arith.addf %847, %890 : vector<16x128xf32>
    %c30_175 = arith.constant 30 : index
    %892 = memref.load %arg4[%c30_175] : memref<144xf32, #tpu.memory_space<smem>>
    %893 = vector.broadcast %892 : f32 to vector<16x128xf32>
    %894 = arith.mulf %893, %861 : vector<16x128xf32>
    %895 = arith.addf %891, %894 : vector<16x128xf32>
    %c46_176 = arith.constant 46 : index
    %896 = memref.load %arg4[%c46_176] : memref<144xf32, #tpu.memory_space<smem>>
    %897 = vector.broadcast %896 : f32 to vector<16x128xf32>
    %898 = arith.mulf %897, %863 : vector<16x128xf32>
    %899 = arith.addf %895, %898 : vector<16x128xf32>
    %c15_177 = arith.constant 15 : index
    %900 = memref.load %arg4[%c15_177] : memref<144xf32, #tpu.memory_space<smem>>
    %901 = vector.broadcast %900 : f32 to vector<16x128xf32>
    %902 = arith.mulf %901, %862 : vector<16x128xf32>
    %903 = arith.addf %859, %902 : vector<16x128xf32>
    %c31_178 = arith.constant 31 : index
    %904 = memref.load %arg4[%c31_178] : memref<144xf32, #tpu.memory_space<smem>>
    %905 = vector.broadcast %904 : f32 to vector<16x128xf32>
    %906 = arith.mulf %905, %861 : vector<16x128xf32>
    %907 = arith.addf %903, %906 : vector<16x128xf32>
    %c47_179 = arith.constant 47 : index
    %908 = memref.load %arg4[%c47_179] : memref<144xf32, #tpu.memory_space<smem>>
    %909 = vector.broadcast %908 : f32 to vector<16x128xf32>
    %910 = arith.mulf %909, %863 : vector<16x128xf32>
    %911 = arith.addf %907, %910 : vector<16x128xf32>
    %c0_180 = arith.constant 0 : index
    %c1_181 = arith.constant 1 : index
    %c0_182 = arith.constant 0 : index
    %912 = vector.load %arg8[%c0_180, %c1_181, %c0_182] : memref<4x18x128xf32, #tpu.memory_space<vmem>>, vector<1x16x128xf32>
    %913 = vector.shape_cast %912 : vector<1x16x128xf32> to vector<16x128xf32>
    %c1_i32_183 = arith.constant 1 : i32
    %914 = tpu.dynamic_rotate %913 by %c1_i32_183 dim 1 : vector<16x128xf32>, i32 -> vector<16x128xf32>
    %c127_i32_184 = arith.constant 127 : i32
    %915 = tpu.dynamic_rotate %913 by %c127_i32_184 dim 1 : vector<16x128xf32>, i32 -> vector<16x128xf32>
    %c48_185 = arith.constant 48 : index
    %916 = memref.load %arg4[%c48_185] : memref<144xf32, #tpu.memory_space<smem>>
    %917 = vector.broadcast %916 : f32 to vector<16x128xf32>
    %918 = arith.mulf %917, %914 : vector<16x128xf32>
    %919 = arith.addf %875, %918 : vector<16x128xf32>
    %c64_186 = arith.constant 64 : index
    %920 = memref.load %arg4[%c64_186] : memref<144xf32, #tpu.memory_space<smem>>
    %921 = vector.broadcast %920 : f32 to vector<16x128xf32>
    %922 = arith.mulf %921, %913 : vector<16x128xf32>
    %923 = arith.addf %919, %922 : vector<16x128xf32>
    %c80_187 = arith.constant 80 : index
    %924 = memref.load %arg4[%c80_187] : memref<144xf32, #tpu.memory_space<smem>>
    %925 = vector.broadcast %924 : f32 to vector<16x128xf32>
    %926 = arith.mulf %925, %915 : vector<16x128xf32>
    %927 = arith.addf %923, %926 : vector<16x128xf32>
    %c49_188 = arith.constant 49 : index
    %928 = memref.load %arg4[%c49_188] : memref<144xf32, #tpu.memory_space<smem>>
    %929 = vector.broadcast %928 : f32 to vector<16x128xf32>
    %930 = arith.mulf %929, %914 : vector<16x128xf32>
    %931 = arith.addf %887, %930 : vector<16x128xf32>
    %c65_189 = arith.constant 65 : index
    %932 = memref.load %arg4[%c65_189] : memref<144xf32, #tpu.memory_space<smem>>
    %933 = vector.broadcast %932 : f32 to vector<16x128xf32>
    %934 = arith.mulf %933, %913 : vector<16x128xf32>
    %935 = arith.addf %931, %934 : vector<16x128xf32>
    %c81_190 = arith.constant 81 : index
    %936 = memref.load %arg4[%c81_190] : memref<144xf32, #tpu.memory_space<smem>>
    %937 = vector.broadcast %936 : f32 to vector<16x128xf32>
    %938 = arith.mulf %937, %915 : vector<16x128xf32>
    %939 = arith.addf %935, %938 : vector<16x128xf32>
    %c50_191 = arith.constant 50 : index
    %940 = memref.load %arg4[%c50_191] : memref<144xf32, #tpu.memory_space<smem>>
    %941 = vector.broadcast %940 : f32 to vector<16x128xf32>
    %942 = arith.mulf %941, %914 : vector<16x128xf32>
    %943 = arith.addf %899, %942 : vector<16x128xf32>
    %c66_192 = arith.constant 66 : index
    %944 = memref.load %arg4[%c66_192] : memref<144xf32, #tpu.memory_space<smem>>
    %945 = vector.broadcast %944 : f32 to vector<16x128xf32>
    %946 = arith.mulf %945, %913 : vector<16x128xf32>
    %947 = arith.addf %943, %946 : vector<16x128xf32>
    %c82_193 = arith.constant 82 : index
    %948 = memref.load %arg4[%c82_193] : memref<144xf32, #tpu.memory_space<smem>>
    %949 = vector.broadcast %948 : f32 to vector<16x128xf32>
    %950 = arith.mulf %949, %915 : vector<16x128xf32>
    %951 = arith.addf %947, %950 : vector<16x128xf32>
    %c51_194 = arith.constant 51 : index
    %952 = memref.load %arg4[%c51_194] : memref<144xf32, #tpu.memory_space<smem>>
    %953 = vector.broadcast %952 : f32 to vector<16x128xf32>
    %954 = arith.mulf %953, %914 : vector<16x128xf32>
    %955 = arith.addf %911, %954 : vector<16x128xf32>
    %c67_195 = arith.constant 67 : index
    %956 = memref.load %arg4[%c67_195] : memref<144xf32, #tpu.memory_space<smem>>
    %957 = vector.broadcast %956 : f32 to vector<16x128xf32>
    %958 = arith.mulf %957, %913 : vector<16x128xf32>
    %959 = arith.addf %955, %958 : vector<16x128xf32>
    %c83_196 = arith.constant 83 : index
    %960 = memref.load %arg4[%c83_196] : memref<144xf32, #tpu.memory_space<smem>>
    %961 = vector.broadcast %960 : f32 to vector<16x128xf32>
    %962 = arith.mulf %961, %915 : vector<16x128xf32>
    %963 = arith.addf %959, %962 : vector<16x128xf32>
    %c1_197 = arith.constant 1 : index
    %c1_198 = arith.constant 1 : index
    %c0_199 = arith.constant 0 : index
    %964 = vector.load %arg8[%c1_197, %c1_198, %c0_199] : memref<4x18x128xf32, #tpu.memory_space<vmem>>, vector<1x16x128xf32>
    %965 = vector.shape_cast %964 : vector<1x16x128xf32> to vector<16x128xf32>
    %c1_i32_200 = arith.constant 1 : i32
    %966 = tpu.dynamic_rotate %965 by %c1_i32_200 dim 1 : vector<16x128xf32>, i32 -> vector<16x128xf32>
    %c127_i32_201 = arith.constant 127 : i32
    %967 = tpu.dynamic_rotate %965 by %c127_i32_201 dim 1 : vector<16x128xf32>, i32 -> vector<16x128xf32>
    %c52_202 = arith.constant 52 : index
    %968 = memref.load %arg4[%c52_202] : memref<144xf32, #tpu.memory_space<smem>>
    %969 = vector.broadcast %968 : f32 to vector<16x128xf32>
    %970 = arith.mulf %969, %966 : vector<16x128xf32>
    %971 = arith.addf %927, %970 : vector<16x128xf32>
    %c68_203 = arith.constant 68 : index
    %972 = memref.load %arg4[%c68_203] : memref<144xf32, #tpu.memory_space<smem>>
    %973 = vector.broadcast %972 : f32 to vector<16x128xf32>
    %974 = arith.mulf %973, %965 : vector<16x128xf32>
    %975 = arith.addf %971, %974 : vector<16x128xf32>
    %c84_204 = arith.constant 84 : index
    %976 = memref.load %arg4[%c84_204] : memref<144xf32, #tpu.memory_space<smem>>
    %977 = vector.broadcast %976 : f32 to vector<16x128xf32>
    %978 = arith.mulf %977, %967 : vector<16x128xf32>
    %979 = arith.addf %975, %978 : vector<16x128xf32>
    %c53_205 = arith.constant 53 : index
    %980 = memref.load %arg4[%c53_205] : memref<144xf32, #tpu.memory_space<smem>>
    %981 = vector.broadcast %980 : f32 to vector<16x128xf32>
    %982 = arith.mulf %981, %966 : vector<16x128xf32>
    %983 = arith.addf %939, %982 : vector<16x128xf32>
    %c69_206 = arith.constant 69 : index
    %984 = memref.load %arg4[%c69_206] : memref<144xf32, #tpu.memory_space<smem>>
    %985 = vector.broadcast %984 : f32 to vector<16x128xf32>
    %986 = arith.mulf %985, %965 : vector<16x128xf32>
    %987 = arith.addf %983, %986 : vector<16x128xf32>
    %c85_207 = arith.constant 85 : index
    %988 = memref.load %arg4[%c85_207] : memref<144xf32, #tpu.memory_space<smem>>
    %989 = vector.broadcast %988 : f32 to vector<16x128xf32>
    %990 = arith.mulf %989, %967 : vector<16x128xf32>
    %991 = arith.addf %987, %990 : vector<16x128xf32>
    %c54_208 = arith.constant 54 : index
    %992 = memref.load %arg4[%c54_208] : memref<144xf32, #tpu.memory_space<smem>>
    %993 = vector.broadcast %992 : f32 to vector<16x128xf32>
    %994 = arith.mulf %993, %966 : vector<16x128xf32>
    %995 = arith.addf %951, %994 : vector<16x128xf32>
    %c70_209 = arith.constant 70 : index
    %996 = memref.load %arg4[%c70_209] : memref<144xf32, #tpu.memory_space<smem>>
    %997 = vector.broadcast %996 : f32 to vector<16x128xf32>
    %998 = arith.mulf %997, %965 : vector<16x128xf32>
    %999 = arith.addf %995, %998 : vector<16x128xf32>
    %c86_210 = arith.constant 86 : index
    %1000 = memref.load %arg4[%c86_210] : memref<144xf32, #tpu.memory_space<smem>>
    %1001 = vector.broadcast %1000 : f32 to vector<16x128xf32>
    %1002 = arith.mulf %1001, %967 : vector<16x128xf32>
    %1003 = arith.addf %999, %1002 : vector<16x128xf32>
    %c55_211 = arith.constant 55 : index
    %1004 = memref.load %arg4[%c55_211] : memref<144xf32, #tpu.memory_space<smem>>
    %1005 = vector.broadcast %1004 : f32 to vector<16x128xf32>
    %1006 = arith.mulf %1005, %966 : vector<16x128xf32>
    %1007 = arith.addf %963, %1006 : vector<16x128xf32>
    %c71_212 = arith.constant 71 : index
    %1008 = memref.load %arg4[%c71_212] : memref<144xf32, #tpu.memory_space<smem>>
    %1009 = vector.broadcast %1008 : f32 to vector<16x128xf32>
    %1010 = arith.mulf %1009, %965 : vector<16x128xf32>
    %1011 = arith.addf %1007, %1010 : vector<16x128xf32>
    %c87_213 = arith.constant 87 : index
    %1012 = memref.load %arg4[%c87_213] : memref<144xf32, #tpu.memory_space<smem>>
    %1013 = vector.broadcast %1012 : f32 to vector<16x128xf32>
    %1014 = arith.mulf %1013, %967 : vector<16x128xf32>
    %1015 = arith.addf %1011, %1014 : vector<16x128xf32>
    %c2_214 = arith.constant 2 : index
    %c1_215 = arith.constant 1 : index
    %c0_216 = arith.constant 0 : index
    %1016 = vector.load %arg8[%c2_214, %c1_215, %c0_216] : memref<4x18x128xf32, #tpu.memory_space<vmem>>, vector<1x16x128xf32>
    %1017 = vector.shape_cast %1016 : vector<1x16x128xf32> to vector<16x128xf32>
    %c1_i32_217 = arith.constant 1 : i32
    %1018 = tpu.dynamic_rotate %1017 by %c1_i32_217 dim 1 : vector<16x128xf32>, i32 -> vector<16x128xf32>
    %c127_i32_218 = arith.constant 127 : i32
    %1019 = tpu.dynamic_rotate %1017 by %c127_i32_218 dim 1 : vector<16x128xf32>, i32 -> vector<16x128xf32>
    %c56_219 = arith.constant 56 : index
    %1020 = memref.load %arg4[%c56_219] : memref<144xf32, #tpu.memory_space<smem>>
    %1021 = vector.broadcast %1020 : f32 to vector<16x128xf32>
    %1022 = arith.mulf %1021, %1018 : vector<16x128xf32>
    %1023 = arith.addf %979, %1022 : vector<16x128xf32>
    %c72_220 = arith.constant 72 : index
    %1024 = memref.load %arg4[%c72_220] : memref<144xf32, #tpu.memory_space<smem>>
    %1025 = vector.broadcast %1024 : f32 to vector<16x128xf32>
    %1026 = arith.mulf %1025, %1017 : vector<16x128xf32>
    %1027 = arith.addf %1023, %1026 : vector<16x128xf32>
    %c88_221 = arith.constant 88 : index
    %1028 = memref.load %arg4[%c88_221] : memref<144xf32, #tpu.memory_space<smem>>
    %1029 = vector.broadcast %1028 : f32 to vector<16x128xf32>
    %1030 = arith.mulf %1029, %1019 : vector<16x128xf32>
    %1031 = arith.addf %1027, %1030 : vector<16x128xf32>
    %c57_222 = arith.constant 57 : index
    %1032 = memref.load %arg4[%c57_222] : memref<144xf32, #tpu.memory_space<smem>>
    %1033 = vector.broadcast %1032 : f32 to vector<16x128xf32>
    %1034 = arith.mulf %1033, %1018 : vector<16x128xf32>
    %1035 = arith.addf %991, %1034 : vector<16x128xf32>
    %c73_223 = arith.constant 73 : index
    %1036 = memref.load %arg4[%c73_223] : memref<144xf32, #tpu.memory_space<smem>>
    %1037 = vector.broadcast %1036 : f32 to vector<16x128xf32>
    %1038 = arith.mulf %1037, %1017 : vector<16x128xf32>
    %1039 = arith.addf %1035, %1038 : vector<16x128xf32>
    %c89_224 = arith.constant 89 : index
    %1040 = memref.load %arg4[%c89_224] : memref<144xf32, #tpu.memory_space<smem>>
    %1041 = vector.broadcast %1040 : f32 to vector<16x128xf32>
    %1042 = arith.mulf %1041, %1019 : vector<16x128xf32>
    %1043 = arith.addf %1039, %1042 : vector<16x128xf32>
    %c58_225 = arith.constant 58 : index
    %1044 = memref.load %arg4[%c58_225] : memref<144xf32, #tpu.memory_space<smem>>
    %1045 = vector.broadcast %1044 : f32 to vector<16x128xf32>
    %1046 = arith.mulf %1045, %1018 : vector<16x128xf32>
    %1047 = arith.addf %1003, %1046 : vector<16x128xf32>
    %c74_226 = arith.constant 74 : index
    %1048 = memref.load %arg4[%c74_226] : memref<144xf32, #tpu.memory_space<smem>>
    %1049 = vector.broadcast %1048 : f32 to vector<16x128xf32>
    %1050 = arith.mulf %1049, %1017 : vector<16x128xf32>
    %1051 = arith.addf %1047, %1050 : vector<16x128xf32>
    %c90_227 = arith.constant 90 : index
    %1052 = memref.load %arg4[%c90_227] : memref<144xf32, #tpu.memory_space<smem>>
    %1053 = vector.broadcast %1052 : f32 to vector<16x128xf32>
    %1054 = arith.mulf %1053, %1019 : vector<16x128xf32>
    %1055 = arith.addf %1051, %1054 : vector<16x128xf32>
    %c59_228 = arith.constant 59 : index
    %1056 = memref.load %arg4[%c59_228] : memref<144xf32, #tpu.memory_space<smem>>
    %1057 = vector.broadcast %1056 : f32 to vector<16x128xf32>
    %1058 = arith.mulf %1057, %1018 : vector<16x128xf32>
    %1059 = arith.addf %1015, %1058 : vector<16x128xf32>
    %c75_229 = arith.constant 75 : index
    %1060 = memref.load %arg4[%c75_229] : memref<144xf32, #tpu.memory_space<smem>>
    %1061 = vector.broadcast %1060 : f32 to vector<16x128xf32>
    %1062 = arith.mulf %1061, %1017 : vector<16x128xf32>
    %1063 = arith.addf %1059, %1062 : vector<16x128xf32>
    %c91_230 = arith.constant 91 : index
    %1064 = memref.load %arg4[%c91_230] : memref<144xf32, #tpu.memory_space<smem>>
    %1065 = vector.broadcast %1064 : f32 to vector<16x128xf32>
    %1066 = arith.mulf %1065, %1019 : vector<16x128xf32>
    %1067 = arith.addf %1063, %1066 : vector<16x128xf32>
    %c3_231 = arith.constant 3 : index
    %c1_232 = arith.constant 1 : index
    %c0_233 = arith.constant 0 : index
    %1068 = vector.load %arg8[%c3_231, %c1_232, %c0_233] : memref<4x18x128xf32, #tpu.memory_space<vmem>>, vector<1x16x128xf32>
    %1069 = vector.shape_cast %1068 : vector<1x16x128xf32> to vector<16x128xf32>
    %c1_i32_234 = arith.constant 1 : i32
    %1070 = tpu.dynamic_rotate %1069 by %c1_i32_234 dim 1 : vector<16x128xf32>, i32 -> vector<16x128xf32>
    %c127_i32_235 = arith.constant 127 : i32
    %1071 = tpu.dynamic_rotate %1069 by %c127_i32_235 dim 1 : vector<16x128xf32>, i32 -> vector<16x128xf32>
    %c60_236 = arith.constant 60 : index
    %1072 = memref.load %arg4[%c60_236] : memref<144xf32, #tpu.memory_space<smem>>
    %1073 = vector.broadcast %1072 : f32 to vector<16x128xf32>
    %1074 = arith.mulf %1073, %1070 : vector<16x128xf32>
    %1075 = arith.addf %1031, %1074 : vector<16x128xf32>
    %c76_237 = arith.constant 76 : index
    %1076 = memref.load %arg4[%c76_237] : memref<144xf32, #tpu.memory_space<smem>>
    %1077 = vector.broadcast %1076 : f32 to vector<16x128xf32>
    %1078 = arith.mulf %1077, %1069 : vector<16x128xf32>
    %1079 = arith.addf %1075, %1078 : vector<16x128xf32>
    %c92_238 = arith.constant 92 : index
    %1080 = memref.load %arg4[%c92_238] : memref<144xf32, #tpu.memory_space<smem>>
    %1081 = vector.broadcast %1080 : f32 to vector<16x128xf32>
    %1082 = arith.mulf %1081, %1071 : vector<16x128xf32>
    %1083 = arith.addf %1079, %1082 : vector<16x128xf32>
    %c61_239 = arith.constant 61 : index
    %1084 = memref.load %arg4[%c61_239] : memref<144xf32, #tpu.memory_space<smem>>
    %1085 = vector.broadcast %1084 : f32 to vector<16x128xf32>
    %1086 = arith.mulf %1085, %1070 : vector<16x128xf32>
    %1087 = arith.addf %1043, %1086 : vector<16x128xf32>
    %c77_240 = arith.constant 77 : index
    %1088 = memref.load %arg4[%c77_240] : memref<144xf32, #tpu.memory_space<smem>>
    %1089 = vector.broadcast %1088 : f32 to vector<16x128xf32>
    %1090 = arith.mulf %1089, %1069 : vector<16x128xf32>
    %1091 = arith.addf %1087, %1090 : vector<16x128xf32>
    %c93_241 = arith.constant 93 : index
    %1092 = memref.load %arg4[%c93_241] : memref<144xf32, #tpu.memory_space<smem>>
    %1093 = vector.broadcast %1092 : f32 to vector<16x128xf32>
    %1094 = arith.mulf %1093, %1071 : vector<16x128xf32>
    %1095 = arith.addf %1091, %1094 : vector<16x128xf32>
    %c62_242 = arith.constant 62 : index
    %1096 = memref.load %arg4[%c62_242] : memref<144xf32, #tpu.memory_space<smem>>
    %1097 = vector.broadcast %1096 : f32 to vector<16x128xf32>
    %1098 = arith.mulf %1097, %1070 : vector<16x128xf32>
    %1099 = arith.addf %1055, %1098 : vector<16x128xf32>
    %c78_243 = arith.constant 78 : index
    %1100 = memref.load %arg4[%c78_243] : memref<144xf32, #tpu.memory_space<smem>>
    %1101 = vector.broadcast %1100 : f32 to vector<16x128xf32>
    %1102 = arith.mulf %1101, %1069 : vector<16x128xf32>
    %1103 = arith.addf %1099, %1102 : vector<16x128xf32>
    %c94_244 = arith.constant 94 : index
    %1104 = memref.load %arg4[%c94_244] : memref<144xf32, #tpu.memory_space<smem>>
    %1105 = vector.broadcast %1104 : f32 to vector<16x128xf32>
    %1106 = arith.mulf %1105, %1071 : vector<16x128xf32>
    %1107 = arith.addf %1103, %1106 : vector<16x128xf32>
    %c63_245 = arith.constant 63 : index
    %1108 = memref.load %arg4[%c63_245] : memref<144xf32, #tpu.memory_space<smem>>
    %1109 = vector.broadcast %1108 : f32 to vector<16x128xf32>
    %1110 = arith.mulf %1109, %1070 : vector<16x128xf32>
    %1111 = arith.addf %1067, %1110 : vector<16x128xf32>
    %c79_246 = arith.constant 79 : index
    %1112 = memref.load %arg4[%c79_246] : memref<144xf32, #tpu.memory_space<smem>>
    %1113 = vector.broadcast %1112 : f32 to vector<16x128xf32>
    %1114 = arith.mulf %1113, %1069 : vector<16x128xf32>
    %1115 = arith.addf %1111, %1114 : vector<16x128xf32>
    %c95_247 = arith.constant 95 : index
    %1116 = memref.load %arg4[%c95_247] : memref<144xf32, #tpu.memory_space<smem>>
    %1117 = vector.broadcast %1116 : f32 to vector<16x128xf32>
    %1118 = arith.mulf %1117, %1071 : vector<16x128xf32>
    %1119 = arith.addf %1115, %1118 : vector<16x128xf32>
    %c0_248 = arith.constant 0 : index
    %c2_249 = arith.constant 2 : index
    %c0_250 = arith.constant 0 : index
    %1120 = vector.load %arg8[%c0_248, %c2_249, %c0_250] : memref<4x18x128xf32, #tpu.memory_space<vmem>>, vector<1x16x128xf32>
    %1121 = vector.shape_cast %1120 : vector<1x16x128xf32> to vector<16x128xf32>
    %c1_i32_251 = arith.constant 1 : i32
    %1122 = tpu.dynamic_rotate %1121 by %c1_i32_251 dim 1 : vector<16x128xf32>, i32 -> vector<16x128xf32>
    %c127_i32_252 = arith.constant 127 : i32
    %1123 = tpu.dynamic_rotate %1121 by %c127_i32_252 dim 1 : vector<16x128xf32>, i32 -> vector<16x128xf32>
    %c96_253 = arith.constant 96 : index
    %1124 = memref.load %arg4[%c96_253] : memref<144xf32, #tpu.memory_space<smem>>
    %1125 = vector.broadcast %1124 : f32 to vector<16x128xf32>
    %1126 = arith.mulf %1125, %1122 : vector<16x128xf32>
    %1127 = arith.addf %1083, %1126 : vector<16x128xf32>
    %c112_254 = arith.constant 112 : index
    %1128 = memref.load %arg4[%c112_254] : memref<144xf32, #tpu.memory_space<smem>>
    %1129 = vector.broadcast %1128 : f32 to vector<16x128xf32>
    %1130 = arith.mulf %1129, %1121 : vector<16x128xf32>
    %1131 = arith.addf %1127, %1130 : vector<16x128xf32>
    %c128_255 = arith.constant 128 : index
    %1132 = memref.load %arg4[%c128_255] : memref<144xf32, #tpu.memory_space<smem>>
    %1133 = vector.broadcast %1132 : f32 to vector<16x128xf32>
    %1134 = arith.mulf %1133, %1123 : vector<16x128xf32>
    %1135 = arith.addf %1131, %1134 : vector<16x128xf32>
    %c97_256 = arith.constant 97 : index
    %1136 = memref.load %arg4[%c97_256] : memref<144xf32, #tpu.memory_space<smem>>
    %1137 = vector.broadcast %1136 : f32 to vector<16x128xf32>
    %1138 = arith.mulf %1137, %1122 : vector<16x128xf32>
    %1139 = arith.addf %1095, %1138 : vector<16x128xf32>
    %c113_257 = arith.constant 113 : index
    %1140 = memref.load %arg4[%c113_257] : memref<144xf32, #tpu.memory_space<smem>>
    %1141 = vector.broadcast %1140 : f32 to vector<16x128xf32>
    %1142 = arith.mulf %1141, %1121 : vector<16x128xf32>
    %1143 = arith.addf %1139, %1142 : vector<16x128xf32>
    %c129_258 = arith.constant 129 : index
    %1144 = memref.load %arg4[%c129_258] : memref<144xf32, #tpu.memory_space<smem>>
    %1145 = vector.broadcast %1144 : f32 to vector<16x128xf32>
    %1146 = arith.mulf %1145, %1123 : vector<16x128xf32>
    %1147 = arith.addf %1143, %1146 : vector<16x128xf32>
    %c98_259 = arith.constant 98 : index
    %1148 = memref.load %arg4[%c98_259] : memref<144xf32, #tpu.memory_space<smem>>
    %1149 = vector.broadcast %1148 : f32 to vector<16x128xf32>
    %1150 = arith.mulf %1149, %1122 : vector<16x128xf32>
    %1151 = arith.addf %1107, %1150 : vector<16x128xf32>
    %c114_260 = arith.constant 114 : index
    %1152 = memref.load %arg4[%c114_260] : memref<144xf32, #tpu.memory_space<smem>>
    %1153 = vector.broadcast %1152 : f32 to vector<16x128xf32>
    %1154 = arith.mulf %1153, %1121 : vector<16x128xf32>
    %1155 = arith.addf %1151, %1154 : vector<16x128xf32>
    %c130_261 = arith.constant 130 : index
    %1156 = memref.load %arg4[%c130_261] : memref<144xf32, #tpu.memory_space<smem>>
    %1157 = vector.broadcast %1156 : f32 to vector<16x128xf32>
    %1158 = arith.mulf %1157, %1123 : vector<16x128xf32>
    %1159 = arith.addf %1155, %1158 : vector<16x128xf32>
    %c99_262 = arith.constant 99 : index
    %1160 = memref.load %arg4[%c99_262] : memref<144xf32, #tpu.memory_space<smem>>
    %1161 = vector.broadcast %1160 : f32 to vector<16x128xf32>
    %1162 = arith.mulf %1161, %1122 : vector<16x128xf32>
    %1163 = arith.addf %1119, %1162 : vector<16x128xf32>
    %c115_263 = arith.constant 115 : index
    %1164 = memref.load %arg4[%c115_263] : memref<144xf32, #tpu.memory_space<smem>>
    %1165 = vector.broadcast %1164 : f32 to vector<16x128xf32>
    %1166 = arith.mulf %1165, %1121 : vector<16x128xf32>
    %1167 = arith.addf %1163, %1166 : vector<16x128xf32>
    %c131_264 = arith.constant 131 : index
    %1168 = memref.load %arg4[%c131_264] : memref<144xf32, #tpu.memory_space<smem>>
    %1169 = vector.broadcast %1168 : f32 to vector<16x128xf32>
    %1170 = arith.mulf %1169, %1123 : vector<16x128xf32>
    %1171 = arith.addf %1167, %1170 : vector<16x128xf32>
    %c1_265 = arith.constant 1 : index
    %c2_266 = arith.constant 2 : index
    %c0_267 = arith.constant 0 : index
    %1172 = vector.load %arg8[%c1_265, %c2_266, %c0_267] : memref<4x18x128xf32, #tpu.memory_space<vmem>>, vector<1x16x128xf32>
    %1173 = vector.shape_cast %1172 : vector<1x16x128xf32> to vector<16x128xf32>
    %c1_i32_268 = arith.constant 1 : i32
    %1174 = tpu.dynamic_rotate %1173 by %c1_i32_268 dim 1 : vector<16x128xf32>, i32 -> vector<16x128xf32>
    %c127_i32_269 = arith.constant 127 : i32
    %1175 = tpu.dynamic_rotate %1173 by %c127_i32_269 dim 1 : vector<16x128xf32>, i32 -> vector<16x128xf32>
    %c100_270 = arith.constant 100 : index
    %1176 = memref.load %arg4[%c100_270] : memref<144xf32, #tpu.memory_space<smem>>
    %1177 = vector.broadcast %1176 : f32 to vector<16x128xf32>
    %1178 = arith.mulf %1177, %1174 : vector<16x128xf32>
    %1179 = arith.addf %1135, %1178 : vector<16x128xf32>
    %c116_271 = arith.constant 116 : index
    %1180 = memref.load %arg4[%c116_271] : memref<144xf32, #tpu.memory_space<smem>>
    %1181 = vector.broadcast %1180 : f32 to vector<16x128xf32>
    %1182 = arith.mulf %1181, %1173 : vector<16x128xf32>
    %1183 = arith.addf %1179, %1182 : vector<16x128xf32>
    %c132_272 = arith.constant 132 : index
    %1184 = memref.load %arg4[%c132_272] : memref<144xf32, #tpu.memory_space<smem>>
    %1185 = vector.broadcast %1184 : f32 to vector<16x128xf32>
    %1186 = arith.mulf %1185, %1175 : vector<16x128xf32>
    %1187 = arith.addf %1183, %1186 : vector<16x128xf32>
    %c101_273 = arith.constant 101 : index
    %1188 = memref.load %arg4[%c101_273] : memref<144xf32, #tpu.memory_space<smem>>
    %1189 = vector.broadcast %1188 : f32 to vector<16x128xf32>
    %1190 = arith.mulf %1189, %1174 : vector<16x128xf32>
    %1191 = arith.addf %1147, %1190 : vector<16x128xf32>
    %c117_274 = arith.constant 117 : index
    %1192 = memref.load %arg4[%c117_274] : memref<144xf32, #tpu.memory_space<smem>>
    %1193 = vector.broadcast %1192 : f32 to vector<16x128xf32>
    %1194 = arith.mulf %1193, %1173 : vector<16x128xf32>
    %1195 = arith.addf %1191, %1194 : vector<16x128xf32>
    %c133_275 = arith.constant 133 : index
    %1196 = memref.load %arg4[%c133_275] : memref<144xf32, #tpu.memory_space<smem>>
    %1197 = vector.broadcast %1196 : f32 to vector<16x128xf32>
    %1198 = arith.mulf %1197, %1175 : vector<16x128xf32>
    %1199 = arith.addf %1195, %1198 : vector<16x128xf32>
    %c102_276 = arith.constant 102 : index
    %1200 = memref.load %arg4[%c102_276] : memref<144xf32, #tpu.memory_space<smem>>
    %1201 = vector.broadcast %1200 : f32 to vector<16x128xf32>
    %1202 = arith.mulf %1201, %1174 : vector<16x128xf32>
    %1203 = arith.addf %1159, %1202 : vector<16x128xf32>
    %c118_277 = arith.constant 118 : index
    %1204 = memref.load %arg4[%c118_277] : memref<144xf32, #tpu.memory_space<smem>>
    %1205 = vector.broadcast %1204 : f32 to vector<16x128xf32>
    %1206 = arith.mulf %1205, %1173 : vector<16x128xf32>
    %1207 = arith.addf %1203, %1206 : vector<16x128xf32>
    %c134_278 = arith.constant 134 : index
    %1208 = memref.load %arg4[%c134_278] : memref<144xf32, #tpu.memory_space<smem>>
    %1209 = vector.broadcast %1208 : f32 to vector<16x128xf32>
    %1210 = arith.mulf %1209, %1175 : vector<16x128xf32>
    %1211 = arith.addf %1207, %1210 : vector<16x128xf32>
    %c103_279 = arith.constant 103 : index
    %1212 = memref.load %arg4[%c103_279] : memref<144xf32, #tpu.memory_space<smem>>
    %1213 = vector.broadcast %1212 : f32 to vector<16x128xf32>
    %1214 = arith.mulf %1213, %1174 : vector<16x128xf32>
    %1215 = arith.addf %1171, %1214 : vector<16x128xf32>
    %c119_280 = arith.constant 119 : index
    %1216 = memref.load %arg4[%c119_280] : memref<144xf32, #tpu.memory_space<smem>>
    %1217 = vector.broadcast %1216 : f32 to vector<16x128xf32>
    %1218 = arith.mulf %1217, %1173 : vector<16x128xf32>
    %1219 = arith.addf %1215, %1218 : vector<16x128xf32>
    %c135_281 = arith.constant 135 : index
    %1220 = memref.load %arg4[%c135_281] : memref<144xf32, #tpu.memory_space<smem>>
    %1221 = vector.broadcast %1220 : f32 to vector<16x128xf32>
    %1222 = arith.mulf %1221, %1175 : vector<16x128xf32>
    %1223 = arith.addf %1219, %1222 : vector<16x128xf32>
    %c2_282 = arith.constant 2 : index
    %c2_283 = arith.constant 2 : index
    %c0_284 = arith.constant 0 : index
    %1224 = vector.load %arg8[%c2_282, %c2_283, %c0_284] : memref<4x18x128xf32, #tpu.memory_space<vmem>>, vector<1x16x128xf32>
    %1225 = vector.shape_cast %1224 : vector<1x16x128xf32> to vector<16x128xf32>
    %c1_i32_285 = arith.constant 1 : i32
    %1226 = tpu.dynamic_rotate %1225 by %c1_i32_285 dim 1 : vector<16x128xf32>, i32 -> vector<16x128xf32>
    %c127_i32_286 = arith.constant 127 : i32
    %1227 = tpu.dynamic_rotate %1225 by %c127_i32_286 dim 1 : vector<16x128xf32>, i32 -> vector<16x128xf32>
    %c104_287 = arith.constant 104 : index
    %1228 = memref.load %arg4[%c104_287] : memref<144xf32, #tpu.memory_space<smem>>
    %1229 = vector.broadcast %1228 : f32 to vector<16x128xf32>
    %1230 = arith.mulf %1229, %1226 : vector<16x128xf32>
    %1231 = arith.addf %1187, %1230 : vector<16x128xf32>
    %c120_288 = arith.constant 120 : index
    %1232 = memref.load %arg4[%c120_288] : memref<144xf32, #tpu.memory_space<smem>>
    %1233 = vector.broadcast %1232 : f32 to vector<16x128xf32>
    %1234 = arith.mulf %1233, %1225 : vector<16x128xf32>
    %1235 = arith.addf %1231, %1234 : vector<16x128xf32>
    %c136_289 = arith.constant 136 : index
    %1236 = memref.load %arg4[%c136_289] : memref<144xf32, #tpu.memory_space<smem>>
    %1237 = vector.broadcast %1236 : f32 to vector<16x128xf32>
    %1238 = arith.mulf %1237, %1227 : vector<16x128xf32>
    %1239 = arith.addf %1235, %1238 : vector<16x128xf32>
    %c105_290 = arith.constant 105 : index
    %1240 = memref.load %arg4[%c105_290] : memref<144xf32, #tpu.memory_space<smem>>
    %1241 = vector.broadcast %1240 : f32 to vector<16x128xf32>
    %1242 = arith.mulf %1241, %1226 : vector<16x128xf32>
    %1243 = arith.addf %1199, %1242 : vector<16x128xf32>
    %c121_291 = arith.constant 121 : index
    %1244 = memref.load %arg4[%c121_291] : memref<144xf32, #tpu.memory_space<smem>>
    %1245 = vector.broadcast %1244 : f32 to vector<16x128xf32>
    %1246 = arith.mulf %1245, %1225 : vector<16x128xf32>
    %1247 = arith.addf %1243, %1246 : vector<16x128xf32>
    %c137_292 = arith.constant 137 : index
    %1248 = memref.load %arg4[%c137_292] : memref<144xf32, #tpu.memory_space<smem>>
    %1249 = vector.broadcast %1248 : f32 to vector<16x128xf32>
    %1250 = arith.mulf %1249, %1227 : vector<16x128xf32>
    %1251 = arith.addf %1247, %1250 : vector<16x128xf32>
    %c106_293 = arith.constant 106 : index
    %1252 = memref.load %arg4[%c106_293] : memref<144xf32, #tpu.memory_space<smem>>
    %1253 = vector.broadcast %1252 : f32 to vector<16x128xf32>
    %1254 = arith.mulf %1253, %1226 : vector<16x128xf32>
    %1255 = arith.addf %1211, %1254 : vector<16x128xf32>
    %c122_294 = arith.constant 122 : index
    %1256 = memref.load %arg4[%c122_294] : memref<144xf32, #tpu.memory_space<smem>>
    %1257 = vector.broadcast %1256 : f32 to vector<16x128xf32>
    %1258 = arith.mulf %1257, %1225 : vector<16x128xf32>
    %1259 = arith.addf %1255, %1258 : vector<16x128xf32>
    %c138_295 = arith.constant 138 : index
    %1260 = memref.load %arg4[%c138_295] : memref<144xf32, #tpu.memory_space<smem>>
    %1261 = vector.broadcast %1260 : f32 to vector<16x128xf32>
    %1262 = arith.mulf %1261, %1227 : vector<16x128xf32>
    %1263 = arith.addf %1259, %1262 : vector<16x128xf32>
    %c107_296 = arith.constant 107 : index
    %1264 = memref.load %arg4[%c107_296] : memref<144xf32, #tpu.memory_space<smem>>
    %1265 = vector.broadcast %1264 : f32 to vector<16x128xf32>
    %1266 = arith.mulf %1265, %1226 : vector<16x128xf32>
    %1267 = arith.addf %1223, %1266 : vector<16x128xf32>
    %c123_297 = arith.constant 123 : index
    %1268 = memref.load %arg4[%c123_297] : memref<144xf32, #tpu.memory_space<smem>>
    %1269 = vector.broadcast %1268 : f32 to vector<16x128xf32>
    %1270 = arith.mulf %1269, %1225 : vector<16x128xf32>
    %1271 = arith.addf %1267, %1270 : vector<16x128xf32>
    %c139_298 = arith.constant 139 : index
    %1272 = memref.load %arg4[%c139_298] : memref<144xf32, #tpu.memory_space<smem>>
    %1273 = vector.broadcast %1272 : f32 to vector<16x128xf32>
    %1274 = arith.mulf %1273, %1227 : vector<16x128xf32>
    %1275 = arith.addf %1271, %1274 : vector<16x128xf32>
    %c3_299 = arith.constant 3 : index
    %c2_300 = arith.constant 2 : index
    %c0_301 = arith.constant 0 : index
    %1276 = vector.load %arg8[%c3_299, %c2_300, %c0_301] : memref<4x18x128xf32, #tpu.memory_space<vmem>>, vector<1x16x128xf32>
    %1277 = vector.shape_cast %1276 : vector<1x16x128xf32> to vector<16x128xf32>
    %c1_i32_302 = arith.constant 1 : i32
    %1278 = tpu.dynamic_rotate %1277 by %c1_i32_302 dim 1 : vector<16x128xf32>, i32 -> vector<16x128xf32>
    %c127_i32_303 = arith.constant 127 : i32
    %1279 = tpu.dynamic_rotate %1277 by %c127_i32_303 dim 1 : vector<16x128xf32>, i32 -> vector<16x128xf32>
    %c108_304 = arith.constant 108 : index
    %1280 = memref.load %arg4[%c108_304] : memref<144xf32, #tpu.memory_space<smem>>
    %1281 = vector.broadcast %1280 : f32 to vector<16x128xf32>
    %1282 = arith.mulf %1281, %1278 : vector<16x128xf32>
    %1283 = arith.addf %1239, %1282 : vector<16x128xf32>
    %c124_305 = arith.constant 124 : index
    %1284 = memref.load %arg4[%c124_305] : memref<144xf32, #tpu.memory_space<smem>>
    %1285 = vector.broadcast %1284 : f32 to vector<16x128xf32>
    %1286 = arith.mulf %1285, %1277 : vector<16x128xf32>
    %1287 = arith.addf %1283, %1286 : vector<16x128xf32>
    %c140_306 = arith.constant 140 : index
    %1288 = memref.load %arg4[%c140_306] : memref<144xf32, #tpu.memory_space<smem>>
    %1289 = vector.broadcast %1288 : f32 to vector<16x128xf32>
    %1290 = arith.mulf %1289, %1279 : vector<16x128xf32>
    %1291 = arith.addf %1287, %1290 : vector<16x128xf32>
    %c109_307 = arith.constant 109 : index
    %1292 = memref.load %arg4[%c109_307] : memref<144xf32, #tpu.memory_space<smem>>
    %1293 = vector.broadcast %1292 : f32 to vector<16x128xf32>
    %1294 = arith.mulf %1293, %1278 : vector<16x128xf32>
    %1295 = arith.addf %1251, %1294 : vector<16x128xf32>
    %c125_308 = arith.constant 125 : index
    %1296 = memref.load %arg4[%c125_308] : memref<144xf32, #tpu.memory_space<smem>>
    %1297 = vector.broadcast %1296 : f32 to vector<16x128xf32>
    %1298 = arith.mulf %1297, %1277 : vector<16x128xf32>
    %1299 = arith.addf %1295, %1298 : vector<16x128xf32>
    %c141_309 = arith.constant 141 : index
    %1300 = memref.load %arg4[%c141_309] : memref<144xf32, #tpu.memory_space<smem>>
    %1301 = vector.broadcast %1300 : f32 to vector<16x128xf32>
    %1302 = arith.mulf %1301, %1279 : vector<16x128xf32>
    %1303 = arith.addf %1299, %1302 : vector<16x128xf32>
    %c110_310 = arith.constant 110 : index
    %1304 = memref.load %arg4[%c110_310] : memref<144xf32, #tpu.memory_space<smem>>
    %1305 = vector.broadcast %1304 : f32 to vector<16x128xf32>
    %1306 = arith.mulf %1305, %1278 : vector<16x128xf32>
    %1307 = arith.addf %1263, %1306 : vector<16x128xf32>
    %c126_311 = arith.constant 126 : index
    %1308 = memref.load %arg4[%c126_311] : memref<144xf32, #tpu.memory_space<smem>>
    %1309 = vector.broadcast %1308 : f32 to vector<16x128xf32>
    %1310 = arith.mulf %1309, %1277 : vector<16x128xf32>
    %1311 = arith.addf %1307, %1310 : vector<16x128xf32>
    %c142_312 = arith.constant 142 : index
    %1312 = memref.load %arg4[%c142_312] : memref<144xf32, #tpu.memory_space<smem>>
    %1313 = vector.broadcast %1312 : f32 to vector<16x128xf32>
    %1314 = arith.mulf %1313, %1279 : vector<16x128xf32>
    %1315 = arith.addf %1311, %1314 : vector<16x128xf32>
    %c111_313 = arith.constant 111 : index
    %1316 = memref.load %arg4[%c111_313] : memref<144xf32, #tpu.memory_space<smem>>
    %1317 = vector.broadcast %1316 : f32 to vector<16x128xf32>
    %1318 = arith.mulf %1317, %1278 : vector<16x128xf32>
    %1319 = arith.addf %1275, %1318 : vector<16x128xf32>
    %c127_314 = arith.constant 127 : index
    %1320 = memref.load %arg4[%c127_314] : memref<144xf32, #tpu.memory_space<smem>>
    %1321 = vector.broadcast %1320 : f32 to vector<16x128xf32>
    %1322 = arith.mulf %1321, %1277 : vector<16x128xf32>
    %1323 = arith.addf %1319, %1322 : vector<16x128xf32>
    %c143_315 = arith.constant 143 : index
    %1324 = memref.load %arg4[%c143_315] : memref<144xf32, #tpu.memory_space<smem>>
    %1325 = vector.broadcast %1324 : f32 to vector<16x128xf32>
    %1326 = arith.mulf %1325, %1279 : vector<16x128xf32>
    %1327 = arith.addf %1323, %1326 : vector<16x128xf32>
    %c0_316 = arith.constant 0 : index
    %c1_317 = arith.constant 1 : index
    %c0_318 = arith.constant 0 : index
    %1328 = vector.load %arg7[%c0_316, %c1_317, %c0_318] : memref<4x18x128xf32, #tpu.memory_space<vmem>>, vector<1x16x128xf32>
    %1329 = vector.shape_cast %1328 : vector<1x16x128xf32> to vector<16x128xf32>
    %1330 = arith.addf %1291, %1329 : vector<16x128xf32>
    %c0_319 = arith.constant 0 : index
    %c0_320 = arith.constant 0 : index
    %c0_321 = arith.constant 0 : index
    %c0_322 = arith.constant 0 : index
    %1331 = vector.load %arg6[%c0_319, %c0_320, %c0_321, %c0_322] : memref<1x4x16x128xf32, #tpu.memory_space<vmem>>, vector<1x1x16x128xf32>
    %1332 = vector.shape_cast %1331 : vector<1x1x16x128xf32> to vector<16x128xf32>
    %1333 = vector.shape_cast %1330 : vector<16x128xf32> to vector<1x1x16x128xf32>
    tpu.vector_store %arg6[%c0_319, %c0_320, %c0_321, %c0_322], %1333 {strides = array<i32>} : memref<1x4x16x128xf32, #tpu.memory_space<vmem>>, vector<1x1x16x128xf32>,
    %c1_323 = arith.constant 1 : index
    %c1_324 = arith.constant 1 : index
    %c0_325 = arith.constant 0 : index
    %1334 = vector.load %arg7[%c1_323, %c1_324, %c0_325] : memref<4x18x128xf32, #tpu.memory_space<vmem>>, vector<1x16x128xf32>
    %1335 = vector.shape_cast %1334 : vector<1x16x128xf32> to vector<16x128xf32>
    %1336 = arith.addf %1303, %1335 : vector<16x128xf32>
    %c0_326 = arith.constant 0 : index
    %c1_327 = arith.constant 1 : index
    %c0_328 = arith.constant 0 : index
    %c0_329 = arith.constant 0 : index
    %1337 = vector.load %arg6[%c0_326, %c1_327, %c0_328, %c0_329] : memref<1x4x16x128xf32, #tpu.memory_space<vmem>>, vector<1x1x16x128xf32>
    %1338 = vector.shape_cast %1337 : vector<1x1x16x128xf32> to vector<16x128xf32>
    %1339 = vector.shape_cast %1336 : vector<16x128xf32> to vector<1x1x16x128xf32>
    tpu.vector_store %arg6[%c0_326, %c1_327, %c0_328, %c0_329], %1339 {strides = array<i32>} : memref<1x4x16x128xf32, #tpu.memory_space<vmem>>, vector<1x1x16x128xf32>,
    %c2_330 = arith.constant 2 : index
    %c1_331 = arith.constant 1 : index
    %c0_332 = arith.constant 0 : index
    %1340 = vector.load %arg7[%c2_330, %c1_331, %c0_332] : memref<4x18x128xf32, #tpu.memory_space<vmem>>, vector<1x16x128xf32>
    %1341 = vector.shape_cast %1340 : vector<1x16x128xf32> to vector<16x128xf32>
    %1342 = arith.addf %1315, %1341 : vector<16x128xf32>
    %c0_333 = arith.constant 0 : index
    %c2_334 = arith.constant 2 : index
    %c0_335 = arith.constant 0 : index
    %c0_336 = arith.constant 0 : index
    %1343 = vector.load %arg6[%c0_333, %c2_334, %c0_335, %c0_336] : memref<1x4x16x128xf32, #tpu.memory_space<vmem>>, vector<1x1x16x128xf32>
    %1344 = vector.shape_cast %1343 : vector<1x1x16x128xf32> to vector<16x128xf32>
    %1345 = vector.shape_cast %1342 : vector<16x128xf32> to vector<1x1x16x128xf32>
    tpu.vector_store %arg6[%c0_333, %c2_334, %c0_335, %c0_336], %1345 {strides = array<i32>} : memref<1x4x16x128xf32, #tpu.memory_space<vmem>>, vector<1x1x16x128xf32>,
    %c3_337 = arith.constant 3 : index
    %c1_338 = arith.constant 1 : index
    %c0_339 = arith.constant 0 : index
    %1346 = vector.load %arg7[%c3_337, %c1_338, %c0_339] : memref<4x18x128xf32, #tpu.memory_space<vmem>>, vector<1x16x128xf32>
    %1347 = vector.shape_cast %1346 : vector<1x16x128xf32> to vector<16x128xf32>
    %1348 = arith.addf %1327, %1347 : vector<16x128xf32>
    %c0_340 = arith.constant 0 : index
    %c3_341 = arith.constant 3 : index
    %c0_342 = arith.constant 0 : index
    %c0_343 = arith.constant 0 : index
    %1349 = vector.load %arg6[%c0_340, %c3_341, %c0_342, %c0_343] : memref<1x4x16x128xf32, #tpu.memory_space<vmem>>, vector<1x1x16x128xf32>
    %1350 = vector.shape_cast %1349 : vector<1x1x16x128xf32> to vector<16x128xf32>
    %1351 = vector.shape_cast %1348 : vector<16x128xf32> to vector<1x1x16x128xf32>
    tpu.vector_store %arg6[%c0_340, %c3_341, %c0_342, %c0_343], %1351 {strides = array<i32>} : memref<1x4x16x128xf32, #tpu.memory_space<vmem>>, vector<1x1x16x128xf32>,
    return
  }
  func.func @transform_0(%arg0: i32) -> (i32, i32, i32, i32) {
    %c0_i32 = arith.constant 0 : i32
    %c0_i32_0 = arith.constant 0 : i32
    %c0_i32_1 = arith.constant 0 : i32
    %c0_i32_2 = arith.constant 0 : i32
    return %arg0, %c0_i32, %c0_i32_0, %c0_i32_1 : i32, i32, i32, i32
  }
  func.func @transform_1(%arg0: i32) -> i32 {
    %c0_i32 = arith.constant 0 : i32
    %c0_i32_0 = arith.constant 0 : i32
    return %c0_i32 : i32
  }
  func.func @transform_2(%arg0: i32) -> i32 {
    %c0_i32 = arith.constant 0 : i32
    %c0_i32_0 = arith.constant 0 : i32
    return %c0_i32 : i32
  }
  func.func @transform_3(%arg0: i32) -> i32 {
    %c0_i32 = arith.constant 0 : i32
    %c0_i32_0 = arith.constant 0 : i32
    return %c0_i32 : i32
  }
  func.func @transform_4(%arg0: i32) -> i32 {
    %c0_i32 = arith.constant 0 : i32
    %c0_i32_0 = arith.constant 0 : i32
    return %c0_i32 : i32
  }
  func.func @transform_5(%arg0: i32) -> (i32, i32, i32, i32) {
    %c0_i32 = arith.constant 0 : i32
    %c0_i32_0 = arith.constant 0 : i32
    %c0_i32_1 = arith.constant 0 : i32
    %c0_i32_2 = arith.constant 0 : i32
    return %arg0, %c0_i32, %c0_i32_0, %c0_i32_1 : i32, i32, i32, i32
  }
}

</mosaic_0001>

<bundles_post_ra>
// kernel: tpu_custom_call.1
= control target key start
LH: loop header
LB: loop body
LE: loop exit
PB: predicated region body
PF: predicated region fallthrough
CT: control target
= control target key end

     0   :  { %s5772_s0 = inlined_call_operand.hbm [shape: f32[2,4,16,16], index: 0, kind: input, shape index: {}]   ;;  %s5773_s1 = inlined_call_operand.hbm [shape: f32[144], index: 1, kind: input, shape index: {}]   ;;  %s5774_s2 = inlined_call_operand.vmem [shape: f32[4], index: 2, kind: input, shape index: {}]   ;;  %s5775_s3 = inlined_call_operand.vmem [shape: f32[144], index: 3, kind: input, shape index: {}]   ;;  %s5776_s4 = inlined_call_operand.vmem [shape: f32[4], index: 4, kind: input, shape index: {}]   ;;  %s5777_s5 = inlined_call_operand.hbm [shape: f32[1,4,16,128], index: 5, kind: output, shape index: {}]  }
   0x1   :  { %6079 = sst [smem:[#allocation175_spill]] %s5777_s5 }
   0x2   :  { %10 = vsyncpa [#allocation5], 0 }
   0x3   :  { %11 = vsyncpa [#allocation7], 0 }
   0x4   :  { %12 = vsyncpa [#allocation8], 0 }
   0x5   :  { %13 = vsyncpa [#allocation12], 0  ;;  %s51_s20 = sshll.u32 %s5775_s3, 4  ;;  %s52_s20 = int_to_ptr.vmem [resolvable:$true] %s51_s20 }
   0x6   :  { %14 = vsyncpa [#allocation6], 0  ;;  %s2576_s21 = scalar_lea.vmem %s52_s20, 32  ;;  %p2581_p1 = scmp.lt.s32.totalorder %s52_s20, %s52_s20 }
   0x7   :  { %p2577_p0 = scmp.ne.s32.totalorder %s52_s20, %s2576_s21  ;;  %p2582_p2 = scmp.lt.s32.totalorder %s2576_s21, %s2576_s21 }
   0x9   :  { %p2583_p3 = por %p2582_p2, %p2581_p1 }
   0xb   :  { %p2584_p4 = pnand %p2583_p3, %p2577_p0 }
   0xd   :  { %2587 = shalt.err (!%p2584_p4)
}
   0xe   :  { %s2670_s22 = smov [#allocation11]   ;;  %s2671_s23 = smov [#allocation4]  }
   0xf   :  { %54 = dma.vmem_to_smem %s52_s20, 32, %s2670_s22, [#allocation12]  }
  0x10   :  { %s20_s24 = sshll.u32 %s2671_s23, 4  ;;  %s21_s24 = int_to_ptr.vmem [resolvable:$true] %s20_s24 }
  0x11   :  { %s2596_s25 = scalar_lea.vmem %s21_s24, 2048  ;;  %p2601_p6 = scmp.lt.s32.totalorder %s21_s24, %s21_s24 }
  0x12   :  { %p2597_p5 = scmp.ne.s32.totalorder %s21_s24, %s2596_s25  ;;  %p2602_p7 = scmp.lt.s32.totalorder %s2596_s25, %s2596_s25 }
  0x14   :  { %p2603_p8 = por %p2602_p7, %p2601_p6 }
  0x16   :  { %p2604_p9 = pnand %p2603_p8, %p2597_p5 }
  0x18   :  { %2607 = shalt.err (!%p2604_p9)
}
  0x19   :  { %s5778_s3 = smov 128   ;;  %s5779_s26 = smov 8  }
  0x1a   :  { %26 = dma.hbm_to_vmem [thread:$0]  %s5772_s0, 2048, %s21_s24, [#allocation5], %s5778_s3, %s5778_s3, %s5779_s26  }
  0x1b   :  { %s41_s6 = sshll.u32 %s5774_s2, 4  ;;  %s2674_s7 = smov [#allocation9]   ;;  %s42_s6 = int_to_ptr.vmem [resolvable:$true] %s41_s6 }
  0x1c   :  { %34 = dma.hbm_to_smem %s5773_s1, 32, %s2674_s7, [#allocation7]  }
  0x1d   :  { %s2616_s10 = scalar_lea.vmem %s42_s6, 16  ;;  %p2621_p11 = scmp.lt.s32.totalorder %s42_s6, %s42_s6 }
  0x1e   :  { %p2617_p10 = scmp.ne.s32.totalorder %s42_s6, %s2616_s10  ;;  %p2622_p12 = scmp.lt.s32.totalorder %s2616_s10, %s2616_s10 }
  0x20   :  { %p2623_p13 = por %p2622_p12, %p2621_p11 }
  0x22   :  { %p2624_p0 = pnand %p2623_p13, %p2617_p10 }
  0x24   :  { %2627 = shalt.err (!%p2624_p0)
}
  0x25   :  { %s2675_s11 = smov [#allocation10]   ;;  %s61_s13 = sshll.u32 %s5776_s4, 4  ;;  %s62_s13 = int_to_ptr.vmem [resolvable:$true] %s61_s13 }
  0x26   :  { %44 = dma.vmem_to_smem %s42_s6, 16, %s2675_s11, [#allocation8]  }
  0x27   :  { %s2628_s2 = scalar_lea.vmem %s62_s13, 16  ;;  %p2633_p2 = scmp.lt.s32.totalorder %s62_s13, %s62_s13 }
  0x28   :  { %p2629_p1 = scmp.ne.s32.totalorder %s62_s13, %s2628_s2  ;;  %p2634_p3 = scmp.lt.s32.totalorder %s2628_s2, %s2628_s2 }
  0x2a   :  { %p2635_p4 = por %p2634_p3, %p2633_p2 }
  0x2c   :  { %p2636_p5 = pnand %p2635_p4, %p2629_p1 }
  0x2e   :  { %2639 = shalt.err (!%p2636_p5)
}
  0x2f   :  { %s2676_s1 = smov [#allocation13]  }
  0x30   :  { %64 = dma.vmem_to_smem %s62_s13, 16, %s2676_s1, [#allocation12]  }
  0x31   :  { %2660 = dma.done.wait [#allocation5], 2048  }
  0x32   :  { %2661 = vsyncadd [#allocation5], 4294965248 }
  0x33   :  { %2662 = dma.done.wait [#allocation7], 32  }
  0x34   :  { %2663 = vsyncadd [#allocation7], 4294967264 }
  0x35   :  { %2664 = dma.done.wait [#allocation8], 16  }
  0x36   :  { %2665 = vsyncadd [#allocation8], 4294967280 }
  0x37   :  { %2666 = dma.done.wait [#allocation12], 48  }
  0x38   :  { %2667 = vsyncadd [#allocation12], 4294967248 }
  0x39   :  { %80 = sfence }
  0x3a   :  { %v102_v0 = vld [vmem:[#allocation4] sm:$0xff]  ;;  %s5780_s4 = smov 1   ;;  %s2678_s14 = smov 19   ;;  %v103_v2 = vld [vmem:[#allocation4 + $0x8] sm:$0xff]  ;;  %v2679_v4 = vmov 0.0   ;;  %v104_v5 = vld [vmem:[#allocation4 + $0x10] sm:$0xff] }
  0x3b   :  { %v152_v1 = vld [vmem:[#allocation4 + $0x40] sm:$0xff]  ;;  %118 = vrot.lane.b32.xlu0 %v102_v0, %s5780_s4  ;;  %v153_v3 = vld [vmem:[#allocation4 + $0x48] sm:$0xff]  ;;  %90 = vst [vmem:[#allocation2] sm:$0xff] %v2679_v4  ;;  %91 = vst [vmem:[#allocation2 + $0x8] sm:$0xff] %v2679_v4  ;;  %s2746_s15 = sld [smem:[#allocation9 + $0x10]]  ;;  %vm142_vm0 = vcmask 138248  }
  0x3c   :  { %168 = vrot.lane.b32.xlu1 %v152_v1, %s2678_s14  ;;  %92 = vst [vmem:[#allocation2 + $0x10] sm:$0x3] %v2679_v4  ;;  %93 = vst [vmem:[#allocation2 + $0x18] sm:$0xff] %v2679_v4  ;;  %v105_v6 = vld [vmem:[#allocation4 + $0x18] sm:$0xff]  ;;  %v154_v7 = vld [vmem:[#allocation4 + $0x50] sm:$0xff]  ;;  %s2748_s16 = sld [smem:[#allocation9 + $0x11]] }
  0x3d   :  { %94 = vst [vmem:[#allocation2 + $0x20] sm:$0xff] %v2679_v4  ;;  %95 = vst [vmem:[#allocation2 + $0x28] sm:$0x3] %v2679_v4  ;;  %v155_v8 = vld [vmem:[#allocation4 + $0x58] sm:$0xff]  ;;  %v106_v9 = vld [vmem:[#allocation4 + $0x20] sm:$0xff]  ;;  %s2750_s17 = sld [smem:[#allocation9 + $0x12]] }
  0x3e   :  { %96 = vst [vmem:[#allocation2 + $0x30] sm:$0xff] %v2679_v4  ;;  %97 = vst [vmem:[#allocation2 + $0x38] sm:$0xff] %v2679_v4  ;;  %v107_v10 = vld [vmem:[#allocation4 + $0x28] sm:$0xff]  ;;  %v156_v11 = vld [vmem:[#allocation4 + $0x60] sm:$0xff]  ;;  %s2752_s18 = sld [smem:[#allocation9 + $0x13]]  ;;  %vm192_vm1 = vcmask 285848  }
  0x3f   :  { %98 = vst [vmem:[#allocation2 + $0x40] sm:$0x3] %v2679_v4  ;;  %99 = vst [vmem:[#allocation2 + $0x48] sm:$0xff] %v2679_v4  ;;  %120 = vrot.lane.b32.xlu0 %v103_v2, %s5780_s4  ;;  %v157_v12 = vld [vmem:[#allocation4 + $0x68] sm:$0xff]  ;;  %v108_v13 = vld [vmem:[#allocation4 + $0x30] sm:$0xff]  ;;  %s2754_s19 = sld [smem:[#allocation9 + $0x14]] }
  0x40   :  { %100 = vst [vmem:[#allocation2 + $0x50] sm:$0xff] %v2679_v4  ;;  %101 = vst [vmem:[#allocation2 + $0x58] sm:$0x3] %v2679_v4  ;;  %170 = vrot.lane.b32.xlu1 %v153_v3, %s2678_s14  ;;  %v109_v14 = vld [vmem:[#allocation4 + $0x38] sm:$0xff]  ;;  %v158_v15 = vld [vmem:[#allocation4 + $0x70] sm:$0xff]  ;;  %s2756_s20 = sld [smem:[#allocation9 + $0x15]] }
  0x41   :  { %201 = vst [vmem:[#allocation3] sm:$0x1] %v2679_v4  ;;  %202 = vst [vmem:[#allocation3 + $0x18] sm:$0x1] %v2679_v4  ;;  %v159_v16 = vld [vmem:[#allocation4 + $0x78] sm:$0xff]  ;;  %s2758_s21 = sld [smem:[#allocation9 + $0x16]]  ;;  %v234_v47 = vstv %s2746_s15 }
  0x42   :  { %203 = vst [vmem:[#allocation3 + $0x30] sm:$0x1] %v2679_v4  ;;  %204 = vst [vmem:[#allocation3 + $0x48] sm:$0x1] %v2679_v4  ;;  %s2760_s22 = sld [smem:[#allocation9 + $0x17]]  ;;  %v252_v48 = vstv %s2748_s16 }
  0x43   :  { %205 = vst [vmem:[#allocation3 + $0x11] sm:$0x1] %v2679_v4  ;;  %206 = vst [vmem:[#allocation3 + $0x29] sm:$0x1] %v2679_v4  ;;  %122 = vrot.lane.b32.xlu0 %v104_v5, %s5780_s4  ;;  %s2762_s23 = sld [smem:[#allocation9 + $0x40]]  ;;  %v270_v49 = vstv %s2750_s17 }
  0x44   :  { %207 = vst [vmem:[#allocation3 + $0x41] sm:$0x1] %v2679_v4  ;;  %208 = vst [vmem:[#allocation3 + $0x59] sm:$0x1] %v2679_v4  ;;  %124 = vrot.lane.b32.xlu1 %v105_v6, %s5780_s4  ;;  %s2764_s24 = sld [smem:[#allocation9 + $0x41]]  ;;  %v288_v50 = vstv %s2752_s18 }
  0x45   :  { %6080 = sst [smem:[#allocation20_spill]] %s2754_s19  ;;  %v317_v51 = vstv %s2754_s19 }
  0x46   :  { %6081 = sst [smem:[#allocation21_spill]] %s2756_s20  ;;  %v335_v52 = vstv %s2756_s20 }
  0x47   :  { %172 = vrot.lane.b32.xlu0 %v154_v7, %s2678_s14  ;;  %6082 = sst [smem:[#allocation22_spill]] %s2758_s21  ;;  %v353_v53 = vstv %s2758_s21 }
  0x48   :  { %174 = vrot.lane.b32.xlu1 %v155_v8, %s2678_s14  ;;  %6083 = sst [smem:[#allocation23_spill]] %s2760_s22  ;;  %v371_v54 = vstv %s2760_s22 }
  0x49   :  { %s2766_s25 = sld [smem:[#allocation9 + $0x42]]  ;;  %v565_v55 = vstv %s2762_s23 }
  0x4a   :  { %s2768_s27 = sld [smem:[#allocation9 + $0x43]]  ;;  %v583_v56 = vstv %s2764_s24 }
  0x4b   :  { %126 = vrot.lane.b32.xlu0 %v106_v9, %s5780_s4  ;;  %s2770_s28 = sld [smem:[#allocation9 + $0x44]] }
  0x4c   :  { %128 = vrot.lane.b32.xlu1 %v107_v10, %s5780_s4  ;;  %s2772_s29 = sld [smem:[#allocation9 + $0x18]] }
  0x4d   :  { %s2774_s30 = sld [smem:[#allocation9 + $0x19]] }
  0x4e   :  { %s2776_s6 = sld [smem:[#allocation9 + $0x1a]] }
  0x4f   :  { %176 = vrot.lane.b32.xlu0 %v156_v11, %s2678_s14  ;;  %s2778_s7 = sld [smem:[#allocation9 + $0x1b]]  ;;  %v601_v57 = vstv %s2766_s25 }
  0x50   :  { %178 = vrot.lane.b32.xlu1 %v157_v12, %s2678_s14  ;;  %s2780_s8 = sld [smem:[#allocation9 + $0x45]]  ;;  %v619_v58 = vstv %s2768_s27 }
  0x51   :  { %6084 = sst [smem:[#allocation24_spill]] %s2770_s28  ;;  %v647_v62 = vstv %s2770_s28 }
  0x52   :  { %6085 = sst [smem:[#allocation25_spill]] %s2772_s29  ;;  %v5904_v59 = vstv %s2772_s29 }
  0x53   :  { %130 = vrot.lane.b32.xlu0 %v108_v13, %s5780_s4  ;;  %6086 = sst [smem:[#allocation26_spill]] %s2774_s30  ;;  %v5903_v60 = vstv %s2774_s30 }
  0x54   :  { %132 = vrot.lane.b32.xlu1 %v109_v14, %s5780_s4  ;;  %6087 = sst [smem:[#allocation27_spill]] %s2776_s6 }
  0x55   :  { %6088 = sst [smem:[#allocation28_spill]] %s2778_s7 }
  0x56   :  { %6089 = sst [smem:[#allocation29_spill]] %s2780_s8  ;;  %v665_v1 = vstv %s2780_s8 }
  0x57   :  { %180 = vrot.lane.b32.xlu0 %v158_v15, %s2678_s14  ;;  %s2782_s9 = sld [smem:[#allocation9 + $0x46]] }
  0x58   :  { %182 = vrot.lane.b32.xlu1 %v159_v16, %s2678_s14  ;;  %s2784_s10 = sld [smem:[#allocation9 + $0x47]] }
  0x59   :  { %s2786_s11 = sld [smem:[#allocation9 + $0x70]] }
  0x5a   :  { %s2788_s0 = sld [smem:[#allocation9 + $0x48]] }
  0x5b   :  { %s2790_s12 = sld [smem:[#allocation9 + $0x49]] }
  0x5c   :  { %s2792_s13 = sld [smem:[#allocation9 + $0x1c]] }
  0x5d   :  { %6090 = sst [smem:[#allocation30_spill]] %s2782_s9  ;;  %v683_v2 = vstv %s2782_s9 }
  0x5e   :  { %6091 = sst [smem:[#allocation31_spill]] %s2784_s10  ;;  %v701_v3 = vstv %s2784_s10 }
  0x5f   :  { %6092 = sst [smem:[#allocation32_spill]] %s2786_s11 }
  0x60   :  { %6093 = sst [smem:[#allocation33_spill]] %s2788_s0 }
  0x61   :  { %6094 = sst [smem:[#allocation34_spill]] %s2790_s12 }
  0x62   :  { %6095 = sst [smem:[#allocation35_spill]] %s2792_s13 }
  0x63   :  { %s2794_s2 = sld [smem:[#allocation9 + $0x1d]] }
  0x64   :  { %s2796_s1 = sld [smem:[#allocation9 + $0x1e]] }
  0x65   :  { %s2798_s14 = sld [smem:[#allocation9 + $0x1f]] }
  0x66   :  { %s2800_s3 = sld [smem:[#allocation9 + $0x4a]] }
  0x67   :  { %s2803_s26 = sld [smem:[#allocation9 + $0x4b]] }
  0x68   :  { %s2806_s4 = sld [smem:[#allocation9 + $0x71]] }
  0x69   :  { %6096 = sst [smem:[#allocation36_spill]] %s2794_s2 }
  0x6a   :  { %6097 = sst [smem:[#allocation37_spill]] %s2796_s1 }
  0x6b   :  { %6098 = sst [smem:[#allocation38_spill]] %s2798_s14 }
  0x6c   :  { %6099 = sst [smem:[#allocation39_spill]] %s2800_s3 }
  0x6d   :  { %6100 = sst [smem:[#allocation40_spill]] %s2803_s26 }
  0x6e   :  { %6101 = sst [smem:[#allocation41_spill]] %s2806_s4 }
  0x6f   :  { %s2808_s5 = sld [smem:[#allocation9 + $0x72]] }
  0x70   :  { %s2810_s1 = sld [smem:[#allocation9 + $0x4c]] }
  0x71   :  { %s2813_s14 = sld [smem:[#allocation9 + $0x4d]] }
  0x72   :  { %s2816_s3 = sld [smem:[#allocation9 + $0x4e]] }
  0x73   :  { %s2818_s2 = sld [smem:[#allocation9 + $0x4f]] }
  0x74   :  { %s2820_s26 = sld [smem:[#allocation9 + $0x73]] }
  0x75   :  { %6102 = sst [smem:[#allocation42_spill]] %s2808_s5 }
  0x76   :  { %6103 = sst [smem:[#allocation43_spill]] %s2810_s1  ;;  %s6109_s1 = smov 1  }
  0x77   :  { %6104 = sst [smem:[#allocation44_spill]] %s2813_s14 }
  0x78   :  { %6105 = sst [smem:[#allocation45_spill]] %s2816_s3 }
  0x79   :  { %6106 = sst [smem:[#allocation46_spill]] %s2818_s2 }
  0x7a   :  { %6107 = sst [smem:[#allocation47_spill]] %s2820_s26 }
  0x7b   :  { %s2826_s5 = sld [smem:[#allocation9 + $0x74]] }
  0x7c   :  { %s2830_s14 = sld [smem:[#allocation9 + $0x75]] }
  0x7d   :  { %s2832_s3 = sld [smem:[#allocation9 + $0x76]] }
  0x7e   :  { %s2834_s2 = sld [smem:[#allocation9 + $0x77]] }
  0x7f   :  { %s2840_s26 = sld [smem:[#allocation9 + $0x78]] }
  0x80   :  { %s2858_s4 = sld [smem:[#allocation9 + $0x7d]] }
  0x81   :  { %6108 = sst [smem:[#allocation48_spill]] %s2826_s5  ;;  %s5801_s5 = smov 127  }
  0x82   :  { %6110 = sst [smem:[#allocation49_spill]] %s2830_s14 }
  0x83   :  { %6111 = sst [smem:[#allocation50_spill]] %s2832_s3 }
  0x84   :  { %6112 = sst [smem:[#allocation51_spill]] %s2834_s2 }
  0x85   :  { %6113 = sst [smem:[#allocation52_spill]] %s2840_s26 }
  0x86   :  { %s2846_s3 = sld [smem:[#allocation9 + $0x79]] }
  0x87   :  { %s2848_s14 = sld [smem:[#allocation9 + $0x7a]] }
  0x88   :  { %s2850_s2 = sld [smem:[#allocation9 + $0x7b]] }
  0x89   :  { %s2854_s26 = sld [smem:[#allocation9 + $0x7c]] }
  0x8a   :  { %6118 = sst [smem:[#allocation57_spill]] %s2858_s4 }
  0x8b   :  { %s2860_s13 = sld [smem:[#allocation9 + $0x7e]] }
  0x8c   :  { %6114 = sst [smem:[#allocation53_spill]] %s2846_s3 }
  0x8d   :  { %6115 = sst [smem:[#allocation54_spill]] %s2848_s14 }
  0x8e   :  { %6116 = sst [smem:[#allocation55_spill]] %s2850_s2 }
  0x8f   :  { %6117 = sst [smem:[#allocation56_spill]] %s2854_s26 }
  0x90   :  { %s2866_s2 = sld [smem:[#allocation9 + $0x7f]] }
  0x91   :  { %6119 = sst [smem:[#allocation58_spill]] %s2860_s13 }
  0x92   :  { %s2876_s13 = sld [smem:[#allocation10 + $0x1]] }
  0x93   :  { %s2878_s4 = sld [smem:[#allocation10 + $0x2]] }
  0x94   :  { %s2880_s26 = sld [smem:[#allocation10 + $0x3]] }
  0x95   :  { %s2886_s14 = sld [smem:[#allocation9]] }
  0x96   :  { %6120 = sst [smem:[#allocation59_spill]] %s2866_s2  ;;  %s6125_s2 = smov 127  }
  0x97   :  { %s2920_s3 = sld [smem:[#allocation9 + $0x5]] }
  0x98   :  { %6122 = sst [smem:[#allocation61_spill]] %s2876_s13 }
  0x99   :  { %6123 = sst [smem:[#allocation62_spill]] %s2878_s4 }
  0x9a   :  { %6124 = sst [smem:[#allocation63_spill]] %s2880_s26 }
  0x9b   :  { %6126 = sst [smem:[#allocation64_spill]] %s2886_s14 }
  0x9c   :  { %s2892_s13 = sld [smem:[#allocation9 + $0x2]] }
  0x9d   :  { %s2898_s26 = sld [smem:[#allocation9 + $0x3]] }
  0x9e   :  { %s2904_s14 = sld [smem:[#allocation9 + $0x20]] }
  0x9f   :  { %s2912_s4 = sld [smem:[#allocation9 + $0x23]] }
  0xa0   :  { %6135 = sst [smem:[#allocation73_spill]] %s2920_s3 }
  0xa1   :  { %s2940_s3 = sld [smem:[#allocation9 + $0x27]] }
  0xa2   :  { %6128 = sst [smem:[#allocation66_spill]] %s2892_s13 }
  0xa3   :  { %6129 = sst [smem:[#allocation67_spill]] %s2898_s26 }
  0xa4   :  { %6130 = sst [smem:[#allocation68_spill]] %s2904_s14 }
  0xa5   :  { %s2908_s13 = sld [smem:[#allocation9 + $0x21]] }
  0xa6   :  { %6133 = sst [smem:[#allocation71_spill]] %s2912_s4 }
  0xa7   :  { %s2916_s26 = sld [smem:[#allocation9 + $0x4]] }
  0xa8   :  { %s2922_s14 = sld [smem:[#allocation9 + $0x6]] }
  0xa9   :  { %s2932_s4 = sld [smem:[#allocation9 + $0x24]] }
  0xaa   :  { %6141 = sst [smem:[#allocation79_spill]] %s2940_s3 }
  0xab   :  { %6131 = sst [smem:[#allocation69_spill]] %s2908_s13 }
  0xac   :  { %s2928_s13 = sld [smem:[#allocation9 + $0x7]] }
  0xad   :  { %v119_v17 = vpop.permute.xlu0 %118  ;;  %6134 = sst [smem:[#allocation72_spill]] %s2916_s26 }
  0xae   :  { %v169_v18 = vpop.permute.xlu1 %168  ;;  %143 = vst.msk [vmem:[#allocation2 + $0x1] sm:$0xff] %vm142_vm0, %v119_v17  ;;  %6136 = sst [smem:[#allocation74_spill]] %s2922_s14 }
  0xaf   :  { %193 = vst.msk [vmem:[#allocation2 + $0x1] sm:$0xff] %vm192_vm1, %v169_v18  ;;  %6138 = sst [smem:[#allocation76_spill]] %s2932_s4 }
  0xb0   :  { %s2936_s26 = sld [smem:[#allocation9 + $0x25]] }
  0xb1   :  { %v121_v19 = vpop.permute.xlu0 %120  ;;  %s2944_s14 = sld [smem:[#allocation9 + $0x8]] }
  0xb2   :  { %v171_v20 = vpop.permute.xlu1 %170  ;;  %144 = vst.msk [vmem:[#allocation2 + $0x9] sm:$0xff] %vm142_vm0, %v121_v19  ;;  %6137 = sst [smem:[#allocation75_spill]] %s2928_s13 }
  0xb3   :  { %194 = vst.msk [vmem:[#allocation2 + $0x9] sm:$0xff] %vm192_vm1, %v171_v20  ;;  %s2948_s13 = sld [smem:[#allocation9 + $0x9]] }
  0xb4   :  { %s2950_s4 = sld [smem:[#allocation9 + $0xa]] }
  0xb5   :  { %v123_v21 = vpop.permute.xlu0 %122  ;;  %s2954_s11 = sld [smem:[#allocation9 + $0xb]] }
  0xb6   :  { %v125_v22 = vpop.permute.xlu1 %124  ;;  %145 = vst.msk [vmem:[#allocation2 + $0x19] sm:$0xff] %vm142_vm0, %v123_v21  ;;  %v2824_v23 = vld [vmem:[#allocation2] sm:$0xff]  ;;  %6139 = sst [smem:[#allocation77_spill]] %s2936_s26 }
  0xb7   :  { %146 = vst.msk [vmem:[#allocation2 + $0x21] sm:$0xff] %vm142_vm0, %v125_v22  ;;  %219 = vrot.lane.b32.xlu0 %v2824_v23, %s6109_s1  ;;  %6142 = sst [smem:[#allocation80_spill]] %s2944_s14  ;;  %v2952_v41 = vld [vmem:[#allocation2 + $0x1] sm:$0xff]  ;;  %v3157_v9 = vmul.f32 %v270_v49, %v2824_v23  ;;  %v3162_v10 = vmul.f32 %v288_v50, %v2824_v23 }
  0xb8   :  { %s2960_s3 = sld [smem:[#allocation9 + $0x28]]  ;;  %v3168_v15 = vmul.f32 %v565_v55, %v2952_v41  ;;  %v3188_v11 = vmul.f32 %v619_v58, %v2952_v41 }
  0xb9   :  { %v173_v24 = vpop.permute.xlu0 %172  ;;  %6143 = sst [smem:[#allocation81_spill]] %s2948_s13 }
  0xba   :  { %v175_v25 = vpop.permute.xlu1 %174  ;;  %195 = vst.msk [vmem:[#allocation2 + $0x19] sm:$0xff] %vm192_vm1, %v173_v24  ;;  %v2838_v26 = vld [vmem:[#allocation2 + $0x8] sm:$0xff]  ;;  %6144 = sst [smem:[#allocation82_spill]] %s2950_s4 }
  0xbb   :  { %196 = vst.msk [vmem:[#allocation2 + $0x21] sm:$0xff] %vm192_vm1, %v175_v25  ;;  %221 = vrot.lane.b32.xlu1 %v2838_v26, %s6109_s1  ;;  %223 = vrot.lane.b32.xlu0 %v2824_v23, %s5801_s5  ;;  %6145 = sst [smem:[#allocation83_spill]] %s2954_s11  ;;  %v2958_v42 = vld [vmem:[#allocation2 + $0x9] sm:$0xff]  ;;  %v3195_v16 = vmul.f32 %v234_v47, %v2838_v26  ;;  %v3200_v19 = vmul.f32 %v252_v48, %v2838_v26 }
  0xbc   :  { %s2964_s14 = sld [smem:[#allocation9 + $0x29]]  ;;  %v3118_v17 = vld [vmem:[#allocation2 + $0xa] sm:$0xff]  ;;  %v3205_v8 = vmul.f32 %v270_v49, %v2838_v26  ;;  %v3222_v49 = vmul.f32 %v565_v55, %v2958_v42  ;;  %v3239_v55 = vmul.f32 %v601_v57, %v2958_v42 }
  0xbd   :  { %v127_v27 = vpop.permute.xlu0 %126  ;;  %s2968_s13 = sld [smem:[#allocation9 + $0x2b]] }
  0xbe   :  { %v129_v28 = vpop.permute.xlu1 %128  ;;  %147 = vst.msk [vmem:[#allocation2 + $0x31] sm:$0xff] %vm142_vm0, %v127_v27  ;;  %6146 = sst [smem:[#allocation84_spill]] %s2960_s3 }
  0xbf   :  { %148 = vst.msk [vmem:[#allocation2 + $0x39] sm:$0xff] %vm142_vm0, %v129_v28  ;;  %225 = vrot.lane.b32.xlu1 %v2838_v26, %s5801_s5  ;;  %s2872_s5 = sld [smem:[#allocation10]] }
  0xc0   :  { %s2972_s11 = sld [smem:[#allocation9 + $0xc]] }
  0xc1   :  { %v177_v29 = vpop.permute.xlu0 %176  ;;  %v2862_v31 = vld [vmem:[#allocation2 + $0x18] sm:$0xff]  ;;  %s2976_s4 = sld [smem:[#allocation9 + $0xd]] }
  0xc2   :  { %v179_v30 = vpop.permute.xlu1 %178  ;;  %v2864_v32 = vld [vmem:[#allocation2 + $0x20] sm:$0xff]  ;;  %197 = vst.msk [vmem:[#allocation2 + $0x31] sm:$0xff] %vm192_vm1, %v177_v29  ;;  %302 = vrot.lane.b32.xlu0 %v2862_v31, %s6109_s1  ;;  %6147 = sst [smem:[#allocation85_spill]] %s2964_s14  ;;  %v3314_v27 = vmul.f32 %v353_v53, %v2862_v31 }
  0xc3   :  { %198 = vst.msk [vmem:[#allocation2 + $0x39] sm:$0xff] %vm192_vm1, %v179_v30  ;;  %304 = vrot.lane.b32.xlu1 %v2864_v32, %s6109_s1  ;;  %6149 = sst [smem:[#allocation87_spill]] %s2968_s13  ;;  %v2980_v43 = vld [vmem:[#allocation2 + $0x19] sm:$0xff]  ;;  %v2986_v44 = vld [vmem:[#allocation2 + $0x21] sm:$0xff]  ;;  %v3343_v13 = vmul.f32 %v371_v54, %v2864_v32 }
  0xc4   :  { %s2978_s3 = sld [smem:[#allocation9 + $0xe]]  ;;  %v3228_v30 = vld [vmem:[#allocation2 + $0x22] sm:$0xff]  ;;  %v3369_v5 = vmul.f32 %v683_v2, %v2980_v43  ;;  %v3374_v6 = vmul.f32 %v701_v3, %v2980_v43  ;;  %v3396_v0 = vmul.f32 %v683_v2, %v2986_v44 }
  0xc5   :  { %6121 = sst [smem:[#allocation60_spill]] %s2872_s5  ;;  %v131_v33 = vpop.permute.xlu0 %130 }
  0xc6   :  { %v133_v34 = vpop.permute.xlu1 %132  ;;  %149 = vst.msk [vmem:[#allocation2 + $0x49] sm:$0xff] %vm142_vm0, %v131_v33  ;;  %306 = vrot.lane.b32.xlu0 %v2862_v31, %s6125_s2  ;;  %s2890_s5 = sld [smem:[#allocation9 + $0x1]]  ;;  %v3108_v33 = vld [vmem:[#allocation2 + $0x2] sm:$0xff]  ;;  %6271 = vst [vmem:[#allocation128_spill] sm:$0xff] %v3369_v5 }
  0xc7   :  { %150 = vst.msk [vmem:[#allocation2 + $0x51] sm:$0xff] %vm142_vm0, %v133_v34  ;;  %308 = vrot.lane.b32.xlu1 %v2864_v32, %s6125_s2  ;;  %6150 = sst [smem:[#allocation88_spill]] %s2972_s11  ;;  %v3148_v34 = vmul.f32 %v252_v48, %v2824_v23  ;;  %v3244_v48 = vmul.f32 %v619_v58, %v2958_v42  ;;  %v3289_v58 = vmul.f32 %v317_v51, %v2862_v31  ;;  %6272 = vst [vmem:[#allocation129_spill] sm:$0xff] %v3374_v6 }
  0xc8   :  { %6151 = sst [smem:[#allocation89_spill]] %s2976_s4  ;;  %6280 = vst [vmem:[#allocation132_spill] sm:$0xff] %v3396_v0 }
  0xc9   :  { %v181_v35 = vpop.permute.xlu0 %180  ;;  %v2894_v37 = vld [vmem:[#allocation2 + $0x30] sm:$0xff]  ;;  %s2982_s26 = sld [smem:[#allocation9 + $0xf]]  ;;  %6237 = vst [vmem:[#allocation117_spill] sm:$0xff] %v3244_v48 }
  0xca   :  { %v183_v36 = vpop.permute.xlu1 %182  ;;  %v2896_v38 = vld [vmem:[#allocation2 + $0x38] sm:$0xff]  ;;  %199 = vst.msk [vmem:[#allocation2 + $0x49] sm:$0xff] %vm192_vm1, %v181_v35  ;;  %385 = vrot.lane.b32.xlu0 %v2894_v37, %s6109_s1  ;;  %6152 = sst [smem:[#allocation90_spill]] %s2978_s3  ;;  %v3178_v35 = vmul.f32 %v583_v56, %v2952_v41 }
  0xcb   :  { %200 = vst.msk [vmem:[#allocation2 + $0x51] sm:$0xff] %vm192_vm1, %v183_v36  ;;  %387 = vrot.lane.b32.xlu1 %v2896_v38, %s6109_s1  ;;  %s2988_s13 = sld [smem:[#allocation9 + $0x2c]]  ;;  %v3008_v45 = vld [vmem:[#allocation2 + $0x31] sm:$0xff]  ;;  %v3014_v46 = vld [vmem:[#allocation2 + $0x39] sm:$0xff]  ;;  %v3143_v36 = vmul.f32 %v234_v47, %v2824_v23  ;;  %v3183_v23 = vmul.f32 %v601_v57, %v2952_v41  ;;  %v3215_v47 = vmul.f32 %v288_v50, %v2838_v26 }
  0xcc   :  { %6127 = sst [smem:[#allocation65_spill]] %s2890_s5  ;;  %v3234_v50 = vmul.f32 %v583_v56, %v2958_v42 }
  0xcd   :  { %s2910_s5 = sld [smem:[#allocation9 + $0x22]] }
  0xce   :  { %389 = vrot.lane.b32.xlu0 %v2894_v37, %s6125_s2  ;;  %s2992_s11 = sld [smem:[#allocation9 + $0x2d]] }
  0xcf   :  { %391 = vrot.lane.b32.xlu1 %v2896_v38, %s6125_s2  ;;  %6153 = sst [smem:[#allocation91_spill]] %s2982_s26 }
  0xd0   :  { %s2994_s4 = sld [smem:[#allocation9 + $0x2e]] }
  0xd1   :  { %v2924_v39 = vld [vmem:[#allocation2 + $0x48] sm:$0xff]  ;;  %6154 = sst [smem:[#allocation92_spill]] %s2988_s13 }
  0xd2   :  { %v2926_v40 = vld [vmem:[#allocation2 + $0x50] sm:$0xff]  ;;  %468 = vrot.lane.b32.xlu0 %v2924_v39, %s6109_s1  ;;  %s2996_s3 = sld [smem:[#allocation9 + $0x2f]] }
  0xd3   :  { %6132 = sst [smem:[#allocation70_spill]] %s2910_s5  ;;  %470 = vrot.lane.b32.xlu1 %v2926_v40, %s6109_s1  ;;  %v3052_v63 = vld [vmem:[#allocation2 + $0x49] sm:$0xff]  ;;  %v3062_v4 = vld [vmem:[#allocation2 + $0x51] sm:$0xff] }
  0xd4   :  { %s2938_s5 = sld [smem:[#allocation9 + $0x26]] }
  0xd5   :  { %6155 = sst [smem:[#allocation93_spill]] %s2992_s11 }
  0xd6   :  { %472 = vrot.lane.b32.xlu0 %v2924_v39, %s6125_s2  ;;  %6156 = sst [smem:[#allocation94_spill]] %s2994_s4 }
  0xd7   :  { %474 = vrot.lane.b32.xlu1 %v2926_v40, %s6125_s2  ;;  %s3000_s26 = sld [smem:[#allocation9 + $0x30]] }
  0xd8   :  { %6157 = sst [smem:[#allocation95_spill]] %s2996_s3 }
  0xd9   :  { %s3004_s13 = sld [smem:[#allocation9 + $0x31]] }
  0xda   :  { %6140 = sst [smem:[#allocation78_spill]] %s2938_s5  ;;  %550 = vrot.lane.b32.xlu0 %v2952_v41, %s6109_s1 }
  0xdb   :  { %552 = vrot.lane.b32.xlu1 %v2958_v42, %s6109_s1  ;;  %s2966_s5 = sld [smem:[#allocation9 + $0x2a]] }
  0xdc   :  { %s3006_s11 = sld [smem:[#allocation9 + $0x32]] }
  0xdd   :  { %6158 = sst [smem:[#allocation96_spill]] %s3000_s26 }
  0xde   :  { %554 = vrot.lane.b32.xlu0 %v2952_v41, %s6125_s2  ;;  %s3010_s3 = sld [smem:[#allocation9 + $0x33]]  ;;  %v3210_v41 = vld [vmem:[#allocation2 + $0x1a] sm:$0xff] }
  0xdf   :  { %556 = vrot.lane.b32.xlu1 %v2958_v42, %s6125_s2  ;;  %6159 = sst [smem:[#allocation97_spill]] %s3004_s13 }
  0xe0   :  { %s3016_s26 = sld [smem:[#allocation9 + $0x50]] }
  0xe1   :  { %6148 = sst [smem:[#allocation86_spill]] %s2966_s5 }
  0xe2   :  { %632 = vrot.lane.b32.xlu0 %v2980_v43, %s6109_s1  ;;  %6160 = sst [smem:[#allocation98_spill]] %s3006_s11 }
  0xe3   :  { %634 = vrot.lane.b32.xlu1 %v2986_v44, %s6109_s1  ;;  %s3020_s13 = sld [smem:[#allocation9 + $0x51]] }
  0xe4   :  { %6161 = sst [smem:[#allocation99_spill]] %s3010_s3 }
  0xe5   :  { %s3024_s3 = sld [smem:[#allocation9 + $0x52]] }
  0xe6   :  { %636 = vrot.lane.b32.xlu0 %v2980_v43, %s6125_s2  ;;  %6162 = sst [smem:[#allocation100_spill]] %s3016_s26 }
  0xe7   :  { %638 = vrot.lane.b32.xlu1 %v2986_v44, %s6125_s2  ;;  %s3030_s26 = sld [smem:[#allocation9 + $0x53]] }
  0xe8   :  { %s3049_s4 = sld [smem:[#allocation9 + $0x36]] }
  0xe9   :  { %6163 = sst [smem:[#allocation101_spill]] %s3020_s13 }
  0xea   :  { %714 = vrot.lane.b32.xlu0 %v3008_v45, %s6109_s1  ;;  %s6168_s13 = sld [smem:[#allocation32_spill]] }
  0xeb   :  { %716 = vrot.lane.b32.xlu1 %v3014_v46, %s6109_s1  ;;  %6164 = sst [smem:[#allocation102_spill]] %s3024_s3 }
  0xec   :  { %s3037_s3 = sld [smem:[#allocation9 + $0x34]] }
  0xed   :  { %6165 = sst [smem:[#allocation103_spill]] %s3030_s26 }
  0xee   :  { %718 = vrot.lane.b32.xlu0 %v3008_v45, %s6125_s2  ;;  %s3044_s26 = sld [smem:[#allocation9 + $0x35]] }
  0xef   :  { %720 = vrot.lane.b32.xlu1 %v3014_v46, %s6125_s2  ;;  %6170 = sst [smem:[#allocation106_spill]] %s3049_s4 }
  0xf0   :  { %s3055_s22 = sld [smem:[#allocation9 + $0x37]]  ;;  %v893_v7 = vstv %s6168_s13 }
  0xf1   :  { %s6177_s6 = sld [smem:[#allocation41_spill]]  ;;  %v3256_v56 = vmul.f32 %v893_v7, %v3108_v33  ;;  %v3279_v29 = vmul.f32 %v893_v7, %v3118_v17 }
  0xf2   :  { %6166 = sst [smem:[#allocation104_spill]] %s3037_s3  ;;  %796 = vrot.lane.b32.xlu0 %v3052_v63, %s6109_s1 }
  0xf3   :  { %s3064_s30 = sld [smem:[#allocation9 + $0x54]]  ;;  %798 = vrot.lane.b32.xlu1 %v3062_v4, %s6109_s1  ;;  %6242 = vst [vmem:[#allocation118_spill] sm:$0xff] %v3256_v56  ;;  %6248 = vst [vmem:[#allocation122_spill] sm:$0xff] %v3279_v29 }
  0xf4   :  { %6167 = sst [smem:[#allocation105_spill]] %s3044_s26 }
  0xf5   :  { %s6182_s28 = sld [smem:[#allocation42_spill]] }
  0xf6   :  { %6174 = sst [smem:[#allocation107_spill]] %s3055_s22  ;;  %800 = vrot.lane.b32.xlu0 %v3052_v63, %s6125_s2 }
  0xf7   :  { %s6184_s10 = sld [smem:[#allocation47_spill]]  ;;  %v911_v14 = vstv %s6177_s6  ;;  %802 = vrot.lane.b32.xlu1 %v3062_v4, %s6125_s2 }
  0xf8   :  { %s6185_s9 = sld [smem:[#allocation48_spill]]  ;;  %v3261_v42 = vmul.f32 %v911_v14, %v3108_v33  ;;  %v3284_v28 = vmul.f32 %v911_v14, %v3118_v17  ;;  %v3309_v14 = vmul.f32 %v335_v52, %v2862_v31 }
  0xf9   :  { %6179 = sst [smem:[#allocation41_spill]] %s3064_s30 }
  0xfa   :  { %s3074_s8 = sld [smem:[#allocation9 + $0x55]]  ;;  %878 = vrot.lane.b32.xlu0 %v3108_v33, %s6109_s1  ;;  %6244 = vst [vmem:[#allocation119_spill] sm:$0xff] %v3261_v42  ;;  %6249 = vst [vmem:[#allocation123_spill] sm:$0xff] %v3284_v28 }
  0xfb   :  { %s3077_s20 = sld [smem:[#allocation9 + $0x56]]  ;;  %v929_v18 = vstv %s6182_s28  ;;  %880 = vrot.lane.b32.xlu1 %v3118_v17, %s6109_s1 }
  0xfc   :  { %s6188_s30 = sld [smem:[#allocation49_spill]]  ;;  %v3266_v57 = vmul.f32 %v929_v18, %v3108_v33 }
  0xfd   :  { %s6189_s0 = sld [smem:[#allocation50_spill]]  ;;  %v947_v20 = vstv %s6184_s10 }
  0xfe   :  { %s6190_s12 = sld [smem:[#allocation51_spill]]  ;;  %v975_v21 = vstv %s6185_s9  ;;  %882 = vrot.lane.b32.xlu0 %v3108_v33, %s6125_s2  ;;  %6245 = vst [vmem:[#allocation120_spill] sm:$0xff] %v3266_v57  ;;  %v3274_v26 = vmul.f32 %v947_v20, %v3108_v33  ;;  %v3297_v33 = vmul.f32 %v929_v18, %v3118_v17  ;;  %v3302_v7 = vmul.f32 %v947_v20, %v3118_v17 }
  0xff   :  { %s3082_s19 = sld [smem:[#allocation9 + $0x57]]  ;;  %884 = vrot.lane.b32.xlu1 %v3118_v17, %s6125_s2  ;;  %v3319_v18 = vmul.f32 %v371_v54, %v2862_v31  ;;  %v3324_v17 = vmul.f32 %v317_v51, %v2864_v32  ;;  %v3333_v20 = vmul.f32 %v335_v52, %v2864_v32  ;;  %v3338_v31 = vmul.f32 %v353_v53, %v2864_v32  ;;  %v3358_v32 = vld [vmem:[#allocation2 + $0x32] sm:$0xff]  ;;  %v3380_v53 = vld [vmem:[#allocation2 + $0x3a] sm:$0xff] }
 0x100   :  { %6186 = sst [smem:[#allocation108_spill]] %s3074_s8  ;;  %6247 = vst [vmem:[#allocation121_spill] sm:$0xff] %v3274_v26  ;;  %6254 = vst [vmem:[#allocation124_spill] sm:$0xff] %v3297_v33  ;;  %v3354_v52 = vmul.f32 %v647_v62, %v2980_v43  ;;  %v3364_v54 = vmul.f32 %v665_v1, %v2980_v43  ;;  %v3386_v51 = vmul.f32 %v647_v62, %v2986_v44 }
 0x101   :  { %6187 = sst [smem:[#allocation109_spill]] %s3077_s20  ;;  %6256 = vst [vmem:[#allocation125_spill] sm:$0xff] %v3302_v7  ;;  %v3391_v43 = vmul.f32 %v665_v1, %v2986_v44  ;;  %v3406_v62 = vmul.f32 %v701_v3, %v2986_v44  ;;  %v3413_v1 = vmul.f32 %v975_v21, %v3210_v41  ;;  %v3435_v3 = vmul.f32 %v975_v21, %v3228_v30 }
 0x102   :  { %s6192_s13 = sld [smem:[#allocation52_spill]]  ;;  %v993_v22 = vstv %s6188_s30  ;;  %960 = vrot.lane.b32.xlu0 %v3210_v41, %s6109_s1  ;;  %6265 = vst [vmem:[#allocation126_spill] sm:$0xff] %v3354_v52  ;;  %6269 = vst [vmem:[#allocation127_spill] sm:$0xff] %v3364_v54 }
 0x103   :  { %s6193_s11 = sld [smem:[#allocation53_spill]]  ;;  %v5899_v24 = vstv %s6189_s0  ;;  %962 = vrot.lane.b32.xlu1 %v3228_v30, %s6109_s1  ;;  %6277 = vst [vmem:[#allocation130_spill] sm:$0xff] %v3386_v51  ;;  %6279 = vst [vmem:[#allocation131_spill] sm:$0xff] %v3391_v43  ;;  %v3418_v2 = vmul.f32 %v993_v22, %v3210_v41  ;;  %v3440_v61 = vmul.f32 %v993_v22, %v3228_v30 }
 0x104   :  { %s6194_s5 = sld [smem:[#allocation54_spill]]  ;;  %v1029_v25 = vstv %s6190_s12  ;;  %6283 = vst [vmem:[#allocation133_spill] sm:$0xff] %v3406_v62  ;;  %6286 = vst [vmem:[#allocation134_spill] sm:$0xff] %v3413_v1  ;;  %v3425_v12 = vmul.f32 %v5899_v24, %v3210_v41  ;;  %v3445_v24 = vmul.f32 %v5904_v59, %v2894_v37 }
 0x105   :  { %6191 = sst [smem:[#allocation110_spill]] %s3082_s19  ;;  %6287 = vst [vmem:[#allocation135_spill] sm:$0xff] %v3418_v2  ;;  %v3430_v44 = vmul.f32 %v1029_v25, %v3210_v41  ;;  %6291 = vst [vmem:[#allocation138_spill] sm:$0xff] %v3435_v3  ;;  %v3462_v22 = vmul.f32 %v1029_v25, %v3228_v30 }
 0x106   :  { %s3090_s20 = sld [smem:[#allocation9 + $0x38]]  ;;  %964 = vrot.lane.b32.xlu0 %v3210_v41, %s6125_s2  ;;  %6289 = vst [vmem:[#allocation136_spill] sm:$0xff] %v3425_v12  ;;  %6293 = vst [vmem:[#allocation139_spill] sm:$0xff] %v3440_v61  ;;  %v3450_v12 = vmul.f32 %v5903_v60, %v2894_v37 }
 0x107   :  { %s6197_s8 = sld [smem:[#allocation56_spill]]  ;;  %966 = vrot.lane.b32.xlu1 %v3228_v30, %s6125_s2  ;;  %6290 = vst [vmem:[#allocation137_spill] sm:$0xff] %v3430_v44  ;;  %6301 = vst [vmem:[#allocation141_spill] sm:$0xff] %v3462_v22  ;;  %v1122_v44 = vld [vmem:[#allocation2 + $0x4a] sm:$0xff]  ;;  %v1123_v22 = vld [vmem:[#allocation2 + $0x52] sm:$0xff] }
 0x108   :  { %s6198_s14 = sld [smem:[#allocation57_spill]] }
 0x109   :  { %s3097_s29 = sld [smem:[#allocation9 + $0x39]] }
 0x10a   :  { %s3102_s28 = sld [smem:[#allocation9 + $0x3a]]  ;;  %1042 = vrot.lane.b32.xlu0 %v3358_v32, %s6109_s1 }
 0x10b   :  { %s3110_s10 = sld [smem:[#allocation9 + $0x3b]]  ;;  %1044 = vrot.lane.b32.xlu1 %v3380_v53, %s6109_s1 }
 0x10c   :  { %6196 = sst [smem:[#allocation52_spill]] %s3090_s20 }
 0x10d   :  { %s3130_s26 = sld [smem:[#allocation9 + $0x59]] }
 0x10e   :  { %s3136_s21 = sld [smem:[#allocation9 + $0x5a]]  ;;  %1046 = vrot.lane.b32.xlu0 %v3358_v32, %s6125_s2 }
 0x10f   :  { %6201 = sst [smem:[#allocation53_spill]] %s3097_s29  ;;  %1048 = vrot.lane.b32.xlu1 %v3380_v53, %s6125_s2 }
 0x110   :  { %6205 = sst [smem:[#allocation54_spill]] %s3102_s28 }
 0x111   :  { %6209 = sst [smem:[#allocation56_spill]] %s3110_s10 }
 0x112   :  { %s3123_s10 = sld [smem:[#allocation9 + $0x58]]  ;;  %1124 = vrot.lane.b32.xlu0 %v1122_v44, %s6109_s1 }
 0x113   :  { %6218 = sst [smem:[#allocation111_spill]] %s3130_s26  ;;  %1126 = vrot.lane.b32.xlu1 %v1123_v22, %s6109_s1 }
 0x114   :  { %6220 = sst [smem:[#allocation112_spill]] %s3136_s21 }
 0x115   :  { %s3150_s0 = sld [smem:[#allocation9 + $0x5b]] }
 0x116   :  { %s3170_s20 = sld [smem:[#allocation9 + $0x3c]]  ;;  %1128 = vrot.lane.b32.xlu0 %v1122_v44, %s6125_s2 }
 0x117   :  { %s3190_s4 = sld [smem:[#allocation9 + $0x3d]]  ;;  %1130 = vrot.lane.b32.xlu1 %v1123_v22, %s6125_s2 }
 0x118   :  { %6216 = sst [smem:[#allocation57_spill]] %s3123_s10 }
 0x119   :  { %s3208_s30 = sld [smem:[#allocation9 + $0x3e]] }
 0x11a   :  { %s3224_s12 = sld [smem:[#allocation9 + $0x3f]] }
 0x11b   :  { %6221 = sst [smem:[#allocation113_spill]] %s3150_s0 }
 0x11c   :  { %6225 = sst [smem:[#allocation114_spill]] %s3170_s20 }
 0x11d   :  { %6227 = sst [smem:[#allocation115_spill]] %s3190_s4 }
 0x11e   :  { %s3246_s28 = sld [smem:[#allocation9 + $0x5c]] }
 0x11f   :  { %6229 = sst [smem:[#allocation116_spill]] %s3208_s30 }
 0x120   :  { %6233 = sst [smem:[#allocation32_spill]] %s3224_s12 }
 0x121   :  { %s3251_s19 = sld [smem:[#allocation9 + $0x5d]] }
 0x122   :  { %s3269_s7 = sld [smem:[#allocation9 + $0x5e]] }
 0x123   :  { %s3292_s9 = sld [smem:[#allocation9 + $0x5f]] }
 0x124   :  { %6238 = sst [smem:[#allocation42_spill]] %s3246_s28 }
 0x125   :  { %s3356_s25 = sld [smem:[#allocation9 + $0x62]] }
 0x126   :  { %s6273_s6 = sld [smem:[#allocation50_spill]] }
 0x127   :  { %6240 = sst [smem:[#allocation47_spill]] %s3251_s19 }
 0x128   :  { %6246 = sst [smem:[#allocation20_spill]] %s3269_s7 }
 0x129   :  { %6252 = sst [smem:[#allocation21_spill]] %s3292_s9 }
 0x12a   :  { %s3326_s9 = sld [smem:[#allocation9 + $0x60]] }
 0x12b   :  { %6267 = sst [smem:[#allocation24_spill]] %s3356_s25 }
 0x12c   :  { %s3376_s3 = sld [smem:[#allocation9 + $0x63]]  ;;  %v6297_v21 = vstv %s6273_s6 }
 0x12d   :  { %s6276_s17 = sld [smem:[#allocation25_spill]]  ;;  %v3457_v41 = vmul.f32 %v6297_v21, %v3228_v30 }
 0x12e   :  { %s6278_s25 = sld [smem:[#allocation26_spill]] }
 0x12f   :  { %s6282_s22 = sld [smem:[#allocation27_spill]]  ;;  %6299 = vst [vmem:[#allocation140_spill] sm:$0xff] %v3457_v41 }
 0x130   :  { %6261 = sst [smem:[#allocation22_spill]] %s3326_s9 }
 0x131   :  { %s3346_s9 = sld [smem:[#allocation9 + $0x61]] }
 0x132   :  { %6274 = sst [smem:[#allocation29_spill]] %s3376_s3 }
 0x133   :  { %s3398_s3 = sld [smem:[#allocation9 + $0x80]]  ;;  %v6305_v21 = vstv %s6276_s17 }
 0x134   :  { %s6284_s29 = sld [smem:[#allocation28_spill]]  ;;  %v3479_v41 = vmul.f32 %v6305_v21, %v2896_v38  ;;  %v6307_v25 = vstv %s6278_s25 }
 0x135   :  { %s3408_s18 = sld [smem:[#allocation9 + $0x81]]  ;;  %v6303_v60 = vstv %s6282_s22  ;;  %v3484_v30 = vmul.f32 %v6307_v25, %v2896_v38 }
 0x136   :  { %s3420_s23 = sld [smem:[#allocation9 + $0x82]]  ;;  %v3469_v59 = vmul.f32 %v6303_v60, %v2894_v37 }
 0x137   :  { %6264 = sst [smem:[#allocation23_spill]] %s3346_s9 }
 0x138   :  { %s6298_s27 = sld [smem:[#allocation33_spill]] }
 0x139   :  { %6281 = sst [smem:[#allocation30_spill]] %s3398_s3 }
 0x13a   :  { %s6300_s15 = sld [smem:[#allocation34_spill]]  ;;  %v6304_v61 = vstv %s6284_s29 }
 0x13b   :  { %6285 = sst [smem:[#allocation31_spill]] %s3408_s18  ;;  %v3474_v3 = vmul.f32 %v6304_v61, %v2894_v37  ;;  %v6310_v37 = vmov %v6303_v60  ;;  %v3498_v21 = vmul.f32 %v6304_v61, %v2896_v38 }
 0x13c   :  { %6288 = sst [smem:[#allocation48_spill]] %s3420_s23  ;;  %v3493_v60 = vmul.f32 %v6310_v37, %v2896_v38 }
 0x13d   :  { %s3452_s18 = sld [smem:[#allocation9 + $0x83]] }
 0x13e   :  { %s6302_s3 = sld [smem:[#allocation39_spill]]  ;;  %v6313_v2 = vstv %s6298_s27  ;;  %v6323_v33 = vstv %s6298_s27 }
 0x13f   :  { %s6308_s16 = sld [smem:[#allocation40_spill]]  ;;  %v3508_v1 = vmul.f32 %v6313_v2, %v3008_v45 }
 0x140   :  { %s3502_s25 = sld [smem:[#allocation9 + $0x65]]  ;;  %v6315_v7 = vstv %s6300_s15  ;;  %v6326_v28 = vstv %s6300_s15 }
 0x141   :  { %6314 = vst [vmem:[#allocation142_spill] sm:$0xff] %v3508_v1  ;;  %v3513_v37 = vmul.f32 %v6315_v7, %v3008_v45  ;;  %s3520_s29 = sld [smem:[#allocation9 + $0x66]]  ;;  %v3531_v7 = vmul.f32 %v6323_v33, %v3014_v46 }
 0x142   :  { %s6324_s23 = sld [smem:[#allocation55_spill]] }
 0x143   :  { %6296 = sst [smem:[#allocation49_spill]] %s3452_s18  ;;  %6316 = vst [vmem:[#allocation143_spill] sm:$0xff] %v3513_v37  ;;  %6325 = vst [vmem:[#allocation146_spill] sm:$0xff] %v3531_v7  ;;  %v222_v37 = vpop.permute.xlu1 %221 }
 0x144   :  { %s3486_s18 = sld [smem:[#allocation9 + $0x64]]  ;;  %v6317_v38 = vstv %s6302_s3 }
 0x145   :  { %v3518_v61 = vmul.f32 %v6317_v38, %v3008_v45  ;;  %v6321_v25 = vstv %s6308_s16  ;;  %v3536_v38 = vmul.f32 %v6326_v28, %v3014_v46  ;;  %s3538_s7 = sld [smem:[#allocation9 + $0x67]]  ;;  %v6333_v33 = vstv %s6308_s16 }
 0x146   :  { %6312 = sst [smem:[#allocation51_spill]] %s3502_s25  ;;  %v3526_v2 = vmul.f32 %v6321_v25, %v3008_v45  ;;  %v6330_v25 = vstv %s6302_s3  ;;  %v3550_v26 = vmul.f32 %v6333_v33, %v3014_v46  ;;  %v6338_v28 = vstv %s6192_s13 }
 0x147   :  { %6318 = vst [vmem:[#allocation144_spill] sm:$0xff] %v3518_v61  ;;  %6320 = sst [smem:[#allocation25_spill]] %s3520_s29  ;;  %6328 = vst [vmem:[#allocation147_spill] sm:$0xff] %v3536_v38  ;;  %v3545_v29 = vmul.f32 %v6330_v25, %v3014_v46  ;;  %v3557_v57 = vmul.f32 %v6338_v28, %v3358_v32  ;;  %v6342_v25 = vstv %s6193_s11  ;;  %v6345_v46 = vstv %s6194_s5 }
 0x148   :  { %6322 = vst [vmem:[#allocation145_spill] sm:$0xff] %v3526_v2  ;;  %s6331_s27 = sld [smem:[#allocation35_spill]]  ;;  %6335 = vst [vmem:[#allocation149_spill] sm:$0xff] %v3550_v26  ;;  %v3566_v42 = vmul.f32 %v6342_v25, %v3358_v32  ;;  %v3571_v33 = vmul.f32 %v6345_v46, %v3358_v32  ;;  %v6347_v28 = vstv %s6324_s23  ;;  %v6350_v45 = vstv %s6192_s13 }
 0x149   :  { %6332 = vst [vmem:[#allocation148_spill] sm:$0xff] %v3545_v29  ;;  %s6334_s15 = sld [smem:[#allocation36_spill]]  ;;  %6339 = vst [vmem:[#allocation150_spill] sm:$0xff] %v3557_v57  ;;  %v3576_v57 = vmul.f32 %v6347_v28, %v3358_v32  ;;  %v3584_v26 = vmul.f32 %v6350_v45, %v3380_v53 }
 0x14a   :  { %6309 = sst [smem:[#allocation50_spill]] %s3486_s18  ;;  %6344 = vst [vmem:[#allocation151_spill] sm:$0xff] %v3566_v42  ;;  %6346 = vst [vmem:[#allocation152_spill] sm:$0xff] %v3571_v33  ;;  %v3589_v42 = vmul.f32 %v6342_v25, %v3380_v53  ;;  %v3594_v33 = vmul.f32 %v6345_v46, %v3380_v53  ;;  %v6362_v25 = vstv %s6324_s23 }
 0x14b   :  { %6329 = sst [smem:[#allocation26_spill]] %s3538_s7  ;;  %6348 = vst [vmem:[#allocation153_spill] sm:$0xff] %v3576_v57  ;;  %6351 = vst [vmem:[#allocation154_spill] sm:$0xff] %v3584_v26  ;;  %v3616_v46 = vmul.f32 %v6362_v25, %v3380_v53 }
 0x14c   :  { %s6336_s6 = sld [smem:[#allocation37_spill]]  ;;  %6352 = vst [vmem:[#allocation155_spill] sm:$0xff] %v3589_v42  ;;  %6354 = vst [vmem:[#allocation156_spill] sm:$0xff] %v3594_v33 }
 0x14d   :  { %s3552_s29 = sld [smem:[#allocation9 + $0x84]]  ;;  %6364 = vst [vmem:[#allocation157_spill] sm:$0xff] %v3616_v46 }
 0x14e   :  { %s6340_s3 = sld [smem:[#allocation38_spill]]  ;;  %v6355_v32 = vstv %s6331_s27 }
 0x14f   :  { %s3561_s17 = sld [smem:[#allocation9 + $0x85]]  ;;  %v3599_v28 = vmul.f32 %v6355_v32, %v2924_v39  ;;  %v6357_v56 = vstv %s6334_s15  ;;  %v6368_v29 = vstv %s6334_s15 }
 0x150   :  { %s3579_s1 = sld [smem:[#allocation9 + $0x86]]  ;;  %v3604_v57 = vmul.f32 %v6357_v56, %v2924_v39  ;;  %v3633_v38 = vmul.f32 %v6368_v29, %v2926_v40 }
 0x151   :  { %s6353_s22 = sld [smem:[#allocation43_spill]] }
 0x152   :  { %s6356_s24 = sld [smem:[#allocation44_spill]]  ;;  %v6358_v45 = vstv %s6336_s6 }
 0x153   :  { %6337 = sst [smem:[#allocation27_spill]] %s3552_s29  ;;  %v3609_v26 = vmul.f32 %v6358_v45, %v2924_v39  ;;  %v6367_v45 = vstv %s6331_s27 }
 0x154   :  { %s6360_s13 = sld [smem:[#allocation45_spill]]  ;;  %v6365_v32 = vstv %s6340_s3  ;;  %v3628_v42 = vmul.f32 %v6367_v45, %v2926_v40 }
 0x155   :  { %6341 = sst [smem:[#allocation28_spill]] %s3561_s17  ;;  %v3622_v56 = vmul.f32 %v6365_v32, %v2924_v39  ;;  %v6370_v39 = vstv %s6336_s6  ;;  %v6372_v25 = vmov %v6365_v32 }
 0x156   :  { %6349 = sst [smem:[#allocation33_spill]] %s3579_s1  ;;  %v3641_v53 = vmul.f32 %v6370_v39, %v2926_v40  ;;  %v3646_v32 = vmul.f32 %v6372_v25, %v2926_v40 }
 0x157   :  { %s3611_s1 = sld [smem:[#allocation9 + $0x87]]  ;;  %v6373_v45 = vstv %s6353_s22 }
 0x158   :  { %s6363_s5 = sld [smem:[#allocation46_spill]]  ;;  %v3651_v33 = vmul.f32 %v6373_v45, %v3052_v63  ;;  %v6375_v29 = vstv %s6356_s24 }
 0x159   :  { %s3635_s23 = sld [smem:[#allocation9 + $0x68]]  ;;  %v3656_v46 = vmul.f32 %v6375_v29, %v3052_v63  ;;  %v6388_v39 = vmov %v6375_v29  ;;  %v6399_v29 = vstv %s6197_s8 }
 0x15a   :  { %6374 = vst [vmem:[#allocation158_spill] sm:$0xff] %v3651_v33  ;;  %s6377_s27 = sld [smem:[#allocation58_spill]]  ;;  %v6380_v7 = vstv %s6360_s13  ;;  %v3674_v33 = vmul.f32 %v6373_v45, %v3062_v4 }
 0x15b   :  { %6376 = vst [vmem:[#allocation159_spill] sm:$0xff] %v3656_v46  ;;  %s3658_s15 = sld [smem:[#allocation9 + $0x69]]  ;;  %v3664_v2 = vmul.f32 %v6380_v7, %v3052_v63  ;;  %v3682_v7 = vmul.f32 %v6388_v39, %v3062_v4  ;;  %v3701_v39 = vmul.f32 %v6399_v29, %v1122_v44 }
 0x15c   :  { %s6383_s3 = sld [smem:[#allocation59_spill]]  ;;  %6385 = vst [vmem:[#allocation162_spill] sm:$0xff] %v3674_v33 }
 0x15d   :  { %6361 = sst [smem:[#allocation34_spill]] %s3611_s1  ;;  %6381 = vst [vmem:[#allocation160_spill] sm:$0xff] %v3664_v2  ;;  %6390 = vst [vmem:[#allocation163_spill] sm:$0xff] %v3682_v7  ;;  %v6391_v2 = vstv %s6360_s13  ;;  %v6402_v7 = vstv %s6198_s14 }
 0x15e   :  { %v6382_v40 = vstv %s6363_s5  ;;  %s3676_s2 = sld [smem:[#allocation9 + $0x6a]]  ;;  %v3687_v46 = vmul.f32 %v6391_v2, %v3062_v4  ;;  %6401 = vst [vmem:[#allocation166_spill] sm:$0xff] %v3701_v39  ;;  %v3705_v2 = vmul.f32 %v6402_v7, %v1122_v44  ;;  %v6416_v39 = vmov %v6402_v7 }
 0x15f   :  { %6369 = sst [smem:[#allocation39_spill]] %s3635_s23  ;;  %v3669_v25 = vmul.f32 %v6382_v40, %v3052_v63  ;;  %v6393_v63 = vmov %v6382_v40 }
 0x160   :  { %6392 = vst [vmem:[#allocation164_spill] sm:$0xff] %v3687_v46  ;;  %v3692_v40 = vmul.f32 %v6393_v63, %v3062_v4  ;;  %s3694_s22 = sld [smem:[#allocation9 + $0x6b]]  ;;  %6404 = vst [vmem:[#allocation167_spill] sm:$0xff] %v3705_v2  ;;  %v6405_v46 = vstv %s6377_s27 }
 0x161   :  { %6378 = sst [smem:[#allocation40_spill]] %s3658_s15  ;;  %6384 = vst [vmem:[#allocation161_spill] sm:$0xff] %v3669_v25  ;;  %v3709_v33 = vmul.f32 %v6405_v46, %v1122_v44  ;;  %v3724_v25 = vmul.f32 %v6416_v39, %v1123_v22  ;;  %v6421_v4 = vmov %v6405_v46  ;;  %v81_v46 = vlaneseq }
 0x162   :  { %6394 = vst [vmem:[#allocation165_spill] sm:$0xff] %v3692_v40  ;;  %s3697_s15 = sld [smem:[#allocation9 + $0x88]]  ;;  %v6410_v63 = vstv %s6383_s3  ;;  %v6413_v40 = vmov %v6399_v29 }
 0x163   :  { %6406 = vst [vmem:[#allocation168_spill] sm:$0xff] %v3709_v33  ;;  %v3716_v45 = vmul.f32 %v6410_v63, %v1122_v44  ;;  %v3720_v29 = vmul.f32 %v6413_v40, %v1123_v22  ;;  %6417 = vst [vmem:[#allocation171_spill] sm:$0xff] %v3724_v25  ;;  %s3728_s6 = sld [smem:[#allocation9 + $0x8a]]  ;;  %v3732_v33 = vmul.f32 %v6421_v4, %v1123_v22  ;;  %v6424_v44 = vmov %v6410_v63  ;;  %v220_v4 = vpop.permute.xlu0 %219 }
 0x164   :  { %6386 = sst [smem:[#allocation55_spill]] %s3676_s2  ;;  %v3736_v63 = vmul.f32 %v6424_v44, %v1123_v22 }
 0x165   :  { %6412 = vst [vmem:[#allocation169_spill] sm:$0xff] %v3716_v45  ;;  %6415 = vst [vmem:[#allocation170_spill] sm:$0xff] %v3720_v29  ;;  %s3742_s14 = sld [smem:[#allocation9 + $0x8b]]  ;;  %v3830_v29 = vand.u32 127, %v81_v46 }
 0x166   :  { %6395 = sst [smem:[#allocation35_spill]] %s3694_s22  ;;  %6423 = vst [vmem:[#allocation172_spill] sm:$0xff] %v3732_v33  ;;  %6425 = vst [vmem:[#allocation173_spill] sm:$0xff] %v3736_v63 }
 0x167   :  { %s3712_s22 = sld [smem:[#allocation9 + $0x89]]  ;;  %v224_v25 = vpop.permute.xlu0 %223  ;;  %6473 = vst [vmem:[#allocation174_spill] sm:$0xff] %v3830_v29 }
 0x168   :  { %6398 = sst [smem:[#allocation36_spill]] %s3697_s15 }
 0x169   :  { %s3748_s27 = sld [smem:[#allocation9 + $0x6c]] }
 0x16a   :  { %s3754_s3 = sld [smem:[#allocation9 + $0x6d]] }
 0x16b   :  { %6428 = sst [smem:[#allocation38_spill]] %s3742_s14 }
 0x16c   :  { %s6432_s23 = sld [smem:[#allocation22_spill]] }
 0x16d   :  { %6409 = sst [smem:[#allocation37_spill]] %s3712_s22 }
 0x16e   :  { %s3760_s15 = sld [smem:[#allocation9 + $0x6e]] }
 0x16f   :  { %6429 = sst [smem:[#allocation43_spill]] %s3748_s27 }
 0x170   :  { %s3766_s22 = sld [smem:[#allocation9 + $0x6f]] }
 0x171   :  { %s6437_s24 = sld [smem:[#allocation48_spill]] }
 0x172   :  { %s6438_s8 = sld [smem:[#allocation49_spill]] }
 0x173   :  { %s6439_s18 = sld [smem:[#allocation50_spill]] }
 0x174   :  { %s3772_s26 = sld [smem:[#allocation9 + $0x8c]] }
 0x175   :  { %s6443_s21 = sld [smem:[#allocation26_spill]] }
 0x176   :  { %s6444_s0 = sld [smem:[#allocation27_spill]] }
 0x177   :  { %s3778_s2 = sld [smem:[#allocation9 + $0x8d]] }
 0x178   :  { %s6447_s30 = sld [smem:[#allocation34_spill]] }
 0x179   :  { %s6448_s12 = sld [smem:[#allocation39_spill]] }
 0x17a   :  { %6441 = sst [smem:[#allocation44_spill]] %s3772_s26 }
 0x17b   :  { %s6449_s28 = sld [smem:[#allocation40_spill]] }
 0x17c   :  { %s6450_s19 = sld [smem:[#allocation55_spill]] }
 0x17d   :  { %s6451_s11 = sld [smem:[#allocation35_spill]] }
 0x17e   :  { %s3784_s16 = sld [smem:[#allocation9 + $0x8e]] }
 0x17f   :  { %s6453_s13 = sld [smem:[#allocation36_spill]] }
 0x180   :  { %s6454_s5 = sld [smem:[#allocation37_spill]] }
 0x181   :  { %s3790_s9 = sld [smem:[#allocation9 + $0x8f]] }
 0x182   :  { %s6455_s29 = sld [smem:[#allocation64_spill]] }
 0x183   :  { %s6456_s7 = sld [smem:[#allocation65_spill]] }
 0x184   :  { %6452 = sst [smem:[#allocation45_spill]] %s3784_s16 }
 0x185   :  { %s6457_s25 = sld [smem:[#allocation66_spill]] }
 0x186   :  { %s6458_s1 = sld [smem:[#allocation67_spill]] }
 0x187   :  { %s6459_s10 = sld [smem:[#allocation60_spill]] }
 0x188   :  { %s6460_s17 = sld [smem:[#allocation61_spill]]  ;;  %v6463_v44 = vstv %s6455_s29  ;;  %v6474_v51 = vstv %s6455_s29 }
 0x189   :  { %s6461_s20 = sld [smem:[#allocation62_spill]]  ;;  %v229_v45 = vmul.f32 %v6463_v44, %v220_v4  ;;  %v6464_v22 = vstv %s6456_s7 }
 0x18a   :  { %s6462_s4 = sld [smem:[#allocation63_spill]]  ;;  %v247_v7 = vmul.f32 %v6464_v22, %v220_v4 }
 0x18b   :  { %v6465_v2 = vstv %s6457_s25  ;;  %s6468_s27 = sld [smem:[#allocation68_spill]] }
 0x18c   :  { %v265_v39 = vmul.f32 %v6465_v2, %v220_v4  ;;  %v6466_v61 = vstv %s6458_s1  ;;  %s6470_s14 = sld [smem:[#allocation69_spill]] }
 0x18d   :  { %v283_v63 = vmul.f32 %v6466_v61, %v220_v4  ;;  %v6467_v1 = vstv %s6459_s10  ;;  %s6475_s26 = sld [smem:[#allocation70_spill]]  ;;  %v6482_v29 = vstv %s6459_s10 }
 0x18e   :  { %v231_v40 = vadd.f32 %v229_v45, %v6467_v1  ;;  %v6469_v62 = vstv %s6460_s17  ;;  %v230_v1 = vmul.f32 %v6474_v51, %v222_v37  ;;  %s6479_s16 = sld [smem:[#allocation71_spill]]  ;;  %v6483_v51 = vstv %s6460_s17 }
 0x18f   :  { %v249_v44 = vadd.f32 %v247_v7, %v6469_v62  ;;  %v6471_v2 = vstv %s6461_s20  ;;  %v6476_v62 = vmov %v6464_v22  ;;  %v6477_v7 = vstv %s6457_s25  ;;  %s6489_s10 = sld [smem:[#allocation73_spill]] }
 0x190   :  { %v267_v43 = vadd.f32 %v265_v39, %v6471_v2  ;;  %v6472_v61 = vstv %s6462_s4  ;;  %v248_v45 = vmul.f32 %v6476_v62, %v222_v37  ;;  %v266_v0 = vmul.f32 %v6477_v7, %v222_v37  ;;  %s6499_s7 = sld [smem:[#allocation76_spill]] }
 0x191   :  { %v285_v4 = vadd.f32 %v283_v63, %v6472_v61  ;;  %v6478_v22 = vstv %s6458_s1  ;;  %v237_v39 = vadd.f32 %v3143_v36, %v231_v40  ;;  %v6480_v2 = vstv %s6468_s27  ;;  %s6487_s1 = sld [smem:[#allocation72_spill]] }
 0x192   :  { %v284_v6 = vmul.f32 %v6478_v22, %v222_v37  ;;  %v241_v63 = vmul.f32 %v6480_v2, %v224_v25  ;;  %v255_v61 = vadd.f32 %v3148_v34, %v249_v44  ;;  %v6481_v33 = vstv %s6470_s14  ;;  %v226_v34 = vpop.permute.xlu1 %225  ;;  %s6504_s17 = sld [smem:[#allocation78_spill]] }
 0x193   :  { %v259_v46 = vmul.f32 %v6481_v33, %v224_v25  ;;  %v232_v5 = vadd.f32 %v230_v1, %v6482_v29  ;;  %v250_v54 = vadd.f32 %v248_v45, %v6483_v51  ;;  %v6484_v62 = vstv %s6461_s20  ;;  %s6492_s20 = sld [smem:[#allocation75_spill]] }
 0x194   :  { %v268_v52 = vadd.f32 %v266_v0, %v6484_v62  ;;  %v6485_v7 = vstv %s6462_s4  ;;  %v243_v37 = vadd.f32 %v241_v63, %v237_v39  ;;  %v273_v36 = vadd.f32 %v3157_v9, %v267_v43  ;;  %s6491_s4 = sld [smem:[#allocation74_spill]] }
 0x195   :  { %v286_v48 = vadd.f32 %v284_v6, %v6485_v7  ;;  %v261_v22 = vadd.f32 %v259_v46, %v255_v61  ;;  %v6486_v40 = vstv %s6475_s26  ;;  %v291_v33 = vadd.f32 %v3162_v10, %v285_v4  ;;  %s6502_s26 = sld [smem:[#allocation77_spill]] }
 0x196   :  { %v277_v2 = vmul.f32 %v6486_v40, %v224_v25  ;;  %v6488_v44 = vstv %s6479_s16  ;;  %v238_v1 = vadd.f32 %v3195_v16, %v232_v5  ;;  %v6490_v0 = vstv %s6468_s27  ;;  %v303_v5 = vpop.permute.xlu0 %302  ;;  %s6506_s25 = sld [smem:[#allocation79_spill]] }
 0x197   :  { %v295_v29 = vmul.f32 %v6488_v44, %v224_v25  ;;  %v242_v45 = vmul.f32 %v6490_v0, %v226_v34  ;;  %v256_v39 = vadd.f32 %v3200_v19, %v250_v54  ;;  %v6493_v9 = vstv %s6470_s14  ;;  %s6512_s29 = sld [smem:[#allocation80_spill]] }
 0x198   :  { %v279_v6 = vadd.f32 %v277_v2, %v273_v36  ;;  %v260_v43 = vmul.f32 %v6493_v9, %v226_v34  ;;  %v274_v63 = vadd.f32 %v3205_v8, %v268_v52  ;;  %v6494_v10 = vmov %v6486_v40  ;;  %v305_v40 = vpop.permute.xlu1 %304  ;;  %s6513_s16 = sld [smem:[#allocation81_spill]] }
 0x199   :  { %v297_v61 = vadd.f32 %v295_v29, %v291_v33  ;;  %v244_v46 = vadd.f32 %v242_v45, %v238_v1  ;;  %v278_v4 = vmul.f32 %v6494_v10, %v226_v34  ;;  %v292_v25 = vadd.f32 %v3215_v47, %v286_v48  ;;  %s6515_s14 = sld [smem:[#allocation82_spill]] }
 0x19a   :  { %v262_v16 = vadd.f32 %v260_v43, %v256_v39  ;;  %v6495_v51 = vmov %v6488_v44  ;;  %v6496_v7 = vstv %s6487_s1  ;;  %v6497_v19 = vstv %s6489_s10  ;;  %s6516_s27 = sld [smem:[#allocation83_spill]] }
 0x19b   :  { %v296_v62 = vmul.f32 %v6495_v51, %v226_v34  ;;  %v312_v36 = vmul.f32 %v6496_v7, %v303_v5  ;;  %v330_v54 = vmul.f32 %v6497_v19, %v303_v5  ;;  %v280_v2 = vadd.f32 %v278_v4, %v274_v63  ;;  %v307_v63 = vpop.permute.xlu0 %306  ;;  %s6524_s1 = sld [smem:[#allocation84_spill]] }
 0x19c   :  { %v6498_v8 = vstv %s6491_s4  ;;  %v6500_v33 = vstv %s6492_s20  ;;  %v6501_v29 = vmov %v6496_v7  ;;  %v6503_v45 = vmov %v6497_v19  ;;  %s6526_s10 = sld [smem:[#allocation85_spill]] }
 0x19d   :  { %v348_v52 = vmul.f32 %v6498_v8, %v303_v5  ;;  %v366_v44 = vmul.f32 %v6500_v33, %v303_v5  ;;  %v313_v1 = vmul.f32 %v6501_v29, %v305_v40  ;;  %v298_v47 = vadd.f32 %v296_v62, %v292_v25  ;;  %s6528_s4 = sld [smem:[#allocation86_spill]] }
 0x19e   :  { %v314_v48 = vadd.f32 %v312_v36, %v243_v37  ;;  %v332_v0 = vadd.f32 %v330_v54, %v261_v22  ;;  %v331_v34 = vmul.f32 %v6503_v45, %v305_v40  ;;  %v6505_v10 = vmov %v6498_v8  ;;  %v309_v37 = vpop.permute.xlu1 %308  ;;  %s6530_s20 = sld [smem:[#allocation87_spill]] }
 0x19f   :  { %v350_v39 = vadd.f32 %v348_v52, %v279_v6  ;;  %v368_v9 = vadd.f32 %v366_v44, %v297_v61  ;;  %v315_v43 = vadd.f32 %v313_v1, %v244_v46  ;;  %v349_v51 = vmul.f32 %v6505_v10, %v305_v40  ;;  %v386_v1 = vpop.permute.xlu0 %385 }
 0x1a0   :  { %v333_v4 = vadd.f32 %v331_v34, %v262_v16  ;;  %v6507_v7 = vmov %v6500_v33  ;;  %v320_v19 = vadd.f32 %v3289_v58, %v314_v48  ;;  %v6508_v25 = vstv %s6499_s7  ;;  %s6535_s7 = sld [smem:[#allocation88_spill]] }
 0x1a1   :  { %v367_v5 = vmul.f32 %v6507_v7, %v305_v40  ;;  %v324_v62 = vmul.f32 %v6508_v25, %v307_v63  ;;  %v351_v22 = vadd.f32 %v349_v51, %v280_v2  ;;  %v338_v6 = vadd.f32 %v3309_v14, %v332_v0 }
 0x1a2   :  { %v6509_v36 = vstv %s6502_s26  ;;  %v356_v46 = vadd.f32 %v3314_v27, %v350_v39  ;;  %v6510_v16 = vstv %s6504_s17  ;;  %v374_v40 = vadd.f32 %v3319_v18, %v368_v9  ;;  %v388_v45 = vpop.permute.xlu1 %387  ;;  %s6537_s26 = sld [smem:[#allocation89_spill]] }
 0x1a3   :  { %v342_v61 = vmul.f32 %v6509_v36, %v307_v63  ;;  %v369_v54 = vadd.f32 %v367_v5, %v298_v47  ;;  %v326_v8 = vadd.f32 %v324_v62, %v320_v19  ;;  %v360_v52 = vmul.f32 %v6510_v16, %v307_v63  ;;  %s6539_s17 = sld [smem:[#allocation90_spill]] }
 0x1a4   :  { %v6511_v33 = vstv %s6506_s25  ;;  %v321_v2 = vadd.f32 %v3324_v17, %v315_v43  ;;  %v6514_v14 = vmov %v6508_v25  ;;  %v339_v47 = vadd.f32 %v3333_v20, %v333_v4  ;;  %s6540_s25 = sld [smem:[#allocation91_spill]] }
 0x1a5   :  { %v344_v58 = vadd.f32 %v342_v61, %v338_v6  ;;  %v378_v44 = vmul.f32 %v6511_v33, %v307_v63  ;;  %v325_v29 = vmul.f32 %v6514_v14, %v309_v37  ;;  %v362_v27 = vadd.f32 %v360_v52, %v356_v46  ;;  %v390_v61 = vpop.permute.xlu0 %389 }
 0x1a6   :  { %v6517_v48 = vmov %v6509_v36  ;;  %v357_v18 = vadd.f32 %v3338_v31, %v351_v22  ;;  %v6518_v9 = vmov %v6510_v16  ;;  %v375_v17 = vadd.f32 %v3343_v13, %v369_v54  ;;  %v392_v52 = vpop.permute.xlu1 %391 }
 0x1a7   :  { %v343_v0 = vmul.f32 %v6517_v48, %v309_v37  ;;  %v380_v34 = vadd.f32 %v378_v44, %v374_v40  ;;  %v327_v39 = vadd.f32 %v325_v29, %v321_v2  ;;  %v361_v10 = vmul.f32 %v6518_v9, %v309_v37 }
 0x1a8   :  { %v6519_v51 = vmov %v6511_v33  ;;  %v6520_v7 = vstv %s6512_s29  ;;  %v6521_v19 = vstv %s6513_s16  ;;  %v6522_v25 = vstv %s6515_s14  ;;  %s6547_s29 = sld [smem:[#allocation92_spill]] }
 0x1a9   :  { %v345_v43 = vadd.f32 %v343_v0, %v339_v47  ;;  %v379_v63 = vmul.f32 %v6519_v51, %v309_v37  ;;  %v395_v5 = vmul.f32 %v6520_v7, %v386_v1  ;;  %v413_v20 = vmul.f32 %v6521_v19, %v386_v1  ;;  %s6550_s16 = sld [smem:[#allocation93_spill]] }
 0x1aa   :  { %v363_v4 = vadd.f32 %v361_v10, %v357_v18  ;;  %v431_v31 = vmul.f32 %v6522_v25, %v386_v1  ;;  %v6523_v62 = vstv %s6516_s27  ;;  %v6525_v6 = vmov %v6520_v7  ;;  %s6552_s14 = sld [smem:[#allocation94_spill]] }
 0x1ab   :  { %v449_v22 = vmul.f32 %v6523_v62, %v386_v1  ;;  %v396_v36 = vmul.f32 %v6525_v6, %v388_v45  ;;  %v381_v13 = vadd.f32 %v379_v63, %v375_v17  ;;  %v397_v46 = vadd.f32 %v395_v5, %v326_v8  ;;  %s6554_s27 = sld [smem:[#allocation95_spill]] }
 0x1ac   :  { %v415_v54 = vadd.f32 %v413_v20, %v344_v58  ;;  %v6527_v37 = vmov %v6521_v19  ;;  %v433_v40 = vadd.f32 %v431_v31, %v362_v27  ;;  %v6529_v2 = vmov %v6522_v25 }
 0x1ad   :  { %v414_v16 = vmul.f32 %v6527_v37, %v388_v45  ;;  %v451_v33 = vadd.f32 %v449_v22, %v380_v34  ;;  %v398_v44 = vadd.f32 %v396_v36, %v327_v39  ;;  %v432_v14 = vmul.f32 %v6529_v2, %v388_v45  ;;  %v469_v34 = vpop.permute.xlu0 %468 }
 0x1ae   :  { %v6531_v47 = vmov %v6523_v62  ;;  %v403_v48 = vadd.f32 %v3445_v24, %v397_v46  ;;  %v6532_v0 = vstv %s6524_s1  ;;  %v421_v58 = vadd.f32 %v3450_v12, %v415_v54  ;;  %v471_v24 = vpop.permute.xlu1 %470  ;;  %s6560_s1 = sld [smem:[#allocation96_spill]] }
 0x1af   :  { %v416_v29 = vadd.f32 %v414_v16, %v345_v43  ;;  %v450_v1 = vmul.f32 %v6531_v47, %v388_v45  ;;  %v407_v18 = vmul.f32 %v6532_v0, %v390_v61  ;;  %v434_v8 = vadd.f32 %v432_v14, %v363_v4 }
 0x1b0   :  { %v6533_v9 = vstv %s6526_s10  ;;  %v439_v27 = vadd.f32 %v3469_v59, %v433_v40  ;;  %v6534_v43 = vstv %s6528_s4  ;;  %v457_v45 = vadd.f32 %v3474_v3, %v451_v33  ;;  %s6561_s10 = sld [smem:[#allocation97_spill]] }
 0x1b1   :  { %v425_v10 = vmul.f32 %v6533_v9, %v390_v61  ;;  %v452_v39 = vadd.f32 %v450_v1, %v381_v13  ;;  %v409_v17 = vadd.f32 %v407_v18, %v403_v48  ;;  %v443_v51 = vmul.f32 %v6534_v43, %v390_v61  ;;  %s6563_s4 = sld [smem:[#allocation98_spill]] }
 0x1b2   :  { %v6536_v7 = vstv %s6530_s20  ;;  %v404_v12 = vadd.f32 %v3479_v41, %v398_v44  ;;  %v6538_v19 = vmov %v6532_v0  ;;  %v422_v4 = vadd.f32 %v3484_v30, %v416_v29  ;;  %v473_v41 = vpop.permute.xlu0 %472  ;;  %v475_v33 = vpop.permute.xlu1 %474  ;;  %s6564_s20 = sld [smem:[#allocation99_spill]] }
 0x1b3   :  { %v427_v63 = vadd.f32 %v425_v10, %v421_v58  ;;  %v461_v5 = vmul.f32 %v6536_v7, %v390_v61  ;;  %v408_v20 = vmul.f32 %v6538_v19, %v392_v52  ;;  %v445_v59 = vadd.f32 %v443_v51, %v439_v27 }
 0x1b4   :  { %v6541_v25 = vmov %v6533_v9  ;;  %v440_v3 = vadd.f32 %v3493_v60, %v434_v8  ;;  %v6542_v6 = vmov %v6534_v43  ;;  %v458_v61 = vadd.f32 %v3498_v21, %v452_v39 }
 0x1b5   :  { %v426_v31 = vmul.f32 %v6541_v25, %v392_v52  ;;  %v463_v62 = vadd.f32 %v461_v5, %v457_v45  ;;  %v410_v22 = vadd.f32 %v408_v20, %v404_v12  ;;  %v444_v36 = vmul.f32 %v6542_v6, %v392_v52 }
 0x1b6   :  { %v6543_v46 = vmov %v6536_v7  ;;  %v6544_v37 = vstv %s6535_s7  ;;  %v6545_v30 = vstv %s6537_s26  ;;  %v6546_v60 = vstv %s6539_s17  ;;  %v551_v39 = vpop.permute.xlu0 %550  ;;  %s6572_s7 = sld [smem:[#allocation100_spill]] }
 0x1b7   :  { %v428_v13 = vadd.f32 %v426_v31, %v422_v4  ;;  %v462_v54 = vmul.f32 %v6543_v46, %v392_v52  ;;  %v478_v16 = vmul.f32 %v6544_v37, %v469_v34  ;;  %v496_v40 = vmul.f32 %v6545_v30, %v469_v34  ;;  %s6574_s26 = sld [smem:[#allocation101_spill]] }
 0x1b8   :  { %v446_v44 = vadd.f32 %v444_v36, %v440_v3  ;;  %v514_v2 = vmul.f32 %v6546_v60, %v469_v34  ;;  %v6548_v14 = vstv %s6540_s25  ;;  %v6549_v47 = vmov %v6544_v37  ;;  %s6576_s17 = sld [smem:[#allocation102_spill]] }
 0x1b9   :  { %v532_v29 = vmul.f32 %v6548_v14, %v469_v34  ;;  %v479_v1 = vmul.f32 %v6549_v47, %v471_v24  ;;  %v464_v21 = vadd.f32 %v462_v54, %v458_v61  ;;  %v480_v48 = vadd.f32 %v478_v16, %v409_v17  ;;  %v553_v17 = vpop.permute.xlu1 %552  ;;  %s6578_s25 = sld [smem:[#allocation103_spill]] }
 0x1ba   :  { %v498_v0 = vadd.f32 %v496_v40, %v427_v63  ;;  %v6551_v18 = vmov %v6545_v30  ;;  %v516_v8 = vadd.f32 %v514_v2, %v445_v59  ;;  %v6553_v10 = vmov %v6546_v60  ;;  %v555_v61 = vpop.permute.xlu0 %554 }
 0x1bb   :  { %v497_v52 = vmul.f32 %v6551_v18, %v471_v24  ;;  %v534_v58 = vadd.f32 %v532_v29, %v463_v62  ;;  %v481_v9 = vadd.f32 %v479_v1, %v410_v22  ;;  %v515_v27 = vmul.f32 %v6553_v10, %v471_v24 }
 0x1bc   :  { %v6555_v51 = vmov %v6548_v14  ;;  %v486_v45 = vadd.f32 %v3599_v28, %v480_v48  ;;  %v6556_v7 = vstv %s6547_s29  ;;  %v504_v12 = vadd.f32 %v3604_v57, %v498_v0  ;;  %s6583_s29 = sld [smem:[#allocation104_spill]] }
 0x1bd   :  { %v499_v43 = vadd.f32 %v497_v52, %v428_v13  ;;  %v533_v34 = vmul.f32 %v6555_v51, %v471_v24  ;;  %v490_v5 = vmul.f32 %v6556_v7, %v473_v41  ;;  %v517_v63 = vadd.f32 %v515_v27, %v446_v44  ;;  %v557_v37 = vpop.permute.xlu1 %556 }
 0x1be   :  { %v6557_v19 = vstv %s6550_s16  ;;  %v522_v59 = vadd.f32 %v3609_v26, %v516_v8  ;;  %v6558_v31 = vstv %s6552_s14  ;;  %v540_v24 = vadd.f32 %v3622_v56, %v534_v58  ;;  %v633_v8 = vpop.permute.xlu0 %632  ;;  %s6585_s16 = sld [smem:[#allocation105_spill]] }
 0x1bf   :  { %v508_v20 = vmul.f32 %v6557_v19, %v473_v41  ;;  %v535_v4 = vadd.f32 %v533_v34, %v464_v21  ;;  %v492_v25 = vadd.f32 %v490_v5, %v486_v45  ;;  %v526_v3 = vmul.f32 %v6558_v31, %v473_v41  ;;  %s6587_s14 = sld [smem:[#allocation106_spill]] }
 0x1c0   :  { %v6559_v62 = vstv %s6554_s27  ;;  %v487_v6 = vadd.f32 %v3628_v42, %v481_v9  ;;  %v6562_v57 = vmov %v6556_v7  ;;  %v505_v13 = vadd.f32 %v3633_v38, %v499_v43  ;;  %s6588_s27 = sld [smem:[#allocation107_spill]] }
 0x1c1   :  { %v510_v28 = vadd.f32 %v508_v20, %v504_v12  ;;  %v544_v22 = vmul.f32 %v6559_v62, %v473_v41  ;;  %v491_v36 = vmul.f32 %v6562_v57, %v475_v33  ;;  %v528_v26 = vadd.f32 %v526_v3, %v522_v59  ;;  %v635_v27 = vpop.permute.xlu1 %634 }
 0x1c2   :  { %v6565_v46 = vmov %v6557_v19  ;;  %v523_v56 = vadd.f32 %v3641_v53, %v517_v63  ;;  %v6566_v30 = vmov %v6558_v31  ;;  %v541_v42 = vadd.f32 %v3646_v32, %v535_v4 }
 0x1c3   :  { %v509_v54 = vmul.f32 %v6565_v46, %v475_v33  ;;  %v546_v16 = vadd.f32 %v544_v22, %v540_v24  ;;  %v493_v41 = vadd.f32 %v491_v36, %v487_v6  ;;  %v527_v40 = vmul.f32 %v6566_v30, %v475_v33  ;;  %v637_v24 = vpop.permute.xlu0 %636 }
 0x1c4   :  { %v6567_v60 = vmov %v6559_v62  ;;  %v6568_v14 = vstv %s6560_s1  ;;  %v6569_v47 = vstv %s6561_s10  ;;  %v6570_v21 = vstv %s6563_s4  ;;  %s6596_s1 = sld [smem:[#allocation41_spill]] }
 0x1c5   :  { %v511_v44 = vadd.f32 %v509_v54, %v505_v13  ;;  %v545_v2 = vmul.f32 %v6567_v60, %v475_v33  ;;  %v560_v29 = vmul.f32 %v6568_v14, %v551_v39  ;;  %v578_v38 = vmul.f32 %v6569_v47, %v551_v39  ;;  %s6599_s10 = sld [smem:[#allocation108_spill]] }
 0x1c6   :  { %v529_v1 = vadd.f32 %v527_v40, %v523_v56  ;;  %v596_v53 = vmul.f32 %v6570_v21, %v551_v39  ;;  %v6571_v48 = vstv %s6564_s20  ;;  %v6573_v18 = vmov %v6568_v14  ;;  %s6601_s4 = sld [smem:[#allocation109_spill]] }
 0x1c7   :  { %v614_v0 = vmul.f32 %v6571_v48, %v551_v39  ;;  %v561_v52 = vmul.f32 %v6573_v18, %v553_v17  ;;  %v547_v32 = vadd.f32 %v545_v2, %v541_v42  ;;  %v562_v58 = vadd.f32 %v560_v29, %v492_v25  ;;  %s6603_s20 = sld [smem:[#allocation110_spill]] }
 0x1c8   :  { %v580_v9 = vadd.f32 %v578_v38, %v510_v28  ;;  %v6575_v33 = vmov %v6569_v47  ;;  %v598_v43 = vadd.f32 %v596_v53, %v528_v26  ;;  %v6577_v45 = vmov %v6570_v21 }
 0x1c9   :  { %v579_v10 = vmul.f32 %v6575_v33, %v553_v17  ;;  %v616_v51 = vadd.f32 %v614_v0, %v546_v16  ;;  %v563_v34 = vadd.f32 %v561_v52, %v493_v41  ;;  %v597_v7 = vmul.f32 %v6577_v45, %v553_v17 }
 0x1ca   :  { %v6579_v63 = vmov %v6571_v48  ;;  %v568_v12 = vadd.f32 %v3168_v15, %v562_v58  ;;  %v6580_v19 = vstv %s6572_s7  ;;  %v586_v4 = vadd.f32 %v3178_v35, %v580_v9  ;;  %v639_v15 = vpop.permute.xlu1 %638  ;;  %s6612_s7 = sld [smem:[#allocation52_spill]] }
 0x1cb   :  { %v581_v5 = vadd.f32 %v579_v10, %v511_v44  ;;  %v615_v39 = vmul.f32 %v6579_v63, %v553_v17  ;;  %v572_v20 = vmul.f32 %v6580_v19, %v555_v61  ;;  %v599_v59 = vadd.f32 %v597_v7, %v529_v1 }
 0x1cc   :  { %v6581_v25 = vstv %s6574_s26  ;;  %v604_v3 = vadd.f32 %v3183_v23, %v598_v43  ;;  %v6582_v22 = vstv %s6576_s17  ;;  %v622_v17 = vadd.f32 %v3188_v11, %v616_v51  ;;  %s6614_s26 = sld [smem:[#allocation53_spill]] }
 0x1cd   :  { %v590_v31 = vmul.f32 %v6581_v25, %v555_v61  ;;  %v617_v28 = vadd.f32 %v615_v39, %v547_v32  ;;  %v574_v62 = vadd.f32 %v572_v20, %v568_v12  ;;  %v608_v6 = vmul.f32 %v6582_v22, %v555_v61  ;;  %v6605_v39 = vld [vmem:[#allocation126_spill] sm:$0xff]  ;;  %s6617_s17 = sld [smem:[#allocation54_spill]] }
 0x1ce   :  { %v6584_v36 = vstv %s6578_s25  ;;  %v569_v35 = vadd.f32 %v3222_v49, %v563_v34  ;;  %v6586_v13 = vmov %v6580_v19  ;;  %v587_v54 = vadd.f32 %v3234_v50, %v581_v5  ;;  %v715_v49 = vpop.permute.xlu0 %714  ;;  %v717_v1 = vpop.permute.xlu1 %716  ;;  %s6618_s25 = sld [smem:[#allocation56_spill]] }
 0x1cf   :  { %v592_v57 = vadd.f32 %v590_v31, %v586_v4  ;;  %v626_v26 = vmul.f32 %v6584_v36, %v555_v61  ;;  %v573_v46 = vmul.f32 %v6586_v13, %v557_v37  ;;  %v610_v23 = vadd.f32 %v608_v6, %v604_v3  ;;  %v6591_v61 = vld [vmem:[#allocation117_spill] sm:$0xff] }
 0x1d0   :  { %v6589_v56 = vmov %v6581_v25  ;;  %v605_v11 = vadd.f32 %v3239_v55, %v599_v59  ;;  %v6590_v40 = vmov %v6582_v22  ;;  %v623_v44 = vadd.f32 %v6591_v61, %v617_v28  ;;  %v6607_v25 = vld [vmem:[#allocation127_spill] sm:$0xff] }
 0x1d1   :  { %v591_v16 = vmul.f32 %v6589_v56, %v557_v37  ;;  %v628_v41 = vadd.f32 %v626_v26, %v622_v17  ;;  %v575_v30 = vadd.f32 %v573_v46, %v569_v35  ;;  %v609_v42 = vmul.f32 %v6590_v40, %v557_v37 }
 0x1d2   :  { %v6592_v2 = vmov %v6584_v36  ;;  %v6593_v29 = vstv %s6583_s29  ;;  %v6594_v50 = vstv %s6585_s16  ;;  %v6595_v55 = vstv %s6587_s14  ;;  %v719_v7 = vpop.permute.xlu0 %718  ;;  %v4051_v59 = vpop.permute.xlu1 %720  ;;  %s6628_s29 = sld [smem:[#allocation57_spill]] }
 0x1d3   :  { %v593_v60 = vadd.f32 %v591_v16, %v587_v54  ;;  %v627_v14 = vmul.f32 %v6592_v2, %v557_v37  ;;  %v642_v47 = vmul.f32 %v6593_v29, %v633_v8  ;;  %v660_v38 = vmul.f32 %v6594_v50, %v633_v8  ;;  %s6631_s16 = sld [smem:[#allocation111_spill]] }
 0x1d4   :  { %v611_v21 = vadd.f32 %v609_v42, %v605_v11  ;;  %v678_v53 = vmul.f32 %v6595_v55, %v633_v8  ;;  %v6597_v48 = vstv %s6588_s27  ;;  %v6598_v18 = vmov %v6593_v29  ;;  %s6633_s14 = sld [smem:[#allocation112_spill]] }
 0x1d5   :  { %v696_v0 = vmul.f32 %v6597_v48, %v633_v8  ;;  %v643_v52 = vmul.f32 %v6598_v18, %v635_v27  ;;  %v629_v32 = vadd.f32 %v627_v14, %v623_v44  ;;  %v644_v58 = vadd.f32 %v642_v47, %v574_v62  ;;  %v6609_v62 = vld [vmem:[#allocation128_spill] sm:$0xff]  ;;  %v6623_v47 = vld [vmem:[#allocation133_spill] sm:$0xff]  ;;  %s6635_s27 = sld [smem:[#allocation113_spill]] }
 0x1d6   :  { %v662_v9 = vadd.f32 %v660_v38, %v592_v57  ;;  %v6600_v33 = vmov %v6594_v50  ;;  %v680_v10 = vadd.f32 %v678_v53, %v610_v23  ;;  %v6602_v34 = vmov %v6595_v55  ;;  %v6615_v23 = vld [vmem:[#allocation130_spill] sm:$0xff]  ;;  %v797_v11 = vpop.permute.xlu0 %796  ;;  %v6621_v44 = vld [vmem:[#allocation132_spill] sm:$0xff] }
 0x1d7   :  { %v661_v37 = vmul.f32 %v6600_v33, %v635_v27  ;;  %v698_v43 = vadd.f32 %v696_v0, %v628_v41  ;;  %v645_v51 = vadd.f32 %v643_v52, %v575_v30  ;;  %v679_v45 = vmul.f32 %v6602_v34, %v635_v27  ;;  %v6619_v30 = vld [vmem:[#allocation131_spill] sm:$0xff]  ;;  %v799_v52 = vpop.permute.xlu1 %798 }
 0x1d8   :  { %v6604_v63 = vmov %v6597_v48  ;;  %v650_v12 = vadd.f32 %v6605_v39, %v644_v58  ;;  %v6606_v19 = vstv %s6596_s1  ;;  %v668_v31 = vadd.f32 %v6607_v25, %v662_v9  ;;  %s6644_s1 = sld [smem:[#allocation114_spill]] }
 0x1d9   :  { %v663_v5 = vadd.f32 %v661_v37, %v593_v60  ;;  %v697_v8 = vmul.f32 %v6604_v63, %v635_v27  ;;  %v654_v20 = vmul.f32 %v6606_v19, %v637_v24  ;;  %v681_v4 = vadd.f32 %v679_v45, %v611_v21  ;;  %v6611_v27 = vld [vmem:[#allocation129_spill] sm:$0xff] }
 0x1da   :  { %v6608_v3 = vstv %s6599_s10  ;;  %v686_v22 = vadd.f32 %v6609_v62, %v680_v10  ;;  %v6610_v57 = vstv %s6601_s4  ;;  %v704_v26 = vadd.f32 %v6611_v27, %v698_v43  ;;  %v6641_v27 = vld [vmem:[#allocation144_spill] sm:$0xff]  ;;  %s6646_s10 = sld [smem:[#allocation115_spill]] }
 0x1db   :  { %v672_v28 = vmul.f32 %v6608_v3, %v637_v24  ;;  %v699_v6 = vadd.f32 %v697_v8, %v629_v32  ;;  %v656_v17 = vadd.f32 %v654_v20, %v650_v12  ;;  %v690_v36 = vmul.f32 %v6610_v57, %v637_v24  ;;  %v801_v20 = vpop.permute.xlu0 %800  ;;  %s6649_s4 = sld [smem:[#allocation116_spill]] }
 0x1dc   :  { %v6613_v13 = vstv %s6603_s20  ;;  %v651_v54 = vadd.f32 %v6615_v23, %v645_v51  ;;  %v6616_v56 = vmov %v6606_v19  ;;  %v669_v40 = vadd.f32 %v6619_v30, %v663_v5  ;;  %s6650_s20 = sld [smem:[#allocation32_spill]] }
 0x1dd   :  { %v674_v35 = vadd.f32 %v672_v28, %v668_v31  ;;  %v708_v46 = vmul.f32 %v6613_v13, %v637_v24  ;;  %v655_v16 = vmul.f32 %v6616_v56, %v639_v15  ;;  %v692_v41 = vadd.f32 %v690_v36, %v686_v22  ;;  %v6637_v31 = vld [vmem:[#allocation142_spill] sm:$0xff] }
 0x1de   :  { %v6620_v42 = vmov %v6608_v3  ;;  %v687_v60 = vadd.f32 %v6621_v44, %v681_v4  ;;  %v6622_v29 = vmov %v6610_v57  ;;  %v705_v50 = vadd.f32 %v6623_v47, %v699_v6  ;;  %v6639_v6 = vld [vmem:[#allocation143_spill] sm:$0xff]  ;;  %v6653_v47 = vld [vmem:[#allocation148_spill] sm:$0xff] }
 0x1df   :  { %v673_v61 = vmul.f32 %v6620_v42, %v639_v15  ;;  %v710_v2 = vadd.f32 %v708_v46, %v704_v26  ;;  %v657_v14 = vadd.f32 %v655_v16, %v651_v54  ;;  %v691_v24 = vmul.f32 %v6622_v29, %v639_v15  ;;  %v6643_v54 = vld [vmem:[#allocation145_spill] sm:$0xff] }
 0x1e0   :  { %v6624_v21 = vmov %v6613_v13  ;;  %v6625_v53 = vstv %s6612_s7  ;;  %v6626_v0 = vstv %s6614_s26  ;;  %v6627_v58 = vstv %s6617_s17  ;;  %s6660_s7 = sld [smem:[#allocation42_spill]] }
 0x1e1   :  { %v675_v38 = vadd.f32 %v673_v61, %v669_v40  ;;  %v709_v55 = vmul.f32 %v6624_v21, %v639_v15  ;;  %v724_v48 = vmul.f32 %v6625_v53, %v715_v49  ;;  %v742_v18 = vmul.f32 %v6626_v0, %v715_v49  ;;  %v6647_v40 = vld [vmem:[#allocation146_spill] sm:$0xff]  ;;  %s6663_s26 = sld [smem:[#allocation47_spill]] }
 0x1e2   :  { %v693_v32 = vadd.f32 %v691_v24, %v687_v60  ;;  %v760_v9 = vmul.f32 %v6627_v58, %v715_v49  ;;  %v6629_v33 = vstv %s6618_s25  ;;  %v6630_v10 = vmov %v6625_v53  ;;  %v6655_v53 = vld [vmem:[#allocation149_spill] sm:$0xff]  ;;  %s6665_s17 = sld [smem:[#allocation20_spill]] }
 0x1e3   :  { %v778_v37 = vmul.f32 %v6629_v33, %v715_v49  ;;  %v725_v43 = vmul.f32 %v6630_v10, %v717_v1  ;;  %v711_v51 = vadd.f32 %v709_v55, %v705_v50  ;;  %v726_v34 = vadd.f32 %v724_v48, %v656_v17  ;;  %s6667_s25 = sld [smem:[#allocation21_spill]] }
 0x1e4   :  { %v744_v45 = vadd.f32 %v742_v18, %v674_v35  ;;  %v6632_v5 = vmov %v6626_v0  ;;  %v762_v63 = vadd.f32 %v760_v9, %v692_v41  ;;  %v6634_v12 = vmov %v6627_v58  ;;  %v879_v0 = vpop.permute.xlu0 %878 }
 0x1e5   :  { %v743_v15 = vmul.f32 %v6632_v5, %v717_v1  ;;  %v780_v8 = vadd.f32 %v778_v37, %v710_v2  ;;  %v727_v39 = vadd.f32 %v725_v43, %v657_v14  ;;  %v761_v19 = vmul.f32 %v6634_v12, %v717_v1  ;;  %v6651_v2 = vld [vmem:[#allocation147_spill] sm:$0xff] }
 0x1e6   :  { %v6636_v25 = vmov %v6629_v33  ;;  %v732_v3 = vadd.f32 %v6637_v31, %v726_v34  ;;  %v6638_v28 = vstv %s6628_s29  ;;  %v750_v17 = vadd.f32 %v6639_v6, %v744_v45  ;;  %v6669_v6 = vld [vmem:[#allocation158_spill] sm:$0xff]  ;;  %s6677_s29 = sld [smem:[#allocation23_spill]] }
 0x1e7   :  { %v745_v4 = vadd.f32 %v743_v15, %v675_v38  ;;  %v779_v49 = vmul.f32 %v6636_v25, %v717_v1  ;;  %v736_v62 = vmul.f32 %v6638_v28, %v719_v7  ;;  %v763_v22 = vadd.f32 %v761_v19, %v693_v32  ;;  %v803_v1 = vpop.permute.xlu1 %802 }
 0x1e8   :  { %v6640_v57 = vstv %s6631_s16  ;;  %v768_v26 = vadd.f32 %v6641_v27, %v762_v63  ;;  %v6642_v46 = vstv %s6633_s14  ;;  %v786_v56 = vadd.f32 %v6643_v54, %v780_v8  ;;  %s6680_s16 = sld [smem:[#allocation24_spill]] }
 0x1e9   :  { %v754_v36 = vmul.f32 %v6640_v57, %v719_v7  ;;  %v781_v35 = vadd.f32 %v779_v49, %v711_v51  ;;  %v738_v13 = vadd.f32 %v736_v62, %v732_v3  ;;  %v772_v23 = vmul.f32 %v6642_v46, %v719_v7  ;;  %s6681_s14 = sld [smem:[#allocation29_spill]] }
 0x1ea   :  { %v6645_v41 = vstv %s6635_s27  ;;  %v733_v42 = vadd.f32 %v6647_v40, %v727_v39  ;;  %v6648_v61 = vmov %v6638_v28  ;;  %v751_v14 = vadd.f32 %v6651_v2, %v745_v4  ;;  %v6678_v2 = vld [vmem:[#allocation162_spill] sm:$0xff]  ;;  %s6691_s27 = sld [smem:[#allocation30_spill]] }
 0x1eb   :  { %v756_v16 = vadd.f32 %v754_v36, %v750_v17  ;;  %v790_v30 = vmul.f32 %v6645_v41, %v719_v7  ;;  %v737_v44 = vmul.f32 %v6648_v61, %v4051_v59  ;;  %v774_v60 = vadd.f32 %v772_v23, %v768_v26  ;;  %v6671_v26 = vld [vmem:[#allocation159_spill] sm:$0xff]  ;;  %v6673_v23 = vld [vmem:[#allocation160_spill] sm:$0xff] }
 0x1ec   :  { %v6652_v29 = vmov %v6640_v57  ;;  %v769_v50 = vadd.f32 %v6653_v47, %v763_v22  ;;  %v6654_v7 = vmov %v6642_v46  ;;  %v787_v48 = vadd.f32 %v6655_v53, %v781_v35 }
 0x1ed   :  { %v755_v24 = vmul.f32 %v6652_v29, %v4051_v59  ;;  %v792_v38 = vadd.f32 %v790_v30, %v786_v56  ;;  %v739_v21 = vadd.f32 %v737_v44, %v733_v42  ;;  %v773_v55 = vmul.f32 %v6654_v7, %v4051_v59  ;;  %v883_v56 = vpop.permute.xlu0 %882  ;;  %v6675_v42 = vld [vmem:[#allocation161_spill] sm:$0xff] }
 0x1ee   :  { %v6656_v32 = vmov %v6645_v41  ;;  %v6657_v9 = vstv %s6644_s1  ;;  %v6658_v37 = vstv %s6646_s10  ;;  %v6659_v51 = vstv %s6649_s4  ;;  %s6694_s1 = sld [smem:[#allocation31_spill]] }
 0x1ef   :  { %v757_v18 = vadd.f32 %v755_v24, %v751_v14  ;;  %v791_v58 = vmul.f32 %v6656_v32, %v4051_v59  ;;  %v806_v33 = vmul.f32 %v6657_v9, %v797_v11  ;;  %v824_v10 = vmul.f32 %v6658_v37, %v797_v11  ;;  %v881_v59 = vpop.permute.xlu1 %880  ;;  %s6709_s10 = sld [smem:[#allocation25_spill]] }
 0x1f0   :  { %v775_v43 = vadd.f32 %v773_v55, %v769_v50  ;;  %v842_v34 = vmul.f32 %v6659_v51, %v797_v11  ;;  %v6661_v45 = vstv %s6650_s20  ;;  %v6662_v15 = vmov %v6657_v9  ;;  %v6682_v50 = vld [vmem:[#allocation163_spill] sm:$0xff]  ;;  %v6684_v55 = vld [vmem:[#allocation164_spill] sm:$0xff]  ;;  %v6686_v9 = vld [vmem:[#allocation165_spill] sm:$0xff]  ;;  %s6725_s4 = sld [smem:[#allocation33_spill]] }
 0x1f1   :  { %v860_v5 = vmul.f32 %v6661_v45, %v797_v11  ;;  %v807_v63 = vmul.f32 %v6662_v15, %v799_v52  ;;  %v793_v8 = vadd.f32 %v791_v58, %v787_v48  ;;  %v808_v39 = vadd.f32 %v806_v33, %v738_v13  ;;  %s4214_s20 = sld [smem:[#allocation11 + $0x10]] }
 0x1f2   :  { %v826_v12 = vadd.f32 %v824_v10, %v756_v16  ;;  %v6664_v19 = vmov %v6658_v37  ;;  %v844_v25 = vadd.f32 %v842_v34, %v774_v60  ;;  %v6666_v3 = vmov %v6659_v51 }
 0x1f3   :  { %v825_v4 = vmul.f32 %v6664_v19, %v799_v52  ;;  %v862_v49 = vadd.f32 %v860_v5, %v792_v38  ;;  %v809_v31 = vadd.f32 %v807_v63, %v739_v21  ;;  %v843_v28 = vmul.f32 %v6666_v3, %v799_v52  ;;  %v885_v48 = vpop.permute.xlu1 %884 }
 0x1f4   :  { %v6668_v22 = vmov %v6661_v45  ;;  %v814_v17 = vadd.f32 %v6669_v6, %v808_v39  ;;  %v6670_v57 = vstv %s6660_s7  ;;  %v832_v35 = vadd.f32 %v6671_v26, %v826_v12  ;;  %s4227_s7 = sld [smem:[#allocation11 + $0x12]] }
 0x1f5   :  { %v827_v62 = vadd.f32 %v825_v4, %v757_v18  ;;  %v861_v11 = vmul.f32 %v6668_v22, %v799_v52  ;;  %v818_v36 = vmul.f32 %v6670_v57, %v801_v20  ;;  %v845_v27 = vadd.f32 %v843_v28, %v775_v43 }
 0x1f6   :  { %v6672_v13 = vstv %s6663_s26  ;;  %v850_v54 = vadd.f32 %v6673_v23, %v844_v25  ;;  %v6674_v30 = vstv %s6665_s17  ;;  %v868_v52 = vadd.f32 %v6675_v42, %v862_v49  ;;  %v961_v25 = vpop.permute.xlu0 %960  ;;  %s4239_s26 = sld [smem:[#allocation11 + $0x14]] }
 0x1f7   :  { %v836_v46 = vmul.f32 %v6672_v13, %v801_v20  ;;  %v863_v16 = vadd.f32 %v861_v11, %v793_v8  ;;  %v820_v41 = vadd.f32 %v818_v36, %v814_v17  ;;  %v854_v40 = vmul.f32 %v6674_v30, %v801_v20  ;;  %s4245_s17 = sld [smem:[#allocation11 + $0x15]] }
 0x1f8   :  { %v6676_v44 = vstv %s6667_s25  ;;  %v815_v14 = vadd.f32 %v6678_v2, %v809_v31  ;;  %v6679_v29 = vmov %v6670_v57  ;;  %v833_v38 = vadd.f32 %v6682_v50, %v827_v62  ;;  %v6704_v2 = vld [vmem:[#allocation121_spill] sm:$0xff]  ;;  %s4258_s25 = sld [smem:[#allocation11 + $0x17]] }
 0x1f9   :  { %v838_v61 = vadd.f32 %v836_v46, %v832_v35  ;;  %v872_v60 = vmul.f32 %v6676_v44, %v801_v20  ;;  %v819_v24 = vmul.f32 %v6679_v29, %v803_v1  ;;  %v856_v47 = vadd.f32 %v854_v40, %v850_v54  ;;  %v963_v46 = vpop.permute.xlu1 %962  ;;  %v6700_v54 = vld [vmem:[#allocation119_spill] sm:$0xff]  ;;  %v6702_v40 = vld [vmem:[#allocation120_spill] sm:$0xff] }
 0x1fa   :  { %v6683_v21 = vmov %v6672_v13  ;;  %v851_v53 = vadd.f32 %v6684_v55, %v845_v27  ;;  %v6685_v58 = vmov %v6674_v30  ;;  %v869_v33 = vadd.f32 %v6686_v9, %v863_v16  ;;  %v6698_v27 = vld [vmem:[#allocation118_spill] sm:$0xff] }
 0x1fb   :  { %v837_v7 = vmul.f32 %v6683_v21, %v803_v1  ;;  %v874_v18 = vadd.f32 %v872_v60, %v868_v52  ;;  %v821_v32 = vadd.f32 %v819_v24, %v815_v14  ;;  %v855_v20 = vmul.f32 %v6685_v58, %v803_v1 }
 0x1fc   :  { %v6687_v10 = vmov %v6676_v44  ;;  %v6688_v51 = vstv %s6432_s23  ;;  %v6689_v45 = vstv %s6677_s29  ;;  %v6690_v63 = vstv %s6680_s16  ;;  %s6706_s23 = sld [smem:[#allocation51_spill]] }
 0x1fd   :  { %v839_v37 = vadd.f32 %v837_v7, %v833_v38  ;;  %v873_v43 = vmul.f32 %v6687_v10, %v803_v1  ;;  %v888_v34 = vmul.f32 %v6688_v51, %v879_v0  ;;  %v906_v5 = vmul.f32 %v6689_v45, %v879_v0  ;;  %v965_v7 = vpop.permute.xlu0 %964  ;;  %s4266_s29 = sld [smem:[#allocation11 + $0x18]] }
 0x1fe   :  { %v857_v15 = vadd.f32 %v855_v20, %v851_v53  ;;  %v924_v8 = vmul.f32 %v6690_v63, %v879_v0  ;;  %v6692_v39 = vstv %s6681_s14  ;;  %v6693_v19 = vmov %v6688_v51  ;;  %v6710_v53 = vld [vmem:[#allocation123_spill] sm:$0xff]  ;;  %v6712_v20 = vld [vmem:[#allocation124_spill] sm:$0xff]  ;;  %6745 = sst [smem:[#allocation58_spill]] %s4258_s25 }
 0x1ff   :  { %v942_v12 = vmul.f32 %v6692_v39, %v879_v0  ;;  %v889_v4 = vmul.f32 %v6693_v19, %v881_v59  ;;  %v875_v49 = vadd.f32 %v873_v43, %v869_v33  ;;  %v890_v31 = vadd.f32 %v888_v34, %v820_v41  ;;  %v6714_v43 = vld [vmem:[#allocation125_spill] sm:$0xff]  ;;  %s4285_s16 = sld [smem:[#allocation11 + $0x1b]] }
 0x200   :  { %v908_v3 = vadd.f32 %v906_v5, %v838_v61  ;;  %v6695_v28 = vmov %v6689_v45  ;;  %v926_v62 = vadd.f32 %v924_v8, %v856_v47  ;;  %v6696_v6 = vmov %v6690_v63  ;;  %v6707_v47 = vld [vmem:[#allocation122_spill] sm:$0xff]  ;;  %s6770_s14 = sld [smem:[#allocation43_spill]] }
 0x201   :  { %v907_v1 = vmul.f32 %v6695_v28, %v881_v59  ;;  %v944_v22 = vadd.f32 %v942_v12, %v874_v18  ;;  %v891_v11 = vadd.f32 %v889_v4, %v821_v32  ;;  %v925_v17 = vmul.f32 %v6696_v6, %v881_v59  ;;  %v967_v12 = vpop.permute.xlu1 %966  ;;  %s4578_s25 = sld [smem:[#allocation11 + $0xb]] }
 0x202   :  { %v6697_v36 = vmov %v6692_v39  ;;  %v896_v26 = vadd.f32 %v6698_v27, %v890_v31  ;;  %v6699_v35 = vstv %s6691_s27  ;;  %v914_v16 = vadd.f32 %v6700_v54, %v908_v3  ;;  %s4303_s27 = sld [smem:[#allocation11 + $0x1e]] }
 0x203   :  { %v909_v57 = vadd.f32 %v907_v1, %v839_v37  ;;  %v943_v0 = vmul.f32 %v6697_v36, %v881_v59  ;;  %v900_v13 = vmul.f32 %v6699_v35, %v883_v56  ;;  %v927_v23 = vadd.f32 %v925_v17, %v857_v15  ;;  %6749 = sst [smem:[#allocation59_spill]] %s4266_s29 }
 0x204   :  { %v6701_v41 = vstv %s6694_s1  ;;  %v932_v42 = vadd.f32 %v6702_v40, %v926_v62  ;;  %v6703_v44 = vstv %s6437_s24  ;;  %v950_v59 = vadd.f32 %v6704_v2, %v944_v22  ;;  %s6722_s24 = sld [smem:[#allocation28_spill]]  ;;  %v6729_v40 = vld [vmem:[#allocation135_spill] sm:$0xff] }
 0x205   :  { %v918_v30 = vmul.f32 %v6701_v41, %v883_v56  ;;  %v945_v52 = vadd.f32 %v943_v0, %v875_v49  ;;  %v902_v61 = vadd.f32 %v900_v13, %v896_v26  ;;  %v936_v60 = vmul.f32 %v6703_v44, %v883_v56  ;;  %v1043_v26 = vpop.permute.xlu0 %1042  ;;  %6759 = sst [smem:[#allocation49_spill]] %s4285_s16 }
 0x206   :  { %v6705_v29 = vstv %s6438_s8  ;;  %v897_v50 = vadd.f32 %v6707_v47, %v891_v11  ;;  %v6708_v38 = vmov %v6699_v35  ;;  %v915_v18 = vadd.f32 %v6710_v53, %v909_v57  ;;  %s4210_s8 = sld [smem:[#allocation11 + $0x40]]  ;;  %v1045_v47 = vpop.permute.xlu1 %1044 }
 0x207   :  { %v920_v14 = vadd.f32 %v918_v30, %v914_v16  ;;  %v954_v24 = vmul.f32 %v6705_v29, %v883_v56  ;;  %v901_v21 = vmul.f32 %v6708_v38, %v885_v48  ;;  %v938_v55 = vadd.f32 %v936_v60, %v932_v42  ;;  %s4309_s1 = sld [smem:[#allocation11 + $0x1f]] }
 0x208   :  { %v6711_v32 = vmov %v6701_v41  ;;  %v933_v9 = vadd.f32 %v6712_v20, %v927_v23  ;;  %v6713_v10 = vmov %v6703_v44  ;;  %v951_v51 = vadd.f32 %v6714_v43, %v945_v52  ;;  %v6727_v23 = vld [vmem:[#allocation134_spill] sm:$0xff]  ;;  %v6731_v44 = vld [vmem:[#allocation136_spill] sm:$0xff]  ;;  %v6737_v20 = vld [vmem:[#allocation139_spill] sm:$0xff]  ;;  %6771 = sst [smem:[#allocation27_spill]] %s4303_s27 }
 0x209   :  { %v919_v58 = vmul.f32 %v6711_v32, %v885_v48  ;;  %v956_v33 = vadd.f32 %v954_v24, %v950_v59  ;;  %v903_v37 = vadd.f32 %v901_v21, %v897_v50  ;;  %v937_v56 = vmul.f32 %v6713_v10, %v885_v48  ;;  %v6739_v10 = vld [vmem:[#allocation140_spill] sm:$0xff]  ;;  %s4550_s27 = sld [smem:[#allocation11 + $0x6]] }
 0x20a   :  { %v6715_v45 = vmov %v6705_v29  ;;  %v6716_v15 = vstv %s6439_s18  ;;  %v6717_v8 = vstv %s6706_s23  ;;  %v6718_v4 = vstv %s6709_s10  ;;  %s4221_s18 = sld [smem:[#allocation11 + $0x11]]  ;;  %v6733_v29 = vld [vmem:[#allocation137_spill] sm:$0xff] }
 0x20b   :  { %v921_v34 = vadd.f32 %v919_v58, %v915_v18  ;;  %v955_v5 = vmul.f32 %v6715_v45, %v885_v48  ;;  %v970_v63 = vmul.f32 %v6716_v15, %v961_v25  ;;  %v988_v39 = vmul.f32 %v6717_v8, %v961_v25  ;;  %v6741_v45 = vld [vmem:[#allocation141_spill] sm:$0xff]  ;;  %s6787_s23 = sld [smem:[#allocation44_spill]] }
 0x20c   :  { %v939_v19 = vadd.f32 %v937_v56, %v933_v9  ;;  %v1006_v49 = vmul.f32 %v6718_v4, %v961_v25  ;;  %v6719_v31 = vstv %s6443_s21  ;;  %v6720_v28 = vmov %v6716_v15  ;;  %6723 = sst [smem:[#allocation46_spill]] %s4210_s8  ;;  %v1047_v15 = vpop.permute.xlu0 %1046 }
 0x20d   :  { %v1024_v3 = vmul.f32 %v6719_v31, %v961_v25  ;;  %v971_v1 = vmul.f32 %v6720_v28, %v963_v46  ;;  %v957_v62 = vadd.f32 %v955_v5, %v951_v51  ;;  %v972_v22 = vadd.f32 %v970_v63, %v902_v61  ;;  %s4232_s21 = sld [smem:[#allocation11 + $0x13]] }
 0x20e   :  { %v990_v11 = vadd.f32 %v988_v39, %v920_v14  ;;  %v6721_v6 = vmov %v6717_v8  ;;  %v1008_v17 = vadd.f32 %v1006_v49, %v938_v55  ;;  %v6724_v0 = vmov %v6718_v4  ;;  %v6735_v55 = vld [vmem:[#allocation138_spill] sm:$0xff]  ;;  %6775 = sst [smem:[#allocation34_spill]] %s4309_s1 }
 0x20f   :  { %v989_v48 = vmul.f32 %v6721_v6, %v963_v46  ;;  %v1026_v57 = vadd.f32 %v1024_v3, %v956_v33  ;;  %v973_v36 = vadd.f32 %v971_v1, %v903_v37  ;;  %v1007_v27 = vmul.f32 %v6724_v0, %v963_v46  ;;  %v1049_v0 = vpop.permute.xlu1 %1048  ;;  %s4334_s10 = sld [smem:[#allocation11 + $0x44]] }
 0x210   :  { %v6726_v35 = vmov %v6719_v31  ;;  %v978_v54 = vadd.f32 %v6727_v23, %v972_v22  ;;  %v6728_v16 = vstv %s6444_s0  ;;  %v996_v42 = vadd.f32 %v6729_v40, %v990_v11  ;;  %s4250_s0 = sld [smem:[#allocation11 + $0x16]] }
 0x211   :  { %v991_v25 = vadd.f32 %v989_v48, %v921_v34  ;;  %v1025_v13 = vmul.f32 %v6726_v35, %v963_v46  ;;  %v982_v41 = vmul.f32 %v6728_v16, %v965_v7  ;;  %v1009_v30 = vadd.f32 %v1007_v27, %v939_v19  ;;  %v6751_v27 = vld [vmem:[#allocation174_spill] sm:$0xff]  ;;  %s4542_s8 = sld [smem:[#allocation11 + $0x4]] }
 0x212   :  { %v6730_v52 = vstv %s6722_s24  ;;  %v1014_v60 = vadd.f32 %v6731_v44, %v1008_v17  ;;  %v6732_v59 = vstv %s6725_s4  ;;  %v1032_v24 = vadd.f32 %v6733_v29, %v1026_v57  ;;  %v6760_v44 = vld [vmem:[#allocation151_spill] sm:$0xff]  ;;  %v1125_v29 = vpop.permute.xlu0 %1124  ;;  %s6793_s24 = sld [smem:[#allocation45_spill]] }
 0x213   :  { %v1000_v61 = vmul.f32 %v6730_v52, %v965_v7  ;;  %v1027_v2 = vadd.f32 %v1025_v13, %v957_v62  ;;  %v984_v46 = vadd.f32 %v982_v41, %v978_v54  ;;  %v1018_v14 = vmul.f32 %v6732_v59, %v965_v7  ;;  %s4346_s4 = sld [smem:[#allocation11 + $0x45]] }
 0x214   :  { %v6734_v38 = vstv %s6447_s30  ;;  %v979_v53 = vadd.f32 %v6735_v55, %v973_v36  ;;  %v6736_v18 = vmov %v6728_v16  ;;  %v997_v9 = vadd.f32 %v6737_v20, %v991_v25  ;;  %s4272_s30 = sld [smem:[#allocation11 + $0x19]] }
 0x215   :  { %v1002_v50 = vadd.f32 %v1000_v61, %v996_v42  ;;  %v1036_v21 = vmul.f32 %v6734_v38, %v965_v7  ;;  %v983_v32 = vmul.f32 %v6736_v18, %v967_v12  ;;  %v1020_v58 = vadd.f32 %v1018_v14, %v1014_v60  ;;  %6789 = sst [smem:[#allocation35_spill]] %s4334_s10 }
 0x216   :  { %v6738_v33 = vmov %v6730_v52  ;;  %v1015_v56 = vadd.f32 %v6739_v10, %v1009_v30  ;;  %v6740_v51 = vmov %v6732_v59  ;;  %v1033_v5 = vadd.f32 %v6741_v45, %v1027_v2  ;;  %v6756_v30 = vld [vmem:[#allocation150_spill] sm:$0xff]  ;;  %v6762_v59 = vld [vmem:[#allocation152_spill] sm:$0xff]  ;;  %v6772_v10 = vld [vmem:[#allocation155_spill] sm:$0xff]  ;;  %v1127_v45 = vpop.permute.xlu1 %1126  ;;  %s4528_s10 = sld [smem:[#allocation11 + $0x20]] }
 0x217   :  { %v1001_v37 = vmul.f32 %v6738_v33, %v967_v12  ;;  %v1038_v7 = vadd.f32 %v1036_v21, %v1032_v24  ;;  %v985_v43 = vadd.f32 %v983_v32, %v979_v53  ;;  %v1019_v34 = vmul.f32 %v6740_v51, %v967_v12  ;;  %v6765_v21 = vld [vmem:[#allocation153_spill] sm:$0xff]  ;;  %v6774_v51 = vld [vmem:[#allocation156_spill] sm:$0xff]  ;;  %6856 = sst [smem:[#allocation97_spill]] %s4542_s8 }
 0x218   :  { %v6742_v8 = vmov %v6734_v38  ;;  %v6743_v19 = vstv %s6448_s12  ;;  %v6744_v49 = vstv %s6449_s28  ;;  %v6746_v28 = vstv %s6450_s19  ;;  %s4278_s28 = sld [smem:[#allocation11 + $0x1a]] }
 0x219   :  { %v1003_v63 = vadd.f32 %v1001_v37, %v997_v9  ;;  %v1037_v39 = vmul.f32 %v6742_v8, %v967_v12  ;;  %v1052_v4 = vmul.f32 %v6743_v19, %v1043_v26  ;;  %v1070_v31 = vmul.f32 %v6744_v49, %v1043_v26  ;;  %s6757_s12 = sld [smem:[#allocation38_spill]] }
 0x21a   :  { %v1021_v3 = vadd.f32 %v1019_v34, %v1015_v56  ;;  %v1088_v1 = vmul.f32 %v6746_v28, %v1043_v26  ;;  %v6747_v62 = vstv %s6451_s11  ;;  %v6748_v11 = vmov %v6743_v19  ;;  %6752 = sst [smem:[#allocation22_spill]] %s4272_s30 }
 0x21b   :  { %v1106_v22 = vmul.f32 %v6747_v62, %v1043_v26  ;;  %v1053_v6 = vmul.f32 %v6748_v11, %v1045_v47  ;;  %v1039_v48 = vadd.f32 %v1037_v39, %v1033_v5  ;;  %v1054_v17 = vadd.f32 %v1052_v4, %v984_v46  ;;  %s4291_s19 = sld [smem:[#allocation11 + $0x1c]]  ;;  %v6777_v39 = vld [vmem:[#allocation157_spill] sm:$0xff] }
 0x21c   :  { %v1072_v12 = vadd.f32 %v1070_v31, %v1002_v50  ;;  %v6750_v57 = vmov %v6744_v49  ;;  %vm83_vm2 = vcmp.ge.s32.totalorder %v6751_v27, 1  ;;  %vm84_vm3 = vcmp.lt.s32.totalorder %v6751_v27, 17  ;;  %s4296_s11 = sld [smem:[#allocation11 + $0x1d]] }
 0x21d   :  { %v1071_v36 = vmul.f32 %v6750_v57, %v1045_v47  ;;  %v1090_v26 = vadd.f32 %v1088_v1, %v1020_v58  ;;  %v1108_v25 = vadd.f32 %v1106_v22, %v1038_v7  ;;  %v1055_v35 = vadd.f32 %v1053_v6, %v985_v43  ;;  %v6768_v58 = vld [vmem:[#allocation154_spill] sm:$0xff]  ;;  %vm4342_vm6 = vmand %vm83_vm2, %vm84_vm3  ;;  %6794 = sst [smem:[#allocation36_spill]] %s4346_s4 }
 0x21e   :  { %v6753_v13 = vmov %v6746_v28  ;;  %vm86_vm4 = vcmp.ge.s32.totalorder %v6751_v27, 19  ;;  %vm87_vm5 = vcmp.lt.s32.totalorder %v6751_v27, 35  ;;  %6754 = sst [smem:[#allocation48_spill]] %s4278_s28  ;;  %v6755_v16 = vmov %v6747_v62 }
 0x21f   :  { %v1089_v23 = vmul.f32 %v6753_v13, %v1045_v47  ;;  %v1073_v54 = vadd.f32 %v1071_v36, %v1003_v63  ;;  %v1107_v41 = vmul.f32 %v6755_v16, %v1045_v47  ;;  %v1060_v40 = vadd.f32 %v6756_v30, %v1054_v17  ;;  %v1129_v36 = vpop.permute.xlu0 %1128  ;;  %vm4354_vm7 = vmand %vm86_vm4, %vm87_vm5  ;;  %s4524_s4 = sld [smem:[#allocation11 + $0x3]] }
 0x220   :  { %v6758_v42 = vstv %s6453_s13  ;;  %v1078_v60 = vadd.f32 %v6760_v44, %v1072_v12  ;;  %v6761_v2 = vstv %s6454_s5  ;;  %v1096_v14 = vadd.f32 %v6762_v59, %v1090_v26  ;;  %s4314_s13 = sld [smem:[#allocation11 + $0x41]]  ;;  %vm4378_vm8 = vmor %vm4342_vm6, %vm4354_vm7 }
 0x221   :  { %v1064_v52 = vmul.f32 %v6758_v42, %v1047_v15  ;;  %v1091_v61 = vadd.f32 %v1089_v23, %v1021_v3  ;;  %v1082_v46 = vmul.f32 %v6761_v2, %v1047_v15  ;;  %6763 = sst [smem:[#allocation50_spill]] %s4291_s19  ;;  %v1109_v24 = vadd.f32 %v1107_v41, %v1039_v48 }
 0x222   :  { %v6764_v50 = vstv %s3728_s6  ;;  %v1114_v55 = vadd.f32 %v6765_v21, %v1108_v25  ;;  %6766 = sst [smem:[#allocation26_spill]] %s4296_s11  ;;  %v6767_v18 = vstv %s6757_s12  ;;  %v1061_v20 = vadd.f32 %v6768_v58, %v1055_v35  ;;  %v6803_v21 = vld [vmem:[#allocation168_spill] sm:$0xff]  ;;  %v6806_v58 = vld [vmem:[#allocation169_spill] sm:$0xff] }
 0x223   :  { %v1066_v47 = vadd.f32 %v1064_v52, %v1060_v40  ;;  %v1100_v38 = vmul.f32 %v6764_v50, %v1047_v15  ;;  %v1084_v53 = vadd.f32 %v1082_v46, %v1078_v60  ;;  %v1118_v32 = vmul.f32 %v6767_v18, %v1047_v15  ;;  %s4322_s5 = sld [smem:[#allocation11 + $0x42]]  ;;  %v6798_v60 = vld [vmem:[#allocation166_spill] sm:$0xff] }
 0x224   :  { %v6769_v9 = vmov %v6758_v42  ;;  %v1079_v56 = vadd.f32 %v6772_v10, %v1073_v54  ;;  %v6773_v7 = vmov %v6761_v2  ;;  %v1097_v34 = vadd.f32 %v6774_v51, %v1091_v61  ;;  %s4330_s6 = sld [smem:[#allocation11 + $0x43]] }
 0x225   :  { %v1065_v33 = vmul.f32 %v6769_v9, %v1049_v0  ;;  %v1102_v37 = vadd.f32 %v1100_v38, %v1096_v14  ;;  %v1083_v43 = vmul.f32 %v6773_v7, %v1049_v0  ;;  %v1120_v5 = vadd.f32 %v1118_v32, %v1114_v55  ;;  %v1131_v14 = vpop.permute.xlu1 %1130  ;;  %s4387_s12 = sld [smem:[#allocation11 + $0x49]] }
 0x226   :  { %v6776_v63 = vmov %v6764_v50  ;;  %v1115_v19 = vadd.f32 %v6777_v39, %v1109_v24  ;;  %6778 = sst [smem:[#allocation39_spill]] %s4314_s13  ;;  %v6779_v49 = vmov %v6767_v18  ;;  %v6780_v3 = vstv %s6770_s14  ;;  %v6801_v24 = vld [vmem:[#allocation167_spill] sm:$0xff] }
 0x227   :  { %v1067_v15 = vadd.f32 %v1065_v33, %v1061_v20  ;;  %v1101_v8 = vmul.f32 %v6776_v63, %v1049_v0  ;;  %v1085_v4 = vadd.f32 %v1083_v43, %v1079_v56  ;;  %v1119_v31 = vmul.f32 %v6779_v49, %v1049_v0  ;;  %v6811_v56 = vld [vmem:[#allocation170_spill] sm:$0xff]  ;;  %s4392_s14 = sld [smem:[#allocation11 + $0x4a]]  ;;  %v6817_v49 = vld [vmem:[#allocation172_spill] sm:$0xff] }
 0x228   :  { %v1134_v28 = vmul.f32 %v6780_v3, %v1125_v29  ;;  %v6781_v1 = vstv %s3754_s3  ;;  %v6783_v11 = vstv %s3760_s15  ;;  %v6784_v48 = vstv %s3766_s22  ;;  %s4361_s15 = sld [smem:[#allocation11 + $0x46]] }
 0x229   :  { %v1152_v62 = vmul.f32 %v6781_v1, %v1125_v29  ;;  %6782 = sst [smem:[#allocation40_spill]] %s4322_s5  ;;  %v1103_v22 = vadd.f32 %v1101_v8, %v1097_v34  ;;  %v1170_v6 = vmul.f32 %v6783_v11, %v1125_v29  ;;  %v1188_v17 = vmul.f32 %v6784_v48, %v1125_v29 }
 0x22a   :  { %v6785_v12 = vmov %v6780_v3  ;;  %6786 = sst [smem:[#allocation55_spill]] %s4330_s6  ;;  %v1121_v0 = vadd.f32 %v1119_v31, %v1115_v19  ;;  %v1136_v26 = vadd.f32 %v1134_v28, %v1066_v47  ;;  %v6788_v35 = vmov %v6781_v1 }
 0x22b   :  { %v1135_v57 = vmul.f32 %v6785_v12, %v1127_v45  ;;  %v1154_v25 = vadd.f32 %v1152_v62, %v1084_v53  ;;  %v1153_v13 = vmul.f32 %v6788_v35, %v1127_v45  ;;  %v1172_v23 = vadd.f32 %v1170_v6, %v1102_v37  ;;  %s4367_s22 = sld [smem:[#allocation11 + $0x47]] }
 0x22c   :  { %v1190_v54 = vadd.f32 %v1188_v17, %v1120_v5  ;;  %v6790_v41 = vmov %v6783_v11  ;;  %v6795_v52 = vmov %v6784_v48  ;;  %v1142_v2 = vadd.f32 %v6798_v60, %v1136_v26  ;;  %s4372_s3 = sld [smem:[#allocation11 + $0x48]]  ;;  %v6814_v5 = vld [vmem:[#allocation171_spill] sm:$0xff]  ;;  %v6821_v48 = vld [vmem:[#allocation173_spill] sm:$0xff] }
 0x22d   :  { %v1137_v16 = vadd.f32 %v1135_v57, %v1067_v15  ;;  %v1171_v30 = vmul.f32 %v6790_v41, %v1127_v45  ;;  %v1155_v42 = vadd.f32 %v1153_v13, %v1085_v4  ;;  %v1189_v61 = vmul.f32 %v6795_v52, %v1127_v45  ;;  %6813 = sst [smem:[#allocation66_spill]] %s4387_s12 }
 0x22e   :  { %v6799_v46 = vstv %s6787_s23  ;;  %6800 = sst [smem:[#allocation37_spill]] %s4361_s15  ;;  %v1160_v47 = vadd.f32 %v6801_v24, %v1154_v25  ;;  %v6802_v50 = vstv %s3778_s2  ;;  %v1178_v27 = vadd.f32 %v6803_v21, %v1172_v23 }
 0x22f   :  { %v1146_v59 = vmul.f32 %v6799_v46, %v1129_v36  ;;  %v1173_v29 = vadd.f32 %v1171_v30, %v1103_v22  ;;  %v1164_v38 = vmul.f32 %v6802_v50, %v1129_v36  ;;  %v1191_v55 = vadd.f32 %v1189_v61, %v1121_v0  ;;  %6816 = sst [smem:[#allocation67_spill]] %s4392_s14 }
 0x230   :  { %v6805_v18 = vstv %s6793_s24  ;;  %v1196_v20 = vadd.f32 %v6806_v58, %v1190_v54  ;;  %v6810_v37 = vstv %s3790_s9  ;;  %v1143_v7 = vadd.f32 %v6811_v56, %v1137_v16  ;;  %s4403_s2 = sld [smem:[#allocation11 + $0x4c]] }
 0x231   :  { %6804 = sst [smem:[#allocation64_spill]] %s4367_s22  ;;  %v1148_v53 = vadd.f32 %v1146_v59, %v1142_v2  ;;  %v1182_v32 = vmul.f32 %v6805_v18, %v1129_v36  ;;  %v1166_v33 = vadd.f32 %v1164_v38, %v1160_v47  ;;  %v1200_v10 = vmul.f32 %v6810_v37, %v1129_v36 }
 0x232   :  { %6807 = sst [smem:[#allocation65_spill]] %s4372_s3  ;;  %v6812_v43 = vmov %v6799_v46  ;;  %v1161_v15 = vadd.f32 %v6814_v5, %v1155_v42  ;;  %v6815_v63 = vmov %v6802_v50  ;;  %v1179_v31 = vadd.f32 %v6817_v49, %v1173_v29 }
 0x233   :  { %v1147_v51 = vmul.f32 %v6812_v43, %v1131_v14  ;;  %v1184_v34 = vadd.f32 %v1182_v32, %v1178_v27  ;;  %v1204_v45 = vmax.f32 %v1148_v53, 0.0  ;;  %v1165_v8 = vmul.f32 %v6815_v63, %v1131_v14  ;;  %s4395_s3 = sld [smem:[#allocation11 + $0x4b]] }
 0x234   :  { %v1202_v39 = vadd.f32 %v1200_v10, %v1196_v20  ;;  %v1212_v19 = vmax.f32 %v1166_v33, 0.0  ;;  %v6819_v62 = vmov %v6805_v18  ;;  %v1197_v17 = vadd.f32 %v6821_v48, %v1191_v55  ;;  %s4413_s23 = sld [smem:[#allocation11 + $0x4d]] }
 0x235   :  { %v1149_v4 = vadd.f32 %v1147_v51, %v1143_v7  ;;  %v4399_v3 = vsel %vm4378_vm8, %v1204_v45, 0.0  ;;  %v1219_v28 = vmax.f32 %v1184_v34, 0.0  ;;  %v1167_v1 = vadd.f32 %v1165_v8, %v1161_v15  ;;  %s4420_s24 = sld [smem:[#allocation11 + $0x4e]] }
 0x236   :  { %v1183_v22 = vmul.f32 %v6819_v62, %v1131_v14  ;;  %6820 = sst [smem:[#allocation61_spill]] %s4403_s2  ;;  %1210 = vst [vmem:[#allocation3 + $0x1] sm:$0xff] %v4399_v3  ;;  %v4408_v11 = vsel %vm4378_vm8, %v1212_v19, 0.0  ;;  %v1226_v6 = vmax.f32 %v1202_v39, 0.0  ;;  %v6822_v12 = vmov %v6810_v37 }
 0x237   :  { %v1201_v57 = vmul.f32 %v6822_v12, %v1131_v14  ;;  %1217 = vst [vmem:[#allocation3 + $0x19] sm:$0xff] %v4408_v11  ;;  %v4418_v36 = vsel %vm4378_vm8, %v1219_v28, 0.0  ;;  %v1205_v26 = vmax.f32 %v1149_v4, 0.0  ;;  %v1213_v25 = vmax.f32 %v1167_v1, 0.0  ;;  %s4427_s9 = sld [smem:[#allocation11 + $0x4f]] }
 0x238   :  { %v1185_v0 = vadd.f32 %v1183_v22, %v1179_v31  ;;  %1224 = vst [vmem:[#allocation3 + $0x31] sm:$0xff] %v4418_v36  ;;  %v4425_v35 = vsel %vm4378_vm8, %v1226_v6, 0.0  ;;  %s4460_s2 = sld [smem:[#allocation11 + $0x74]]  ;;  %v1258_v55 = vstv %s4214_s20  ;;  %v1276_v18 = vstv %s4221_s18 }
 0x239   :  { %6818 = sst [smem:[#allocation60_spill]] %s4395_s3  ;;  %v1203_v13 = vadd.f32 %v1201_v57, %v1197_v17  ;;  %1231 = vst [vmem:[#allocation3 + $0x49] sm:$0xff] %v4425_v35  ;;  %v4432_v23 = vsel %vm4378_vm8, %v1205_v26, 0.0  ;;  %v4436_v54 = vsel %vm4378_vm8, %v1213_v25, 0.0  ;;  %v1294_v32 = vstv %s4227_s7 }
 0x23a   :  { %6823 = sst [smem:[#allocation62_spill]] %s4413_s23  ;;  %v1220_v16 = vmax.f32 %v1185_v0, 0.0  ;;  %1211 = vst [vmem:[#allocation3 + $0x9] sm:$0xff] %v4432_v23  ;;  %1218 = vst [vmem:[#allocation3 + $0x21] sm:$0xff] %v4436_v54  ;;  %v1312_v58 = vstv %s4232_s21  ;;  %v1340_v37 = vstv %s4239_s26  ;;  %v1358_v56 = vstv %s4245_s17 }
 0x23b   :  { %6824 = sst [smem:[#allocation63_spill]] %s4420_s24  ;;  %v1227_v41 = vmax.f32 %v1203_v13, 0.0  ;;  %v1376_v7 = vstv %s4250_s0 }
 0x23c   :  { %s4438_s24 = sld [smem:[#allocation11 + $0x70]]  ;;  %v4446_v30 = vsel %vm4378_vm8, %v1220_v16, 0.0 }
 0x23d   :  { %6825 = sst [smem:[#allocation68_spill]] %s4427_s9  ;;  %1225 = vst [vmem:[#allocation3 + $0x39] sm:$0xff] %v4446_v30  ;;  %v4453_v40 = vsel %vm4378_vm8, %v1227_v41, 0.0  ;;  %v4458_v42 = vld [vmem:[#allocation3] sm:$0xff] }
 0x23e   :  { %s4442_s23 = sld [smem:[#allocation11 + $0x71]]  ;;  %1232 = vst [vmem:[#allocation3 + $0x51] sm:$0xff] %v4453_v40  ;;  %v4484_v61 = vld [vmem:[#allocation3 + $0x18] sm:$0xff]  ;;  %v4676_v10 = vmul.f32 %v1258_v55, %v4458_v42  ;;  %v4683_v43 = vmul.f32 %v1276_v18, %v4458_v42  ;;  %v4686_v51 = vmul.f32 %v1294_v32, %v4458_v42  ;;  %v4689_v34 = vmul.f32 %v1312_v58, %v4458_v42 }
 0x23f   :  { %s4448_s9 = sld [smem:[#allocation11 + $0x72]]  ;;  %v4512_v60 = vld [vmem:[#allocation3 + $0x30] sm:$0xff]  ;;  %v4697_v63 = vmul.f32 %v1340_v37, %v4484_v61  ;;  %v4706_v4 = vmul.f32 %v1358_v56, %v4484_v61  ;;  %v4709_v49 = vmul.f32 %v1376_v7, %v4484_v61 }
 0x240   :  { %6830 = sst [smem:[#allocation73_spill]] %s4460_s2  ;;  %v4540_v46 = vld [vmem:[#allocation3 + $0x48] sm:$0xff] }
 0x241   :  { %s4464_s3 = sld [smem:[#allocation11 + $0x75]]  ;;  %v4470_v52 = vld [vmem:[#allocation3 + $0x8] sm:$0xff]  ;;  %v4498_v44 = vld [vmem:[#allocation3 + $0x20] sm:$0xff] }
 0x242   :  { %6826 = sst [smem:[#allocation69_spill]] %s4438_s24  ;;  %v4702_v39 = vld [vmem:[#allocation3 + $0x2] sm:$0xff]  ;;  %v4719_v28 = vmul.f32 %v1258_v55, %v4470_v52  ;;  %v4722_v1 = vmul.f32 %v1276_v18, %v4470_v52  ;;  %v4725_v62 = vmul.f32 %v1294_v32, %v4470_v52  ;;  %v4731_v6 = vmul.f32 %v1312_v58, %v4470_v52  ;;  %v4748_v13 = vld [vmem:[#allocation3 + $0xa] sm:$0xff] }
 0x243   :  { %s4455_s24 = sld [smem:[#allocation11 + $0x73]]  ;;  %v4742_v0 = vmul.f32 %v1340_v37, %v4498_v44  ;;  %v4752_v41 = vmul.f32 %v1358_v56, %v4498_v44 }
 0x244   :  { %6827 = sst [smem:[#allocation70_spill]] %s4442_s23  ;;  %s6831_s23 = smov 1   ;;  %v4526_v2 = vld [vmem:[#allocation3 + $0x38] sm:$0xff] }
 0x245   :  { %6828 = sst [smem:[#allocation71_spill]] %s4448_s9  ;;  %1243 = vrot.lane.b32.xlu0 %v4458_v42, %s6831_s23  ;;  %1245 = vrot.lane.b32.xlu1 %v4470_v52, %s6831_s23  ;;  %v4554_v59 = vld [vmem:[#allocation3 + $0x50] sm:$0xff] }
 0x246   :  { %s4466_s9 = sld [smem:[#allocation11 + $0x76]] }
 0x247   :  { %6832 = sst [smem:[#allocation74_spill]] %s4464_s3 }
 0x248   :  { %s4468_s14 = sld [smem:[#allocation11 + $0x77]] }
 0x249   :  { %6829 = sst [smem:[#allocation72_spill]] %s4455_s24  ;;  %s6836_s24 = smov 127  }
 0x24a   :  { %s4472_s12 = sld [smem:[#allocation11 + $0x78]]  ;;  %1247 = vrot.lane.b32.xlu0 %v4458_v42, %s6836_s24  ;;  %1249 = vrot.lane.b32.xlu1 %v4470_v52, %s6836_s24  ;;  %v4755_v42 = vmul.f32 %v1376_v7, %v4498_v44 }
 0x24b   :  { %s4478_s2 = sld [smem:[#allocation11 + $0x79]] }
 0x24c   :  { %6833 = sst [smem:[#allocation75_spill]] %s4466_s9 }
 0x24d   :  { %s4480_s22 = sld [smem:[#allocation11 + $0x7a]] }
 0x24e   :  { %6834 = sst [smem:[#allocation76_spill]] %s4468_s14  ;;  %1325 = vrot.lane.b32.xlu0 %v4484_v61, %s6831_s23  ;;  %1327 = vrot.lane.b32.xlu1 %v4498_v44, %s6831_s23 }
 0x24f   :  { %s4482_s15 = sld [smem:[#allocation11 + $0x7b]] }
 0x250   :  { %6835 = sst [smem:[#allocation77_spill]] %s4472_s12 }
 0x251   :  { %6837 = sst [smem:[#allocation78_spill]] %s4478_s2 }
 0x252   :  { %s4486_s9 = sld [smem:[#allocation11 + $0x7c]]  ;;  %1329 = vrot.lane.b32.xlu0 %v4484_v61, %s6836_s24  ;;  %1331 = vrot.lane.b32.xlu1 %v4498_v44, %s6836_s24 }
 0x253   :  { %6838 = sst [smem:[#allocation79_spill]] %s4480_s22 }
 0x254   :  { %s4492_s12 = sld [smem:[#allocation11 + $0x7d]] }
 0x255   :  { %6839 = sst [smem:[#allocation80_spill]] %s4482_s15 }
 0x256   :  { %s4494_s14 = sld [smem:[#allocation11 + $0x7e]]  ;;  %1407 = vrot.lane.b32.xlu0 %v4512_v60, %s6831_s23  ;;  %1409 = vrot.lane.b32.xlu1 %v4526_v2, %s6831_s23 }
 0x257   :  { %s4496_s3 = sld [smem:[#allocation11 + $0x7f]] }
 0x258   :  { %6840 = sst [smem:[#allocation81_spill]] %s4486_s9 }
 0x259   :  { %s4500_s22 = sld [smem:[#allocation13]] }
 0x25a   :  { %6841 = sst [smem:[#allocation82_spill]] %s4492_s12  ;;  %1411 = vrot.lane.b32.xlu0 %v4512_v60, %s6836_s24  ;;  %1413 = vrot.lane.b32.xlu1 %v4526_v2, %s6836_s24 }
 0x25b   :  { %s4506_s9 = sld [smem:[#allocation13 + $0x1]] }
 0x25c   :  { %6842 = sst [smem:[#allocation83_spill]] %s4494_s14 }
 0x25d   :  { %6843 = sst [smem:[#allocation84_spill]] %s4496_s3 }
 0x25e   :  { %s4508_s15 = sld [smem:[#allocation13 + $0x2]]  ;;  %1489 = vrot.lane.b32.xlu0 %v4540_v46, %s6831_s23  ;;  %1491 = vrot.lane.b32.xlu1 %v4554_v59, %s6831_s23 }
 0x25f   :  { %6844 = sst [smem:[#allocation85_spill]] %s4500_s22 }
 0x260   :  { %s4510_s2 = sld [smem:[#allocation13 + $0x3]] }
 0x261   :  { %6845 = sst [smem:[#allocation86_spill]] %s4506_s9 }
 0x262   :  { %s4514_s14 = sld [smem:[#allocation11]]  ;;  %1493 = vrot.lane.b32.xlu0 %v4540_v46, %s6836_s24  ;;  %1495 = vrot.lane.b32.xlu1 %v4554_v59, %s6836_s24 }
 0x263   :  { %s4520_s3 = sld [smem:[#allocation11 + $0x1]] }
 0x264   :  { %6846 = sst [smem:[#allocation87_spill]] %s4508_s15 }
 0x265   :  { %s4522_s12 = sld [smem:[#allocation11 + $0x2]] }
 0x266   :  { %6847 = sst [smem:[#allocation88_spill]] %s4510_s2  ;;  %1571 = vrot.lane.b32.xlu0 %v4399_v3, %s6831_s23  ;;  %1573 = vrot.lane.b32.xlu1 %v4432_v23, %s6831_s23 }
 0x267   :  { %6851 = sst [smem:[#allocation92_spill]] %s4524_s4 }
 0x268   :  { %6848 = sst [smem:[#allocation89_spill]] %s4514_s14 }
 0x269   :  { %6849 = sst [smem:[#allocation90_spill]] %s4520_s3 }
 0x26a   :  { %6852 = sst [smem:[#allocation93_spill]] %s4528_s10  ;;  %1575 = vrot.lane.b32.xlu0 %v4399_v3, %s6836_s24  ;;  %1577 = vrot.lane.b32.xlu1 %v4432_v23, %s6836_s24 }
 0x26b   :  { %6850 = sst [smem:[#allocation91_spill]] %s4522_s12 }
 0x26c   :  { %s4534_s6 = sld [smem:[#allocation11 + $0x21]] }
 0x26d   :  { %s4536_s5 = sld [smem:[#allocation11 + $0x22]] }
 0x26e   :  { %s4538_s13 = sld [smem:[#allocation11 + $0x23]]  ;;  %1653 = vrot.lane.b32.xlu0 %v4408_v11, %s6831_s23  ;;  %1655 = vrot.lane.b32.xlu1 %v4436_v54, %s6831_s23 }
 0x26f   :  { %s4548_s1 = sld [smem:[#allocation11 + $0x5]] }
 0x270   :  { %6858 = sst [smem:[#allocation99_spill]] %s4550_s27 }
 0x271   :  { %s4552_s11 = sld [smem:[#allocation11 + $0x7]] }
 0x272   :  { %6853 = sst [smem:[#allocation94_spill]] %s4534_s6  ;;  %1657 = vrot.lane.b32.xlu0 %v4408_v11, %s6836_s24  ;;  %1659 = vrot.lane.b32.xlu1 %v4436_v54, %s6836_s24 }
 0x273   :  { %6854 = sst [smem:[#allocation95_spill]] %s4536_s5 }
 0x274   :  { %6855 = sst [smem:[#allocation96_spill]] %s4538_s13 }
 0x275   :  { %6857 = sst [smem:[#allocation98_spill]] %s4548_s1 }
 0x276   :  { %s4556_s19 = sld [smem:[#allocation11 + $0x24]]  ;;  %1735 = vrot.lane.b32.xlu0 %v4418_v36, %s6831_s23  ;;  %1737 = vrot.lane.b32.xlu1 %v4446_v30, %s6831_s23 }
 0x277   :  { %6859 = sst [smem:[#allocation100_spill]] %s4552_s11 }
 0x278   :  { %s4562_s16 = sld [smem:[#allocation11 + $0x25]] }
 0x279   :  { %s4564_s28 = sld [smem:[#allocation11 + $0x26]] }
 0x27a   :  { %s4566_s30 = sld [smem:[#allocation11 + $0x27]]  ;;  %1739 = vrot.lane.b32.xlu0 %v4418_v36, %s6836_s24  ;;  %1741 = vrot.lane.b32.xlu1 %v4446_v30, %s6836_s24 }
 0x27b   :  { %s4568_s29 = sld [smem:[#allocation11 + $0x8]] }
 0x27c   :  { %6860 = sst [smem:[#allocation101_spill]] %s4556_s19 }
 0x27d   :  { %s4574_s19 = sld [smem:[#allocation11 + $0x9]] }
 0x27e   :  { %6861 = sst [smem:[#allocation102_spill]] %s4562_s16  ;;  %1817 = vrot.lane.b32.xlu0 %v4425_v35, %s6831_s23  ;;  %1819 = vrot.lane.b32.xlu1 %v4453_v40, %s6831_s23 }
 0x27f   :  { %6862 = sst [smem:[#allocation103_spill]] %s4564_s28 }
 0x280   :  { %6863 = sst [smem:[#allocation104_spill]] %s4566_s30 }
 0x281   :  { %6864 = sst [smem:[#allocation105_spill]] %s4568_s29 }
 0x282   :  { %s4576_s11 = sld [smem:[#allocation11 + $0xa]]  ;;  %1821 = vrot.lane.b32.xlu0 %v4425_v35, %s6836_s24  ;;  %1823 = vrot.lane.b32.xlu1 %v4453_v40, %s6836_s24 }
 0x283   :  { %6865 = sst [smem:[#allocation106_spill]] %s4574_s19 }
 0x284   :  { %6867 = sst [smem:[#allocation41_spill]] %s4578_s25 }
 0x285   :  { %s4580_s27 = sld [smem:[#allocation11 + $0x28]] }
 0x286   :  { %s4586_s29 = sld [smem:[#allocation11 + $0x29]]  ;;  %1899 = vrot.lane.b32.xlu0 %v4702_v39, %s6831_s23  ;;  %1901 = vrot.lane.b32.xlu1 %v4748_v13, %s6831_s23 }
 0x287   :  { %s4588_s30 = sld [smem:[#allocation11 + $0x2a]] }
 0x288   :  { %6866 = sst [smem:[#allocation107_spill]] %s4576_s11 }
 0x289   :  { %s4590_s28 = sld [smem:[#allocation11 + $0x2b]] }
 0x28a   :  { %s4592_s16 = sld [smem:[#allocation11 + $0xc]]  ;;  %1903 = vrot.lane.b32.xlu0 %v4702_v39, %s6836_s24  ;;  %1905 = vrot.lane.b32.xlu1 %v4748_v13, %s6836_s24 }
 0x28b   :  { %6868 = sst [smem:[#allocation108_spill]] %s4580_s27 }
 0x28c   :  { %6869 = sst [smem:[#allocation109_spill]] %s4586_s29 }
 0x28d   :  { %6870 = sst [smem:[#allocation110_spill]] %s4588_s30 }
 0x28e   :  { %s4598_s27 = sld [smem:[#allocation11 + $0xd]] }
 0x28f   :  { %6871 = sst [smem:[#allocation52_spill]] %s4590_s28 }
 0x290   :  { %6872 = sst [smem:[#allocation53_spill]] %s4592_s16 }
 0x291   :  { %s4600_s25 = sld [smem:[#allocation11 + $0xe]] }
 0x292   :  { %s4602_s11 = sld [smem:[#allocation11 + $0xf]] }
 0x293   :  { %s4604_s19 = sld [smem:[#allocation11 + $0x2c]] }
 0x294   :  { %6873 = sst [smem:[#allocation54_spill]] %s4598_s27 }
 0x295   :  { %s4610_s16 = sld [smem:[#allocation11 + $0x2d]] }
 0x296   :  { %s4612_s28 = sld [smem:[#allocation11 + $0x2e]] }
 0x297   :  { %6874 = sst [smem:[#allocation56_spill]] %s4600_s25 }
 0x298   :  { %6875 = sst [smem:[#allocation57_spill]] %s4602_s11 }
 0x299   :  { %6876 = sst [smem:[#allocation111_spill]] %s4604_s19 }
 0x29a   :  { %s4614_s27 = sld [smem:[#allocation11 + $0x2f]] }
 0x29b   :  { %6877 = sst [smem:[#allocation112_spill]] %s4610_s16 }
 0x29c   :  { %6878 = sst [smem:[#allocation113_spill]] %s4612_s28 }
 0x29d   :  { %s4616_s25 = sld [smem:[#allocation11 + $0x30]] }
 0x29e   :  { %s4622_s19 = sld [smem:[#allocation11 + $0x31]] }
 0x29f   :  { %s4624_s11 = sld [smem:[#allocation11 + $0x32]] }
 0x2a0   :  { %6879 = sst [smem:[#allocation114_spill]] %s4614_s27 }
 0x2a1   :  { %s4626_s16 = sld [smem:[#allocation11 + $0x33]] }
 0x2a2   :  { %s4628_s28 = sld [smem:[#allocation11 + $0x50]] }
 0x2a3   :  { %6880 = sst [smem:[#allocation115_spill]] %s4616_s25 }
 0x2a4   :  { %6881 = sst [smem:[#allocation116_spill]] %s4622_s19 }
 0x2a5   :  { %6882 = sst [smem:[#allocation32_spill]] %s4624_s11 }
 0x2a6   :  { %s4634_s25 = sld [smem:[#allocation11 + $0x51]] }
 0x2a7   :  { %6883 = sst [smem:[#allocation42_spill]] %s4626_s16 }
 0x2a8   :  { %6884 = sst [smem:[#allocation47_spill]] %s4628_s28 }
 0x2a9   :  { %s4636_s19 = sld [smem:[#allocation11 + $0x52]] }
 0x2aa   :  { %s4638_s11 = sld [smem:[#allocation11 + $0x53]] }
 0x2ab   :  { %s4643_s28 = sld [smem:[#allocation11 + $0x34]] }
 0x2ac   :  { %6885 = sst [smem:[#allocation20_spill]] %s4634_s25 }
 0x2ad   :  { %s4657_s15 = sld [smem:[#allocation11 + $0x36]] }
 0x2ae   :  { %s4663_s9 = sld [smem:[#allocation11 + $0x37]] }
 0x2af   :  { %6886 = sst [smem:[#allocation21_spill]] %s4636_s19 }
 0x2b0   :  { %6887 = sst [smem:[#allocation23_spill]] %s4638_s11 }
 0x2b1   :  { %6888 = sst [smem:[#allocation24_spill]] %s4643_s28 }
 0x2b2   :  { %s4651_s11 = sld [smem:[#allocation11 + $0x35]] }
 0x2b3   :  { %6890 = sst [smem:[#allocation30_spill]] %s4657_s15 }
 0x2b4   :  { %6891 = sst [smem:[#allocation31_spill]] %s4663_s9 }
 0x2b5   :  { %s6893_s22 = sld [smem:[#allocation58_spill]] }
 0x2b6   :  { %s4669_s4 = sld [smem:[#allocation11 + $0x54]] }
 0x2b7   :  { %s6896_s18 = sld [smem:[#allocation59_spill]] }
 0x2b8   :  { %6889 = sst [smem:[#allocation29_spill]] %s4651_s11 }
 0x2b9   :  { %s4680_s7 = sld [smem:[#allocation11 + $0x55]] }
 0x2ba   :  { %s4692_s21 = sld [smem:[#allocation11 + $0x56]] }
 0x2bb   :  { %v1394_v8 = vstv %s6893_s22  ;;  %s4700_s0 = sld [smem:[#allocation11 + $0x57]] }
 0x2bc   :  { %6894 = sst [smem:[#allocation51_spill]] %s4669_s4  ;;  %v4735_v17 = vmul.f32 %v1394_v8, %v4484_v61  ;;  %v4758_v52 = vmul.f32 %v1394_v8, %v4498_v44 }
 0x2bd   :  { %s6902_s13 = sld [smem:[#allocation22_spill]]  ;;  %v1422_v31 = vstv %s6896_s18 }
 0x2be   :  { %s6904_s2 = sld [smem:[#allocation48_spill]]  ;;  %v4767_v61 = vmul.f32 %v1422_v31, %v4512_v60  ;;  %v4783_v37 = vmul.f32 %v1422_v31, %v4526_v2 }
 0x2bf   :  { %6897 = sst [smem:[#allocation25_spill]] %s4680_s7 }
 0x2c0   :  { %6898 = sst [smem:[#allocation28_spill]] %s4692_s21 }
 0x2c1   :  { %6901 = sst [smem:[#allocation33_spill]] %s4700_s0 }
 0x2c2   :  { %s4712_s1 = sld [smem:[#allocation11 + $0x38]] }
 0x2c3   :  { %s6906_s22 = sld [smem:[#allocation49_spill]]  ;;  %v1440_v12 = vstv %s6902_s13 }
 0x2c4   :  { %s4728_s18 = sld [smem:[#allocation11 + $0x39]]  ;;  %v1458_v26 = vstv %s6904_s2  ;;  %v4770_v55 = vmul.f32 %v1440_v12, %v4512_v60  ;;  %v4790_v8 = vmul.f32 %v1440_v12, %v4526_v2 }
 0x2c5   :  { %s4738_s5 = sld [smem:[#allocation11 + $0x3a]]  ;;  %v4777_v44 = vmul.f32 %v1458_v26, %v4512_v60  ;;  %v4793_v16 = vmul.f32 %v1458_v26, %v4526_v2 }
 0x2c6   :  { %s6910_s6 = sld [smem:[#allocation50_spill]] }
 0x2c7   :  { %s6911_s10 = sld [smem:[#allocation26_spill]] }
 0x2c8   :  { %6905 = sst [smem:[#allocation38_spill]] %s4712_s1 }
 0x2c9   :  { %v1476_v25 = vstv %s6906_s22  ;;  %s4746_s26 = sld [smem:[#allocation11 + $0x3b]] }
 0x2ca   :  { %6908 = sst [smem:[#allocation43_spill]] %s4728_s18  ;;  %v4780_v58 = vmul.f32 %v1476_v25, %v4512_v60  ;;  %v4796_v57 = vmul.f32 %v1476_v25, %v4526_v2  ;;  %v4800_v60 = vld [vmem:[#allocation3 + $0x1a] sm:$0xff] }
 0x2cb   :  { %6909 = sst [smem:[#allocation44_spill]] %s4738_s5  ;;  %1981 = vrot.lane.b32.xlu0 %v4800_v60, %s6831_s23 }
 0x2cc   :  { %s6913_s12 = sld [smem:[#allocation27_spill]]  ;;  %v1504_v18 = vstv %s6910_s6 }
 0x2cd   :  { %s4760_s8 = sld [smem:[#allocation11 + $0x58]]  ;;  %v1522_v32 = vstv %s6911_s10  ;;  %v4804_v7 = vmul.f32 %v1504_v18, %v4540_v46  ;;  %v4821_v31 = vmul.f32 %v1504_v18, %v4554_v59 }
 0x2ce   :  { %s6917_s22 = sld [smem:[#allocation34_spill]]  ;;  %v4807_v12 = vmul.f32 %v1522_v32, %v4540_v46  ;;  %v4828_v19 = vmul.f32 %v1522_v32, %v4554_v59  ;;  %v4846_v32 = vld [vmem:[#allocation3 + $0x22] sm:$0xff] }
 0x2cf   :  { %6912 = sst [smem:[#allocation45_spill]] %s4746_s26  ;;  %1983 = vrot.lane.b32.xlu1 %v4846_v32, %s6831_s23  ;;  %1985 = vrot.lane.b32.xlu0 %v4800_v60, %s6836_s24 }
 0x2d0   :  { %s4774_s20 = sld [smem:[#allocation11 + $0x59]] }
 0x2d1   :  { %s4786_s3 = sld [smem:[#allocation11 + $0x5a]] }
 0x2d2   :  { %v1540_v56 = vstv %s6913_s12  ;;  %s6921_s6 = sld [smem:[#allocation46_spill]] }
 0x2d3   :  { %6915 = sst [smem:[#allocation58_spill]] %s4760_s8  ;;  %v4818_v25 = vmul.f32 %v1540_v56, %v4540_v46  ;;  %v4839_v18 = vmul.f32 %v1540_v56, %v4554_v59  ;;  %1987 = vrot.lane.b32.xlu1 %v4846_v32, %s6836_s24 }
 0x2d4   :  { %s4798_s14 = sld [smem:[#allocation11 + $0x5b]]  ;;  %v1558_v26 = vstv %s6917_s22 }
 0x2d5   :  { %s6925_s12 = sld [smem:[#allocation40_spill]]  ;;  %v4836_v45 = vmul.f32 %v1558_v26, %v4540_v46  ;;  %v4842_v33 = vmul.f32 %v1558_v26, %v4554_v59 }
 0x2d6   :  { %6918 = sst [smem:[#allocation59_spill]] %s4774_s20 }
 0x2d7   :  { %6920 = sst [smem:[#allocation22_spill]] %s4786_s3 }
 0x2d8   :  { %s6924_s20 = sld [smem:[#allocation39_spill]]  ;;  %v1586_v48 = vstv %s6921_s6 }
 0x2d9   :  { %s4810_s3 = sld [smem:[#allocation11 + $0x3c]]  ;;  %v4851_v2 = vmul.f32 %v1586_v48, %v4399_v3  ;;  %v4871_v22 = vmul.f32 %v1586_v48, %v4432_v23 }
 0x2da   :  { %6923 = sst [smem:[#allocation48_spill]] %s4798_s14 }
 0x2db   :  { %s6928_s2 = sld [smem:[#allocation55_spill]]  ;;  %v1622_v5 = vstv %s6925_s12 }
 0x2dc   :  { %s4824_s22 = sld [smem:[#allocation11 + $0x3d]]  ;;  %v4864_v56 = vmul.f32 %v1622_v5, %v4399_v3  ;;  %v4885_v14 = vmul.f32 %v1622_v5, %v4432_v23 }
 0x2dd   :  { %s6931_s17 = sld [smem:[#allocation35_spill]] }
 0x2de   :  { %v1604_v15 = vstv %s6924_s20  ;;  %s6932_s14 = sld [smem:[#allocation36_spill]] }
 0x2df   :  { %6927 = sst [smem:[#allocation49_spill]] %s4810_s3  ;;  %v4861_v59 = vmul.f32 %v1604_v15, %v4399_v3  ;;  %v4874_v20 = vmul.f32 %v1604_v15, %v4432_v23  ;;  %v4892_v15 = vld [vmem:[#allocation3 + $0x32] sm:$0xff] }
 0x2e0   :  { %s4832_s3 = sld [smem:[#allocation11 + $0x3e]]  ;;  %2063 = vrot.lane.b32.xlu0 %v4892_v15, %s6831_s23 }
 0x2e1   :  { %s4844_s6 = sld [smem:[#allocation11 + $0x3f]]  ;;  %v1640_v46 = vstv %s6928_s2 }
 0x2e2   :  { %6929 = sst [smem:[#allocation50_spill]] %s4824_s22  ;;  %v4882_v29 = vmul.f32 %v1640_v46, %v4399_v3  ;;  %v4888_v27 = vmul.f32 %v1640_v46, %v4432_v23 }
 0x2e3   :  { %s6934_s10 = sld [smem:[#allocation37_spill]]  ;;  %v1668_v26 = vstv %s6931_s17 }
 0x2e4   :  { %s6935_s20 = sld [smem:[#allocation64_spill]]  ;;  %v1686_v9 = vstv %s6932_s14  ;;  %6944 = vst [vmem:[#allocation117_spill] sm:$0xff] %v4888_v27  ;;  %v4896_v21 = vmul.f32 %v1668_v26, %v4408_v11  ;;  %v4919_v38 = vmul.f32 %v1668_v26, %v4436_v54  ;;  %2067 = vrot.lane.b32.xlu0 %v4892_v15, %s6836_s24 }
 0x2e5   :  { %s4854_s13 = sld [smem:[#allocation11 + $0x5c]]  ;;  %v4899_v24 = vmul.f32 %v1686_v9, %v4408_v11  ;;  %v4922_v50 = vmul.f32 %v1686_v9, %v4436_v54  ;;  %v4940_v9 = vld [vmem:[#allocation3 + $0x3a] sm:$0xff] }
 0x2e6   :  { %6930 = sst [smem:[#allocation26_spill]] %s4832_s3  ;;  %6947 = vst [vmem:[#allocation126_spill] sm:$0xff] %v4896_v21  ;;  %6957 = vst [vmem:[#allocation130_spill] sm:$0xff] %v4919_v38  ;;  %2065 = vrot.lane.b32.xlu1 %v4940_v9, %s6831_s23 }
 0x2e7   :  { %6933 = sst [smem:[#allocation27_spill]] %s4844_s6  ;;  %6949 = vst [vmem:[#allocation127_spill] sm:$0xff] %v4899_v24  ;;  %6958 = vst [vmem:[#allocation131_spill] sm:$0xff] %v4922_v50 }
 0x2e8   :  { %s6939_s30 = sld [smem:[#allocation65_spill]] }
 0x2e9   :  { %s4868_s29 = sld [smem:[#allocation11 + $0x5d]]  ;;  %v1704_v53 = vstv %s6934_s10 }
 0x2ea   :  { %v1722_v47 = vstv %s6935_s20  ;;  %s4878_s2 = sld [smem:[#allocation11 + $0x5e]]  ;;  %v4909_v23 = vmul.f32 %v1704_v53, %v4408_v11  ;;  %v4925_v24 = vmul.f32 %v1704_v53, %v4436_v54  ;;  %2069 = vrot.lane.b32.xlu1 %v4940_v9, %s6836_s24 }
 0x2eb   :  { %6937 = sst [smem:[#allocation34_spill]] %s4854_s13  ;;  %v4912_v5 = vmul.f32 %v1722_v47, %v4408_v11  ;;  %v4933_v21 = vmul.f32 %v1722_v47, %v4436_v54 }
 0x2ec   :  { %s6942_s13 = sld [smem:[#allocation66_spill]]  ;;  %6952 = vst [vmem:[#allocation128_spill] sm:$0xff] %v4909_v23  ;;  %6959 = vst [vmem:[#allocation132_spill] sm:$0xff] %v4925_v24 }
 0x2ed   :  { %s6943_s3 = sld [smem:[#allocation67_spill]]  ;;  %6953 = vst [vmem:[#allocation129_spill] sm:$0xff] %v4912_v5  ;;  %6962 = vst [vmem:[#allocation133_spill] sm:$0xff] %v4933_v21 }
 0x2ee   :  { %s4890_s14 = sld [smem:[#allocation11 + $0x5f]]  ;;  %v1750_v3 = vstv %s6939_s30 }
 0x2ef   :  { %6940 = sst [smem:[#allocation46_spill]] %s4868_s29  ;;  %v4936_v27 = vmul.f32 %v1750_v3, %v4418_v36 }
 0x2f0   :  { %6941 = sst [smem:[#allocation39_spill]] %s4878_s2 }
 0x2f1   :  { %s6946_s17 = sld [smem:[#allocation60_spill]]  ;;  %6964 = vst [vmem:[#allocation142_spill] sm:$0xff] %v4936_v27 }
 0x2f2   :  { %s4902_s12 = sld [smem:[#allocation11 + $0x60]]  ;;  %v1768_v46 = vstv %s6942_s13 }
 0x2f3   :  { %s6954_s6 = sld [smem:[#allocation61_spill]]  ;;  %v1786_v48 = vstv %s6943_s3  ;;  %v4943_v53 = vmul.f32 %v1768_v46, %v4418_v36 }
 0x2f4   :  { %6945 = sst [smem:[#allocation40_spill]] %s4890_s14  ;;  %v4946_v26 = vmul.f32 %v1786_v48, %v4418_v36  ;;  %v4970_v21 = vmul.f32 %v1786_v48, %v4446_v30  ;;  %v4988_v48 = vld [vmem:[#allocation3 + $0x4a] sm:$0xff] }
 0x2f5   :  { %s6955_s14 = sld [smem:[#allocation62_spill]]  ;;  %6968 = vst [vmem:[#allocation143_spill] sm:$0xff] %v4943_v53  ;;  %v4961_v53 = vmul.f32 %v1750_v3, %v4446_v30  ;;  %2145 = vrot.lane.b32.xlu0 %v4988_v48, %s6831_s23 }
 0x2f6   :  { %s4916_s2 = sld [smem:[#allocation11 + $0x61]]  ;;  %6969 = vst [vmem:[#allocation144_spill] sm:$0xff] %v4946_v26  ;;  %v4964_v26 = vmul.f32 %v1768_v46, %v4446_v30  ;;  %6979 = vst [vmem:[#allocation148_spill] sm:$0xff] %v4970_v21 }
 0x2f7   :  { %v1804_v23 = vstv %s6946_s17  ;;  %s4938_s13 = sld [smem:[#allocation11 + $0x63]]  ;;  %6975 = vst [vmem:[#allocation146_spill] sm:$0xff] %v4961_v53 }
 0x2f8   :  { %6951 = sst [smem:[#allocation55_spill]] %s4902_s12  ;;  %v4958_v11 = vmul.f32 %v1804_v23, %v4418_v36  ;;  %6977 = vst [vmem:[#allocation147_spill] sm:$0xff] %v4964_v26  ;;  %v4978_v3 = vmul.f32 %v1804_v23, %v4446_v30 }
 0x2f9   :  { %s4928_s12 = sld [smem:[#allocation11 + $0x62]]  ;;  %v1832_v5 = vstv %s6954_s6  ;;  %2149 = vrot.lane.b32.xlu0 %v4988_v48, %s6836_s24 }
 0x2fa   :  { %s6967_s29 = sld [smem:[#allocation68_spill]]  ;;  %6973 = vst [vmem:[#allocation145_spill] sm:$0xff] %v4958_v11  ;;  %6982 = vst [vmem:[#allocation149_spill] sm:$0xff] %v4978_v3  ;;  %v4981_v53 = vmul.f32 %v1832_v5, %v4425_v35  ;;  %v5007_v27 = vmul.f32 %v1832_v5, %v4453_v40 }
 0x2fb   :  { %v1850_v54 = vstv %s6955_s14  ;;  %s4950_s20 = sld [smem:[#allocation11 + $0x80]] }
 0x2fc   :  { %6956 = sst [smem:[#allocation35_spill]] %s4916_s2  ;;  %6983 = vst [vmem:[#allocation158_spill] sm:$0xff] %v4981_v53  ;;  %v4984_v46 = vmul.f32 %v1850_v54, %v4425_v35  ;;  %6991 = vst [vmem:[#allocation162_spill] sm:$0xff] %v5007_v27  ;;  %v5014_v53 = vmul.f32 %v1850_v54, %v4453_v40 }
 0x2fd   :  { %6965 = sst [smem:[#allocation37_spill]] %s4938_s13 }
 0x2fe   :  { %s6966_s2 = sld [smem:[#allocation63_spill]]  ;;  %6984 = vst [vmem:[#allocation159_spill] sm:$0xff] %v4984_v46  ;;  %6994 = vst [vmem:[#allocation163_spill] sm:$0xff] %v5014_v53 }
 0x2ff   :  { %6961 = sst [smem:[#allocation36_spill]] %s4928_s12 }
 0x300   :  { %s6974_s13 = sld [smem:[#allocation69_spill]]  ;;  %v1886_v24 = vstv %s6967_s29 }
 0x301   :  { %6971 = sst [smem:[#allocation64_spill]] %s4950_s20  ;;  %v5004_v23 = vmul.f32 %v1886_v24, %v4425_v35 }
 0x302   :  { %s6976_s6 = sld [smem:[#allocation70_spill]] }
 0x303   :  { %s6978_s14 = sld [smem:[#allocation71_spill]]  ;;  %6990 = vst [vmem:[#allocation161_spill] sm:$0xff] %v5004_v23 }
 0x304   :  { %s4966_s20 = sld [smem:[#allocation11 + $0x81]]  ;;  %v1868_v47 = vstv %s6966_s2 }
 0x305   :  { %s4974_s30 = sld [smem:[#allocation11 + $0x82]]  ;;  %v5001_v30 = vmul.f32 %v1868_v47, %v4425_v35  ;;  %v5017_v3 = vmul.f32 %v1868_v47, %v4453_v40 }
 0x306   :  { %s6981_s12 = sld [smem:[#allocation72_spill]]  ;;  %v1914_v21 = vstv %s6974_s13 }
 0x307   :  { %s4986_s3 = sld [smem:[#allocation11 + $0x83]]  ;;  %6988 = vst [vmem:[#allocation160_spill] sm:$0xff] %v5001_v30  ;;  %6995 = vst [vmem:[#allocation164_spill] sm:$0xff] %v5017_v3  ;;  %v5020_v30 = vmul.f32 %v1886_v24, %v4453_v40  ;;  %v5025_v35 = vmul.f32 %v1914_v21, %v4702_v39  ;;  %v5036_v40 = vld [vmem:[#allocation3 + $0x52] sm:$0xff] }
 0x308   :  { %v1932_v26 = vstv %s6976_s6  ;;  %s4994_s29 = sld [smem:[#allocation11 + $0x64]]  ;;  %2147 = vrot.lane.b32.xlu1 %v5036_v40, %s6831_s23 }
 0x309   :  { %v1950_v11 = vstv %s6978_s14  ;;  %s6987_s2 = sld [smem:[#allocation73_spill]]  ;;  %6996 = vst [vmem:[#allocation165_spill] sm:$0xff] %v5020_v30  ;;  %6998 = vst [vmem:[#allocation118_spill] sm:$0xff] %v5025_v35  ;;  %v5028_v5 = vmul.f32 %v1932_v26, %v4702_v39  ;;  %v5043_v35 = vmul.f32 %v1914_v21, %v4748_v13  ;;  %v5053_v24 = vmul.f32 %v1932_v26, %v4748_v13 }
 0x30a   :  { %s5010_s13 = sld [smem:[#allocation11 + $0x65]]  ;;  %v5031_v46 = vmul.f32 %v1950_v11, %v4702_v39 }
 0x30b   :  { %6980 = sst [smem:[#allocation65_spill]] %s4974_s30  ;;  %7000 = vst [vmem:[#allocation119_spill] sm:$0xff] %v5028_v5  ;;  %7007 = vst [vmem:[#allocation122_spill] sm:$0xff] %v5043_v35 }
 0x30c   :  { %v1968_v36 = vstv %s6981_s12  ;;  %s6993_s6 = sld [smem:[#allocation74_spill]]  ;;  %7002 = vst [vmem:[#allocation120_spill] sm:$0xff] %v5031_v46  ;;  %7011 = vst [vmem:[#allocation123_spill] sm:$0xff] %v5053_v24  ;;  %2151 = vrot.lane.b32.xlu1 %v5036_v40, %s6836_s24 }
 0x30d   :  { %6985 = sst [smem:[#allocation66_spill]] %s4986_s3  ;;  %v5040_v47 = vmul.f32 %v1968_v36, %v4702_v39  ;;  %v5056_v39 = vmul.f32 %v1950_v11, %v4748_v13  ;;  %v5065_v30 = vmul.f32 %v1968_v36, %v4748_v13 }
 0x30e   :  { %6986 = sst [smem:[#allocation67_spill]] %s4994_s29 }
 0x30f   :  { %s5022_s14 = sld [smem:[#allocation11 + $0x66]]  ;;  %v1996_v54 = vstv %s6987_s2  ;;  %7006 = vst [vmem:[#allocation121_spill] sm:$0xff] %v5040_v47  ;;  %7012 = vst [vmem:[#allocation124_spill] sm:$0xff] %v5056_v39 }
 0x310   :  { %6992 = sst [smem:[#allocation60_spill]] %s5010_s13  ;;  %7015 = vst [vmem:[#allocation125_spill] sm:$0xff] %v5065_v30  ;;  %v5068_v3 = vmul.f32 %v1996_v54, %v4800_v60  ;;  %v5093_v47 = vmul.f32 %v1996_v54, %v4846_v32 }
 0x311   :  { %s6999_s12 = sld [smem:[#allocation75_spill]] }
 0x312   :  { %s7001_s27 = sld [smem:[#allocation76_spill]]  ;;  %v2014_v5 = vstv %s6993_s6  ;;  %7016 = vst [vmem:[#allocation134_spill] sm:$0xff] %v5068_v3  ;;  %7024 = vst [vmem:[#allocation138_spill] sm:$0xff] %v5093_v47 }
 0x313   :  { %s5033_s13 = sld [smem:[#allocation11 + $0x67]]  ;;  %v5074_v11 = vmul.f32 %v2014_v5, %v4800_v60 }
 0x314   :  { %s7009_s3 = sld [smem:[#allocation77_spill]] }
 0x315   :  { %6997 = sst [smem:[#allocation61_spill]] %s5022_s14  ;;  %7017 = vst [vmem:[#allocation135_spill] sm:$0xff] %v5074_v11  ;;  %v5096_v11 = vmul.f32 %v2014_v5, %v4846_v32 }
 0x316   :  { %s5045_s14 = sld [smem:[#allocation11 + $0x84]] }
 0x317   :  { %s7010_s2 = sld [smem:[#allocation78_spill]]  ;;  %v2032_v21 = vstv %s6999_s12  ;;  %7025 = vst [vmem:[#allocation139_spill] sm:$0xff] %v5096_v11 }
 0x318   :  { %s5058_s17 = sld [smem:[#allocation11 + $0x85]]  ;;  %v2050_v35 = vstv %s7001_s27  ;;  %v5081_v46 = vmul.f32 %v2032_v21, %v4800_v60 }
 0x319   :  { %7004 = sst [smem:[#allocation62_spill]] %s5033_s13  ;;  %v5084_v13 = vmul.f32 %v2050_v35, %v4800_v60  ;;  %v5102_v60 = vmul.f32 %v2050_v35, %v4846_v32 }
 0x31a   :  { %s7013_s13 = sld [smem:[#allocation79_spill]]  ;;  %v2078_v39 = vstv %s7009_s3  ;;  %7020 = vst [vmem:[#allocation136_spill] sm:$0xff] %v5081_v46  ;;  %v5099_v46 = vmul.f32 %v2032_v21, %v4846_v32 }
 0x31b   :  { %s5070_s23 = sld [smem:[#allocation11 + $0x86]]  ;;  %7021 = vst [vmem:[#allocation137_spill] sm:$0xff] %v5084_v13  ;;  %7027 = vst [vmem:[#allocation141_spill] sm:$0xff] %v5102_v60  ;;  %v5109_v13 = vmul.f32 %v2078_v39, %v4892_v15 }
 0x31c   :  { %7008 = sst [smem:[#allocation63_spill]] %s5045_s14  ;;  %7026 = vst [vmem:[#allocation140_spill] sm:$0xff] %v5099_v46 }
 0x31d   :  { %s7014_s14 = sld [smem:[#allocation80_spill]]  ;;  %v2096_v24 = vstv %s7010_s2  ;;  %7030 = vst [vmem:[#allocation174_spill] sm:$0xff] %v5109_v13  ;;  %v5129_v13 = vmul.f32 %v2078_v39, %v4940_v9 }
 0x31e   :  { %s5076_s6 = sld [smem:[#allocation11 + $0x87]]  ;;  %v5112_v54 = vmul.f32 %v2096_v24, %v4892_v15 }
 0x31f   :  { %s7018_s12 = sld [smem:[#allocation81_spill]]  ;;  %7036 = vst [vmem:[#allocation153_spill] sm:$0xff] %v5129_v13 }
 0x320   :  { %s7019_s27 = sld [smem:[#allocation82_spill]]  ;;  %v2114_v36 = vstv %s7013_s13  ;;  %7031 = vst [vmem:[#allocation150_spill] sm:$0xff] %v5112_v54  ;;  %v5132_v54 = vmul.f32 %v2096_v24, %v4940_v9 }
 0x321   :  { %s5086_s29 = sld [smem:[#allocation11 + $0x68]]  ;;  %v5119_v32 = vmul.f32 %v2114_v36, %v4892_v15  ;;  %v5135_v46 = vmul.f32 %v2114_v36, %v4940_v9 }
 0x322   :  { %s7022_s10 = sld [smem:[#allocation83_spill]]  ;;  %7037 = vst [vmem:[#allocation154_spill] sm:$0xff] %v5132_v54 }
 0x323   :  { %v2132_v26 = vstv %s7014_s14  ;;  %s7023_s16 = sld [smem:[#allocation84_spill]]  ;;  %7032 = vst [vmem:[#allocation151_spill] sm:$0xff] %v5119_v32  ;;  %7038 = vst [vmem:[#allocation155_spill] sm:$0xff] %v5135_v46 }
 0x324   :  { %s5104_s3 = sld [smem:[#allocation11 + $0x69]]  ;;  %v5122_v35 = vmul.f32 %v2132_v26, %v4892_v15  ;;  %v5138_v47 = vmul.f32 %v2132_v26, %v4940_v9  ;;  %v1244_v15 = vpop.permute.xlu0 %1243 }
 0x325   :  { %s5106_s14 = sld [smem:[#allocation11 + $0x6a]]  ;;  %v2160_v5 = vstv %s7018_s12 }
 0x326   :  { %v2178_v11 = vstv %s7019_s27  ;;  %s5116_s24 = sld [smem:[#allocation11 + $0x6b]]  ;;  %7033 = vst [vmem:[#allocation152_spill] sm:$0xff] %v5122_v35  ;;  %7039 = vst [vmem:[#allocation156_spill] sm:$0xff] %v5138_v47  ;;  %v5145_v39 = vmul.f32 %v2160_v5, %v4988_v48  ;;  %v5160_v35 = vmul.f32 %v2160_v5, %v5036_v40 }
 0x327   :  { %v5148_v24 = vmul.f32 %v2178_v11, %v4988_v48  ;;  %s5163_s12 = sld [smem:[#allocation11 + $0x8b]]  ;;  %v5166_v36 = vmul.f32 %v2178_v11, %v5036_v40 }
 0x328   :  { %v2196_v21 = vstv %s7022_s10  ;;  %7041 = vst [vmem:[#allocation157_spill] sm:$0xff] %v5145_v39  ;;  %s5151_s10 = sld [smem:[#allocation11 + $0x8a]]  ;;  %7046 = vst [vmem:[#allocation169_spill] sm:$0xff] %v5160_v35  ;;  %v1246_v35 = vpop.permute.xlu1 %1245  ;;  %v1248_v47 = vpop.permute.xlu0 %1247 }
 0x329   :  { %v2214_v60 = vstv %s7023_s16  ;;  %s5142_s16 = sld [smem:[#allocation11 + $0x89]]  ;;  %7042 = vst [vmem:[#allocation166_spill] sm:$0xff] %v5148_v24  ;;  %v5154_v9 = vmul.f32 %v2196_v21, %v4988_v48  ;;  %7048 = vst [vmem:[#allocation170_spill] sm:$0xff] %v5166_v36  ;;  %v5169_v24 = vmul.f32 %v2196_v21, %v5036_v40 }
 0x32a   :  { %v5157_v26 = vmul.f32 %v2214_v60, %v4988_v48  ;;  %s5178_s25 = sld [smem:[#allocation11 + $0x6c]] }
 0x32b   :  { %7029 = sst [smem:[#allocation68_spill]] %s5106_s14  ;;  %7044 = vst [vmem:[#allocation167_spill] sm:$0xff] %v5154_v9  ;;  %7049 = vst [vmem:[#allocation171_spill] sm:$0xff] %v5169_v24  ;;  %v5172_v9 = vmul.f32 %v2214_v60, %v5036_v40 }
 0x32c   :  { %s5126_s14 = sld [smem:[#allocation11 + $0x88]]  ;;  %7045 = vst [vmem:[#allocation168_spill] sm:$0xff] %v5157_v26 }
 0x32d   :  { %7047 = sst [smem:[#allocation72_spill]] %s5163_s12  ;;  %7050 = vst [vmem:[#allocation172_spill] sm:$0xff] %v5172_v9 }
 0x32e   :  { %7043 = sst [smem:[#allocation71_spill]] %s5151_s10 }
 0x32f   :  { %7040 = sst [smem:[#allocation70_spill]] %s5142_s16 }
 0x330   :  { %7054 = sst [smem:[#allocation73_spill]] %s5178_s25 }
 0x331   :  { %s7055_s13 = sld [smem:[#allocation49_spill]] }
 0x332   :  { %7035 = sst [smem:[#allocation69_spill]] %s5126_s14 }
 0x333   :  { %s5184_s16 = sld [smem:[#allocation11 + $0x6d]] }
 0x334   :  { %s5190_s9 = sld [smem:[#allocation11 + $0x6e]] }
 0x335   :  { %s5196_s0 = sld [smem:[#allocation11 + $0x6f]] }
 0x336   :  { %s5202_s26 = sld [smem:[#allocation11 + $0x8c]] }
 0x337   :  { %s7071_s8 = sld [smem:[#allocation60_spill]] }
 0x338   :  { %s7072_s27 = sld [smem:[#allocation61_spill]] }
 0x339   :  { %7058 = sst [smem:[#allocation74_spill]] %s5184_s16 }
 0x33a   :  { %s5208_s1 = sld [smem:[#allocation11 + $0x8d]] }
 0x33b   :  { %7067 = sst [smem:[#allocation75_spill]] %s5196_s0 }
 0x33c   :  { %s5214_s10 = sld [smem:[#allocation11 + $0x8e]] }
 0x33d   :  { %s7076_s14 = sld [smem:[#allocation68_spill]] }
 0x33e   :  { %s7077_s15 = sld [smem:[#allocation69_spill]] }
 0x33f   :  { %s7078_s11 = sld [smem:[#allocation70_spill]] }
 0x340   :  { %7075 = sst [smem:[#allocation76_spill]] %s5208_s1 }
 0x341   :  { %s5220_s28 = sld [smem:[#allocation11 + $0x8f]] }
 0x342   :  { %s7081_s7 = sld [smem:[#allocation89_spill]] }
 0x343   :  { %s7082_s21 = sld [smem:[#allocation90_spill]] }
 0x344   :  { %s7083_s12 = sld [smem:[#allocation91_spill]] }
 0x345   :  { %s7084_s22 = sld [smem:[#allocation92_spill]] }
 0x346   :  { %s7085_s16 = sld [smem:[#allocation73_spill]] }
 0x347   :  { %s7086_s30 = sld [smem:[#allocation74_spill]] }
 0x348   :  { %s7087_s5 = sld [smem:[#allocation85_spill]]  ;;  %v7091_v21 = vstv %s7081_s7  ;;  %v7101_v3 = vstv %s7081_s7 }
 0x349   :  { %s7088_s18 = sld [smem:[#allocation86_spill]]  ;;  %v1253_v26 = vmul.f32 %v7091_v21, %v1244_v15  ;;  %v7092_v11 = vstv %s7082_s21 }
 0x34a   :  { %s7089_s19 = sld [smem:[#allocation87_spill]]  ;;  %v1271_v24 = vmul.f32 %v7092_v11, %v1244_v15  ;;  %v7093_v39 = vstv %s7083_s12 }
 0x34b   :  { %s7090_s2 = sld [smem:[#allocation88_spill]]  ;;  %v1289_v48 = vmul.f32 %v7093_v39, %v1244_v15  ;;  %v7094_v40 = vstv %s7084_s22  ;;  %v7105_v30 = vstv %s7084_s22 }
 0x34c   :  { %v1307_v60 = vmul.f32 %v7094_v40, %v1244_v15  ;;  %s7096_s4 = sld [smem:[#allocation93_spill]]  ;;  %v1308_v13 = vmul.f32 %v7105_v30, %v1246_v35 }
 0x34d   :  { %s7098_s25 = sld [smem:[#allocation94_spill]] }
 0x34e   :  { %v7095_v36 = vstv %s7087_s5  ;;  %s7102_s0 = sld [smem:[#allocation95_spill]]  ;;  %v7109_v46 = vstv %s7087_s5 }
 0x34f   :  { %v1255_v9 = vadd.f32 %v1253_v26, %v7095_v36  ;;  %v7097_v21 = vstv %s7088_s18  ;;  %v1254_v36 = vmul.f32 %v7101_v3, %v1246_v35  ;;  %v7103_v26 = vmov %v7092_v11  ;;  %s7106_s1 = sld [smem:[#allocation96_spill]] }
 0x350   :  { %v1273_v54 = vadd.f32 %v1271_v24, %v7097_v21  ;;  %v7099_v39 = vstv %s7089_s19  ;;  %v1272_v24 = vmul.f32 %v7103_v26, %v1246_v35  ;;  %v7104_v21 = vstv %s7083_s12  ;;  %s7114_s7 = sld [smem:[#allocation97_spill]] }
 0x351   :  { %v1291_v32 = vadd.f32 %v1289_v48, %v7099_v39  ;;  %v7100_v15 = vstv %s7090_s2  ;;  %v1290_v11 = vmul.f32 %v7104_v21, %v1246_v35  ;;  %v1261_v48 = vadd.f32 %v4676_v10, %v1255_v9  ;;  %s7115_s5 = sld [smem:[#allocation98_spill]] }
 0x352   :  { %v1309_v40 = vadd.f32 %v1307_v60, %v7100_v15  ;;  %v7107_v39 = vstv %s7096_s4  ;;  %v1279_v60 = vadd.f32 %v4683_v43, %v1273_v54  ;;  %v1256_v27 = vadd.f32 %v1254_v36, %v7109_v46  ;;  %v1250_v43 = vpop.permute.xlu1 %1249  ;;  %v1326_v54 = vpop.permute.xlu0 %1325  ;;  %s7119_s21 = sld [smem:[#allocation100_spill]] }
 0x353   :  { %v1265_v53 = vmul.f32 %v7107_v39, %v1248_v47  ;;  %v7108_v15 = vstv %s7098_s25  ;;  %v7110_v23 = vstv %s7088_s18  ;;  %v7111_v26 = vstv %s7089_s19  ;;  %s7118_s19 = sld [smem:[#allocation99_spill]] }
 0x354   :  { %v1283_v5 = vmul.f32 %v7108_v15, %v1248_v47  ;;  %v1274_v3 = vadd.f32 %v1272_v24, %v7110_v23  ;;  %v1292_v50 = vadd.f32 %v1290_v11, %v7111_v26  ;;  %v7112_v21 = vstv %s7090_s2  ;;  %s7125_s25 = sld [smem:[#allocation101_spill]] }
 0x355   :  { %v1310_v38 = vadd.f32 %v1308_v13, %v7112_v21  ;;  %v1267_v30 = vadd.f32 %v1265_v53, %v1261_v48  ;;  %v1297_v10 = vadd.f32 %v4686_v51, %v1291_v32  ;;  %v7113_v9 = vstv %s7102_s0  ;;  %s7133_s0 = sld [smem:[#allocation104_spill]] }
 0x356   :  { %v1285_v35 = vadd.f32 %v1283_v5, %v1279_v60  ;;  %v1301_v39 = vmul.f32 %v7113_v9, %v1248_v47  ;;  %v1315_v46 = vadd.f32 %v4689_v34, %v1309_v40  ;;  %v7116_v36 = vstv %s7106_s1  ;;  %s7131_s1 = sld [smem:[#allocation103_spill]] }
 0x357   :  { %v1319_v23 = vmul.f32 %v7116_v36, %v1248_v47  ;;  %v1262_v11 = vadd.f32 %v4719_v28, %v1256_v27  ;;  %v7117_v24 = vstv %s7096_s4  ;;  %v1280_v51 = vadd.f32 %v4722_v1, %v1274_v3  ;;  %v1328_v3 = vpop.permute.xlu1 %1327  ;;  %s7129_s4 = sld [smem:[#allocation102_spill]] }
 0x358   :  { %v1266_v13 = vmul.f32 %v7117_v24, %v1250_v43  ;;  %v1303_v53 = vadd.f32 %v1301_v39, %v1297_v10  ;;  %v7120_v32 = vmov %v7108_v15  ;;  %v1298_v48 = vadd.f32 %v4725_v62, %v1292_v50  ;;  %v1330_v39 = vpop.permute.xlu0 %1329  ;;  %s7139_s18 = sld [smem:[#allocation105_spill]] }
 0x359   :  { %v1284_v5 = vmul.f32 %v7120_v32, %v1250_v43  ;;  %v1321_v60 = vadd.f32 %v1319_v23, %v1315_v46  ;;  %v7121_v26 = vmov %v7113_v9  ;;  %v1316_v47 = vadd.f32 %v4731_v6, %v1310_v38  ;;  %s7140_s22 = sld [smem:[#allocation106_spill]] }
 0x35a   :  { %v1268_v15 = vadd.f32 %v1266_v13, %v1262_v11  ;;  %v1302_v34 = vmul.f32 %v7121_v26, %v1250_v43  ;;  %v7122_v28 = vmov %v7116_v36  ;;  %v7123_v21 = vstv %s7114_s7  ;;  %s7142_s2 = sld [smem:[#allocation107_spill]] }
 0x35b   :  { %v1286_v27 = vadd.f32 %v1284_v5, %v1280_v51  ;;  %v1320_v40 = vmul.f32 %v7122_v28, %v1250_v43  ;;  %v1335_v10 = vmul.f32 %v7123_v21, %v1326_v54  ;;  %v7124_v9 = vstv %s7115_s5  ;;  %s7143_s12 = sld [smem:[#allocation41_spill]] }
 0x35c   :  { %v1353_v1 = vmul.f32 %v7124_v9, %v1326_v54  ;;  %v1304_v50 = vadd.f32 %v1302_v34, %v1298_v48  ;;  %v7126_v62 = vstv %s7118_s19  ;;  %v7127_v36 = vstv %s7119_s21  ;;  %s7151_s7 = sld [smem:[#allocation108_spill]] }
 0x35d   :  { %v1371_v46 = vmul.f32 %v7126_v62, %v1326_v54  ;;  %v1389_v23 = vmul.f32 %v7127_v36, %v1326_v54  ;;  %v7128_v11 = vmov %v7123_v21  ;;  %v1322_v38 = vadd.f32 %v1320_v40, %v1316_v47  ;;  %v1332_v40 = vpop.permute.xlu1 %1331  ;;  %s7153_s5 = sld [smem:[#allocation109_spill]] }
 0x35e   :  { %v1336_v24 = vmul.f32 %v7128_v11, %v1328_v3  ;;  %v1337_v6 = vadd.f32 %v1335_v10, %v1267_v30  ;;  %v1355_v43 = vadd.f32 %v1353_v1, %v1285_v35  ;;  %v7130_v13 = vmov %v7124_v9  ;;  %v1408_v30 = vpop.permute.xlu0 %1407  ;;  %s7155_s19 = sld [smem:[#allocation110_spill]] }
 0x35f   :  { %v1354_v51 = vmul.f32 %v7130_v13, %v1328_v3  ;;  %v1373_v32 = vadd.f32 %v1371_v46, %v1303_v53  ;;  %v1391_v5 = vadd.f32 %v1389_v23, %v1321_v60  ;;  %v7132_v28 = vmov %v7126_v62  ;;  %s7157_s21 = sld [smem:[#allocation52_spill]] }
 0x360   :  { %v1338_v26 = vadd.f32 %v1336_v24, %v1268_v15  ;;  %v1372_v21 = vmul.f32 %v7132_v28, %v1328_v3  ;;  %v7134_v34 = vmov %v7127_v36  ;;  %v1343_v54 = vadd.f32 %v4697_v63, %v1337_v6 }
 0x361   :  { %v1356_v48 = vadd.f32 %v1354_v51, %v1286_v27  ;;  %v1390_v9 = vmul.f32 %v7134_v34, %v1328_v3  ;;  %v7135_v62 = vstv %s7125_s25  ;;  %v1361_v53 = vadd.f32 %v4706_v4, %v1355_v43  ;;  %v1410_v13 = vpop.permute.xlu1 %1409  ;;  %s7162_s25 = sld [smem:[#allocation53_spill]] }
 0x362   :  { %v1347_v47 = vmul.f32 %v7135_v62, %v1330_v39  ;;  %v1374_v35 = vadd.f32 %v1372_v21, %v1304_v50  ;;  %v7136_v10 = vstv %s7129_s4  ;;  %v1379_v15 = vadd.f32 %v4709_v49, %v1373_v32  ;;  %v1412_v51 = vpop.permute.xlu0 %1411  ;;  %s7163_s4 = sld [smem:[#allocation54_spill]] }
 0x363   :  { %v1365_v60 = vmul.f32 %v7136_v10, %v1330_v39  ;;  %v1392_v1 = vadd.f32 %v1390_v9, %v1322_v38  ;;  %v7137_v46 = vstv %s7131_s1  ;;  %v1397_v36 = vadd.f32 %v4735_v17, %v1391_v5  ;;  %s7166_s1 = sld [smem:[#allocation56_spill]] }
 0x364   :  { %v1349_v27 = vadd.f32 %v1347_v47, %v1343_v54  ;;  %v1383_v3 = vmul.f32 %v7137_v46, %v1330_v39  ;;  %v7138_v23 = vstv %s7133_s0  ;;  %v1344_v50 = vadd.f32 %v4742_v0, %v1338_v26  ;;  %s7167_s0 = sld [smem:[#allocation57_spill]] }
 0x365   :  { %v1367_v63 = vadd.f32 %v1365_v60, %v1361_v53  ;;  %v1401_v11 = vmul.f32 %v7138_v23, %v1330_v39  ;;  %v7141_v4 = vmov %v7135_v62  ;;  %v1362_v49 = vadd.f32 %v4752_v41, %v1356_v48 }
 0x366   :  { %v1348_v24 = vmul.f32 %v7141_v4, %v1332_v40  ;;  %v1385_v6 = vadd.f32 %v1383_v3, %v1379_v15  ;;  %v7144_v38 = vmov %v7136_v10  ;;  %v1380_v17 = vadd.f32 %v4755_v42, %v1374_v35  ;;  %v1414_v3 = vpop.permute.xlu1 %1413 }
 0x367   :  { %v1366_v43 = vmul.f32 %v7144_v38, %v1332_v40  ;;  %v1403_v32 = vadd.f32 %v1401_v11, %v1397_v36  ;;  %v7145_v5 = vmov %v7137_v46  ;;  %v1398_v0 = vadd.f32 %v4758_v52, %v1392_v1  ;;  %v1490_v36 = vpop.permute.xlu0 %1489 }
 0x368   :  { %v1350_v39 = vadd.f32 %v1348_v24, %v1344_v50  ;;  %v1384_v28 = vmul.f32 %v7145_v5, %v1332_v40  ;;  %v7146_v21 = vmov %v7138_v23  ;;  %v7147_v9 = vstv %s7139_s18  ;;  %s7173_s18 = sld [smem:[#allocation111_spill]] }
 0x369   :  { %v1368_v26 = vadd.f32 %v1366_v43, %v1362_v49  ;;  %v1402_v34 = vmul.f32 %v7146_v21, %v1332_v40  ;;  %v1417_v41 = vmul.f32 %v7147_v9, %v1408_v30  ;;  %v7148_v48 = vstv %s7140_s22  ;;  %s7177_s22 = sld [smem:[#allocation112_spill]] }
 0x36a   :  { %v1435_v54 = vmul.f32 %v7148_v48, %v1408_v30  ;;  %v1386_v62 = vadd.f32 %v1384_v28, %v1380_v17  ;;  %v7149_v42 = vstv %s7142_s2  ;;  %v7150_v35 = vstv %s7143_s12  ;;  %s7179_s2 = sld [smem:[#allocation113_spill]] }
 0x36b   :  { %v1453_v47 = vmul.f32 %v7149_v42, %v1408_v30  ;;  %v1471_v53 = vmul.f32 %v7150_v35, %v1408_v30  ;;  %v7152_v10 = vmov %v7147_v9  ;;  %v1404_v15 = vadd.f32 %v1402_v34, %v1398_v0  ;;  %v1492_v34 = vpop.permute.xlu1 %1491  ;;  %s7181_s12 = sld [smem:[#allocation114_spill]] }
 0x36c   :  { %v1418_v60 = vmul.f32 %v7152_v10, %v1410_v13  ;;  %v1419_v52 = vadd.f32 %v1417_v41, %v1349_v27  ;;  %v1437_v1 = vadd.f32 %v1435_v54, %v1367_v63  ;;  %v7154_v46 = vmov %v7148_v48 }
 0x36d   :  { %v1436_v40 = vmul.f32 %v7154_v46, %v1410_v13  ;;  %v1455_v23 = vadd.f32 %v1453_v47, %v1385_v6  ;;  %v1473_v11 = vadd.f32 %v1471_v53, %v1403_v32  ;;  %v7156_v4 = vmov %v7149_v42 }
 0x36e   :  { %v1420_v50 = vadd.f32 %v1418_v60, %v1350_v39  ;;  %v1454_v24 = vmul.f32 %v7156_v4, %v1410_v13  ;;  %v7158_v38 = vmov %v7150_v35  ;;  %v1425_v43 = vadd.f32 %v4767_v61, %v1419_v52  ;;  %v1494_v61 = vpop.permute.xlu0 %1493 }
 0x36f   :  { %v1438_v49 = vadd.f32 %v1436_v40, %v1368_v26  ;;  %v1472_v30 = vmul.f32 %v7158_v38, %v1410_v13  ;;  %v7159_v17 = vstv %s7151_s7  ;;  %v1443_v5 = vadd.f32 %v4770_v55, %v1437_v1  ;;  %s7187_s7 = sld [smem:[#allocation115_spill]] }
 0x370   :  { %v1429_v27 = vmul.f32 %v7159_v17, %v1412_v51  ;;  %v1456_v63 = vadd.f32 %v1454_v24, %v1386_v62  ;;  %v7160_v28 = vstv %s7153_s5  ;;  %v1461_v6 = vadd.f32 %v4777_v44, %v1455_v23  ;;  %s7188_s5 = sld [smem:[#allocation116_spill]] }
 0x371   :  { %v1447_v0 = vmul.f32 %v7160_v28, %v1412_v51  ;;  %v1474_v32 = vadd.f32 %v1472_v30, %v1404_v15  ;;  %v7161_v21 = vstv %s7155_s19  ;;  %v1479_v13 = vadd.f32 %v4780_v58, %v1473_v11  ;;  %v1496_v11 = vpop.permute.xlu1 %1495  ;;  %s7190_s19 = sld [smem:[#allocation32_spill]] }
 0x372   :  { %v1431_v39 = vadd.f32 %v1429_v27, %v1425_v43  ;;  %v1465_v26 = vmul.f32 %v7161_v21, %v1412_v51  ;;  %v7164_v41 = vstv %s7157_s21  ;;  %v1426_v55 = vadd.f32 %v4783_v37, %v1420_v50  ;;  %v1572_v50 = vpop.permute.xlu0 %1571  ;;  %s7191_s21 = sld [smem:[#allocation42_spill]] }
 0x373   :  { %v1449_v9 = vadd.f32 %v1447_v0, %v1443_v5  ;;  %v1483_v48 = vmul.f32 %v7164_v41, %v1412_v51  ;;  %v7165_v54 = vmov %v7159_v17  ;;  %v1444_v42 = vadd.f32 %v4790_v8, %v1438_v49 }
 0x374   :  { %v1430_v62 = vmul.f32 %v7165_v54, %v1414_v3  ;;  %v1467_v44 = vadd.f32 %v1465_v26, %v1461_v6  ;;  %v7168_v47 = vmov %v7160_v28  ;;  %v1462_v35 = vadd.f32 %v4793_v16, %v1456_v63 }
 0x375   :  { %v1448_v58 = vmul.f32 %v7168_v47, %v1414_v3  ;;  %v1485_v53 = vadd.f32 %v1483_v48, %v1479_v13  ;;  %v7169_v60 = vmov %v7161_v21  ;;  %v1480_v51 = vadd.f32 %v4796_v57, %v1474_v32 }
 0x376   :  { %v1432_v10 = vadd.f32 %v1430_v62, %v1426_v55  ;;  %v1466_v15 = vmul.f32 %v7169_v60, %v1414_v3  ;;  %v7170_v52 = vmov %v7164_v41  ;;  %v7171_v46 = vstv %s7162_s25  ;;  %v1574_v55 = vpop.permute.xlu1 %1573  ;;  %s7199_s25 = sld [smem:[#allocation47_spill]] }
 0x377   :  { %v1450_v37 = vadd.f32 %v1448_v58, %v1444_v42  ;;  %v1484_v1 = vmul.f32 %v7170_v52, %v1414_v3  ;;  %v1499_v40 = vmul.f32 %v7171_v46, %v1490_v36  ;;  %v7172_v23 = vstv %s7163_s4  ;;  %s7201_s4 = sld [smem:[#allocation20_spill]] }
 0x378   :  { %v1517_v8 = vmul.f32 %v7172_v23, %v1490_v36  ;;  %v1468_v16 = vadd.f32 %v1466_v15, %v1462_v35  ;;  %v7174_v4 = vstv %s7166_s1  ;;  %v7175_v49 = vstv %s7167_s0  ;;  %s7203_s1 = sld [smem:[#allocation21_spill]] }
 0x379   :  { %v1535_v24 = vmul.f32 %v7174_v4, %v1490_v36  ;;  %v1553_v38 = vmul.f32 %v7175_v49, %v1490_v36  ;;  %v7176_v30 = vmov %v7171_v46  ;;  %v1486_v57 = vadd.f32 %v1484_v1, %v1480_v51  ;;  %s7205_s0 = sld [smem:[#allocation23_spill]] }
 0x37a   :  { %v1500_v43 = vmul.f32 %v7176_v30, %v1492_v34  ;;  %v1501_v17 = vadd.f32 %v1499_v40, %v1431_v39  ;;  %v1519_v3 = vadd.f32 %v1517_v8, %v1449_v9  ;;  %v7178_v27 = vmov %v7172_v23  ;;  %v1576_v39 = vpop.permute.xlu0 %1575  ;;  %v1578_v46 = vpop.permute.xlu1 %1577 }
 0x37b   :  { %v1518_v63 = vmul.f32 %v7178_v27, %v1492_v34  ;;  %v1537_v5 = vadd.f32 %v1535_v24, %v1467_v44  ;;  %v1555_v28 = vadd.f32 %v1553_v38, %v1485_v53  ;;  %v7180_v6 = vmov %v7174_v4 }
 0x37c   :  { %v1502_v0 = vadd.f32 %v1500_v43, %v1432_v10  ;;  %v1536_v32 = vmul.f32 %v7180_v6, %v1492_v34  ;;  %v7182_v26 = vmov %v7175_v49  ;;  %v1507_v36 = vadd.f32 %v4804_v7, %v1501_v17 }
 0x37d   :  { %v1520_v21 = vadd.f32 %v1518_v63, %v1450_v37  ;;  %v1554_v13 = vmul.f32 %v7182_v26, %v1492_v34  ;;  %v7183_v41 = vstv %s7173_s18  ;;  %v1525_v54 = vadd.f32 %v4807_v12, %v1519_v3  ;;  %s7210_s18 = sld [smem:[#allocation24_spill]] }
 0x37e   :  { %v1511_v48 = vmul.f32 %v7183_v41, %v1494_v61  ;;  %v1538_v9 = vadd.f32 %v1536_v32, %v1468_v16  ;;  %v7184_v62 = vstv %s7177_s22  ;;  %v1543_v42 = vadd.f32 %v4818_v25, %v1537_v5  ;;  %v1654_v40 = vpop.permute.xlu0 %1653  ;;  %v1656_v32 = vpop.permute.xlu1 %1655  ;;  %s7211_s22 = sld [smem:[#allocation29_spill]] }
 0x37f   :  { %v1529_v44 = vmul.f32 %v7184_v62, %v1494_v61  ;;  %v1556_v47 = vadd.f32 %v1554_v13, %v1486_v57  ;;  %v7185_v35 = vstv %s7179_s2  ;;  %v1561_v53 = vadd.f32 %v4836_v45, %v1555_v28  ;;  %s7214_s2 = sld [smem:[#allocation30_spill]] }
 0x380   :  { %v1513_v58 = vadd.f32 %v1511_v48, %v1507_v36  ;;  %v1547_v34 = vmul.f32 %v7185_v35, %v1494_v61  ;;  %v7186_v10 = vstv %s7181_s12  ;;  %v1508_v15 = vadd.f32 %v4821_v31, %v1502_v0  ;;  %s7215_s12 = sld [smem:[#allocation31_spill]] }
 0x381   :  { %v1531_v7 = vadd.f32 %v1529_v44, %v1525_v54  ;;  %v1565_v60 = vmul.f32 %v7186_v10, %v1494_v61  ;;  %v7189_v12 = vmov %v7183_v41  ;;  %v1526_v25 = vadd.f32 %v4828_v19, %v1520_v21 }
 0x382   :  { %v1512_v51 = vmul.f32 %v7189_v12, %v1496_v11  ;;  %v1549_v37 = vadd.f32 %v1547_v34, %v1543_v42  ;;  %v7192_v52 = vmov %v7184_v62  ;;  %v1544_v45 = vadd.f32 %v4839_v18, %v1538_v9  ;;  %v5434_v21 = vpop.permute.xlu0 %1657  ;;  %v1660_v12 = vpop.permute.xlu1 %1659 }
 0x383   :  { %v1530_v1 = vmul.f32 %v7192_v52, %v1496_v11  ;;  %v1567_v23 = vadd.f32 %v1565_v60, %v1561_v53  ;;  %v7193_v8 = vmov %v7185_v35  ;;  %v1562_v31 = vadd.f32 %v4842_v33, %v1556_v47 }
 0x384   :  { %v1514_v61 = vadd.f32 %v1512_v51, %v1508_v15  ;;  %v1548_v16 = vmul.f32 %v7193_v8, %v1496_v11  ;;  %v7194_v24 = vmov %v7186_v10  ;;  %v7195_v38 = vstv %s7187_s7  ;;  %s7223_s7 = sld [smem:[#allocation51_spill]] }
 0x385   :  { %v1532_v4 = vadd.f32 %v1530_v1, %v1526_v25  ;;  %v1566_v49 = vmul.f32 %v7194_v24, %v1496_v11  ;;  %v1581_v19 = vmul.f32 %v7195_v38, %v1572_v50  ;;  %v7196_v30 = vstv %s7188_s5  ;;  %s7226_s5 = sld [smem:[#allocation25_spill]] }
 0x386   :  { %v1599_v43 = vmul.f32 %v7196_v30, %v1572_v50  ;;  %v1550_v57 = vadd.f32 %v1548_v16, %v1544_v45  ;;  %v7197_v18 = vstv %s7190_s19  ;;  %v7198_v3 = vstv %s7191_s21  ;;  %s7228_s19 = sld [smem:[#allocation28_spill]] }
 0x387   :  { %v1617_v17 = vmul.f32 %v7197_v18, %v1572_v50  ;;  %v1635_v27 = vmul.f32 %v7198_v3, %v1572_v50  ;;  %v7200_v63 = vmov %v7195_v38  ;;  %v1568_v28 = vadd.f32 %v1566_v49, %v1562_v31  ;;  %s7230_s21 = sld [smem:[#allocation33_spill]] }
 0x388   :  { %v1582_v5 = vmul.f32 %v7200_v63, %v1574_v55  ;;  %v1583_v33 = vadd.f32 %v1581_v19, %v1513_v58  ;;  %v1601_v0 = vadd.f32 %v1599_v43, %v1531_v7  ;;  %v7202_v6 = vmov %v7196_v30 }
 0x389   :  { %v1600_v11 = vmul.f32 %v7202_v6, %v1574_v55  ;;  %v1619_v26 = vadd.f32 %v1617_v17, %v1549_v37  ;;  %v1637_v13 = vadd.f32 %v1635_v27, %v1567_v23  ;;  %v7204_v41 = vmov %v7197_v18 }
 0x38a   :  { %v1584_v36 = vadd.f32 %v1582_v5, %v1514_v61  ;;  %v1618_v48 = vmul.f32 %v7204_v41, %v1574_v55  ;;  %v7206_v50 = vmov %v7198_v3  ;;  %v1589_v62 = vadd.f32 %v4851_v2, %v1583_v33  ;;  %v5450_v2 = vpop.permute.xlu0 %1735 }
 0x38b   :  { %v1602_v9 = vadd.f32 %v1600_v11, %v1532_v4  ;;  %v1636_v54 = vmul.f32 %v7206_v50, %v1574_v55  ;;  %v7207_v44 = vstv %s7199_s25  ;;  %v1607_v58 = vadd.f32 %v4861_v59, %v1601_v0  ;;  %s7239_s25 = sld [smem:[#allocation38_spill]] }
 0x38c   :  { %v1593_v42 = vmul.f32 %v7207_v44, %v1576_v39  ;;  %v1620_v47 = vadd.f32 %v1618_v48, %v1550_v57  ;;  %v7208_v35 = vstv %s7201_s4  ;;  %v1625_v53 = vadd.f32 %v4864_v56, %v1619_v26  ;;  %s7241_s4 = sld [smem:[#allocation43_spill]] }
 0x38d   :  { %v1611_v34 = vmul.f32 %v7208_v35, %v1576_v39  ;;  %v1638_v7 = vadd.f32 %v1636_v54, %v1568_v28  ;;  %v7209_v60 = vstv %s7203_s1  ;;  %v1643_v55 = vadd.f32 %v4882_v29, %v1637_v13  ;;  %v7232_v54 = vld [vmem:[#allocation126_spill] sm:$0xff]  ;;  %s7244_s1 = sld [smem:[#allocation44_spill]] }
 0x38e   :  { %v1595_v10 = vadd.f32 %v1593_v42, %v1589_v62  ;;  %v1629_v15 = vmul.f32 %v7209_v60, %v1576_v39  ;;  %v7212_v37 = vstv %s7205_s0  ;;  %v1590_v25 = vadd.f32 %v4871_v22, %v1584_v36  ;;  %v5476_v28 = vpop.permute.xlu0 %1739  ;;  %s7245_s0 = sld [smem:[#allocation45_spill]] }
 0x38f   :  { %v1613_v51 = vadd.f32 %v1611_v34, %v1607_v58  ;;  %v1647_v59 = vmul.f32 %v7212_v37, %v1576_v39  ;;  %v7213_v52 = vmov %v7207_v44  ;;  %v1608_v45 = vadd.f32 %v4874_v20, %v1602_v9  ;;  %v7218_v39 = vld [vmem:[#allocation117_spill] sm:$0xff]  ;;  %v1738_v20 = vpop.permute.xlu1 %1737 }
 0x390   :  { %v1594_v56 = vmul.f32 %v7213_v52, %v1578_v46  ;;  %v1631_v1 = vadd.f32 %v1629_v15, %v1625_v53  ;;  %v7216_v29 = vmov %v7208_v35  ;;  %v1626_v61 = vadd.f32 %v4885_v14, %v1620_v47  ;;  %v7234_v35 = vld [vmem:[#allocation127_spill] sm:$0xff] }
 0x391   :  { %v1612_v23 = vmul.f32 %v7216_v29, %v1578_v46  ;;  %v1649_v8 = vadd.f32 %v1647_v59, %v1643_v55  ;;  %v7217_v31 = vmov %v7209_v60  ;;  %v1644_v24 = vadd.f32 %v7218_v39, %v1638_v7 }
 0x392   :  { %v1596_v16 = vadd.f32 %v1594_v56, %v1590_v25  ;;  %v1630_v4 = vmul.f32 %v7217_v31, %v1578_v46  ;;  %v7219_v49 = vmov %v7212_v37  ;;  %v7220_v19 = vstv %s7210_s18  ;;  %v7238_v37 = vld [vmem:[#allocation129_spill] sm:$0xff]  ;;  %s7255_s18 = sld [smem:[#allocation58_spill]] }
 0x393   :  { %v1614_v22 = vadd.f32 %v1612_v23, %v1608_v45  ;;  %v1648_v38 = vmul.f32 %v7219_v49, %v1578_v46  ;;  %v1663_v30 = vmul.f32 %v7220_v19, %v1654_v40  ;;  %v7221_v43 = vstv %s7211_s22  ;;  %v5488_v47 = vpop.permute.xlu1 %1741  ;;  %s7258_s22 = sld [smem:[#allocation59_spill]] }
 0x394   :  { %v1681_v57 = vmul.f32 %v7221_v43, %v1654_v40  ;;  %v1632_v18 = vadd.f32 %v1630_v4, %v1626_v61  ;;  %v7222_v17 = vstv %s7214_s2  ;;  %v7224_v3 = vstv %s7215_s12  ;;  %v1818_v61 = vpop.permute.xlu0 %1817  ;;  %s7260_s2 = sld [smem:[#allocation22_spill]] }
 0x395   :  { %v1699_v14 = vmul.f32 %v7222_v17, %v1654_v40  ;;  %v1717_v27 = vmul.f32 %v7224_v3, %v1654_v40  ;;  %v7225_v63 = vmov %v7220_v19  ;;  %v1650_v33 = vadd.f32 %v1648_v38, %v1644_v24  ;;  %v7248_v24 = vld [vmem:[#allocation132_spill] sm:$0xff]  ;;  %s7262_s12 = sld [smem:[#allocation48_spill]] }
 0x396   :  { %v1664_v5 = vmul.f32 %v7225_v63, %v1656_v32  ;;  %v1665_v46 = vadd.f32 %v1663_v30, %v1595_v10  ;;  %v1683_v0 = vadd.f32 %v1681_v57, %v1613_v51  ;;  %v7227_v6 = vmov %v7221_v43  ;;  %v7236_v10 = vld [vmem:[#allocation128_spill] sm:$0xff]  ;;  %v7250_v30 = vld [vmem:[#allocation133_spill] sm:$0xff] }
 0x397   :  { %v1682_v11 = vmul.f32 %v7227_v6, %v1656_v32  ;;  %v1701_v26 = vadd.f32 %v1699_v14, %v1631_v1  ;;  %v1719_v13 = vadd.f32 %v1717_v27, %v1649_v8  ;;  %v7229_v41 = vmov %v7222_v17  ;;  %v7242_v1 = vld [vmem:[#allocation130_spill] sm:$0xff] }
 0x398   :  { %v1666_v36 = vadd.f32 %v1664_v5, %v1596_v16  ;;  %v1700_v48 = vmul.f32 %v7229_v41, %v1656_v32  ;;  %v7231_v50 = vmov %v7224_v3  ;;  %v1671_v62 = vadd.f32 %v7232_v54, %v1665_v46  ;;  %v7246_v16 = vld [vmem:[#allocation131_spill] sm:$0xff]  ;;  %v1820_v5 = vpop.permute.xlu1 %1819 }
 0x399   :  { %v1684_v9 = vadd.f32 %v1682_v11, %v1614_v22  ;;  %v1718_v40 = vmul.f32 %v7231_v50, %v1656_v32  ;;  %v7233_v44 = vstv %s7223_s7  ;;  %v1689_v34 = vadd.f32 %v7234_v35, %v1683_v0  ;;  %s7272_s7 = sld [smem:[#allocation50_spill]] }
 0x39a   :  { %v1675_v42 = vmul.f32 %v7233_v44, %v5434_v21  ;;  %v1702_v58 = vadd.f32 %v1700_v48, %v1632_v18  ;;  %v7235_v53 = vstv %s7226_s5  ;;  %v1707_v60 = vadd.f32 %v7236_v10, %v1701_v26  ;;  %s7275_s5 = sld [smem:[#allocation26_spill]] }
 0x39b   :  { %v1693_v7 = vmul.f32 %v7235_v53, %v5434_v21  ;;  %v1720_v15 = vadd.f32 %v1718_v40, %v1650_v33  ;;  %v7237_v32 = vstv %s7228_s19  ;;  %v1725_v59 = vadd.f32 %v7238_v37, %v1719_v13  ;;  %v7268_v37 = vld [vmem:[#allocation144_spill] sm:$0xff]  ;;  %s7276_s19 = sld [smem:[#allocation27_spill]] }
 0x39c   :  { %v1677_v55 = vadd.f32 %v1675_v42, %v1671_v62  ;;  %v1711_v51 = vmul.f32 %v7237_v32, %v5434_v21  ;;  %v7240_v52 = vstv %s7230_s21  ;;  %v1672_v45 = vadd.f32 %v7242_v1, %v1666_v36  ;;  %v1822_v42 = vpop.permute.xlu0 %1821  ;;  %v7270_v1 = vld [vmem:[#allocation145_spill] sm:$0xff]  ;;  %s7286_s21 = sld [smem:[#allocation34_spill]] }
 0x39d   :  { %v1695_v25 = vadd.f32 %v1693_v7, %v1689_v34  ;;  %v1729_v56 = vmul.f32 %v7240_v52, %v5434_v21  ;;  %v7243_v29 = vmov %v7233_v44  ;;  %v1690_v31 = vadd.f32 %v7246_v16, %v1684_v9  ;;  %v7264_v34 = vld [vmem:[#allocation142_spill] sm:$0xff] }
 0x39e   :  { %v1676_v23 = vmul.f32 %v7243_v29, %v1660_v12  ;;  %v1713_v8 = vadd.f32 %v1711_v51, %v1707_v60  ;;  %v7247_v4 = vmov %v7235_v53  ;;  %v1708_v22 = vadd.f32 %v7248_v24, %v1702_v58  ;;  %v1824_v29 = vpop.permute.xlu1 %1823 }
 0x39f   :  { %v1694_v39 = vmul.f32 %v7247_v4, %v1660_v12  ;;  %v1731_v49 = vadd.f32 %v1729_v56, %v1725_v59  ;;  %v7249_v19 = vmov %v7237_v32  ;;  %v1726_v43 = vadd.f32 %v7250_v30, %v1720_v15  ;;  %v7266_v15 = vld [vmem:[#allocation143_spill] sm:$0xff]  ;;  %v7279_v30 = vld [vmem:[#allocation148_spill] sm:$0xff] }
 0x3a0   :  { %v1678_v38 = vadd.f32 %v1676_v23, %v1672_v45  ;;  %v1712_v21 = vmul.f32 %v7249_v19, %v1660_v12  ;;  %v7251_v18 = vmov %v7240_v52  ;;  %v7252_v14 = vstv %s7239_s25  ;;  %s7289_s25 = sld [smem:[#allocation46_spill]] }
 0x3a1   :  { %v1696_v57 = vadd.f32 %v1694_v39, %v1690_v31  ;;  %v1730_v17 = vmul.f32 %v7251_v18, %v1660_v12  ;;  %v1745_v3 = vmul.f32 %v7252_v14, %v5450_v2  ;;  %v7253_v27 = vstv %s7241_s4  ;;  %v7273_v31 = vld [vmem:[#allocation146_spill] sm:$0xff]  ;;  %s7291_s4 = sld [smem:[#allocation39_spill]] }
 0x3a2   :  { %v1763_v63 = vmul.f32 %v7253_v27, %v5450_v2  ;;  %v1714_v33 = vadd.f32 %v1712_v21, %v1708_v22  ;;  %v7254_v46 = vstv %s7244_s1  ;;  %v7256_v6 = vstv %s7245_s0  ;;  %s7293_s1 = sld [smem:[#allocation40_spill]] }
 0x3a3   :  { %v1781_v0 = vmul.f32 %v7254_v46, %v5450_v2  ;;  %v1799_v11 = vmul.f32 %v7256_v6, %v5450_v2  ;;  %v7257_v26 = vmov %v7252_v14  ;;  %v1732_v12 = vadd.f32 %v1730_v17, %v1726_v43  ;;  %v7281_v14 = vld [vmem:[#allocation149_spill] sm:$0xff]  ;;  %s7304_s0 = sld [smem:[#allocation35_spill]] }
 0x3a4   :  { %v1746_v13 = vmul.f32 %v7257_v26, %v1738_v20  ;;  %v1747_v36 = vadd.f32 %v1745_v3, %v1677_v55  ;;  %v1765_v41 = vadd.f32 %v1763_v63, %v1695_v25  ;;  %v7259_v48 = vmov %v7253_v27  ;;  %v1900_v27 = vpop.permute.xlu0 %1899 }
 0x3a5   :  { %v1764_v9 = vmul.f32 %v7259_v48, %v1738_v20  ;;  %v1783_v50 = vadd.f32 %v1781_v0, %v1713_v8  ;;  %v1801_v40 = vadd.f32 %v1799_v11, %v1731_v49  ;;  %v7261_v62 = vmov %v7254_v46  ;;  %v7277_v49 = vld [vmem:[#allocation147_spill] sm:$0xff] }
 0x3a6   :  { %v1748_v54 = vadd.f32 %v1746_v13, %v1678_v38  ;;  %v1782_v44 = vmul.f32 %v7261_v62, %v1738_v20  ;;  %v7263_v35 = vmov %v7256_v6  ;;  %v1753_v53 = vadd.f32 %v7264_v34, %v1747_v36 }
 0x3a7   :  { %v1766_v58 = vadd.f32 %v1764_v9, %v1696_v57  ;;  %v1800_v2 = vmul.f32 %v7263_v35, %v1738_v20  ;;  %v7265_v7 = vstv %s7255_s18  ;;  %v1771_v55 = vadd.f32 %v7266_v15, %v1765_v41  ;;  %v7295_v15 = vld [vmem:[#allocation158_spill] sm:$0xff]  ;;  %s7307_s18 = sld [smem:[#allocation36_spill]] }
 0x3a8   :  { %v1757_v10 = vmul.f32 %v7265_v7, %v5476_v28  ;;  %v1784_v60 = vadd.f32 %v1782_v44, %v1714_v33  ;;  %v7267_v32 = vstv %s7258_s22  ;;  %v1789_v59 = vadd.f32 %v7268_v37, %v1783_v50  ;;  %s7308_s22 = sld [smem:[#allocation37_spill]] }
 0x3a9   :  { %v1775_v51 = vmul.f32 %v7267_v32, %v5476_v28  ;;  %v1802_v25 = vadd.f32 %v1800_v2, %v1732_v12  ;;  %v7269_v56 = vstv %s7260_s2  ;;  %v1807_v45 = vadd.f32 %v7270_v1, %v1801_v40  ;;  %s7318_s2 = sld [smem:[#allocation64_spill]] }
 0x3aa   :  { %v1759_v52 = vadd.f32 %v1757_v10, %v1753_v53  ;;  %v1793_v20 = vmul.f32 %v7269_v56, %v5476_v28  ;;  %v7271_v8 = vstv %s7262_s12  ;;  %v1754_v4 = vadd.f32 %v7273_v31, %v1748_v54  ;;  %s7322_s12 = sld [smem:[#allocation65_spill]] }
 0x3ab   :  { %v1777_v23 = vadd.f32 %v1775_v51, %v1771_v55  ;;  %v1811_v16 = vmul.f32 %v7271_v8, %v5476_v28  ;;  %v7274_v39 = vmov %v7265_v7  ;;  %v1772_v38 = vadd.f32 %v7277_v49, %v1766_v58  ;;  %v7305_v49 = vld [vmem:[#allocation162_spill] sm:$0xff] }
 0x3ac   :  { %v1758_v24 = vmul.f32 %v7274_v39, %v5488_v47  ;;  %v1795_v22 = vadd.f32 %v1793_v20, %v1789_v59  ;;  %v7278_v19 = vmov %v7267_v32  ;;  %v1790_v43 = vadd.f32 %v7279_v30, %v1784_v60  ;;  %v7297_v59 = vld [vmem:[#allocation159_spill] sm:$0xff]  ;;  %v7299_v20 = vld [vmem:[#allocation160_spill] sm:$0xff] }
 0x3ad   :  { %v1776_v21 = vmul.f32 %v7278_v19, %v5488_v47  ;;  %v1813_v57 = vadd.f32 %v1811_v16, %v1807_v45  ;;  %v7280_v28 = vmov %v7269_v56  ;;  %v1808_v3 = vadd.f32 %v7281_v14, %v1802_v25  ;;  %v1904_v45 = vpop.permute.xlu0 %1903 }
 0x3ae   :  { %v1760_v18 = vadd.f32 %v1758_v24, %v1754_v4  ;;  %v1794_v17 = vmul.f32 %v7280_v28, %v5488_v47  ;;  %v7282_v33 = vmov %v7271_v8  ;;  %v7283_v0 = vstv %s7055_s13  ;;  %v7301_v4 = vld [vmem:[#allocation161_spill] sm:$0xff]  ;;  %s7302_s13 = sld [smem:[#allocation55_spill]] }
 0x3af   :  { %v1778_v63 = vadd.f32 %v1776_v21, %v1772_v38  ;;  %v1812_v46 = vmul.f32 %v7282_v33, %v5488_v47  ;;  %v1827_v6 = vmul.f32 %v7283_v0, %v1818_v61  ;;  %v7284_v11 = vstv %s7272_s7  ;;  %v1902_v47 = vpop.permute.xlu1 %1901  ;;  %s7324_s7 = sld [smem:[#allocation66_spill]] }
 0x3b0   :  { %v1845_v26 = vmul.f32 %v7284_v11, %v1818_v61  ;;  %v1796_v13 = vadd.f32 %v1794_v17, %v1790_v43  ;;  %v7285_v12 = vstv %s7275_s5  ;;  %v7287_v41 = vstv %s7276_s19  ;;  %v7309_v43 = vld [vmem:[#allocation163_spill] sm:$0xff]  ;;  %v7311_v17 = vld [vmem:[#allocation164_spill] sm:$0xff]  ;;  %s7333_s5 = sld [smem:[#allocation67_spill]] }
 0x3b1   :  { %v1863_v36 = vmul.f32 %v7285_v12, %v1818_v61  ;;  %v1881_v48 = vmul.f32 %v7287_v41, %v1818_v61  ;;  %v7288_v9 = vmov %v7283_v0  ;;  %v1814_v40 = vadd.f32 %v1812_v46, %v1808_v3  ;;  %v7313_v0 = vld [vmem:[#allocation165_spill] sm:$0xff]  ;;  %s7337_s19 = sld [smem:[#allocation62_spill]] }
 0x3b2   :  { %v1828_v50 = vmul.f32 %v7288_v9, %v1820_v5  ;;  %v1829_v54 = vadd.f32 %v1827_v6, %v1759_v52  ;;  %v1847_v62 = vadd.f32 %v1845_v26, %v1777_v23  ;;  %v7290_v44 = vmov %v7284_v11 }
 0x3b3   :  { %v1846_v58 = vmul.f32 %v7290_v44, %v1820_v5  ;;  %v1865_v35 = vadd.f32 %v1863_v36, %v1795_v22  ;;  %v1883_v2 = vadd.f32 %v1881_v48, %v1813_v57  ;;  %v7292_v53 = vmov %v7285_v12  ;;  %v1906_v3 = vpop.permute.xlu1 %1905 }
 0x3b4   :  { %v1830_v34 = vadd.f32 %v1828_v50, %v1760_v18  ;;  %v1864_v7 = vmul.f32 %v7292_v53, %v1820_v5  ;;  %v7294_v60 = vmov %v7287_v41  ;;  %v1835_v55 = vadd.f32 %v7295_v15, %v1829_v54 }
 0x3b5   :  { %v1848_v10 = vadd.f32 %v1846_v58, %v1778_v63  ;;  %v1882_v61 = vmul.f32 %v7294_v60, %v1820_v5  ;;  %v7296_v32 = vstv %s7286_s21  ;;  %v1853_v25 = vadd.f32 %v7297_v59, %v1847_v62 }
 0x3b6   :  { %v1839_v51 = vmul.f32 %v7296_v32, %v1822_v42  ;;  %v1866_v37 = vadd.f32 %v1864_v7, %v1796_v13  ;;  %v7298_v52 = vstv %s7289_s25  ;;  %v1871_v1 = vadd.f32 %v7299_v20, %v1865_v35  ;;  %v1982_v35 = vpop.permute.xlu0 %1981 }
 0x3b7   :  { %v1857_v56 = vmul.f32 %v7298_v52, %v1822_v42  ;;  %v1884_v23 = vadd.f32 %v1882_v61, %v1814_v40  ;;  %v7300_v16 = vstv %s7291_s4  ;;  %v1889_v5 = vadd.f32 %v7301_v4, %v1883_v2 }
 0x3b8   :  { %v1841_v8 = vadd.f32 %v1839_v51, %v1835_v55  ;;  %v1875_v31 = vmul.f32 %v7300_v16, %v1822_v42  ;;  %v7303_v24 = vstv %s7293_s1  ;;  %v1836_v38 = vadd.f32 %v7305_v49, %v1830_v34  ;;  %v7332_v49 = vld [vmem:[#allocation121_spill] sm:$0xff] }
 0x3b9   :  { %v1859_v39 = vadd.f32 %v1857_v56, %v1853_v25  ;;  %v1893_v22 = vmul.f32 %v7303_v24, %v1822_v42  ;;  %v7306_v19 = vmov %v7296_v32  ;;  %v1854_v57 = vadd.f32 %v7309_v43, %v1848_v10  ;;  %v1984_v56 = vpop.permute.xlu1 %1983 }
 0x3ba   :  { %v1840_v21 = vmul.f32 %v7306_v19, %v1824_v29  ;;  %v1877_v30 = vadd.f32 %v1875_v31, %v1871_v1  ;;  %v7310_v18 = vmov %v7298_v52  ;;  %v1872_v14 = vadd.f32 %v7311_v17, %v1866_v37  ;;  %v7326_v37 = vld [vmem:[#allocation118_spill] sm:$0xff]  ;;  %v7328_v1 = vld [vmem:[#allocation119_spill] sm:$0xff]  ;;  %v7330_v31 = vld [vmem:[#allocation120_spill] sm:$0xff] }
 0x3bb   :  { %v1858_v28 = vmul.f32 %v7310_v18, %v1824_v29  ;;  %v1895_v63 = vadd.f32 %v1893_v22, %v1889_v5  ;;  %v7312_v46 = vmov %v7300_v16  ;;  %v1890_v6 = vadd.f32 %v7313_v0, %v1884_v23 }
 0x3bc   :  { %v1842_v33 = vadd.f32 %v1840_v21, %v1836_v38  ;;  %v1876_v42 = vmul.f32 %v7312_v46, %v1824_v29  ;;  %v7314_v26 = vmov %v7303_v24  ;;  %v7315_v12 = vstv %s7302_s13 }
 0x3bd   :  { %v1860_v11 = vadd.f32 %v1858_v28, %v1854_v57  ;;  %v1894_v13 = vmul.f32 %v7314_v26, %v1824_v29  ;;  %v1909_v36 = vmul.f32 %v7315_v12, %v1900_v27  ;;  %v7316_v41 = vstv %s7304_s0  ;;  %v1986_v28 = vpop.permute.xlu0 %1985 }
 0x3be   :  { %v1927_v48 = vmul.f32 %v7316_v41, %v1900_v27  ;;  %v1878_v9 = vadd.f32 %v1876_v42, %v1872_v14  ;;  %v7317_v50 = vstv %s7307_s18  ;;  %v7319_v54 = vstv %s7308_s22  ;;  %v7338_v14 = vld [vmem:[#allocation123_spill] sm:$0xff]  ;;  %v7340_v42 = vld [vmem:[#allocation124_spill] sm:$0xff] }
 0x3bf   :  { %v1945_v40 = vmul.f32 %v7317_v50, %v1900_v27  ;;  %v1963_v62 = vmul.f32 %v7319_v54, %v1900_v27  ;;  %v7320_v44 = vmov %v7315_v12  ;;  %v1896_v2 = vadd.f32 %v1894_v13, %v1890_v6  ;;  %v7342_v13 = vld [vmem:[#allocation125_spill] sm:$0xff] }
 0x3c0   :  { %v1910_v58 = vmul.f32 %v7320_v44, %v1902_v47  ;;  %v1911_v34 = vadd.f32 %v1909_v36, %v1841_v8  ;;  %v1929_v53 = vadd.f32 %v1927_v48, %v1859_v39  ;;  %v7321_v7 = vmov %v7316_v41 }
 0x3c1   :  { %v1928_v29 = vmul.f32 %v7321_v7, %v1902_v47  ;;  %v1947_v10 = vadd.f32 %v1945_v40, %v1877_v30  ;;  %v1965_v60 = vadd.f32 %v1963_v62, %v1895_v63  ;;  %v7323_v15 = vmov %v7317_v50  ;;  %v7335_v30 = vld [vmem:[#allocation122_spill] sm:$0xff]  ;;  %v1988_v62 = vpop.permute.xlu1 %1987 }
 0x3c2   :  { %v1912_v61 = vadd.f32 %v1910_v58, %v1842_v33  ;;  %v1946_v55 = vmul.f32 %v7323_v15, %v1902_v47  ;;  %v7325_v51 = vmov %v7319_v54  ;;  %v1917_v59 = vadd.f32 %v7326_v37, %v1911_v34 }
 0x3c3   :  { %v1930_v32 = vadd.f32 %v1928_v29, %v1860_v11  ;;  %v1964_v27 = vmul.f32 %v7325_v51, %v1902_v47  ;;  %v7327_v25 = vstv %s7318_s2  ;;  %v1935_v23 = vadd.f32 %v7328_v1, %v1929_v53 }
 0x3c4   :  { %v1921_v52 = vmul.f32 %v7327_v25, %v1904_v45  ;;  %v1948_v20 = vadd.f32 %v1946_v55, %v1878_v9  ;;  %v7329_v8 = vstv %s4966_s20  ;;  %v1953_v4 = vadd.f32 %v7330_v31, %v1947_v10  ;;  %s7347_s20 = sld [smem:[#allocation63_spill]]  ;;  %v7355_v31 = vld [vmem:[#allocation135_spill] sm:$0xff] }
 0x3c5   :  { %v1939_v16 = vmul.f32 %v7329_v8, %v1904_v45  ;;  %v1966_v5 = vadd.f32 %v1964_v27, %v1896_v2  ;;  %v7331_v24 = vstv %s7322_s12  ;;  %v1971_v47 = vadd.f32 %v7332_v49, %v1965_v60 }
 0x3c6   :  { %v1923_v39 = vadd.f32 %v1921_v52, %v1917_v59  ;;  %v1957_v22 = vmul.f32 %v7331_v24, %v1904_v45  ;;  %v7334_v19 = vstv %s7324_s7  ;;  %v1918_v43 = vadd.f32 %v7335_v30, %v1912_v61  ;;  %v2064_v59 = vpop.permute.xlu0 %2063 }
 0x3c7   :  { %v1941_v38 = vadd.f32 %v1939_v16, %v1935_v23  ;;  %v1975_v21 = vmul.f32 %v7334_v19, %v1904_v45  ;;  %v7336_v57 = vmov %v7327_v25  ;;  %v1936_v63 = vadd.f32 %v7338_v14, %v1930_v32 }
 0x3c8   :  { %v1922_v18 = vmul.f32 %v7336_v57, %v1906_v3  ;;  %v1959_v17 = vadd.f32 %v1957_v22, %v1953_v4  ;;  %v7339_v33 = vmov %v7329_v8  ;;  %v1954_v0 = vadd.f32 %v7340_v42, %v1948_v20  ;;  %v7353_v20 = vld [vmem:[#allocation134_spill] sm:$0xff]  ;;  %v7363_v42 = vld [vmem:[#allocation139_spill] sm:$0xff] }
 0x3c9   :  { %v1940_v46 = vmul.f32 %v7339_v33, %v1906_v3  ;;  %v1977_v6 = vadd.f32 %v1975_v21, %v1971_v47  ;;  %v7341_v26 = vmov %v7331_v24  ;;  %v1972_v12 = vadd.f32 %v7342_v13, %v1966_v5  ;;  %v7357_v24 = vld [vmem:[#allocation136_spill] sm:$0xff]  ;;  %v7359_v21 = vld [vmem:[#allocation137_spill] sm:$0xff] }
 0x3ca   :  { %v1924_v11 = vadd.f32 %v1922_v18, %v1918_v43  ;;  %v1958_v45 = vmul.f32 %v7341_v26, %v1906_v3  ;;  %v7343_v41 = vmov %v7334_v19  ;;  %v7344_v9 = vstv %s7333_s5  ;;  %v7365_v26 = vld [vmem:[#allocation140_spill] sm:$0xff] }
 0x3cb   :  { %v1942_v36 = vadd.f32 %v1940_v46, %v1936_v63  ;;  %v1976_v48 = vmul.f32 %v7343_v41, %v1906_v3  ;;  %v1991_v50 = vmul.f32 %v7344_v9, %v1982_v35  ;;  %v7345_v40 = vstv %s7071_s8  ;;  %s7375_s8 = sld [smem:[#allocation71_spill]] }
 0x3cc   :  { %v2009_v54 = vmul.f32 %v7345_v40, %v1982_v35  ;;  %v1960_v44 = vadd.f32 %v1958_v45, %v1954_v0  ;;  %v7346_v58 = vstv %s7072_s27  ;;  %v7348_v34 = vstv %s7337_s19 }
 0x3cd   :  { %v2027_v2 = vmul.f32 %v7346_v58, %v1982_v35  ;;  %v2045_v53 = vmul.f32 %v7348_v34, %v1982_v35  ;;  %v7349_v7 = vmov %v7344_v9  ;;  %v1978_v10 = vadd.f32 %v1976_v48, %v1972_v12  ;;  %v2068_v9 = vpop.permute.xlu0 %2067 }
 0x3ce   :  { %v1992_v29 = vmul.f32 %v7349_v7, %v1984_v56  ;;  %v1993_v60 = vadd.f32 %v1991_v50, %v1923_v39  ;;  %v2011_v61 = vadd.f32 %v2009_v54, %v1941_v38  ;;  %v7350_v15 = vmov %v7345_v40 }
 0x3cf   :  { %v2010_v3 = vmul.f32 %v7350_v15, %v1984_v56  ;;  %v2029_v55 = vadd.f32 %v2027_v2, %v1959_v17  ;;  %v2047_v32 = vadd.f32 %v2045_v53, %v1977_v6  ;;  %v7351_v27 = vmov %v7346_v58  ;;  %v7361_v17 = vld [vmem:[#allocation138_spill] sm:$0xff] }
 0x3d0   :  { %v1994_v51 = vadd.f32 %v1992_v29, %v1924_v11  ;;  %v2028_v37 = vmul.f32 %v7351_v27, %v1984_v56  ;;  %v7352_v52 = vmov %v7348_v34  ;;  %v1999_v1 = vadd.f32 %v7353_v20, %v1993_v60 }
 0x3d1   :  { %v2012_v25 = vadd.f32 %v2010_v3, %v1942_v36  ;;  %v2046_v35 = vmul.f32 %v7352_v52, %v1984_v56  ;;  %v7354_v23 = vstv %s7347_s20  ;;  %v2017_v4 = vadd.f32 %v7355_v31, %v2011_v61  ;;  %v2066_v56 = vpop.permute.xlu1 %2065 }
 0x3d2   :  { %v2003_v8 = vmul.f32 %v7354_v23, %v1986_v28  ;;  %v2030_v16 = vadd.f32 %v2028_v37, %v1960_v44  ;;  %v7356_v5 = vstv %s5058_s17  ;;  %v2035_v22 = vadd.f32 %v7357_v24, %v2029_v55  ;;  %s7377_s17 = sld [smem:[#allocation72_spill]] }
 0x3d3   :  { %v2021_v39 = vmul.f32 %v7356_v5, %v1986_v28  ;;  %v2048_v49 = vadd.f32 %v2046_v35, %v1978_v10  ;;  %v7358_v38 = vstv %s5070_s23  ;;  %v2053_v30 = vadd.f32 %v7359_v21, %v2047_v32 }
 0x3d4   :  { %v2005_v47 = vadd.f32 %v2003_v8, %v1999_v1  ;;  %v2039_v19 = vmul.f32 %v7358_v38, %v1986_v28  ;;  %v7360_v57 = vstv %s5076_s6  ;;  %v2000_v14 = vadd.f32 %v7361_v17, %v1994_v51  ;;  %v7379_v8 = vld [vmem:[#allocation174_spill] sm:$0xff] }
 0x3d5   :  { %v2023_v43 = vadd.f32 %v2021_v39, %v2017_v4  ;;  %v2057_v18 = vmul.f32 %v7360_v57, %v1986_v28  ;;  %v7362_v63 = vmov %v7354_v23  ;;  %v2018_v0 = vadd.f32 %v7363_v42, %v2012_v25  ;;  %v7367_v28 = vld [vmem:[#allocation141_spill] sm:$0xff]  ;;  %v7381_v39 = vld [vmem:[#allocation150_spill] sm:$0xff] }
 0x3d6   :  { %v2004_v33 = vmul.f32 %v7362_v63, %v1988_v62  ;;  %v2041_v46 = vadd.f32 %v2039_v19, %v2035_v22  ;;  %v7364_v6 = vmov %v7356_v5  ;;  %v2036_v45 = vadd.f32 %v7365_v26, %v2030_v16  ;;  %v2146_v19 = vpop.permute.xlu0 %2145 }
 0x3d7   :  { %v2022_v11 = vmul.f32 %v7364_v6, %v1988_v62  ;;  %v2059_v13 = vadd.f32 %v2057_v18, %v2053_v30  ;;  %v7366_v36 = vmov %v7358_v38  ;;  %v2054_v48 = vadd.f32 %v7367_v28, %v2048_v49  ;;  %v7385_v18 = vld [vmem:[#allocation152_spill] sm:$0xff] }
 0x3d8   :  { %v2006_v12 = vadd.f32 %v2004_v33, %v2000_v14  ;;  %v2040_v41 = vmul.f32 %v7366_v36, %v1988_v62  ;;  %v7368_v40 = vmov %v7360_v57  ;;  %v7369_v44 = vstv %s5086_s29  ;;  %v7387_v33 = vld [vmem:[#allocation153_spill] sm:$0xff]  ;;  %s7389_s29 = sld [smem:[#allocation75_spill]] }
 0x3d9   :  { %v2024_v50 = vadd.f32 %v2022_v11, %v2018_v0  ;;  %v2058_v54 = vmul.f32 %v7368_v40, %v1988_v62  ;;  %v2073_v58 = vmul.f32 %v7369_v44, %v2064_v59  ;;  %v7370_v2 = vstv %s5104_s3  ;;  %v2070_v62 = vpop.permute.xlu1 %2069  ;;  %v7390_v11 = vld [vmem:[#allocation154_spill] sm:$0xff]  ;;  %v7394_v40 = vld [vmem:[#allocation156_spill] sm:$0xff] }
 0x3da   :  { %v2091_v34 = vmul.f32 %v7370_v2, %v2064_v59  ;;  %v2042_v53 = vadd.f32 %v2040_v41, %v2036_v45  ;;  %v7371_v7 = vstv %s7076_s14  ;;  %v7372_v10 = vstv %s5116_s24 }
 0x3db   :  { %v2109_v29 = vmul.f32 %v7371_v7, %v2064_v59  ;;  %v2127_v60 = vmul.f32 %v7372_v10, %v2064_v59  ;;  %v7373_v61 = vmov %v7369_v44  ;;  %v2060_v3 = vadd.f32 %v2058_v54, %v2054_v48 }
 0x3dc   :  { %v2074_v15 = vmul.f32 %v7373_v61, %v2066_v56  ;;  %v2075_v55 = vadd.f32 %v2073_v58, %v2005_v47  ;;  %v2093_v32 = vadd.f32 %v2091_v34, %v2023_v43  ;;  %v7374_v51 = vmov %v7370_v2  ;;  %v7383_v47 = vld [vmem:[#allocation151_spill] sm:$0xff] }
 0x3dd   :  { %v2092_v27 = vmul.f32 %v7374_v51, %v2066_v56  ;;  %v2111_v37 = vadd.f32 %v2109_v29, %v2041_v46  ;;  %v2129_v25 = vadd.f32 %v2127_v60, %v2059_v13  ;;  %v7376_v35 = vmov %v7371_v7  ;;  %v2148_v41 = vpop.permute.xlu1 %2147  ;;  %v2150_v51 = vpop.permute.xlu0 %2149 }
 0x3de   :  { %v2076_v52 = vadd.f32 %v2074_v15, %v2006_v12  ;;  %v2110_v20 = vmul.f32 %v7376_v35, %v2066_v56  ;;  %v7378_v23 = vmov %v7372_v10  ;;  %v2081_v16 = vadd.f32 %v7379_v8, %v2075_v55  ;;  %v7392_v12 = vld [vmem:[#allocation155_spill] sm:$0xff] }
 0x3df   :  { %v2094_v1 = vadd.f32 %v2092_v27, %v2024_v50  ;;  %v2128_v59 = vmul.f32 %v7378_v23, %v2066_v56  ;;  %v7380_v31 = vstv %s7077_s15  ;;  %v2099_v24 = vadd.f32 %v7381_v39, %v2093_v32  ;;  %s2681_s15 = smov [#allocation14]  }
 0x3e0   :  { %v2085_v4 = vmul.f32 %v7380_v31, %v2068_v9  ;;  %v2112_v5 = vadd.f32 %v2110_v20, %v2042_v53  ;;  %v7382_v22 = vstv %s7078_s11  ;;  %v2117_v38 = vadd.f32 %v7383_v47, %v2111_v37  ;;  %s7401_s11 = sld [smem:[#allocation76_spill]]  ;;  %v7407_v47 = vld [vmem:[#allocation166_spill] sm:$0xff] }
 0x3e1   :  { %v2103_v49 = vmul.f32 %v7382_v22, %v2068_v9  ;;  %v2130_v21 = vadd.f32 %v2128_v59, %v2060_v3  ;;  %v7384_v43 = vstv %s7375_s8  ;;  %v2135_v56 = vadd.f32 %v7385_v18, %v2129_v25 }
 0x3e2   :  { %v2087_v30 = vadd.f32 %v2085_v4, %v2081_v16  ;;  %v2121_v57 = vmul.f32 %v7384_v43, %v2068_v9  ;;  %v7386_v14 = vstv %s7377_s17  ;;  %v2082_v46 = vadd.f32 %v7387_v33, %v2076_v52  ;;  %v7405_v4 = vld [vmem:[#allocation157_spill] sm:$0xff] }
 0x3e3   :  { %v2105_v17 = vadd.f32 %v2103_v49, %v2099_v24  ;;  %v2139_v63 = vmul.f32 %v7386_v14, %v2068_v9  ;;  %v7388_v42 = vmov %v7380_v31  ;;  %v2100_v26 = vadd.f32 %v7390_v11, %v2094_v1  ;;  %v2225_v33 = vld [vmem:[#allocation2 + $0x1] sm:$0xff] }
 0x3e4   :  { %v2086_v0 = vmul.f32 %v7388_v42, %v2070_v62  ;;  %v2123_v6 = vadd.f32 %v2121_v57, %v2117_v38  ;;  %v7391_v45 = vmov %v7382_v22  ;;  %v2118_v36 = vadd.f32 %v7392_v12, %v2112_v5  ;;  %v2152_v22 = vpop.permute.xlu1 %2151 }
 0x3e5   :  { %v2104_v13 = vmul.f32 %v7391_v45, %v2070_v62  ;;  %v2141_v28 = vadd.f32 %v2139_v63, %v2135_v56  ;;  %v7393_v50 = vmov %v7384_v43  ;;  %v2136_v54 = vadd.f32 %v7394_v40, %v2130_v21 }
 0x3e6   :  { %v2088_v48 = vadd.f32 %v2086_v0, %v2082_v46  ;;  %v2122_v9 = vmul.f32 %v7393_v50, %v2070_v62  ;;  %v7395_v58 = vmov %v7386_v14  ;;  %v7396_v34 = vstv %s7085_s16  ;;  %v7411_v14 = vld [vmem:[#allocation168_spill] sm:$0xff] }
 0x3e7   :  { %v2106_v44 = vadd.f32 %v2104_v13, %v2100_v26  ;;  %v2140_v2 = vmul.f32 %v7395_v58, %v2070_v62  ;;  %v2155_v53 = vmul.f32 %v7396_v34, %v2146_v19  ;;  %v7397_v7 = vstv %s7086_s30  ;;  %v2231_v13 = vld [vmem:[#allocation2 + $0x19] sm:$0xff]  ;;  %v7417_v58 = vld [vmem:[#allocation171_spill] sm:$0xff] }
 0x3e8   :  { %v2173_v29 = vmul.f32 %v7397_v7, %v2146_v19  ;;  %v2124_v10 = vadd.f32 %v2122_v9, %v2118_v36  ;;  %v7398_v60 = vstv %s5190_s9  ;;  %v7399_v15 = vstv %s7389_s29  ;;  %v2238_v9 = vld [vmem:[#allocation2 + $0x31] sm:$0xff]  ;;  %s2257_s9 = sshll.u32 %s2681_s15, 4  ;;  %s2258_s9 = int_to_ptr.vmem [resolvable:$true] %s2257_s9 }
 0x3e9   :  { %v2191_v61 = vmul.f32 %v7398_v60, %v2146_v19  ;;  %v2209_v3 = vmul.f32 %v7399_v15, %v2146_v19  ;;  %v7400_v55 = vmov %v7396_v34  ;;  %v2142_v27 = vadd.f32 %v2140_v2, %v2136_v54  ;;  %v2245_v34 = vld [vmem:[#allocation2 + $0x49] sm:$0xff]  ;;  %p2645_p7 = scmp.lt.s32.totalorder %s2258_s9, %s2258_s9 }
 0x3ea   :  { %v2156_v32 = vmul.f32 %v7400_v55, %v2148_v41  ;;  %v2157_v37 = vadd.f32 %v2155_v53, %v2087_v30  ;;  %v2175_v25 = vadd.f32 %v2173_v29, %v2105_v17  ;;  %v7402_v52 = vmov %v7397_v7  ;;  %v7409_v30 = vld [vmem:[#allocation167_spill] sm:$0xff]  ;;  %v2232_v55 = vld [vmem:[#allocation2 + $0x21] sm:$0xff] }
 0x3eb   :  { %v2174_v62 = vmul.f32 %v7402_v52, %v2148_v41  ;;  %v2193_v35 = vadd.f32 %v2191_v61, %v2123_v6  ;;  %v2211_v20 = vadd.f32 %v2209_v3, %v2141_v28  ;;  %v7403_v23 = vmov %v7398_v60  ;;  %v7413_v6 = vld [vmem:[#allocation169_spill] sm:$0xff]  ;;  %v2226_v7 = vld [vmem:[#allocation2 + $0x9] sm:$0xff]  ;;  %v7419_v61 = vld [vmem:[#allocation172_spill] sm:$0xff] }
 0x3ec   :  { %v2158_v1 = vadd.f32 %v2156_v32, %v2088_v48  ;;  %v2192_v59 = vmul.f32 %v7403_v23, %v2148_v41  ;;  %v7404_v16 = vmov %v7399_v15  ;;  %v2163_v5 = vadd.f32 %v7405_v4, %v2157_v37  ;;  %v2239_v52 = vld [vmem:[#allocation2 + $0x39] sm:$0xff] }
 0x3ed   :  { %v2176_v8 = vadd.f32 %v2174_v62, %v2106_v44  ;;  %v2210_v31 = vmul.f32 %v7404_v16, %v2148_v41  ;;  %v7406_v39 = vstv %s5202_s26  ;;  %v2181_v38 = vadd.f32 %v7407_v47, %v2175_v25  ;;  %v7415_v41 = vld [vmem:[#allocation170_spill] sm:$0xff]  ;;  %s2640_s26 = scalar_lea.vmem %s2258_s9, 1024 }
 0x3ee   :  { %v2167_v24 = vmul.f32 %v7406_v39, %v2150_v51  ;;  %v2194_v49 = vadd.f32 %v2192_v59, %v2124_v10  ;;  %v7408_v19 = vstv %s7401_s11  ;;  %v2199_v43 = vadd.f32 %v7409_v30, %v2193_v35  ;;  %v2246_v35 = vld [vmem:[#allocation2 + $0x51] sm:$0xff]  ;;  %p2641_p6 = scmp.ne.s32.totalorder %s2258_s9, %s2640_s26  ;;  %p2646_p8 = scmp.lt.s32.totalorder %s2640_s26, %s2640_s26 }
 0x3ef   :  { %v2185_v21 = vmul.f32 %v7408_v19, %v2150_v51  ;;  %v2212_v57 = vadd.f32 %v2210_v31, %v2142_v27  ;;  %v7410_v56 = vstv %s5214_s10  ;;  %v2217_v63 = vadd.f32 %v7411_v14, %v2211_v20 }
 0x3f0   :  { %v2169_v18 = vadd.f32 %v2167_v24, %v2163_v5  ;;  %v2203_v17 = vmul.f32 %v7410_v56, %v2150_v51  ;;  %v7412_v42 = vstv %s5220_s28  ;;  %v2164_v11 = vadd.f32 %v7413_v6, %v2158_v1  ;;  %p2647_p9 = por %p2646_p8, %p2645_p7 }
 0x3f1   :  { %v2187_v46 = vadd.f32 %v2185_v21, %v2181_v38  ;;  %v2221_v0 = vmul.f32 %v7412_v42, %v2150_v51  ;;  %v7414_v26 = vmov %v7406_v39  ;;  %v2182_v28 = vadd.f32 %v7415_v41, %v2176_v8 }
 0x3f2   :  { %v2168_v45 = vmul.f32 %v7414_v26, %v2152_v22  ;;  %v2205_v12 = vadd.f32 %v2203_v17, %v2199_v43  ;;  %v2227_v36 = vadd.f32 %v2225_v33, %v2169_v18  ;;  %v7416_v48 = vmov %v7408_v19  ;;  %p2648_p10 = pnand %p2647_p9, %p2641_p6 }
 0x3f3   :  { %v2186_v50 = vmul.f32 %v7416_v48, %v2152_v22  ;;  %v2223_v40 = vadd.f32 %v2221_v0, %v2217_v63  ;;  %v2233_v54 = vadd.f32 %v2231_v13, %v2187_v46  ;;  %v2200_v2 = vadd.f32 %v7417_v58, %v2194_v49 }
 0x3f4   :  { %v2170_v44 = vadd.f32 %v2168_v45, %v2164_v11  ;;  %2229 = vst [vmem:[#allocation14] sm:$0xff] %v2227_v36  ;;  %v2240_v53 = vadd.f32 %v2238_v9, %v2205_v12  ;;  %v7418_v10 = vmov %v7410_v56  ;;  %v2218_v15 = vadd.f32 %v7419_v61, %v2212_v57 }
 0x3f5   :  { %v2188_v29 = vadd.f32 %v2186_v50, %v2182_v28  ;;  %v2204_v60 = vmul.f32 %v7418_v10, %v2152_v22  ;;  %2236 = vst [vmem:[#allocation14 + $0x10] sm:$0xff] %v2233_v54  ;;  %v2247_v3 = vadd.f32 %v2245_v34, %v2223_v40  ;;  %v7420_v32 = vmov %v7412_v42 }
 0x3f6   :  { %v2222_v51 = vmul.f32 %v7420_v32, %v2152_v22  ;;  %v2228_v27 = vadd.f32 %v2226_v7, %v2170_v44  ;;  %2243 = vst [vmem:[#allocation14 + $0x20] sm:$0xff] %v2240_v53 }
 0x3f7   :  { %v2206_v37 = vadd.f32 %v2204_v60, %v2200_v2  ;;  %v2234_v25 = vadd.f32 %v2232_v55, %v2188_v29  ;;  %2250 = vst [vmem:[#allocation14 + $0x30] sm:$0xff] %v2247_v3 }
 0x3f8   :  { %v2224_v62 = vadd.f32 %v2222_v51, %v2218_v15  ;;  %2230 = vst [vmem:[#allocation14 + $0x8] sm:$0xff] %v2228_v27 }
 0x3f9   :  { %2237 = vst [vmem:[#allocation14 + $0x18] sm:$0xff] %v2234_v25  ;;  %v2241_v20 = vadd.f32 %v2239_v52, %v2206_v37 }
 0x3fa   :  { %v2248_v1 = vadd.f32 %v2246_v35, %v2224_v62 }
 0x3fb   :  { %2244 = vst [vmem:[#allocation14 + $0x28] sm:$0xff] %v2241_v20 }
 0x3fc   :  { %2251 = vst [vmem:[#allocation14 + $0x38] sm:$0xff] %v2248_v1 }
 0x3fd   :  { %2651 = shalt.err (!%p2648_p10)
}
 0x3fe   :  { %s7421_s28 = smov 8   ;;  %s7422_s30 = smov 128  }
 0x3ff   :  { %s7423_s3 = sld [smem:[#allocation175_spill]] }
 0x405   :  { %2263 = dma.vmem_to_hbm [thread:$0]  %s2258_s9, 1024, %s7423_s3, [#allocation6], %s7422_s30, %s7422_s30, %s7421_s28  }
 0x406   :  { %2668 = dma.done.wait [#allocation6], 1024  }
 0x407   :  { %2669 = vsyncadd [#allocation6], 4294966272 }
 0x408   :  { %2267 = vsyncpa [#allocation5], 1 }
 0x409   :  { %2268 = vsyncpa [#allocation6], 1 }
 0x40a   :  { %2269 = vsyncpa [#allocation7], 1 }
 0x40b   :  { %2270 = vsyncpa [#allocation8], 1 }
 0x40c   :  { %2271 = vsyncpa [#allocation12], 1 }

</bundles_post_ra>
